<compile_context>
chip_gen: v6e
topology: v6e:2x2x1
jax: 0.10.0
libtpu: 0.0.40
codegen_flags: <defaults>
</compile_context>

<pallas_src>
import jax
import jax.numpy as jnp
from jax.experimental import pallas as pl
from jax.experimental.pallas import tpu as pltpu


def _make_resnet_block_kernel(H, W, c_in, c_out, eps, has_res):
    HW = H * W
    taps = [(ky, kx) for ky in range(3) for kx in range(3)]

    def _gn_swish(x2d, gamma, beta, mgrp):
        # x2d: (H*W, C) f32.  gamma/beta: (1, C).  mgrp: (C, C) block-diagonal
        # group-average matrix (already scaled by 1/(H*W*cg)).
        s = jnp.sum(x2d, axis=0, keepdims=True)                        # (1, C)
        mean = jnp.dot(s, mgrp, preferred_element_type=jnp.float32)    # group mean per channel
        cen = x2d - mean
        ss = jnp.sum(cen * cen, axis=0, keepdims=True)                 # (1, C)
        var = jnp.dot(ss, mgrp, preferred_element_type=jnp.float32)    # centered variance
        y = cen * jax.lax.rsqrt(var + eps) * gamma + beta
        return y * jax.nn.sigmoid(y)                                   # Swish

    def _store_padded(y2d, pad_ref, c):
        # Zero only the 1-pixel halo (O(H+W)), then write the interior (bf16).
        zrow = jnp.zeros((1, W + 2, c), jnp.bfloat16)
        zcol = jnp.zeros((H + 2, 1, c), jnp.bfloat16)
        pad_ref[0:1, :, :] = zrow
        pad_ref[H + 1:H + 2, :, :] = zrow
        pad_ref[:, 0:1, :] = zcol
        pad_ref[:, W + 1:W + 2, :] = zcol
        pad_ref[1:H + 1, 1:W + 1, :] = y2d.reshape(H, W, c).astype(jnp.bfloat16)

    def _conv3x3(pad_ref, w_ref, b_ref, c):
        # 9 accumulating bf16 MXU dots on shifted views of the padded buffer
        # (f32 accumulation via preferred_element_type); no im2col staging.
        acc = None
        for t, (ky, kx) in enumerate(taps):
            lhs = pad_ref[ky:ky + H, kx:kx + W, :].reshape(HW, c)      # bf16
            d = jnp.dot(lhs, w_ref[t], preferred_element_type=jnp.float32)
            acc = d if acc is None else acc + d
        return acc + b_ref[...]                                        # (HW, c_out) f32

    def kernel(x_ref, g1_ref, be1_ref, mg1_ref, w1_ref, b1_ref,
               g2_ref, be2_ref, mg2_ref, w2_ref, b2_ref, *rest):
        if has_res:
            wr_ref, br_ref, o_ref, pad1, pad2 = rest
        else:
            o_ref, pad1, pad2 = rest

        x = x_ref[0].astype(jnp.float32)                               # (H*W, C_in)

        # ---- block1: GroupNorm -> Swish -> Conv3x3 (fully fused in VMEM) ----
        y = _gn_swish(x, g1_ref[...], be1_ref[...], mg1_ref[...])
        _store_padded(y, pad1, c_in)
        h = _conv3x3(pad1, w1_ref, b1_ref, c_in)                       # (HW, C_out)

        # ---- block2: GroupNorm -> Swish -> (Dropout p=0 == Id) -> Conv3x3 ----
        y2 = _gn_swish(h, g2_ref[...], be2_ref[...], mg2_ref[...])
        _store_padded(y2, pad2, c_out)
        h2 = _conv3x3(pad2, w2_ref, b2_ref, c_out)                     # (HW, C_out)

        # ---- residual: 1x1 conv (dim != dim_out) or identity ----
        if has_res:
            res = jnp.dot(x.astype(jnp.bfloat16), wr_ref[...],
                          preferred_element_type=jnp.float32) + br_ref[...]
        else:
            res = x
        o_ref[0] = (h2 + res).astype(o_ref.dtype)

    return kernel


def _group_average_matrix(c, groups, hw):
    cg = c // groups
    gid = jnp.arange(c) // cg
    return (gid[:, None] == gid[None, :]).astype(jnp.float32) / float(hw * cg)


def resnet_block_forward_nhwc(x_nhwc, gamma1, beta1, w1, b1,
                              gamma2, beta2, w2, b2,
                              res_w=None, res_b=None, *,
                              norm_groups=32, eps=1e-5):
    """Fused ResnetBlock forward, NHWC in / NHWC out (preferred entry point)."""
    N, H, W, C_in = x_nhwc.shape
    C_out = w1.shape[0]
    HW = H * W
    has_res = res_w is not None
    if C_in != C_out:
        assert has_res, "res_conv weights required when dim != dim_out"
    assert C_in % norm_groups == 0 and C_out % norm_groups == 0

    x2d = x_nhwc.reshape(N, HW, C_in)

    def conv3x3_to_taps(w):            # (O, I, 3, 3) -> (9, I, O); tap = ky*3+kx
        o, i = w.shape[0], w.shape[1]
        return jnp.transpose(w, (2, 3, 1, 0)).reshape(9, i, o).astype(jnp.bfloat16)

    w1t = conv3x3_to_taps(w1)
    w2t = conv3x3_to_taps(w2)
    mg1 = _group_average_matrix(C_in, norm_groups, HW)
    mg2 = _group_average_matrix(C_out, norm_groups, HW)
    g1 = gamma1.reshape(1, C_in).astype(jnp.float32)
    be1 = beta1.reshape(1, C_in).astype(jnp.float32)
    g2 = gamma2.reshape(1, C_out).astype(jnp.float32)
    be2 = beta2.reshape(1, C_out).astype(jnp.float32)
    b1r = b1.reshape(1, C_out).astype(jnp.float32)
    b2r = b2.reshape(1, C_out).astype(jnp.float32)

    inputs = [x2d, g1, be1, mg1, w1t, b1r, g2, be2, mg2, w2t, b2r]
    in_specs = [
        pl.BlockSpec((1, HW, C_in), lambda n: (n, 0, 0)),
        pl.BlockSpec((1, C_in), lambda n: (0, 0)),
        pl.BlockSpec((1, C_in), lambda n: (0, 0)),
        pl.BlockSpec((C_in, C_in), lambda n: (0, 0)),
        pl.BlockSpec((9, C_in, C_out), lambda n: (0, 0, 0)),
        pl.BlockSpec((1, C_out), lambda n: (0, 0)),
        pl.BlockSpec((1, C_out), lambda n: (0, 0)),
        pl.BlockSpec((1, C_out), lambda n: (0, 0)),
        pl.BlockSpec((C_out, C_out), lambda n: (0, 0)),
        pl.BlockSpec((9, C_out, C_out), lambda n: (0, 0, 0)),
        pl.BlockSpec((1, C_out), lambda n: (0, 0)),
    ]
    if has_res:
        wr = jnp.transpose(res_w[:, :, 0, 0], (1, 0)).astype(jnp.bfloat16)
        brr = res_b.reshape(1, C_out).astype(jnp.float32)
        inputs += [wr, brr]
        in_specs += [pl.BlockSpec((C_in, C_out), lambda n: (0, 0)),
                     pl.BlockSpec((1, C_out), lambda n: (0, 0))]

    kernel = _make_resnet_block_kernel(H, W, C_in, C_out, eps, has_res)

    # ---- cost estimate & VMEM budget ----
    res_weights = C_in * C_out if has_res else 0
    flops = 2 * N * HW * (9 * C_in * C_out + 9 * C_out * C_out + res_weights)
    transcendentals = N * HW * (C_in + C_out)              # sigmoids
    bytes_accessed = (4 * N * HW * (C_in + C_out)
                      + 2 * (9 * C_in * C_out + 9 * C_out * C_out + res_weights)
                      + 4 * (C_in * C_in + C_out * C_out + 3 * C_in + 5 * C_out))

    itemsize = jnp.dtype(x_nhwc.dtype).itemsize
    pad_bytes = (H + 2) * (W + 2) * (C_in + C_out) * 2                 # bf16 pads
    act_bytes = HW * (C_in + C_out) * itemsize                         # in/out blocks
    w_bytes = 2 * (9 * C_in * C_out + 9 * C_out * C_out + res_weights) # bf16 weights
    tmp_bytes = 4 * HW * C_out * 4                                     # f32 temporaries
    needed = 2 * (act_bytes + w_bytes) + pad_bytes + tmp_bytes + (1 << 20)
    vmem_limit = int(min(max(2 * needed, 32 << 20), 96 << 20))

    out2d = pl.pallas_call(
        kernel,
        out_shape=jax.ShapeDtypeStruct((N, HW, C_out), x_nhwc.dtype),
        grid_spec=pltpu.PrefetchScalarGridSpec(
            num_scalar_prefetch=0,
            grid=(N,),
            in_specs=in_specs,
            out_specs=pl.BlockSpec((1, HW, C_out), lambda n: (n, 0, 0)),
            scratch_shapes=[
                pltpu.VMEM((H + 2, W + 2, C_in), jnp.bfloat16),   # padded act 1
                pltpu.VMEM((H + 2, W + 2, C_out), jnp.bfloat16),  # padded act 2
            ]),
        compiler_params=pltpu.CompilerParams(
            dimension_semantics=("parallel",),
            vmem_limit_bytes=vmem_limit),
        cost_estimate=pl.CostEstimate(flops=flops,
                                      transcendentals=transcendentals,
                                      bytes_accessed=bytes_accessed),
    )(*inputs)

    return out2d.reshape(N, H, W, C_out)


def resnet_block_forward(x_nchw, gamma1, beta1, w1, b1, gamma2, beta2, w2, b2,
                         res_w=None, res_b=None, *, norm_groups=32, eps=1e-5):
    """NCHW interface matching the PyTorch module.

    TODO(synk): keep the surrounding model NHWC and call
    resnet_block_forward_nhwc directly to drop these two transposes (each is a
    full extra HBM round trip of the activation).
    """
    x = jnp.transpose(x_nchw, (0, 2, 3, 1))                           # (N, H, W, C_in)
    out = resnet_block_forward_nhwc(x, gamma1, beta1, w1, b1, gamma2, beta2,
                                    w2, b2, res_w, res_b,
                                    norm_groups=norm_groups, eps=eps)
    return jnp.transpose(out, (0, 3, 1, 2))                           # back to NCHW


# ---------------------------- pure-JAX reference ----------------------------

def _ref_group_norm(x, gamma, beta, groups, eps=1e-5):
    n, c, h, w = x.shape
    xg = x.reshape(n, groups, c // groups, h * w)
    mean = xg.mean(axis=(2, 3), keepdims=True)
    var = xg.var(axis=(2, 3), keepdims=True)
    xn = ((xg - mean) / jnp.sqrt(var + eps)).reshape(n, c, h, w)
    return xn * gamma.reshape(1, c, 1, 1) + beta.reshape(1, c, 1, 1)


def _ref_conv(x, w, b, padding):
    # Matches the kernel's MXU precision: bf16 inputs, f32 accumulation.
    y = jax.lax.conv_general_dilated(
        x.astype(jnp.bfloat16), w.astype(jnp.bfloat16),
        window_strides=(1, 1), padding=padding,
        dimension_numbers=("NCHW", "OIHW", "NCHW"),
        preferred_element_type=jnp.float32)
    return y + b.reshape(1, -1, 1, 1)


def _ref_resnet_block(x, gamma1, beta1, w1, b1, gamma2, beta2, w2, b2,
                      res_w, res_b, groups):
    h = _ref_group_norm(x, gamma1, beta1, groups)
    h = h * jax.nn.sigmoid(h)
    h = _ref_conv(h, w1, b1, ((1, 1), (1, 1)))
    h2 = _ref_group_norm(h, gamma2, beta2, groups)
    h2 = h2 * jax.nn.sigmoid(h2)
    h2 = _ref_conv(h2, w2, b2, ((1, 1), (1, 1)))
    res = _ref_conv(x, res_w, res_b, ((0, 0), (0, 0)))
    return h2 + res


if __name__ == "__main__":
    # Small shapes consistent with the module: batch=2, dim=4 -> dim_out=8,
    # 16x16 spatial, norm_groups=2 (must divide both dim and dim_out).
    N, C_in, C_out, H, W = 2, 4, 8, 16, 16
    groups = 2

    key = jax.random.PRNGKey(0)
    ks = jax.random.split(key, 10)

    def conv_init(k, co, ci, kh, kw):
        fan_in = ci * kh * kw
        bound = 1.0 / (fan_in ** 0.5)
        kw_, kb_ = jax.random.split(k)
        w = jax.random.uniform(kw_, (co, ci, kh, kw), minval=-bound,
                               maxval=bound, dtype=jnp.float32)
        b = jax.random.uniform(kb_, (co,), minval=-bound, maxval=bound,
                               dtype=jnp.float32)
        return w, b

    x = jax.random.normal(ks[0], (N, C_in, H, W), dtype=jnp.float32)
    gamma1 = 1.0 + 0.1 * jax.random.normal(ks[1], (C_in,), dtype=jnp.float32)
    beta1 = 0.1 * jax.random.normal(ks[2], (C_in,), dtype=jnp.float32)
    w1, b1 = conv_init(ks[3], C_out, C_in, 3, 3)
    gamma2 = 1.0 + 0.1 * jax.random.normal(ks[4], (C_out,), dtype=jnp.float32)
    beta2 = 0.1 * jax.random.normal(ks[5], (C_out,), dtype=jnp.float32)
    w2, b2 = conv_init(ks[6], C_out, C_out, 3, 3)
    res_w, res_b = conv_init(ks[7], C_out, C_in, 1, 1)

    out = resnet_block_forward(x, gamma1, beta1, w1, b1, gamma2, beta2, w2, b2,
                               res_w, res_b, norm_groups=groups)
    jax.block_until_ready(out)
    assert out.shape == (N, C_out, H, W), out.shape

    ref = _ref_resnet_block(x, gamma1, beta1, w1, b1, gamma2, beta2, w2, b2,
                            res_w, res_b, groups)
    max_err = float(jnp.max(jnp.abs(out - ref)))
    assert jnp.allclose(out, ref, atol=2e-3, rtol=2e-3), max_err

    print("KERNEL_OK")
</pallas_src>

<mosaic_0001>
module attributes {stable_mosaic.version = 11 : i64} {
  func.func @kernel(%arg0: i32, %arg1: memref<1x256x4xf32, #tpu.memory_space<vmem>>, %arg2: memref<1x4xf32, #tpu.memory_space<vmem>>, %arg3: memref<1x4xf32, #tpu.memory_space<vmem>>, %arg4: memref<4x4xf32, #tpu.memory_space<vmem>>, %arg5: memref<9x4x8xbf16, #tpu.memory_space<vmem>>, %arg6: memref<1x8xf32, #tpu.memory_space<vmem>>, %arg7: memref<1x8xf32, #tpu.memory_space<vmem>>, %arg8: memref<1x8xf32, #tpu.memory_space<vmem>>, %arg9: memref<8x8xf32, #tpu.memory_space<vmem>>, %arg10: memref<9x8x8xbf16, #tpu.memory_space<vmem>>, %arg11: memref<1x8xf32, #tpu.memory_space<vmem>>, %arg12: memref<4x8xbf16, #tpu.memory_space<vmem>>, %arg13: memref<1x8xf32, #tpu.memory_space<vmem>>, %arg14: memref<1x256x8xf32, #tpu.memory_space<vmem>>, %arg15: memref<18x18x4xbf16, #tpu.memory_space<vmem>>, %arg16: memref<18x18x8xbf16, #tpu.memory_space<vmem>>) attributes {dimension_semantics = [#tpu.dimension_semantics<parallel>], iteration_bounds = array<i64: 2>, scalar_prefetch = 0 : i64, scratch_operands = 2 : i64, tpu.core_type = #tpu.core_type<tc>, window_params = [{transform_indices = @transform_0, window_bounds = array<i64: 1, 256, 4>}, {pipeline_mode = #tpu.pipeline_mode<synchronous>, transform_indices = @transform_1, window_bounds = array<i64: 1, 4>}, {pipeline_mode = #tpu.pipeline_mode<synchronous>, transform_indices = @transform_2, window_bounds = array<i64: 1, 4>}, {pipeline_mode = #tpu.pipeline_mode<synchronous>, transform_indices = @transform_3, window_bounds = array<i64: 4, 4>}, {pipeline_mode = #tpu.pipeline_mode<synchronous>, transform_indices = @transform_4, window_bounds = array<i64: 9, 4, 8>}, {pipeline_mode = #tpu.pipeline_mode<synchronous>, transform_indices = @transform_5, window_bounds = array<i64: 1, 8>}, {pipeline_mode = #tpu.pipeline_mode<synchronous>, transform_indices = @transform_6, window_bounds = array<i64: 1, 8>}, {pipeline_mode = #tpu.pipeline_mode<synchronous>, transform_indices = @transform_7, window_bounds = array<i64: 1, 8>}, {pipeline_mode = #tpu.pipeline_mode<synchronous>, transform_indices = @transform_8, window_bounds = array<i64: 8, 8>}, {pipeline_mode = #tpu.pipeline_mode<synchronous>, transform_indices = @transform_9, window_bounds = array<i64: 9, 8, 8>}, {pipeline_mode = #tpu.pipeline_mode<synchronous>, transform_indices = @transform_10, window_bounds = array<i64: 1, 8>}, {pipeline_mode = #tpu.pipeline_mode<synchronous>, transform_indices = @transform_11, window_bounds = array<i64: 4, 8>}, {pipeline_mode = #tpu.pipeline_mode<synchronous>, transform_indices = @transform_12, window_bounds = array<i64: 1, 8>}, {transform_indices = @transform_13, window_bounds = array<i64: 1, 256, 8>}]} {
    %c0 = arith.constant 0 : index
    %c0_0 = arith.constant 0 : index
    %c0_1 = arith.constant 0 : index
    %0 = vector.load %arg1[%c0, %c0_0, %c0_1] : memref<1x256x4xf32, #tpu.memory_space<vmem>>, vector<1x256x4xf32>
    %1 = vector.shape_cast %0 : vector<1x256x4xf32> to vector<256x4xf32>
    %c0_2 = arith.constant 0 : index
    %c0_3 = arith.constant 0 : index
    %2 = vector.load %arg2[%c0_2, %c0_3] : memref<1x4xf32, #tpu.memory_space<vmem>>, vector<1x4xf32>
    %c0_4 = arith.constant 0 : index
    %c0_5 = arith.constant 0 : index
    %3 = vector.load %arg3[%c0_4, %c0_5] : memref<1x4xf32, #tpu.memory_space<vmem>>, vector<1x4xf32>
    %c0_6 = arith.constant 0 : index
    %c0_7 = arith.constant 0 : index
    %4 = vector.load %arg4[%c0_6, %c0_7] : memref<4x4xf32, #tpu.memory_space<vmem>>, vector<4x4xf32>
    %cst = arith.constant dense<0.000000e+00> : vector<4xf32>
    %5 = vector.multi_reduction <add>, %1, %cst [0] : vector<256x4xf32> to vector<4xf32>
    %6 = vector.shape_cast %5 : vector<4xf32> to vector<1x4xf32>
    %cst_8 = arith.constant dense<0.000000e+00> : vector<1x4xf32>
    %7 = tpu.matmul %6, %4, %cst_8 {dimension_numbers = #tpu.dot_dimension_numbers<[1], [0], [0], [1], [0, 0, 1, 1], [], []>} : vector<1x4xf32>, vector<4x4xf32>, vector<1x4xf32> -> vector<1x4xf32>
    %8 = vector.broadcast %7 : vector<1x4xf32> to vector<256x4xf32>
    %9 = arith.subf %1, %8 : vector<256x4xf32>
    %10 = arith.mulf %9, %9 : vector<256x4xf32>
    %cst_9 = arith.constant dense<0.000000e+00> : vector<4xf32>
    %11 = vector.multi_reduction <add>, %10, %cst_9 [0] : vector<256x4xf32> to vector<4xf32>
    %12 = vector.shape_cast %11 : vector<4xf32> to vector<1x4xf32>
    %cst_10 = arith.constant dense<0.000000e+00> : vector<1x4xf32>
    %13 = tpu.matmul %12, %4, %cst_10 {dimension_numbers = #tpu.dot_dimension_numbers<[1], [0], [0], [1], [0, 0, 1, 1], [], []>} : vector<1x4xf32>, vector<4x4xf32>, vector<1x4xf32> -> vector<1x4xf32>
    %cst_11 = arith.constant 9.99999974E-6 : f32
    %14 = vector.broadcast %cst_11 : f32 to vector<1x4xf32>
    %15 = arith.addf %13, %14 : vector<1x4xf32>
    %16 = math.rsqrt %15 : vector<1x4xf32>
    %17 = vector.broadcast %16 : vector<1x4xf32> to vector<256x4xf32>
    %18 = arith.mulf %9, %17 : vector<256x4xf32>
    %19 = vector.broadcast %2 : vector<1x4xf32> to vector<256x4xf32>
    %20 = arith.mulf %18, %19 : vector<256x4xf32>
    %21 = vector.broadcast %3 : vector<1x4xf32> to vector<256x4xf32>
    %22 = arith.addf %20, %21 : vector<256x4xf32>
    %23 = arith.negf %22 : vector<256x4xf32>
    %24 = math.exp %23 : vector<256x4xf32>
    %cst_12 = arith.constant 1.000000e+00 : f32
    %25 = vector.broadcast %cst_12 : f32 to vector<256x4xf32>
    %26 = arith.addf %25, %24 : vector<256x4xf32>
    %27 = arith.divf %25, %26 : vector<256x4xf32>
    %28 = arith.mulf %22, %27 : vector<256x4xf32>
    %cst_13 = arith.constant 0.000000e+00 : bf16
    %29 = vector.broadcast %cst_13 : bf16 to vector<1x18x4xbf16>
    %cst_14 = arith.constant 0.000000e+00 : bf16
    %30 = vector.broadcast %cst_14 : bf16 to vector<18x1x4xbf16>
    %c0_15 = arith.constant 0 : index
    %c0_16 = arith.constant 0 : index
    %c0_17 = arith.constant 0 : index
    %31 = vector.load %arg15[%c0_15, %c0_16, %c0_17] : memref<18x18x4xbf16, #tpu.memory_space<vmem>>, vector<1x18x4xbf16>
    tpu.vector_store %arg15[%c0_15, %c0_16, %c0_17], %29 {strides = array<i32>} : memref<18x18x4xbf16, #tpu.memory_space<vmem>>, vector<1x18x4xbf16>,
    %c17 = arith.constant 17 : index
    %c0_18 = arith.constant 0 : index
    %c0_19 = arith.constant 0 : index
    %32 = vector.load %arg15[%c17, %c0_18, %c0_19] : memref<18x18x4xbf16, #tpu.memory_space<vmem>>, vector<1x18x4xbf16>
    tpu.vector_store %arg15[%c17, %c0_18, %c0_19], %29 {strides = array<i32>} : memref<18x18x4xbf16, #tpu.memory_space<vmem>>, vector<1x18x4xbf16>,
    %c0_20 = arith.constant 0 : index
    %c0_21 = arith.constant 0 : index
    %c0_22 = arith.constant 0 : index
    %33 = vector.load %arg15[%c0_20, %c0_21, %c0_22] : memref<18x18x4xbf16, #tpu.memory_space<vmem>>, vector<18x1x4xbf16>
    tpu.vector_store %arg15[%c0_20, %c0_21, %c0_22], %30 {strides = array<i32>} : memref<18x18x4xbf16, #tpu.memory_space<vmem>>, vector<18x1x4xbf16>,
    %c0_23 = arith.constant 0 : index
    %c17_24 = arith.constant 17 : index
    %c0_25 = arith.constant 0 : index
    %34 = vector.load %arg15[%c0_23, %c17_24, %c0_25] : memref<18x18x4xbf16, #tpu.memory_space<vmem>>, vector<18x1x4xbf16>
    tpu.vector_store %arg15[%c0_23, %c17_24, %c0_25], %30 {strides = array<i32>} : memref<18x18x4xbf16, #tpu.memory_space<vmem>>, vector<18x1x4xbf16>,
    %35 = vector.shape_cast %28 : vector<256x4xf32> to vector<16x16x4xf32>
    %36 = arith.truncf %35 : vector<16x16x4xf32> to vector<16x16x4xbf16>
    %c1 = arith.constant 1 : index
    %c1_26 = arith.constant 1 : index
    %c0_27 = arith.constant 0 : index
    %37 = vector.load %arg15[%c1, %c1_26, %c0_27] : memref<18x18x4xbf16, #tpu.memory_space<vmem>>, vector<16x16x4xbf16>
    tpu.vector_store %arg15[%c1, %c1_26, %c0_27], %36 {strides = array<i32>} : memref<18x18x4xbf16, #tpu.memory_space<vmem>>, vector<16x16x4xbf16>,
    %c0_28 = arith.constant 0 : index
    %c0_29 = arith.constant 0 : index
    %c0_30 = arith.constant 0 : index
    %38 = vector.load %arg15[%c0_28, %c0_29, %c0_30] : memref<18x18x4xbf16, #tpu.memory_space<vmem>>, vector<16x16x4xbf16>
    %39 = vector.shape_cast %38 : vector<16x16x4xbf16> to vector<256x4xbf16>
    %c0_31 = arith.constant 0 : index
    %c0_32 = arith.constant 0 : index
    %c0_33 = arith.constant 0 : index
    %40 = vector.load %arg5[%c0_31, %c0_32, %c0_33] : memref<9x4x8xbf16, #tpu.memory_space<vmem>>, vector<1x4x8xbf16>
    %41 = vector.shape_cast %40 : vector<1x4x8xbf16> to vector<4x8xbf16>
    %cst_34 = arith.constant dense<0.000000e+00> : vector<256x8xf32>
    %42 = tpu.matmul %39, %41, %cst_34 {dimension_numbers = #tpu.dot_dimension_numbers<[1], [0], [0], [1], [0, 0, 1, 1], [], []>} : vector<256x4xbf16>, vector<4x8xbf16>, vector<256x8xf32> -> vector<256x8xf32>
    %c0_35 = arith.constant 0 : index
    %c1_36 = arith.constant 1 : index
    %c0_37 = arith.constant 0 : index
    %43 = vector.load %arg15[%c0_35, %c1_36, %c0_37] : memref<18x18x4xbf16, #tpu.memory_space<vmem>>, vector<16x16x4xbf16>
    %44 = vector.shape_cast %43 : vector<16x16x4xbf16> to vector<256x4xbf16>
    %c1_38 = arith.constant 1 : index
    %c0_39 = arith.constant 0 : index
    %c0_40 = arith.constant 0 : index
    %45 = vector.load %arg5[%c1_38, %c0_39, %c0_40] : memref<9x4x8xbf16, #tpu.memory_space<vmem>>, vector<1x4x8xbf16>
    %46 = vector.shape_cast %45 : vector<1x4x8xbf16> to vector<4x8xbf16>
    %cst_41 = arith.constant dense<0.000000e+00> : vector<256x8xf32>
    %47 = tpu.matmul %44, %46, %cst_41 {dimension_numbers = #tpu.dot_dimension_numbers<[1], [0], [0], [1], [0, 0, 1, 1], [], []>} : vector<256x4xbf16>, vector<4x8xbf16>, vector<256x8xf32> -> vector<256x8xf32>
    %48 = arith.addf %42, %47 : vector<256x8xf32>
    %c0_42 = arith.constant 0 : index
    %c2 = arith.constant 2 : index
    %c0_43 = arith.constant 0 : index
    %49 = vector.load %arg15[%c0_42, %c2, %c0_43] : memref<18x18x4xbf16, #tpu.memory_space<vmem>>, vector<16x16x4xbf16>
    %50 = vector.shape_cast %49 : vector<16x16x4xbf16> to vector<256x4xbf16>
    %c2_44 = arith.constant 2 : index
    %c0_45 = arith.constant 0 : index
    %c0_46 = arith.constant 0 : index
    %51 = vector.load %arg5[%c2_44, %c0_45, %c0_46] : memref<9x4x8xbf16, #tpu.memory_space<vmem>>, vector<1x4x8xbf16>
    %52 = vector.shape_cast %51 : vector<1x4x8xbf16> to vector<4x8xbf16>
    %cst_47 = arith.constant dense<0.000000e+00> : vector<256x8xf32>
    %53 = tpu.matmul %50, %52, %cst_47 {dimension_numbers = #tpu.dot_dimension_numbers<[1], [0], [0], [1], [0, 0, 1, 1], [], []>} : vector<256x4xbf16>, vector<4x8xbf16>, vector<256x8xf32> -> vector<256x8xf32>
    %54 = arith.addf %48, %53 : vector<256x8xf32>
    %c1_48 = arith.constant 1 : index
    %c0_49 = arith.constant 0 : index
    %c0_50 = arith.constant 0 : index
    %55 = vector.load %arg15[%c1_48, %c0_49, %c0_50] : memref<18x18x4xbf16, #tpu.memory_space<vmem>>, vector<16x16x4xbf16>
    %56 = vector.shape_cast %55 : vector<16x16x4xbf16> to vector<256x4xbf16>
    %c3 = arith.constant 3 : index
    %c0_51 = arith.constant 0 : index
    %c0_52 = arith.constant 0 : index
    %57 = vector.load %arg5[%c3, %c0_51, %c0_52] : memref<9x4x8xbf16, #tpu.memory_space<vmem>>, vector<1x4x8xbf16>
    %58 = vector.shape_cast %57 : vector<1x4x8xbf16> to vector<4x8xbf16>
    %cst_53 = arith.constant dense<0.000000e+00> : vector<256x8xf32>
    %59 = tpu.matmul %56, %58, %cst_53 {dimension_numbers = #tpu.dot_dimension_numbers<[1], [0], [0], [1], [0, 0, 1, 1], [], []>} : vector<256x4xbf16>, vector<4x8xbf16>, vector<256x8xf32> -> vector<256x8xf32>
    %60 = arith.addf %54, %59 : vector<256x8xf32>
    %c1_54 = arith.constant 1 : index
    %c1_55 = arith.constant 1 : index
    %c0_56 = arith.constant 0 : index
    %61 = vector.load %arg15[%c1_54, %c1_55, %c0_56] : memref<18x18x4xbf16, #tpu.memory_space<vmem>>, vector<16x16x4xbf16>
    %62 = vector.shape_cast %61 : vector<16x16x4xbf16> to vector<256x4xbf16>
    %c4 = arith.constant 4 : index
    %c0_57 = arith.constant 0 : index
    %c0_58 = arith.constant 0 : index
    %63 = vector.load %arg5[%c4, %c0_57, %c0_58] : memref<9x4x8xbf16, #tpu.memory_space<vmem>>, vector<1x4x8xbf16>
    %64 = vector.shape_cast %63 : vector<1x4x8xbf16> to vector<4x8xbf16>
    %cst_59 = arith.constant dense<0.000000e+00> : vector<256x8xf32>
    %65 = tpu.matmul %62, %64, %cst_59 {dimension_numbers = #tpu.dot_dimension_numbers<[1], [0], [0], [1], [0, 0, 1, 1], [], []>} : vector<256x4xbf16>, vector<4x8xbf16>, vector<256x8xf32> -> vector<256x8xf32>
    %66 = arith.addf %60, %65 : vector<256x8xf32>
    %c1_60 = arith.constant 1 : index
    %c2_61 = arith.constant 2 : index
    %c0_62 = arith.constant 0 : index
    %67 = vector.load %arg15[%c1_60, %c2_61, %c0_62] : memref<18x18x4xbf16, #tpu.memory_space<vmem>>, vector<16x16x4xbf16>
    %68 = vector.shape_cast %67 : vector<16x16x4xbf16> to vector<256x4xbf16>
    %c5 = arith.constant 5 : index
    %c0_63 = arith.constant 0 : index
    %c0_64 = arith.constant 0 : index
    %69 = vector.load %arg5[%c5, %c0_63, %c0_64] : memref<9x4x8xbf16, #tpu.memory_space<vmem>>, vector<1x4x8xbf16>
    %70 = vector.shape_cast %69 : vector<1x4x8xbf16> to vector<4x8xbf16>
    %cst_65 = arith.constant dense<0.000000e+00> : vector<256x8xf32>
    %71 = tpu.matmul %68, %70, %cst_65 {dimension_numbers = #tpu.dot_dimension_numbers<[1], [0], [0], [1], [0, 0, 1, 1], [], []>} : vector<256x4xbf16>, vector<4x8xbf16>, vector<256x8xf32> -> vector<256x8xf32>
    %72 = arith.addf %66, %71 : vector<256x8xf32>
    %c2_66 = arith.constant 2 : index
    %c0_67 = arith.constant 0 : index
    %c0_68 = arith.constant 0 : index
    %73 = vector.load %arg15[%c2_66, %c0_67, %c0_68] : memref<18x18x4xbf16, #tpu.memory_space<vmem>>, vector<16x16x4xbf16>
    %74 = vector.shape_cast %73 : vector<16x16x4xbf16> to vector<256x4xbf16>
    %c6 = arith.constant 6 : index
    %c0_69 = arith.constant 0 : index
    %c0_70 = arith.constant 0 : index
    %75 = vector.load %arg5[%c6, %c0_69, %c0_70] : memref<9x4x8xbf16, #tpu.memory_space<vmem>>, vector<1x4x8xbf16>
    %76 = vector.shape_cast %75 : vector<1x4x8xbf16> to vector<4x8xbf16>
    %cst_71 = arith.constant dense<0.000000e+00> : vector<256x8xf32>
    %77 = tpu.matmul %74, %76, %cst_71 {dimension_numbers = #tpu.dot_dimension_numbers<[1], [0], [0], [1], [0, 0, 1, 1], [], []>} : vector<256x4xbf16>, vector<4x8xbf16>, vector<256x8xf32> -> vector<256x8xf32>
    %78 = arith.addf %72, %77 : vector<256x8xf32>
    %c2_72 = arith.constant 2 : index
    %c1_73 = arith.constant 1 : index
    %c0_74 = arith.constant 0 : index
    %79 = vector.load %arg15[%c2_72, %c1_73, %c0_74] : memref<18x18x4xbf16, #tpu.memory_space<vmem>>, vector<16x16x4xbf16>
    %80 = vector.shape_cast %79 : vector<16x16x4xbf16> to vector<256x4xbf16>
    %c7 = arith.constant 7 : index
    %c0_75 = arith.constant 0 : index
    %c0_76 = arith.constant 0 : index
    %81 = vector.load %arg5[%c7, %c0_75, %c0_76] : memref<9x4x8xbf16, #tpu.memory_space<vmem>>, vector<1x4x8xbf16>
    %82 = vector.shape_cast %81 : vector<1x4x8xbf16> to vector<4x8xbf16>
    %cst_77 = arith.constant dense<0.000000e+00> : vector<256x8xf32>
    %83 = tpu.matmul %80, %82, %cst_77 {dimension_numbers = #tpu.dot_dimension_numbers<[1], [0], [0], [1], [0, 0, 1, 1], [], []>} : vector<256x4xbf16>, vector<4x8xbf16>, vector<256x8xf32> -> vector<256x8xf32>
    %84 = arith.addf %78, %83 : vector<256x8xf32>
    %c2_78 = arith.constant 2 : index
    %c2_79 = arith.constant 2 : index
    %c0_80 = arith.constant 0 : index
    %85 = vector.load %arg15[%c2_78, %c2_79, %c0_80] : memref<18x18x4xbf16, #tpu.memory_space<vmem>>, vector<16x16x4xbf16>
    %86 = vector.shape_cast %85 : vector<16x16x4xbf16> to vector<256x4xbf16>
    %c8 = arith.constant 8 : index
    %c0_81 = arith.constant 0 : index
    %c0_82 = arith.constant 0 : index
    %87 = vector.load %arg5[%c8, %c0_81, %c0_82] : memref<9x4x8xbf16, #tpu.memory_space<vmem>>, vector<1x4x8xbf16>
    %88 = vector.shape_cast %87 : vector<1x4x8xbf16> to vector<4x8xbf16>
    %cst_83 = arith.constant dense<0.000000e+00> : vector<256x8xf32>
    %89 = tpu.matmul %86, %88, %cst_83 {dimension_numbers = #tpu.dot_dimension_numbers<[1], [0], [0], [1], [0, 0, 1, 1], [], []>} : vector<256x4xbf16>, vector<4x8xbf16>, vector<256x8xf32> -> vector<256x8xf32>
    %90 = arith.addf %84, %89 : vector<256x8xf32>
    %c0_84 = arith.constant 0 : index
    %c0_85 = arith.constant 0 : index
    %91 = vector.load %arg6[%c0_84, %c0_85] : memref<1x8xf32, #tpu.memory_space<vmem>>, vector<1x8xf32>
    %92 = vector.broadcast %91 : vector<1x8xf32> to vector<256x8xf32>
    %93 = arith.addf %90, %92 : vector<256x8xf32>
    %c0_86 = arith.constant 0 : index
    %c0_87 = arith.constant 0 : index
    %94 = vector.load %arg7[%c0_86, %c0_87] : memref<1x8xf32, #tpu.memory_space<vmem>>, vector<1x8xf32>
    %c0_88 = arith.constant 0 : index
    %c0_89 = arith.constant 0 : index
    %95 = vector.load %arg8[%c0_88, %c0_89] : memref<1x8xf32, #tpu.memory_space<vmem>>, vector<1x8xf32>
    %c0_90 = arith.constant 0 : index
    %c0_91 = arith.constant 0 : index
    %96 = vector.load %arg9[%c0_90, %c0_91] : memref<8x8xf32, #tpu.memory_space<vmem>>, vector<8x8xf32>
    %cst_92 = arith.constant dense<0.000000e+00> : vector<8xf32>
    %97 = vector.multi_reduction <add>, %93, %cst_92 [0] : vector<256x8xf32> to vector<8xf32>
    %98 = vector.shape_cast %97 : vector<8xf32> to vector<1x8xf32>
    %cst_93 = arith.constant dense<0.000000e+00> : vector<1x8xf32>
    %99 = tpu.matmul %98, %96, %cst_93 {dimension_numbers = #tpu.dot_dimension_numbers<[1], [0], [0], [1], [0, 0, 1, 1], [], []>} : vector<1x8xf32>, vector<8x8xf32>, vector<1x8xf32> -> vector<1x8xf32>
    %100 = vector.broadcast %99 : vector<1x8xf32> to vector<256x8xf32>
    %101 = arith.subf %93, %100 : vector<256x8xf32>
    %102 = arith.mulf %101, %101 : vector<256x8xf32>
    %cst_94 = arith.constant dense<0.000000e+00> : vector<8xf32>
    %103 = vector.multi_reduction <add>, %102, %cst_94 [0] : vector<256x8xf32> to vector<8xf32>
    %104 = vector.shape_cast %103 : vector<8xf32> to vector<1x8xf32>
    %cst_95 = arith.constant dense<0.000000e+00> : vector<1x8xf32>
    %105 = tpu.matmul %104, %96, %cst_95 {dimension_numbers = #tpu.dot_dimension_numbers<[1], [0], [0], [1], [0, 0, 1, 1], [], []>} : vector<1x8xf32>, vector<8x8xf32>, vector<1x8xf32> -> vector<1x8xf32>
    %cst_96 = arith.constant 9.99999974E-6 : f32
    %106 = vector.broadcast %cst_96 : f32 to vector<1x8xf32>
    %107 = arith.addf %105, %106 : vector<1x8xf32>
    %108 = math.rsqrt %107 : vector<1x8xf32>
    %109 = vector.broadcast %108 : vector<1x8xf32> to vector<256x8xf32>
    %110 = arith.mulf %101, %109 : vector<256x8xf32>
    %111 = vector.broadcast %94 : vector<1x8xf32> to vector<256x8xf32>
    %112 = arith.mulf %110, %111 : vector<256x8xf32>
    %113 = vector.broadcast %95 : vector<1x8xf32> to vector<256x8xf32>
    %114 = arith.addf %112, %113 : vector<256x8xf32>
    %115 = arith.negf %114 : vector<256x8xf32>
    %116 = math.exp %115 : vector<256x8xf32>
    %cst_97 = arith.constant 1.000000e+00 : f32
    %117 = vector.broadcast %cst_97 : f32 to vector<256x8xf32>
    %118 = arith.addf %117, %116 : vector<256x8xf32>
    %119 = arith.divf %117, %118 : vector<256x8xf32>
    %120 = arith.mulf %114, %119 : vector<256x8xf32>
    %cst_98 = arith.constant 0.000000e+00 : bf16
    %121 = vector.broadcast %cst_98 : bf16 to vector<1x18x8xbf16>
    %cst_99 = arith.constant 0.000000e+00 : bf16
    %122 = vector.broadcast %cst_99 : bf16 to vector<18x1x8xbf16>
    %c0_100 = arith.constant 0 : index
    %c0_101 = arith.constant 0 : index
    %c0_102 = arith.constant 0 : index
    %123 = vector.load %arg16[%c0_100, %c0_101, %c0_102] : memref<18x18x8xbf16, #tpu.memory_space<vmem>>, vector<1x18x8xbf16>
    tpu.vector_store %arg16[%c0_100, %c0_101, %c0_102], %121 {strides = array<i32>} : memref<18x18x8xbf16, #tpu.memory_space<vmem>>, vector<1x18x8xbf16>,
    %c17_103 = arith.constant 17 : index
    %c0_104 = arith.constant 0 : index
    %c0_105 = arith.constant 0 : index
    %124 = vector.load %arg16[%c17_103, %c0_104, %c0_105] : memref<18x18x8xbf16, #tpu.memory_space<vmem>>, vector<1x18x8xbf16>
    tpu.vector_store %arg16[%c17_103, %c0_104, %c0_105], %121 {strides = array<i32>} : memref<18x18x8xbf16, #tpu.memory_space<vmem>>, vector<1x18x8xbf16>,
    %c0_106 = arith.constant 0 : index
    %c0_107 = arith.constant 0 : index
    %c0_108 = arith.constant 0 : index
    %125 = vector.load %arg16[%c0_106, %c0_107, %c0_108] : memref<18x18x8xbf16, #tpu.memory_space<vmem>>, vector<18x1x8xbf16>
    tpu.vector_store %arg16[%c0_106, %c0_107, %c0_108], %122 {strides = array<i32>} : memref<18x18x8xbf16, #tpu.memory_space<vmem>>, vector<18x1x8xbf16>,
    %c0_109 = arith.constant 0 : index
    %c17_110 = arith.constant 17 : index
    %c0_111 = arith.constant 0 : index
    %126 = vector.load %arg16[%c0_109, %c17_110, %c0_111] : memref<18x18x8xbf16, #tpu.memory_space<vmem>>, vector<18x1x8xbf16>
    tpu.vector_store %arg16[%c0_109, %c17_110, %c0_111], %122 {strides = array<i32>} : memref<18x18x8xbf16, #tpu.memory_space<vmem>>, vector<18x1x8xbf16>,
    %127 = vector.shape_cast %120 : vector<256x8xf32> to vector<16x16x8xf32>
    %128 = arith.truncf %127 : vector<16x16x8xf32> to vector<16x16x8xbf16>
    %c1_112 = arith.constant 1 : index
    %c1_113 = arith.constant 1 : index
    %c0_114 = arith.constant 0 : index
    %129 = vector.load %arg16[%c1_112, %c1_113, %c0_114] : memref<18x18x8xbf16, #tpu.memory_space<vmem>>, vector<16x16x8xbf16>
    tpu.vector_store %arg16[%c1_112, %c1_113, %c0_114], %128 {strides = array<i32>} : memref<18x18x8xbf16, #tpu.memory_space<vmem>>, vector<16x16x8xbf16>,
    %c0_115 = arith.constant 0 : index
    %c0_116 = arith.constant 0 : index
    %c0_117 = arith.constant 0 : index
    %130 = vector.load %arg16[%c0_115, %c0_116, %c0_117] : memref<18x18x8xbf16, #tpu.memory_space<vmem>>, vector<16x16x8xbf16>
    %131 = vector.shape_cast %130 : vector<16x16x8xbf16> to vector<256x8xbf16>
    %c0_118 = arith.constant 0 : index
    %c0_119 = arith.constant 0 : index
    %c0_120 = arith.constant 0 : index
    %132 = vector.load %arg10[%c0_118, %c0_119, %c0_120] : memref<9x8x8xbf16, #tpu.memory_space<vmem>>, vector<1x8x8xbf16>
    %133 = vector.shape_cast %132 : vector<1x8x8xbf16> to vector<8x8xbf16>
    %cst_121 = arith.constant dense<0.000000e+00> : vector<256x8xf32>
    %134 = tpu.matmul %131, %133, %cst_121 {dimension_numbers = #tpu.dot_dimension_numbers<[1], [0], [0], [1], [0, 0, 1, 1], [], []>} : vector<256x8xbf16>, vector<8x8xbf16>, vector<256x8xf32> -> vector<256x8xf32>
    %c0_122 = arith.constant 0 : index
    %c1_123 = arith.constant 1 : index
    %c0_124 = arith.constant 0 : index
    %135 = vector.load %arg16[%c0_122, %c1_123, %c0_124] : memref<18x18x8xbf16, #tpu.memory_space<vmem>>, vector<16x16x8xbf16>
    %136 = vector.shape_cast %135 : vector<16x16x8xbf16> to vector<256x8xbf16>
    %c1_125 = arith.constant 1 : index
    %c0_126 = arith.constant 0 : index
    %c0_127 = arith.constant 0 : index
    %137 = vector.load %arg10[%c1_125, %c0_126, %c0_127] : memref<9x8x8xbf16, #tpu.memory_space<vmem>>, vector<1x8x8xbf16>
    %138 = vector.shape_cast %137 : vector<1x8x8xbf16> to vector<8x8xbf16>
    %cst_128 = arith.constant dense<0.000000e+00> : vector<256x8xf32>
    %139 = tpu.matmul %136, %138, %cst_128 {dimension_numbers = #tpu.dot_dimension_numbers<[1], [0], [0], [1], [0, 0, 1, 1], [], []>} : vector<256x8xbf16>, vector<8x8xbf16>, vector<256x8xf32> -> vector<256x8xf32>
    %140 = arith.addf %134, %139 : vector<256x8xf32>
    %c0_129 = arith.constant 0 : index
    %c2_130 = arith.constant 2 : index
    %c0_131 = arith.constant 0 : index
    %141 = vector.load %arg16[%c0_129, %c2_130, %c0_131] : memref<18x18x8xbf16, #tpu.memory_space<vmem>>, vector<16x16x8xbf16>
    %142 = vector.shape_cast %141 : vector<16x16x8xbf16> to vector<256x8xbf16>
    %c2_132 = arith.constant 2 : index
    %c0_133 = arith.constant 0 : index
    %c0_134 = arith.constant 0 : index
    %143 = vector.load %arg10[%c2_132, %c0_133, %c0_134] : memref<9x8x8xbf16, #tpu.memory_space<vmem>>, vector<1x8x8xbf16>
    %144 = vector.shape_cast %143 : vector<1x8x8xbf16> to vector<8x8xbf16>
    %cst_135 = arith.constant dense<0.000000e+00> : vector<256x8xf32>
    %145 = tpu.matmul %142, %144, %cst_135 {dimension_numbers = #tpu.dot_dimension_numbers<[1], [0], [0], [1], [0, 0, 1, 1], [], []>} : vector<256x8xbf16>, vector<8x8xbf16>, vector<256x8xf32> -> vector<256x8xf32>
    %146 = arith.addf %140, %145 : vector<256x8xf32>
    %c1_136 = arith.constant 1 : index
    %c0_137 = arith.constant 0 : index
    %c0_138 = arith.constant 0 : index
    %147 = vector.load %arg16[%c1_136, %c0_137, %c0_138] : memref<18x18x8xbf16, #tpu.memory_space<vmem>>, vector<16x16x8xbf16>
    %148 = vector.shape_cast %147 : vector<16x16x8xbf16> to vector<256x8xbf16>
    %c3_139 = arith.constant 3 : index
    %c0_140 = arith.constant 0 : index
    %c0_141 = arith.constant 0 : index
    %149 = vector.load %arg10[%c3_139, %c0_140, %c0_141] : memref<9x8x8xbf16, #tpu.memory_space<vmem>>, vector<1x8x8xbf16>
    %150 = vector.shape_cast %149 : vector<1x8x8xbf16> to vector<8x8xbf16>
    %cst_142 = arith.constant dense<0.000000e+00> : vector<256x8xf32>
    %151 = tpu.matmul %148, %150, %cst_142 {dimension_numbers = #tpu.dot_dimension_numbers<[1], [0], [0], [1], [0, 0, 1, 1], [], []>} : vector<256x8xbf16>, vector<8x8xbf16>, vector<256x8xf32> -> vector<256x8xf32>
    %152 = arith.addf %146, %151 : vector<256x8xf32>
    %c1_143 = arith.constant 1 : index
    %c1_144 = arith.constant 1 : index
    %c0_145 = arith.constant 0 : index
    %153 = vector.load %arg16[%c1_143, %c1_144, %c0_145] : memref<18x18x8xbf16, #tpu.memory_space<vmem>>, vector<16x16x8xbf16>
    %154 = vector.shape_cast %153 : vector<16x16x8xbf16> to vector<256x8xbf16>
    %c4_146 = arith.constant 4 : index
    %c0_147 = arith.constant 0 : index
    %c0_148 = arith.constant 0 : index
    %155 = vector.load %arg10[%c4_146, %c0_147, %c0_148] : memref<9x8x8xbf16, #tpu.memory_space<vmem>>, vector<1x8x8xbf16>
    %156 = vector.shape_cast %155 : vector<1x8x8xbf16> to vector<8x8xbf16>
    %cst_149 = arith.constant dense<0.000000e+00> : vector<256x8xf32>
    %157 = tpu.matmul %154, %156, %cst_149 {dimension_numbers = #tpu.dot_dimension_numbers<[1], [0], [0], [1], [0, 0, 1, 1], [], []>} : vector<256x8xbf16>, vector<8x8xbf16>, vector<256x8xf32> -> vector<256x8xf32>
    %158 = arith.addf %152, %157 : vector<256x8xf32>
    %c1_150 = arith.constant 1 : index
    %c2_151 = arith.constant 2 : index
    %c0_152 = arith.constant 0 : index
    %159 = vector.load %arg16[%c1_150, %c2_151, %c0_152] : memref<18x18x8xbf16, #tpu.memory_space<vmem>>, vector<16x16x8xbf16>
    %160 = vector.shape_cast %159 : vector<16x16x8xbf16> to vector<256x8xbf16>
    %c5_153 = arith.constant 5 : index
    %c0_154 = arith.constant 0 : index
    %c0_155 = arith.constant 0 : index
    %161 = vector.load %arg10[%c5_153, %c0_154, %c0_155] : memref<9x8x8xbf16, #tpu.memory_space<vmem>>, vector<1x8x8xbf16>
    %162 = vector.shape_cast %161 : vector<1x8x8xbf16> to vector<8x8xbf16>
    %cst_156 = arith.constant dense<0.000000e+00> : vector<256x8xf32>
    %163 = tpu.matmul %160, %162, %cst_156 {dimension_numbers = #tpu.dot_dimension_numbers<[1], [0], [0], [1], [0, 0, 1, 1], [], []>} : vector<256x8xbf16>, vector<8x8xbf16>, vector<256x8xf32> -> vector<256x8xf32>
    %164 = arith.addf %158, %163 : vector<256x8xf32>
    %c2_157 = arith.constant 2 : index
    %c0_158 = arith.constant 0 : index
    %c0_159 = arith.constant 0 : index
    %165 = vector.load %arg16[%c2_157, %c0_158, %c0_159] : memref<18x18x8xbf16, #tpu.memory_space<vmem>>, vector<16x16x8xbf16>
    %166 = vector.shape_cast %165 : vector<16x16x8xbf16> to vector<256x8xbf16>
    %c6_160 = arith.constant 6 : index
    %c0_161 = arith.constant 0 : index
    %c0_162 = arith.constant 0 : index
    %167 = vector.load %arg10[%c6_160, %c0_161, %c0_162] : memref<9x8x8xbf16, #tpu.memory_space<vmem>>, vector<1x8x8xbf16>
    %168 = vector.shape_cast %167 : vector<1x8x8xbf16> to vector<8x8xbf16>
    %cst_163 = arith.constant dense<0.000000e+00> : vector<256x8xf32>
    %169 = tpu.matmul %166, %168, %cst_163 {dimension_numbers = #tpu.dot_dimension_numbers<[1], [0], [0], [1], [0, 0, 1, 1], [], []>} : vector<256x8xbf16>, vector<8x8xbf16>, vector<256x8xf32> -> vector<256x8xf32>
    %170 = arith.addf %164, %169 : vector<256x8xf32>
    %c2_164 = arith.constant 2 : index
    %c1_165 = arith.constant 1 : index
    %c0_166 = arith.constant 0 : index
    %171 = vector.load %arg16[%c2_164, %c1_165, %c0_166] : memref<18x18x8xbf16, #tpu.memory_space<vmem>>, vector<16x16x8xbf16>
    %172 = vector.shape_cast %171 : vector<16x16x8xbf16> to vector<256x8xbf16>
    %c7_167 = arith.constant 7 : index
    %c0_168 = arith.constant 0 : index
    %c0_169 = arith.constant 0 : index
    %173 = vector.load %arg10[%c7_167, %c0_168, %c0_169] : memref<9x8x8xbf16, #tpu.memory_space<vmem>>, vector<1x8x8xbf16>
    %174 = vector.shape_cast %173 : vector<1x8x8xbf16> to vector<8x8xbf16>
    %cst_170 = arith.constant dense<0.000000e+00> : vector<256x8xf32>
    %175 = tpu.matmul %172, %174, %cst_170 {dimension_numbers = #tpu.dot_dimension_numbers<[1], [0], [0], [1], [0, 0, 1, 1], [], []>} : vector<256x8xbf16>, vector<8x8xbf16>, vector<256x8xf32> -> vector<256x8xf32>
    %176 = arith.addf %170, %175 : vector<256x8xf32>
    %c2_171 = arith.constant 2 : index
    %c2_172 = arith.constant 2 : index
    %c0_173 = arith.constant 0 : index
    %177 = vector.load %arg16[%c2_171, %c2_172, %c0_173] : memref<18x18x8xbf16, #tpu.memory_space<vmem>>, vector<16x16x8xbf16>
    %178 = vector.shape_cast %177 : vector<16x16x8xbf16> to vector<256x8xbf16>
    %c8_174 = arith.constant 8 : index
    %c0_175 = arith.constant 0 : index
    %c0_176 = arith.constant 0 : index
    %179 = vector.load %arg10[%c8_174, %c0_175, %c0_176] : memref<9x8x8xbf16, #tpu.memory_space<vmem>>, vector<1x8x8xbf16>
    %180 = vector.shape_cast %179 : vector<1x8x8xbf16> to vector<8x8xbf16>
    %cst_177 = arith.constant dense<0.000000e+00> : vector<256x8xf32>
    %181 = tpu.matmul %178, %180, %cst_177 {dimension_numbers = #tpu.dot_dimension_numbers<[1], [0], [0], [1], [0, 0, 1, 1], [], []>} : vector<256x8xbf16>, vector<8x8xbf16>, vector<256x8xf32> -> vector<256x8xf32>
    %182 = arith.addf %176, %181 : vector<256x8xf32>
    %c0_178 = arith.constant 0 : index
    %c0_179 = arith.constant 0 : index
    %183 = vector.load %arg11[%c0_178, %c0_179] : memref<1x8xf32, #tpu.memory_space<vmem>>, vector<1x8xf32>
    %184 = vector.broadcast %183 : vector<1x8xf32> to vector<256x8xf32>
    %185 = arith.addf %182, %184 : vector<256x8xf32>
    %186 = arith.truncf %1 : vector<256x4xf32> to vector<256x4xbf16>
    %c0_180 = arith.constant 0 : index
    %c0_181 = arith.constant 0 : index
    %187 = vector.load %arg12[%c0_180, %c0_181] : memref<4x8xbf16, #tpu.memory_space<vmem>>, vector<4x8xbf16>
    %cst_182 = arith.constant dense<0.000000e+00> : vector<256x8xf32>
    %188 = tpu.matmul %186, %187, %cst_182 {dimension_numbers = #tpu.dot_dimension_numbers<[1], [0], [0], [1], [0, 0, 1, 1], [], []>} : vector<256x4xbf16>, vector<4x8xbf16>, vector<256x8xf32> -> vector<256x8xf32>
    %c0_183 = arith.constant 0 : index
    %c0_184 = arith.constant 0 : index
    %189 = vector.load %arg13[%c0_183, %c0_184] : memref<1x8xf32, #tpu.memory_space<vmem>>, vector<1x8xf32>
    %190 = vector.broadcast %189 : vector<1x8xf32> to vector<256x8xf32>
    %191 = arith.addf %188, %190 : vector<256x8xf32>
    %192 = arith.addf %185, %191 : vector<256x8xf32>
    %c0_185 = arith.constant 0 : index
    %c0_186 = arith.constant 0 : index
    %c0_187 = arith.constant 0 : index
    %193 = vector.load %arg14[%c0_185, %c0_186, %c0_187] : memref<1x256x8xf32, #tpu.memory_space<vmem>>, vector<1x256x8xf32>
    %194 = vector.shape_cast %193 : vector<1x256x8xf32> to vector<256x8xf32>
    %195 = vector.shape_cast %192 : vector<256x8xf32> to vector<1x256x8xf32>
    tpu.vector_store %arg14[%c0_185, %c0_186, %c0_187], %195 {strides = array<i32>} : memref<1x256x8xf32, #tpu.memory_space<vmem>>, vector<1x256x8xf32>,
    return
  }
  func.func @transform_0(%arg0: i32) -> (i32, i32, i32) {
    %c0_i32 = arith.constant 0 : i32
    %c0_i32_0 = arith.constant 0 : i32
    %c0_i32_1 = arith.constant 0 : i32
    return %arg0, %c0_i32, %c0_i32_0 : i32, i32, i32
  }
  func.func @transform_1(%arg0: i32) -> (i32, i32) {
    %c0_i32 = arith.constant 0 : i32
    %c0_i32_0 = arith.constant 0 : i32
    %c0_i32_1 = arith.constant 0 : i32
    return %c0_i32, %c0_i32_0 : i32, i32
  }
  func.func @transform_2(%arg0: i32) -> (i32, i32) {
    %c0_i32 = arith.constant 0 : i32
    %c0_i32_0 = arith.constant 0 : i32
    %c0_i32_1 = arith.constant 0 : i32
    return %c0_i32, %c0_i32_0 : i32, i32
  }
  func.func @transform_3(%arg0: i32) -> (i32, i32) {
    %c0_i32 = arith.constant 0 : i32
    %c0_i32_0 = arith.constant 0 : i32
    %c0_i32_1 = arith.constant 0 : i32
    return %c0_i32, %c0_i32_0 : i32, i32
  }
  func.func @transform_4(%arg0: i32) -> (i32, i32, i32) {
    %c0_i32 = arith.constant 0 : i32
    %c0_i32_0 = arith.constant 0 : i32
    %c0_i32_1 = arith.constant 0 : i32
    %c0_i32_2 = arith.constant 0 : i32
    return %c0_i32, %c0_i32_0, %c0_i32_1 : i32, i32, i32
  }
  func.func @transform_5(%arg0: i32) -> (i32, i32) {
    %c0_i32 = arith.constant 0 : i32
    %c0_i32_0 = arith.constant 0 : i32
    %c0_i32_1 = arith.constant 0 : i32
    return %c0_i32, %c0_i32_0 : i32, i32
  }
  func.func @transform_6(%arg0: i32) -> (i32, i32) {
    %c0_i32 = arith.constant 0 : i32
    %c0_i32_0 = arith.constant 0 : i32
    %c0_i32_1 = arith.constant 0 : i32
    return %c0_i32, %c0_i32_0 : i32, i32
  }
  func.func @transform_7(%arg0: i32) -> (i32, i32) {
    %c0_i32 = arith.constant 0 : i32
    %c0_i32_0 = arith.constant 0 : i32
    %c0_i32_1 = arith.constant 0 : i32
    return %c0_i32, %c0_i32_0 : i32, i32
  }
  func.func @transform_8(%arg0: i32) -> (i32, i32) {
    %c0_i32 = arith.constant 0 : i32
    %c0_i32_0 = arith.constant 0 : i32
    %c0_i32_1 = arith.constant 0 : i32
    return %c0_i32, %c0_i32_0 : i32, i32
  }
  func.func @transform_9(%arg0: i32) -> (i32, i32, i32) {
    %c0_i32 = arith.constant 0 : i32
    %c0_i32_0 = arith.constant 0 : i32
    %c0_i32_1 = arith.constant 0 : i32
    %c0_i32_2 = arith.constant 0 : i32
    return %c0_i32, %c0_i32_0, %c0_i32_1 : i32, i32, i32
  }
  func.func @transform_10(%arg0: i32) -> (i32, i32) {
    %c0_i32 = arith.constant 0 : i32
    %c0_i32_0 = arith.constant 0 : i32
    %c0_i32_1 = arith.constant 0 : i32
    return %c0_i32, %c0_i32_0 : i32, i32
  }
  func.func @transform_11(%arg0: i32) -> (i32, i32) {
    %c0_i32 = arith.constant 0 : i32
    %c0_i32_0 = arith.constant 0 : i32
    %c0_i32_1 = arith.constant 0 : i32
    return %c0_i32, %c0_i32_0 : i32, i32
  }
  func.func @transform_12(%arg0: i32) -> (i32, i32) {
    %c0_i32 = arith.constant 0 : i32
    %c0_i32_0 = arith.constant 0 : i32
    %c0_i32_1 = arith.constant 0 : i32
    return %c0_i32, %c0_i32_0 : i32, i32
  }
  func.func @transform_13(%arg0: i32) -> (i32, i32, i32) {
    %c0_i32 = arith.constant 0 : i32
    %c0_i32_0 = arith.constant 0 : i32
    %c0_i32_1 = arith.constant 0 : i32
    return %arg0, %c0_i32, %c0_i32_0 : i32, i32, i32
  }
}

</mosaic_0001>

<bundles_post_ra>
// kernel: tpu_custom_call.1
= control target key start
LH: loop header
LB: loop body
LE: loop exit
PB: predicated region body
PF: predicated region fallthrough
CT: control target
= control target key end

     0   :  { %s15139_s25 = smov 0   ;;  %s22036_s0 = inlined_call_operand.vmem [shape: f32[2,256,4], index: 0, kind: input, shape index: {}]   ;;  %s22037_s1 = inlined_call_operand.vmem [shape: f32[1,4], index: 1, kind: input, shape index: {}]   ;;  %s22038_s2 = inlined_call_operand.vmem [shape: f32[1,4], index: 2, kind: input, shape index: {}]   ;;  %s22039_s3 = inlined_call_operand.vmem [shape: f32[4,4], index: 3, kind: input, shape index: {}]   ;;  %s22040_s4 = inlined_call_operand.vmem [shape: bf16[9,4,8], index: 4, kind: input, shape index: {}]   ;;  %s22041_s5 = inlined_call_operand.vmem [shape: f32[1,8], index: 5, kind: input, shape index: {}]   ;;  %s22042_s6 = inlined_call_operand.vmem [shape: f32[1,8], index: 6, kind: input, shape index: {}]   ;;  %s22043_s7 = inlined_call_operand.vmem [shape: f32[1,8], index: 7, kind: input, shape index: {}]   ;;  %s22044_s8 = inlined_call_operand.vmem [shape: f32[8,8], index: 8, kind: input, shape index: {}]   ;;  %s22045_s9 = inlined_call_operand.vmem [shape: bf16[9,8,8], index: 9, kind: input, shape index: {}]   ;;  %s22046_s10 = inlined_call_operand.vmem [shape: f32[1,8], index: 10, kind: input, shape index: {}]   ;;  %s22047_s11 = inlined_call_operand.vmem [shape: bf16[4,8], index: 11, kind: input, shape index: {}]   ;;  %s22048_s12 = inlined_call_operand.vmem [shape: f32[1,8], index: 12, kind: input, shape index: {}]   ;;  %s22049_s13 = inlined_call_operand.vmem [shape: f32[2,256,8], index: 13, kind: output, shape index: {}]  }
   0x1 LB: > { %s12710_s26 = sadd.s32 4294967295, %s15064_s25   ;;  %p12714_p0 = scmp.ge.s32.totalorder %s15064_s25, 1  ;;  %s15064_s25 = sphi %s15139_s25, %s23_s25  }
   0x2   : > { %p387_p1 = scmp.lt.s32.totalorder %s15064_s25, 3 }
   0x4   : > { %p388_p2 = pnand %p12714_p0, %p387_p1 }
   0x6   : > { %391 = sbr.rel (%p388_p2) target bundleno = 2450 (0x992), region = 72 }
   0xb   : > { %v15150_v0 = vld [vmem:[%s22039_s3] sm:$0xf]  ;;  %vm550_vm0 = vcmask 1043456   ;;  %p431_p3 = scmp.lt.s32.totalorder %s12710_s26, 1  ;;  %v22052_v1 = vmov 0.0   ;;  %vm15067_vm1 = vmmov 0  }
   0xc   : > { %13963 = vmatprep.subr.mxu1 %v22052_v1  ;;  %13965 = vmatprep.mubr.msk.f32.mxu1 %vm15067_vm1, %v22052_v1  ;;  %vm1174_vm2 = vcmask 24576   ;;  %vm1181_vm3 = vsmask.f32 256  ;;  %v1216_v2 = vld [vmem:[#allocation2 + $0x84] sm:$0x1]  ;;  %vm477_vm4 = vcmask 31744  }
   0xd   : > { %13964 = vmatpush3.msk.msra.mxu1 %vm550_vm0, %v15150_v0  ;;  %s22600_s26 = smov (!%p431_p3, %s12710_s26), 1  ;;  %vm15161_vm5 = vmand %vm1174_vm2, %vm1181_vm3  ;;  %v22123_v3 = vmov 0  ;;  %v1219_v4 = vld [vmem:[#allocation2 + $0x90] sm:$0x1]  ;;  %v1222_v5 = vld [vmem:[#allocation2 + $0x9c] sm:$0x1] }
   0xe   : > { %v22124_v3 = vsel %vm15161_vm5, 4294967295, %v22123_v3  ;;  %13968 = vmatprep.subr.mxu1 %v22052_v1  ;;  %s13566_s29 = sshll.u32 %s22600_s26, 8  ;;  %v1217_v6 = vsel %vm15161_vm5, 0, %v1216_v2  ;;  %v1220_v7 = vsel %vm15161_vm5, 0, %v1219_v4  ;;  %v1223_v8 = vsel %vm15161_vm5, 0, %v1222_v5 }
   0xf   : > { %22125 = vst [vmem:[#allocation4_spill] sm:$0xff] %v22124_v3  ;;  %v1225_v9 = vld [vmem:[#allocation2 + $0xa8] sm:$0x1]  ;;  %s15178_s15 = scalar_lea.vmem %s22036_s0, %s13566_s29  ;;  %1218 = vst [vmem:[#allocation2 + $0x84] sm:$0x1] %v1217_v6  ;;  %v22126_v34 = vmov 0  ;;  %s21831_s21 = scalar_lea.vmem %s22049_s13, %s13566_s29 }
  0x10   : > { %1221 = vst [vmem:[#allocation2 + $0x90] sm:$0x1] %v1220_v7  ;;  %1224 = vst [vmem:[#allocation2 + $0x9c] sm:$0x1] %v1223_v8  ;;  %v1226_v10 = vsel %vm15161_vm5, 0, %v1225_v9  ;;  %v15183_v13 = vld [vmem:[%s15178_s15] sm:$0xff] }
  0x11   : > { %v1228_v11 = vld [vmem:[#allocation2 + $0xb4] sm:$0x1]  ;;  %v1231_v12 = vld [vmem:[#allocation2 + $0xc0] sm:$0x1]  ;;  %v15186_v14 = vld [vmem:[%s15178_s15 + $0x8] sm:$0xff]  ;;  %v478_v19 = vsel %vm477_vm4, %v15183_v13, 0.0 }
  0x12   : > { %v15189_v15 = vld [vmem:[%s15178_s15 + $0x10] sm:$0xff]  ;;  %1227 = vst [vmem:[#allocation2 + $0xa8] sm:$0x1] %v1226_v10  ;;  %v1229_v16 = vsel %vm15161_vm5, 0, %v1228_v11  ;;  %v1232_v17 = vsel %vm15161_vm5, 0, %v1231_v12  ;;  %v15196_v18 = vld [vmem:[%s15178_s15 + $0x18] sm:$0xff] }
  0x13   : > { %v479_v20 = vsel %vm477_vm4, %v15186_v14, 0.0  ;;  %v481_v21 = vsel %vm477_vm4, %v15189_v15, 0.0  ;;  %1230 = vst [vmem:[#allocation2 + $0xb4] sm:$0x1] %v1229_v16  ;;  %1233 = vst [vmem:[#allocation2 + $0xc0] sm:$0x1] %v1232_v17 }
  0x14   : > { %v15205_v22 = vld [vmem:[%s15178_s15 + $0x20] sm:$0xff]  ;;  %v480_v23 = vadd.f32 %v479_v20, %v478_v19  ;;  %v483_v24 = vsel %vm477_vm4, %v15196_v18, 0.0  ;;  %v15210_v25 = vld [vmem:[%s15178_s15 + $0x28] sm:$0xff]  ;;  %v15215_v28 = vld [vmem:[%s15178_s15 + $0x30] sm:$0xff]  ;;  %vm1237_vm6 = vsmask.f32 7938 }
  0x15   : > { %v485_v27 = vsel %vm477_vm4, %v15205_v22, 0.0  ;;  %v487_v30 = vsel %vm477_vm4, %v15210_v25, 0.0  ;;  %v15220_v31 = vld [vmem:[%s15178_s15 + $0x38] sm:$0xff]  ;;  %v489_v33 = vsel %vm477_vm4, %v15215_v28, 0.0  ;;  %vm15226_vm7 = vmand %vm1174_vm2, %vm1237_vm6  ;;  %v15231_v35 = vld [vmem:[%s15178_s15 + $0x40] sm:$0xff]  ;;  %vm1171_vm8 = vcmask 27648  }
  0x16   : > { %v482_v26 = vadd.f32 %v481_v21, %v480_v23  ;;  %v22127_v34 = vsel %vm15226_vm7, 4294967295, %v22126_v34  ;;  %v15234_v37 = vld [vmem:[%s15178_s15 + $0x48] sm:$0xff]  ;;  %v491_v38 = vsel %vm477_vm4, %v15220_v31, 0.0  ;;  %v1278_v39 = vld [vmem:[#allocation2 + $0xa4] sm:$0x1]  ;;  %v493_v46 = vsel %vm477_vm4, %v15231_v35, 0.0 }
  0x17   : > { %22128 = vst [vmem:[#allocation5_spill] sm:$0xff] %v22127_v34  ;;  %v1281_v40 = vld [vmem:[#allocation2 + $0xb0] sm:$0x1]  ;;  %v1279_v42 = vsel %vm15226_vm7, 0, %v1278_v39  ;;  %v1284_v44 = vld [vmem:[#allocation2 + $0xbc] sm:$0x1] }
  0x18   : > { %v484_v29 = vadd.f32 %v483_v24, %v482_v26  ;;  %v1282_v43 = vsel %vm15226_vm7, 0, %v1281_v40  ;;  %v1287_v45 = vld [vmem:[#allocation2 + $0xc8] sm:$0x1]  ;;  %1280 = vst [vmem:[#allocation2 + $0xa4] sm:$0x1] %v1279_v42  ;;  %v1285_v47 = vsel %vm15226_vm7, 0, %v1284_v44 }
  0x19   : > { %1283 = vst [vmem:[#allocation2 + $0xb0] sm:$0x1] %v1282_v43  ;;  %v1288_v48 = vsel %vm15226_vm7, 0, %v1287_v45  ;;  %v15249_v49 = vld [vmem:[%s15178_s15 + $0x50] sm:$0xff]  ;;  %1286 = vst [vmem:[#allocation2 + $0xbc] sm:$0x1] %v1285_v47 }
  0x1a   : > { %v486_v32 = vadd.f32 %v485_v27, %v484_v29  ;;  %1289 = vst [vmem:[#allocation2 + $0xc8] sm:$0x1] %v1288_v48  ;;  %v495_v51 = vsel %vm477_vm4, %v15234_v37, 0.0  ;;  %v15254_v52 = vld [vmem:[%s15178_s15 + $0x58] sm:$0xff]  ;;  %v497_v54 = vsel %vm477_vm4, %v15249_v49, 0.0  ;;  %v15259_v55 = vld [vmem:[%s15178_s15 + $0x60] sm:$0xff] }
  0x1b   : > { %v499_v57 = vsel %vm477_vm4, %v15254_v52, 0.0  ;;  %v15264_v58 = vld [vmem:[%s15178_s15 + $0x68] sm:$0xff]  ;;  %v501_v60 = vsel %vm477_vm4, %v15259_v55, 0.0  ;;  %v15269_v61 = vld [vmem:[%s15178_s15 + $0x70] sm:$0xff]  ;;  %v15274_v2 = vld [vmem:[%s15178_s15 + $0x78] sm:$0xff]  ;;  %vm7118_vm9 = vcmask 57344  }
  0x1c   : > { %v488_v36 = vadd.f32 %v487_v30, %v486_v32  ;;  %v503_v63 = vsel %vm477_vm4, %v15264_v58, 0.0  ;;  %v505_v5 = vsel %vm477_vm4, %v15269_v61, 0.0  ;;  %v15279_v6 = vld [vmem:[%s15178_s15 + $0x80] sm:$0xff]  ;;  %v507_v8 = vsel %vm477_vm4, %v15274_v2, 0.0  ;;  %v15284_v9 = vld [vmem:[%s15178_s15 + $0x88] sm:$0xff]  ;;  %v15289_v12 = vld [vmem:[%s15178_s15 + $0x90] sm:$0xff] }
  0x1d   : > { %v509_v11 = vsel %vm477_vm4, %v15279_v6, 0.0  ;;  %v511_v17 = vsel %vm477_vm4, %v15284_v9, 0.0  ;;  %v15294_v19 = vld [vmem:[%s15178_s15 + $0x98] sm:$0xff]  ;;  %v513_v21 = vsel %vm477_vm4, %v15289_v12, 0.0  ;;  %v15299_v23 = vld [vmem:[%s15178_s15 + $0xa0] sm:$0xff]  ;;  %v15304_v27 = vld [vmem:[%s15178_s15 + $0xa8] sm:$0xff] }
  0x1e   : > { %v490_v41 = vadd.f32 %v489_v33, %v488_v36  ;;  %v515_v26 = vsel %vm477_vm4, %v15294_v19, 0.0  ;;  %v517_v30 = vsel %vm477_vm4, %v15299_v23, 0.0  ;;  %v15309_v32 = vld [vmem:[%s15178_s15 + $0xb0] sm:$0xff]  ;;  %v519_v36 = vsel %vm477_vm4, %v15304_v27, 0.0  ;;  %v15324_v44 = vld [vmem:[%s15178_s15 + $0xc8] sm:$0xff] }
  0x1f   : > { %v521_v40 = vsel %vm477_vm4, %v15309_v32, 0.0  ;;  %v15329_v47 = vld [vmem:[%s15178_s15 + $0xd0] sm:$0xff]  ;;  %vm2360_vm10 = vcmask 1041408   ;;  %vm1875_vm11 = vsmask.f32 3328 }
  0x20   : > { %v492_v50 = vadd.f32 %v491_v38, %v490_v41  ;;  %v15314_v38 = vld [vmem:[%s15178_s15 + $0xb8] sm:$0xff]  ;;  %v15319_v41 = vld [vmem:[%s15178_s15 + $0xc0] sm:$0xff]  ;;  %vm1876_vm12 = vsmask.f32 7440  ;;  %vm1389_vm14 = vsmask.f32 4368 }
  0x21   : > { %v523_v43 = vsel %vm477_vm4, %v15314_v38, 0.0  ;;  %vm15628_vm13 = vmor %vm1875_vm11, %vm1876_vm12  ;;  %vm2865_vm11 = vcmask 1042432   ;;  %vm2866_vm12 = vcmask 1046532  }
  0x22   : > { %v494_v53 = vadd.f32 %v493_v46, %v492_v50  ;;  %v525_v46 = vsel %vm477_vm4, %v15319_v41, 0.0  ;;  %v527_v50 = vsel %vm477_vm4, %v15324_v44, 0.0  ;;  %vm16054_vm15 = vmor %vm1181_vm3, %vm1389_vm14 }
  0x23   : > { %vm16429_vm14 = vmor %vm2865_vm11, %vm2866_vm12 }
  0x24   : > { %v496_v56 = vadd.f32 %v495_v51, %v494_v53  ;;  %v15334_v51 = vld [vmem:[%s15178_s15 + $0xd8] sm:$0xff] }
  0x26   : > { %v498_v59 = vadd.f32 %v497_v54, %v496_v56  ;;  %v529_v54 = vsel %vm477_vm4, %v15329_v47, 0.0  ;;  %v15339_v56 = vld [vmem:[%s15178_s15 + $0xe0] sm:$0xff] }
  0x28   : > { %v500_v62 = vadd.f32 %v499_v57, %v498_v59  ;;  %v531_v59 = vsel %vm477_vm4, %v15334_v51, 0.0 }
  0x2a   : > { %v502_v4 = vadd.f32 %v501_v60, %v500_v62  ;;  %v15344_v60 = vld [vmem:[%s15178_s15 + $0xe8] sm:$0xff] }
  0x2c   : > { %v504_v7 = vadd.f32 %v503_v63, %v502_v4  ;;  %v533_v63 = vsel %vm477_vm4, %v15339_v56, 0.0  ;;  %v15349_v4 = vld [vmem:[%s15178_s15 + $0xf0] sm:$0xff] }
  0x2e   : > { %v506_v10 = vadd.f32 %v505_v5, %v504_v7  ;;  %v535_v7 = vsel %vm477_vm4, %v15344_v60, 0.0 }
  0x30   : > { %v508_v16 = vadd.f32 %v507_v8, %v506_v10  ;;  %v15354_v8 = vld [vmem:[%s15178_s15 + $0xf8] sm:$0xff] }
  0x32   : > { %v510_v20 = vadd.f32 %v509_v11, %v508_v16  ;;  %v537_v11 = vsel %vm477_vm4, %v15349_v4, 0.0 }
  0x34   : > { %v512_v24 = vadd.f32 %v511_v17, %v510_v20  ;;  %v539_v17 = vsel %vm477_vm4, %v15354_v8, 0.0 }
  0x36   : > { %v514_v29 = vadd.f32 %v513_v21, %v512_v24 }
  0x38   : > { %v516_v33 = vadd.f32 %v515_v26, %v514_v29 }
  0x3a   : > { %v518_v39 = vadd.f32 %v517_v30, %v516_v33 }
  0x3c   : > { %v520_v42 = vadd.f32 %v519_v36, %v518_v39  ;;  %v624_v39 = vlaneseq }
  0x3e   : > { %v522_v45 = vadd.f32 %v521_v40, %v520_v42  ;;  %v625_v40 = vshrl.u32 %v624_v39, 7 }
  0x40   : > { %v524_v48 = vadd.f32 %v523_v43, %v522_v45  ;;  %v15365_v45 = vsub.s32 0, %v625_v40 }
  0x42   : > { %v526_v53 = vadd.f32 %v525_v46, %v524_v48  ;;  %22129 = vst [vmem:[#allocation6_spill] sm:$0xff] %v15365_v45 }
  0x44   : > { %v528_v57 = vadd.f32 %v527_v50, %v526_v53 }
  0x46   : > { %v530_v62 = vadd.f32 %v529_v54, %v528_v57 }
  0x48   : > { %v532_v5 = vadd.f32 %v531_v59, %v530_v62 }
  0x4a   : > { %v534_v10 = vadd.f32 %v533_v63, %v532_v5 }
  0x4c   : > { %v536_v16 = vadd.f32 %v535_v7, %v534_v10 }
  0x4e   : > { %v538_v20 = vadd.f32 %v537_v11, %v536_v16 }
  0x50   : > { %v540_v21 = vadd.f32 %v539_v17, %v538_v20 }
  0x52   : > { %v541_v24 = vrot.slane %v540_v21, 4 }
  0x54   : > { %v542_v26 = vadd.f32 %v541_v24, %v540_v21 }
  0x56   : > { %v543_v29 = vrot.slane %v542_v26, 2 }
  0x58   : > { %v544_v30 = vadd.f32 %v543_v29, %v542_v26 }
  0x5a   : > { %v545_v33 = vrot.slane %v544_v30, 1 }
  0x5c   : > { %v546_v36 = vadd.f32 %v545_v33, %v544_v30 }
  0x5e   : > { %13966 = vmatmul.mubr.msk.f32.vlgmr.msra.gmra.mxu1 %vm477_vm4, %v546_v36 }
  0x5f   : > { %13969 = vmatpush3.msk.msra.mxu1 %vm550_vm0, %v15150_v0  ;;  %13970 = vmatprep.mubr.msk.f32.mxu1 %vm15067_vm1, %v22052_v1  ;;  %v1263_v1 = vld [vmem:[#allocation2 + $0x68] sm:$0x1] }
 0x11e   : > { %v620_v42 = vpop.f32.mrf.mxu1 }
 0x11f   : > { %v15368_v46 = vrot.slane %v620_v42, %v15365_v45 }
 0x120   : > { %v13967_v43 = vpop.f32.mrf.mxu1 }
 0x121   : > { %v15372_v48 = vsub.f32 %v15183_v13, %v15368_v46  ;;  %v15376_v50 = vsub.f32 %v15186_v14, %v15368_v46  ;;  %v15380_v0 = vsub.f32 %v15189_v15, %v15368_v46  ;;  %v15384_v53 = vsub.f32 %v15196_v18, %v15368_v46 }
 0x122   : > { %v15392_v13 = vsub.f32 %v15205_v22, %v15368_v46  ;;  %v15398_v15 = vsub.f32 %v15210_v25, %v15368_v46  ;;  %v15406_v5 = vsub.f32 %v15215_v28, %v15368_v46  ;;  %v15413_v25 = vsub.f32 %v15220_v31, %v15368_v46 }
 0x123   : > { %v660_v54 = vmul.f32 %v15372_v48, %v15372_v48  ;;  %v661_v57 = vmul.f32 %v15376_v50, %v15376_v50  ;;  %v662_v14 = vmul.f32 %v15380_v0, %v15380_v0  ;;  %v663_v18 = vmul.f32 %v15384_v53, %v15384_v53 }
 0x124   : > { %v664_v22 = vmul.f32 %v15392_v13, %v15392_v13  ;;  %v665_v11 = vmul.f32 %v15398_v15, %v15398_v15  ;;  %v15420_v28 = vsub.f32 %v15231_v35, %v15368_v46  ;;  %v666_v20 = vmul.f32 %v15406_v5, %v15406_v5 }
 0x125   : > { %v692_v59 = vsel %vm477_vm4, %v660_v54, 0.0  ;;  %v693_v62 = vsel %vm477_vm4, %v661_v57, 0.0  ;;  %v695_v7 = vsel %vm477_vm4, %v662_v14, 0.0  ;;  %v697_v16 = vsel %vm477_vm4, %v663_v18, 0.0 }
 0x126   : > { %v694_v63 = vadd.f32 %v693_v62, %v692_v59  ;;  %v699_v21 = vsel %vm477_vm4, %v664_v22, 0.0  ;;  %v15427_v31 = vsub.f32 %v15234_v37, %v15368_v46  ;;  %v667_v26 = vmul.f32 %v15413_v25, %v15413_v25 }
 0x127   : > { %v701_v29 = vsel %vm477_vm4, %v665_v11, 0.0  ;;  %v15434_v35 = vsub.f32 %v15249_v49, %v15368_v46  ;;  %v668_v33 = vmul.f32 %v15420_v28, %v15420_v28  ;;  %v703_v36 = vsel %vm477_vm4, %v666_v20, 0.0 }
 0x128   : > { %v696_v10 = vadd.f32 %v695_v7, %v694_v63  ;;  %v15441_v37 = vsub.f32 %v15254_v52, %v15368_v46  ;;  %v669_v40 = vmul.f32 %v15427_v31, %v15427_v31  ;;  %v705_v42 = vsel %vm477_vm4, %v667_v26, 0.0 }
 0x129   : > { %v15448_v49 = vsub.f32 %v15259_v55, %v15368_v46  ;;  %v670_v54 = vmul.f32 %v15434_v35, %v15434_v35  ;;  %v707_v57 = vsel %vm477_vm4, %v668_v33, 0.0  ;;  %v15455_v52 = vsub.f32 %v15264_v58, %v15368_v46 }
 0x12a   : > { %v698_v17 = vadd.f32 %v697_v16, %v696_v10  ;;  %v671_v18 = vmul.f32 %v15441_v37, %v15441_v37  ;;  %v709_v59 = vsel %vm477_vm4, %v669_v40, 0.0  ;;  %v15462_v55 = vsub.f32 %v15269_v61, %v15368_v46 }
 0x12b   : > { %v672_v63 = vmul.f32 %v15448_v49, %v15448_v49  ;;  %v711_v22 = vsel %vm477_vm4, %v670_v54, 0.0  ;;  %v15469_v58 = vsub.f32 %v15274_v2, %v15368_v46  ;;  %v673_v10 = vmul.f32 %v15455_v52, %v15455_v52 }
 0x12c   : > { %v700_v24 = vadd.f32 %v699_v21, %v698_v17  ;;  %v713_v11 = vsel %vm477_vm4, %v671_v18, 0.0  ;;  %v15476_v61 = vsub.f32 %v15279_v6, %v15368_v46  ;;  %v674_v17 = vmul.f32 %v15462_v55, %v15462_v55 }
 0x12d   : > { %v715_v20 = vsel %vm477_vm4, %v672_v63, 0.0  ;;  %v15483_v2 = vsub.f32 %v15284_v9, %v15368_v46  ;;  %v717_v26 = vsel %vm477_vm4, %v673_v10, 0.0  ;;  %v15490_v6 = vsub.f32 %v15289_v12, %v15368_v46 }
 0x12e   : > { %v702_v30 = vadd.f32 %v701_v29, %v700_v24  ;;  %v675_v24 = vmul.f32 %v15469_v58, %v15469_v58  ;;  %v719_v33 = vsel %vm477_vm4, %v674_v17, 0.0  ;;  %v15497_v9 = vsub.f32 %v15294_v19, %v15368_v46 }
 0x12f   : > { %v15504_v12 = vsub.f32 %v15299_v23, %v15368_v46  ;;  %v15511_v19 = vsub.f32 %v15304_v27, %v15368_v46  ;;  %v15518_v23 = vsub.f32 %v15309_v32, %v15368_v46  ;;  %v15525_v27 = vsub.f32 %v15314_v38, %v15368_v46 }
 0x130   : > { %v704_v39 = vadd.f32 %v703_v36, %v702_v30  ;;  %v676_v30 = vmul.f32 %v15476_v61, %v15476_v61  ;;  %v721_v40 = vsel %vm477_vm4, %v675_v24, 0.0  ;;  %v15532_v32 = vsub.f32 %v15319_v41, %v15368_v46 }
 0x131   : > { %v15539_v38 = vsub.f32 %v15324_v44, %v15368_v46  ;;  %v15546_v41 = vsub.f32 %v15329_v47, %v15368_v46  ;;  %v15553_v44 = vsub.f32 %v15334_v51, %v15368_v46  ;;  %v15560_v47 = vsub.f32 %v15339_v56, %v15368_v46 }
 0x132   : > { %v706_v43 = vadd.f32 %v705_v42, %v704_v39  ;;  %v677_v39 = vmul.f32 %v15483_v2, %v15483_v2  ;;  %v723_v54 = vsel %vm477_vm4, %v676_v30, 0.0  ;;  %v15567_v51 = vsub.f32 %v15344_v60, %v15368_v46 }
 0x133   : > { %v15574_v56 = vsub.f32 %v15349_v4, %v15368_v46  ;;  %v15581_v60 = vsub.f32 %v15354_v8, %v15368_v46 }
 0x134   : > { %v708_v14 = vadd.f32 %v707_v57, %v706_v43  ;;  %v678_v43 = vmul.f32 %v15490_v6, %v15490_v6  ;;  %v725_v18 = vsel %vm477_vm4, %v677_v39, 0.0 }
 0x135   : > { %v690_v4 = vmul.f32 %v15574_v56, %v15574_v56 }
 0x136   : > { %v710_v62 = vadd.f32 %v709_v59, %v708_v14  ;;  %v679_v14 = vmul.f32 %v15497_v9, %v15497_v9  ;;  %v727_v63 = vsel %vm477_vm4, %v678_v43, 0.0 }
 0x137   : > { %v751_v8 = vsel %vm477_vm4, %v690_v4, 0.0 }
 0x138   : > { %v712_v7 = vadd.f32 %v711_v22, %v710_v62  ;;  %v680_v62 = vmul.f32 %v15504_v12, %v15504_v12  ;;  %v729_v10 = vsel %vm477_vm4, %v679_v14, 0.0 }
 0x13a   : > { %v714_v16 = vadd.f32 %v713_v11, %v712_v7  ;;  %v681_v7 = vmul.f32 %v15511_v19, %v15511_v19  ;;  %v731_v17 = vsel %vm477_vm4, %v680_v62, 0.0 }
 0x13c   : > { %v716_v21 = vadd.f32 %v715_v20, %v714_v16  ;;  %v682_v16 = vmul.f32 %v15518_v23, %v15518_v23  ;;  %v733_v24 = vsel %vm477_vm4, %v681_v7, 0.0 }
 0x13e   : > { %v718_v29 = vadd.f32 %v717_v26, %v716_v21  ;;  %v683_v21 = vmul.f32 %v15525_v27, %v15525_v27  ;;  %v735_v30 = vsel %vm477_vm4, %v682_v16, 0.0 }
 0x140   : > { %v720_v36 = vadd.f32 %v719_v33, %v718_v29  ;;  %v684_v29 = vmul.f32 %v15532_v32, %v15532_v32  ;;  %v737_v39 = vsel %vm477_vm4, %v683_v21, 0.0 }
 0x142   : > { %v722_v42 = vadd.f32 %v721_v40, %v720_v36  ;;  %v685_v36 = vmul.f32 %v15539_v38, %v15539_v38  ;;  %v739_v43 = vsel %vm477_vm4, %v684_v29, 0.0 }
 0x144   : > { %v724_v57 = vadd.f32 %v723_v54, %v722_v42  ;;  %v686_v42 = vmul.f32 %v15546_v41, %v15546_v41  ;;  %v741_v14 = vsel %vm477_vm4, %v685_v36, 0.0 }
 0x146   : > { %v726_v59 = vadd.f32 %v725_v18, %v724_v57  ;;  %v687_v57 = vmul.f32 %v15553_v44, %v15553_v44  ;;  %v743_v62 = vsel %vm477_vm4, %v686_v42, 0.0  ;;  %v22050_v42 = vmov 0  }
 0x147   : > { %1172 = vst.msk [vmem:[#allocation2] sm:$0xf] %vm1171_vm8, %v22050_v42  ;;  %1173 = vst.msk [vmem:[#allocation2 + $0x4] sm:$0xf] %vm1171_vm8, %v22050_v42 }
 0x148   : > { %v728_v22 = vadd.f32 %v727_v63, %v726_v59  ;;  %v688_v59 = vmul.f32 %v15560_v47, %v15560_v47  ;;  %v745_v7 = vsel %vm477_vm4, %v687_v57, 0.0  ;;  %1175 = vst.msk [vmem:[#allocation2 + $0x8] sm:$0x1] %vm1174_vm2, %v22050_v42  ;;  %1179 = vst.msk [vmem:[#allocation2 + $0xd4] sm:$0x1] %vm1174_vm2, %v22050_v42 }
 0x149   : > { %1177 = vst.msk [vmem:[#allocation2 + $0xcc] sm:$0xf] %vm1171_vm8, %v22050_v42  ;;  %1178 = vst.msk [vmem:[#allocation2 + $0xd0] sm:$0xf] %vm1171_vm8, %v22050_v42  ;;  %v12789_v57 = vld [vmem:[%s22040_s4 + $0x2] sm:$0x3] }
 0x14a   : > { %v730_v11 = vadd.f32 %v729_v10, %v728_v22  ;;  %v689_v22 = vmul.f32 %v15567_v51, %v15567_v51  ;;  %7119 = vst.msk [vmem:[#allocation3 + $0x8] sm:$0x1] %vm7118_vm9, %v22050_v42  ;;  %7123 = vst.msk [vmem:[#allocation3 + $0xd4] sm:$0x1] %vm7118_vm9, %v22050_v42  ;;  %14631 = vmatprep.subr.msk.bf16.mxu0 %vm2360_vm10, %v12789_v57  ;;  %14632 = vmatprep.subr.msk.bf16.mxu1 %vm2360_vm10, %v12789_v57 }
 0x14b   : > { %vm16063_vm2 = vmand %vm1171_vm8, %vm1237_vm6 }
 0x14c   : > { %v732_v20 = vadd.f32 %v731_v17, %v730_v11  ;;  %v747_v11 = vsel %vm477_vm4, %v688_v59, 0.0  ;;  %v691_v17 = vmul.f32 %v15581_v60, %v15581_v60 }
 0x14e   : > { %v734_v26 = vadd.f32 %v733_v24, %v732_v20  ;;  %v749_v20 = vsel %vm477_vm4, %v689_v22, 0.0  ;;  %v753_v24 = vsel %vm477_vm4, %v691_v17, 0.0 }
 0x150   : > { %v736_v33 = vadd.f32 %v735_v30, %v734_v26 }
 0x152   : > { %v738_v40 = vadd.f32 %v737_v39, %v736_v33 }
 0x154   : > { %v740_v54 = vadd.f32 %v739_v43, %v738_v40  ;;  %v1183_v43 = vld [vmem:[#allocation2] sm:$0x1] }
 0x156   : > { %v742_v18 = vadd.f32 %v741_v14, %v740_v54  ;;  %v1184_v54 = vsel %vm15161_vm5, 0, %v1183_v43  ;;  %v1239_v14 = vld [vmem:[#allocation2 + $0x8] sm:$0x1]  ;;  %v1186_v43 = vld [vmem:[#allocation2 + $0xc] sm:$0x1] }
 0x157   : > { %1185 = vst [vmem:[#allocation2] sm:$0x1] %v1184_v54  ;;  %v1240_v59 = vsel %vm15226_vm7, 0, %v1239_v14  ;;  %v1242_v54 = vld [vmem:[#allocation2 + $0x14] sm:$0x1]  ;;  %v1187_v14 = vsel %vm15161_vm5, 0, %v1186_v43 }
 0x158   : > { %v744_v63 = vadd.f32 %v743_v62, %v742_v18  ;;  %v2362_v18 = vsel %vm2360_vm10, %v12789_v57, 0  ;;  %v1827_v62 = vld [vmem:[#allocation2 + $0x4] sm:$0xf]  ;;  %1241 = vst [vmem:[#allocation2 + $0x8] sm:$0x1] %v1240_v59 }
 0x159   : > { %13974 = vmatpush3.bf16.msra.mxu0 %v2362_v18  ;;  %v1892_v22 = vshrl.u32 %v1827_v62, 16  ;;  %v1213_v59 = vld [vmem:[#allocation2 + $0x78] sm:$0x1]  ;;  %1188 = vst [vmem:[#allocation2 + $0xc] sm:$0x1] %v1187_v14 }
 0x15a   : > { %v746_v10 = vadd.f32 %v745_v7, %v744_v63  ;;  %v1888_v63 = vshll.u32 %v1827_v62, 16  ;;  %v15624_v7 = vld [vmem:[%s22040_s4 + $0x4] sm:$0x3]  ;;  %v1269_v62 = vld [vmem:[#allocation2 + $0x80] sm:$0x1] }
 0x15b   : > { %14634 = vmatprep.subr.msk.bf16.mxu0 %vm2360_vm10, %v15624_v7  ;;  %v1894_v4 = vrot.slane %v1892_v22, 4  ;;  %v1270_v22 = vsel %vm15226_vm7, 0, %v1269_v62 }
 0x15c   : > { %v748_v16 = vadd.f32 %v747_v11, %v746_v10  ;;  %v1890_v10 = vrot.slane %v1888_v63, 5  ;;  %v1214_v63 = vsel %vm15161_vm5, 0, %v1213_v59  ;;  %1271 = vst [vmem:[#allocation2 + $0x80] sm:$0x1] %v1270_v22 }
 0x15d   : > { %1215 = vst [vmem:[#allocation2 + $0x78] sm:$0x1] %v1214_v63  ;;  %v15701_v63 = vld [vmem:[%s22038_s2] ss:$0 sm:$0xff] }
 0x15e   : > { %v750_v21 = vadd.f32 %v749_v20, %v748_v16  ;;  %v1826_v11 = vld [vmem:[#allocation2] sm:$0xf]  ;;  %v1895_v16 = vor.u32 %v1894_v4, %v1890_v10 }
 0x15f   : > { %v1879_v17 = vshrl.u32 %v1826_v11, 16  ;;  %v1882_v20 = vshll.u32 %v1826_v11, 16  ;;  %v1245_v4 = vld [vmem:[#allocation2 + $0x20] sm:$0x1] }
 0x160   : > { %v752_v46 = vadd.f32 %v751_v8, %v750_v21  ;;  %v1859_v21 = vld [vmem:[#allocation2 + $0x8] sm:$0x1] }
 0x161   : > { %v1881_v8 = vrot.slane %v1879_v17, 4  ;;  %v1272_v17 = vld [vmem:[#allocation2 + $0x8c] sm:$0x1] }
 0x162   : > { %v754_v26 = vadd.f32 %v753_v24, %v752_v46  ;;  %v1884_v46 = vrot.slane %v1882_v20, 5  ;;  %v1896_v24 = vrot.slane %v1895_v16, 4  ;;  %v1246_v16 = vsel %vm15226_vm7, 0, %v1245_v4  ;;  %v1275_v20 = vld [vmem:[#allocation2 + $0x98] sm:$0x1] }
 0x163   : > { %1247 = vst [vmem:[#allocation2 + $0x20] sm:$0x1] %v1246_v16 }
 0x164   : > { %v755_v29 = vrot.slane %v754_v26, 4 }
 0x166   : > { %v756_v30 = vadd.f32 %v755_v29, %v754_v26  ;;  %v1898_v26 = vshll.u32 %v1859_v21, 16  ;;  %v22130_v29 = vmov 0  ;;  %v1273_v21 = vsel %vm15226_vm7, 0, %v1272_v17 }
 0x167   : > { %v22131_v29 = vsel %vm15628_vm13, 4294967295, %v22130_v29  ;;  %1274 = vst [vmem:[#allocation2 + $0x8c] sm:$0x1] %v1273_v21 }
 0x168   : > { %v757_v33 = vrot.slane %v756_v30, 2  ;;  %22132 = vst [vmem:[#allocation7_spill] sm:$0xff] %v22131_v29 }
 0x16a   : > { %v758_v36 = vadd.f32 %v757_v33, %v756_v30  ;;  %v1885_v30 = vor.u32 %v1884_v46, %v1881_v8  ;;  %v1900_v33 = vrot.slane %v1898_v26, 5  ;;  %v1276_v8 = vsel %vm15226_vm7, 0, %v1275_v20 }
 0x16b   : > { %1277 = vst [vmem:[#allocation2 + $0x98] sm:$0x1] %v1276_v8 }
 0x16c   : > { %v759_v39 = vrot.slane %v758_v36, 1 }
 0x16e   : > { %v760_v40 = vadd.f32 %v759_v39, %v758_v36  ;;  %v1886_v36 = vrot.slane %v1885_v30, 4  ;;  %v1901_v39 = vsel %vm15628_vm13, %v1896_v24, %v1900_v33 }
 0x170   : > { %13971 = vmatmul.mubr.msk.f32.vlgmr.msra.gmra.mxu1 %vm477_vm4, %v760_v40  ;;  %v1891_v40 = vsel %vm15628_vm13, %v1886_v36, %v1890_v10  ;;  %v1189_v10 = vld [vmem:[#allocation2 + $0x18] sm:$0x1] }
 0x171   : > { %14630 = vmatpush3.bf16.msra.mxu1 %v2362_v18  ;;  %v12790_v57 = vcombine.low %v1891_v40, %v1901_v39  ;;  %v1243_v18 = vsel %vm15226_vm7, 0, %v1242_v54  ;;  %v1190_v11 = vsel %vm15161_vm5, 0, %v1189_v10  ;;  %v15661_v39 = vld [vmem:[%s22037_s1] ss:$0 sm:$0xff] }
 0x172   : > { %1244 = vst [vmem:[#allocation2 + $0x14] sm:$0x1] %v1243_v18  ;;  %1191 = vst [vmem:[#allocation2 + $0x18] sm:$0x1] %v1190_v11 }
 0x173   : > { %13975 = vmatprep.mubr.msk.bf16.mxu0 %vm477_vm4, %v12790_v57 }
 0x230   : > { %v830_v46 = vpop.f32.mrf.mxu1 }
 0x231   : > { %v831_v24 = vadd.f32 1e-05, %v830_v46 }
 0x232   : > { %v13972_v26 = vpop.f32.mrf.mxu1 }
 0x233   : > { %14743 = vrsqrt.f32 %v831_v24 }
 0x240   : > { %v14744_v30 = vpop.eup %14743 }
 0x241   : > { %v15654_v33 = vrot.slane %v14744_v30, %v15365_v45 }
 0x243   : > { %v850_v36 = vmul.f32 %v15654_v33, %v15441_v37  ;;  %v851_v40 = vmul.f32 %v15654_v33, %v15448_v49  ;;  %v852_v43 = vmul.f32 %v15654_v33, %v15455_v52  ;;  %v853_v54 = vmul.f32 %v15654_v33, %v15462_v55 }
 0x244   : > { %v854_v57 = vmul.f32 %v15654_v33, %v15469_v58  ;;  %v855_v37 = vmul.f32 %v15654_v33, %v15476_v61  ;;  %v856_v14 = vmul.f32 %v15654_v33, %v15483_v2  ;;  %v857_v18 = vmul.f32 %v15654_v33, %v15490_v6 }
 0x245   : > { %v858_v49 = vmul.f32 %v15654_v33, %v15497_v9  ;;  %v15680_v52 = vmul.f32 %v15661_v39, %v850_v36  ;;  %v15683_v55 = vmul.f32 %v15661_v39, %v851_v40  ;;  %v890_v58 = vmul.f32 %v15661_v39, %v852_v43 }
 0x246   : > { %v891_v59 = vmul.f32 %v15661_v39, %v853_v54  ;;  %v892_v61 = vmul.f32 %v15661_v39, %v854_v57  ;;  %v15690_v2 = vmul.f32 %v15654_v33, %v15427_v31  ;;  %v15694_v6 = vmul.f32 %v15654_v33, %v15434_v35 }
 0x247   : > { %v893_v9 = vmul.f32 %v15661_v39, %v855_v37  ;;  %v894_v62 = vmul.f32 %v15661_v39, %v856_v14  ;;  %v859_v22 = vmul.f32 %v15654_v33, %v15504_v12  ;;  %v860_v31 = vmul.f32 %v15654_v33, %v15511_v19 }
 0x248   : > { %v861_v10 = vmul.f32 %v15654_v33, %v15518_v23  ;;  %v862_v35 = vmul.f32 %v15654_v33, %v15525_v27  ;;  %v863_v4 = vmul.f32 %v15654_v33, %v15532_v32  ;;  %v864_v11 = vmul.f32 %v15654_v33, %v15539_v38 }
 0x249   : > { %v865_v16 = vmul.f32 %v15654_v33, %v15546_v41  ;;  %v866_v12 = vmul.f32 %v15654_v33, %v15553_v44  ;;  %v867_v19 = vmul.f32 %v15654_v33, %v15560_v47  ;;  %v868_v23 = vmul.f32 %v15654_v33, %v15567_v51 }
 0x24a   : > { %v895_v27 = vmul.f32 %v15661_v39, %v857_v18  ;;  %v896_v17 = vmul.f32 %v15661_v39, %v858_v49  ;;  %v15726_v32 = vadd.f32 %v15701_v63, %v890_v58  ;;  %v15729_v38 = vadd.f32 %v15701_v63, %v891_v59 }
 0x24b   : > { %v15732_v41 = vadd.f32 %v15701_v63, %v892_v61  ;;  %v15735_v44 = vadd.f32 %v15701_v63, %v893_v9  ;;  %v869_v47 = vmul.f32 %v15654_v33, %v15574_v56  ;;  %v870_v51 = vmul.f32 %v15654_v33, %v15581_v60 }
 0x24c   : > { %v897_v20 = vmul.f32 %v15661_v39, %v859_v22  ;;  %v15743_v21 = vadd.f32 %v15701_v63, %v894_v62  ;;  %v898_v8 = vmul.f32 %v15661_v39, %v860_v31  ;;  %v899_v46 = vmul.f32 %v15661_v39, %v861_v10 }
 0x24d   : > { %v900_v24 = vmul.f32 %v15661_v39, %v862_v35  ;;  %v901_v26 = vmul.f32 %v15661_v39, %v863_v4  ;;  %v902_v30 = vmul.f32 %v15661_v39, %v864_v11  ;;  %v903_v56 = vmul.f32 %v15661_v39, %v865_v16 }
 0x24e   : > { %v904_v36 = vmul.f32 %v15661_v39, %v866_v12  ;;  %v15753_v60 = vadd.f32 %v15701_v63, %v895_v27  ;;  %v905_v40 = vmul.f32 %v15661_v39, %v867_v19  ;;  %v906_v43 = vmul.f32 %v15661_v39, %v868_v23 }
 0x24f   : > { %v15758_v54 = vadd.f32 %v15701_v63, %v896_v17  ;;  %v12738_v57 = vmul.f32 -1.442695, %v15726_v32  ;;  %v15762_v37 = vadd.f32 %v15701_v63, %v897_v20  ;;  %v12739_v14 = vmul.f32 -1.442695, %v15729_v38 }
 0x250   : > { %v12740_v18 = vmul.f32 -1.442695, %v15732_v41  ;;  %v12741_v49 = vmul.f32 -1.442695, %v15735_v44  ;;  %v907_v58 = vmul.f32 %v15661_v39, %v869_v47  ;;  %v15769_v59 = vadd.f32 %v15701_v63, %v898_v8 }
 0x251   : > { %14745 = vpow2.f32 %v12738_v57  ;;  %v12742_v61 = vmul.f32 -1.442695, %v15743_v21  ;;  %v908_v9 = vmul.f32 %v15661_v39, %v870_v51  ;;  %v15774_v62 = vadd.f32 %v15701_v63, %v899_v46 }
 0x252   : > { %14747 = vpow2.f32 %v12739_v14  ;;  %v12743_v22 = vmul.f32 -1.442695, %v15753_v60  ;;  %v15778_v31 = vadd.f32 %v15701_v63, %v900_v24  ;;  %v15781_v10 = vadd.f32 %v15701_v63, %v901_v26 }
 0x253   : > { %14749 = vpow2.f32 %v12740_v18  ;;  %v12744_v35 = vmul.f32 -1.442695, %v15758_v54  ;;  %v15785_v4 = vadd.f32 %v15701_v63, %v902_v30  ;;  %v15788_v11 = vadd.f32 %v15701_v63, %v903_v56 }
 0x254   : > { %14751 = vpow2.f32 %v12741_v49  ;;  %v12745_v16 = vmul.f32 -1.442695, %v15762_v37  ;;  %v15792_v12 = vadd.f32 %v15701_v63, %v904_v36  ;;  %v12746_v19 = vmul.f32 -1.442695, %v15769_v59  ;;  %v1192_v36 = vld [vmem:[#allocation2 + $0x24] sm:$0x1] }
 0x255   : > { %14753 = vpow2.f32 %v12742_v61  ;;  %v839_v23 = vmul.f32 %v15654_v33, %v15372_v48  ;;  %v15798_v27 = vadd.f32 %v15701_v63, %v905_v40  ;;  %v15801_v17 = vadd.f32 %v15701_v63, %v906_v43  ;;  %v1248_v49 = vld [vmem:[#allocation2 + $0x2c] sm:$0x1] }
 0x256   : > { %14755 = vpow2.f32 %v12743_v22  ;;  %v12747_v47 = vmul.f32 -1.442695, %v15774_v62  ;;  %v15805_v51 = vadd.f32 %v15701_v63, %v907_v58  ;;  %v15808_v20 = vadd.f32 %v15701_v63, %v908_v9  ;;  %v1195_v9 = vld [vmem:[#allocation2 + $0x30] sm:$0x1] }
 0x257   : > { %14757 = vpow2.f32 %v12744_v35  ;;  %v12748_v8 = vmul.f32 -1.442695, %v15778_v31  ;;  %v12749_v48 = vmul.f32 -1.442695, %v15781_v10  ;;  %v12750_v46 = vmul.f32 -1.442695, %v15785_v4 }
 0x258   : > { %14759 = vpow2.f32 %v12745_v16  ;;  %v840_v24 = vmul.f32 %v15654_v33, %v15376_v50  ;;  %v12751_v26 = vmul.f32 -1.442695, %v15788_v11  ;;  %v877_v30 = vmul.f32 %v15661_v39, %v839_v23 }
 0x259   : > { %14761 = vpow2.f32 %v12746_v19  ;;  %v841_v56 = vmul.f32 %v15654_v33, %v15380_v0  ;;  %v12752_v40 = vmul.f32 -1.442695, %v15792_v12  ;;  %v12753_v43 = vmul.f32 -1.442695, %v15798_v27 }
 0x25a   : > { %14763 = vpow2.f32 %v12747_v47  ;;  %v842_v57 = vmul.f32 %v15654_v33, %v15384_v53  ;;  %v12754_v50 = vmul.f32 -1.442695, %v15801_v17  ;;  %v12755_v14 = vmul.f32 -1.442695, %v15805_v51 }
 0x25b   : > { %14765 = vpow2.f32 %v12748_v8  ;;  %v843_v18 = vmul.f32 %v15654_v33, %v15392_v13  ;;  %v12756_v0 = vmul.f32 -1.442695, %v15808_v20  ;;  %v878_v58 = vmul.f32 %v15661_v39, %v840_v24  ;;  %v1251_v13 = vld [vmem:[#allocation2 + $0x38] sm:$0x1] }
 0x25c   : > { %14767 = vpow2.f32 %v12749_v48  ;;  %v1193_v61 = vsel %vm15161_vm5, 0, %v1192_v36  ;;  %v15832_v53 = vadd.f32 %v15701_v63, %v877_v30  ;;  %v879_v22 = vmul.f32 %v15661_v39, %v841_v56 }
 0x25d   : > { %14769 = vpow2.f32 %v12750_v46  ;;  %v844_v35 = vmul.f32 %v15654_v33, %v15398_v15  ;;  %1194 = vst [vmem:[#allocation2 + $0x24] sm:$0x1] %v1193_v61  ;;  %v880_v19 = vmul.f32 %v15661_v39, %v842_v57  ;;  %v1249_v23 = vsel %vm15226_vm7, 0, %v1248_v49  ;;  %v15859_v49 = vld [vmem:[%s22040_s4] sm:$0x3] }
 0x25e   : > { %v14746_v16 = vpop.eup %14745  ;;  %14771 = vpow2.f32 %v12751_v26  ;;  %v845_v47 = vmul.f32 %v15654_v33, %v15406_v5  ;;  %v881_v48 = vmul.f32 %v15661_v39, %v843_v18  ;;  %1250 = vst [vmem:[#allocation2 + $0x2c] sm:$0x1] %v1249_v23  ;;  %v846_v15 = vmul.f32 %v15654_v33, %v15413_v25  ;;  %14633 = vmatprep.subr.msk.bf16.mxu1 %vm2360_vm10, %v15859_v49 }
 0x25f   : > { %v14748_v8 = vpop.eup %14747  ;;  %14773 = vpow2.f32 %v12752_v40  ;;  %v1196_v46 = vsel %vm15161_vm5, 0, %v1195_v9  ;;  %v1056_v26 = vadd.f32 1.0, %v14746_v16  ;;  %v1252_v5 = vsel %vm15226_vm7, 0, %v1251_v13 }
 0x260   : > { %v14750_v24 = vpop.eup %14749  ;;  %14775 = vpow2.f32 %v12753_v43  ;;  %v883_v30 = vmul.f32 %v15661_v39, %v845_v47  ;;  %1197 = vst [vmem:[#allocation2 + $0x30] sm:$0x1] %v1196_v46  ;;  %v1057_v36 = vadd.f32 1.0, %v14748_v8  ;;  %v884_v40 = vmul.f32 %v15661_v39, %v846_v15  ;;  %1253 = vst [vmem:[#allocation2 + $0x38] sm:$0x1] %v1252_v5 }
 0x261   : > { %v14752_v56 = vpop.eup %14751  ;;  %14777 = vpow2.f32 %v12754_v50  ;;  %v847_v25 = vmul.f32 %v15654_v33, %v15420_v28  ;;  %v1058_v18 = vadd.f32 1.0, %v14750_v24  ;;  %v886_v50 = vmul.f32 %v15661_v39, %v15690_v2  ;;  %v1198_v33 = vld [vmem:[#allocation2 + $0x3c] sm:$0x1]  ;;  %v1254_v47 = vld [vmem:[#allocation2 + $0x44] sm:$0x1] }
 0x262   : > { %v14754_v57 = vpop.eup %14753  ;;  %14779 = vpow2.f32 %v12755_v14  ;;  %v15854_v43 = vadd.f32 %v15701_v63, %v883_v30  ;;  %v1059_v9 = vadd.f32 1.0, %v14752_v56  ;;  %v15864_v13 = vadd.f32 %v15701_v63, %v878_v58 }
 0x263   : > { %v14756_v61 = vpop.eup %14755  ;;  %14781 = vpow2.f32 %v12756_v0  ;;  %v15867_v28 = vadd.f32 %v15701_v63, %v884_v40  ;;  %v1060_v16 = vadd.f32 1.0, %v14754_v57  ;;  %v882_v23 = vmul.f32 %v15661_v39, %v844_v35 }
 0x264   : > { %22133 = vst [vmem:[#allocation8_spill] sm:$0xff] %v15854_v43  ;;  %v14758_v14 = vpop.eup %14757  ;;  %14783 = vrcp.f32 %v1056_v26  ;;  %v885_v2 = vmul.f32 %v15661_v39, %v847_v25  ;;  %v1061_v8 = vadd.f32 1.0, %v14756_v61  ;;  %v15874_v58 = vadd.f32 %v15701_v63, %v879_v22 }
 0x265   : > { %22134 = vst [vmem:[#allocation9_spill] sm:$0xff] %v15867_v28  ;;  %v14760_v0 = vpop.eup %14759  ;;  %14785 = vrcp.f32 %v1057_v36  ;;  %v15877_v15 = vadd.f32 %v15701_v63, %v886_v50  ;;  %v1062_v24 = vadd.f32 1.0, %v14758_v14  ;;  %v1199_v35 = vsel %vm15161_vm5, 0, %v1198_v33 }
 0x266   : > { %v14762_v46 = vpop.eup %14761  ;;  %14787 = vrcp.f32 %v1058_v18  ;;  %v15880_v30 = vadd.f32 %v15701_v63, %v885_v2  ;;  %v1063_v5 = vadd.f32 1.0, %v14760_v0  ;;  %v15885_v56 = vadd.f32 %v15701_v63, %v880_v19  ;;  %1200 = vst [vmem:[#allocation2 + $0x3c] sm:$0x1] %v1199_v35 }
 0x267   : > { %22135 = vst [vmem:[#allocation10_spill] sm:$0xff] %v15877_v15  ;;  %v14764_v26 = vpop.eup %14763  ;;  %14789 = vrcp.f32 %v1059_v9  ;;  %v1255_v22 = vsel %vm15226_vm7, 0, %v1254_v47  ;;  %v1064_v40 = vadd.f32 1.0, %v14762_v46  ;;  %v15890_v25 = vadd.f32 %v15701_v63, %v881_v48 }
 0x268   : > { %22136 = vst [vmem:[#allocation11_spill] sm:$0xff] %v15880_v30  ;;  %v14766_v36 = vpop.eup %14765  ;;  %14791 = vrcp.f32 %v1060_v16  ;;  %1256 = vst [vmem:[#allocation2 + $0x44] sm:$0x1] %v1255_v22  ;;  %v887_v57 = vmul.f32 %v15661_v39, %v15694_v6  ;;  %v1065_v50 = vadd.f32 1.0, %v14764_v26  ;;  %v15896_v19 = vadd.f32 %v15701_v63, %v15680_v52 }
 0x269   : > { %22137 = vst [vmem:[#allocation12_spill] sm:$0xff] %v15890_v25  ;;  %v14768_v18 = vpop.eup %14767  ;;  %14793 = vrcp.f32 %v1061_v8  ;;  %v15900_v61 = vadd.f32 %v15701_v63, %v15683_v55  ;;  %v1066_v33 = vadd.f32 1.0, %v14766_v36  ;;  %v15903_v48 = vadd.f32 %v15701_v63, %v882_v23 }
 0x26a   : > { %22138 = vst [vmem:[#allocation13_spill] sm:$0xff] %v15896_v19  ;;  %v14770_v9 = vpop.eup %14769  ;;  %14795 = vrcp.f32 %v1062_v24  ;;  %v15906_v14 = vadd.f32 %v15701_v63, %v887_v57  ;;  %v1067_v6 = vadd.f32 1.0, %v14768_v18  ;;  %v15909_v16 = vmul.f32 -1.442695, %v15832_v53  ;;  %v1257_v18 = vld [vmem:[#allocation2 + $0x50] sm:$0x1] }
 0x26b   : > { %22139 = vst [vmem:[#allocation14_spill] sm:$0xff] %v15900_v61  ;;  %22140 = vst [vmem:[#allocation15_spill] sm:$0xff] %v15903_v48  ;;  %v14772_v39 = vpop.eup %14771  ;;  %14797 = vrcp.f32 %v1063_v5  ;;  %v1068_v2 = vadd.f32 1.0, %v14770_v9  ;;  %v15912_v55 = vmul.f32 -1.442695, %v15864_v13  ;;  %v15925_v35 = vsel %vm2360_vm10, %v15624_v7, 0 }
 0x26c   : > { %22141 = vst [vmem:[#allocation16_spill] sm:$0xff] %v15906_v14  ;;  %v14774_v52 = vpop.eup %14773  ;;  %14799 = vrcp.f32 %v1064_v40  ;;  %v15915_v47 = vmul.f32 -1.442695, %v15874_v58  ;;  %v1069_v0 = vadd.f32 1.0, %v14772_v39  ;;  %v15918_v63 = vmul.f32 -1.442695, %v15885_v56 }
 0x26d   : > { %v14776_v23 = vpop.eup %14775  ;;  %14801 = vrcp.f32 %v1065_v50  ;;  %v15921_v8 = vmul.f32 -1.442695, %v15890_v25  ;;  %v1070_v24 = vadd.f32 1.0, %v14774_v52  ;;  %22142 = vst [vmem:[#allocation17_spill] sm:$0xff] %v15925_v35  ;;  %v15928_v26 = vmul.f32 -1.442695, %v15903_v48 }
 0x26e   : > { %v14778_v46 = vpop.eup %14777  ;;  %14803 = vrcp.f32 %v1066_v33  ;;  %v1201_v5 = vld [vmem:[#allocation2 + $0x48] sm:$0x1]  ;;  %v1071_v36 = vadd.f32 1.0, %v14776_v23  ;;  %v15932_v40 = vsel %vm2360_vm10, %v15859_v49, 0  ;;  %v15937_v7 = vmul.f32 -1.442695, %v15854_v43 }
 0x26f   : > { %v14780_v22 = vpop.eup %14779  ;;  %14805 = vrcp.f32 %v1067_v6  ;;  %22143 = vst [vmem:[#allocation18_spill] sm:$0xff] %v15932_v40  ;;  %v1202_v57 = vsel %vm15161_vm5, 0, %v1201_v5  ;;  %v1072_v9 = vadd.f32 1.0, %v14778_v46  ;;  %v1258_v33 = vsel %vm15226_vm7, 0, %v1257_v18  ;;  %v1204_v49 = vld [vmem:[#allocation2 + $0x54] sm:$0x1] }
 0x270   : > { %v14782_v50 = vpop.eup %14781  ;;  %14807 = vrcp.f32 %v1068_v2  ;;  %1203 = vst [vmem:[#allocation2 + $0x48] sm:$0x1] %v1202_v57  ;;  %v1073_v6 = vadd.f32 1.0, %v14780_v22  ;;  %1259 = vst [vmem:[#allocation2 + $0x50] sm:$0x1] %v1258_v33  ;;  %v1205_v2 = vsel %vm15161_vm5, 0, %v1204_v49 }
 0x271   : > { %v14784_v39 = vpop.eup %14783  ;;  %v1074_v52 = vadd.f32 1.0, %v14782_v50  ;;  %14809 = vrcp.f32 %v1069_v0  ;;  %v1260_v23 = vld [vmem:[#allocation2 + $0x5c] sm:$0x1]  ;;  %v1207_v57 = vld [vmem:[#allocation2 + $0x60] sm:$0x1] }
 0x272   : > { %v14786_v42 = vpop.eup %14785  ;;  %14811 = vrcp.f32 %v1070_v24  ;;  %v1152_v5 = vmul.f32 %v14784_v39, %v15726_v32  ;;  %v1261_v46 = vsel %vm15226_vm7, 0, %v1260_v23  ;;  %1206 = vst [vmem:[#allocation2 + $0x54] sm:$0x1] %v1205_v2  ;;  %v1208_v0 = vsel %vm15161_vm5, 0, %v1207_v57  ;;  %v1210_v22 = vld [vmem:[#allocation2 + $0x6c] sm:$0x1] }
 0x273   : > { %v14788_v18 = vpop.eup %14787  ;;  %14813 = vrcp.f32 %v1071_v36  ;;  %1262 = vst [vmem:[#allocation2 + $0x5c] sm:$0x1] %v1261_v46  ;;  %v1264_v24 = vsel %vm15226_vm7, 0, %v1263_v1  ;;  %v1266_v32 = vld [vmem:[#allocation2 + $0x74] sm:$0x1]  ;;  %v1153_v39 = vmul.f32 %v14786_v42, %v15729_v38  ;;  %v1211_v36 = vsel %vm15161_vm5, 0, %v1210_v22 }
 0x274   : > { %v14790_v50 = vpop.eup %14789  ;;  %14815 = vrcp.f32 %v1072_v9  ;;  %v15951_v33 = vmul.f32 -1.442695, %v15867_v28  ;;  %1209 = vst [vmem:[#allocation2 + $0x60] sm:$0x1] %v1208_v0  ;;  %1265 = vst [vmem:[#allocation2 + $0x68] sm:$0x1] %v1264_v24  ;;  %v15970_v46 = vpack.c.bf16 %v1152_v5, %v1152_v5  ;;  %v15973_v57 = vmul.f32 %v14788_v18, %v15732_v41 }
 0x275   : > { %v14792_v49 = vpop.eup %14791  ;;  %14817 = vrcp.f32 %v1073_v6  ;;  %v15957_v23 = vmul.f32 -1.442695, %v15880_v30  ;;  %v15960_v1 = vmul.f32 -1.442695, %v15877_v15  ;;  %1212 = vst [vmem:[#allocation2 + $0x6c] sm:$0x1] %v1211_v36  ;;  %v15981_v22 = vmul.f32 %v14790_v50, %v15735_v44 }
 0x276   : > { %v1267_v9 = vsel %vm15226_vm7, 0, %v1266_v32  ;;  %v14794_v2 = vpop.eup %14793  ;;  %14819 = vrcp.f32 %v1074_v52  ;;  %v15965_v42 = vmul.f32 -1.442695, %v15896_v19  ;;  %v15968_v38 = vmul.f32 -1.442695, %v15900_v61 }
 0x277   : > { %22144 = vst [vmem:[#allocation19_spill] sm:$0xff] %v15960_v1  ;;  %1268 = vst [vmem:[#allocation2 + $0x74] sm:$0x1] %v1267_v9  ;;  %v14796_v6 = vpop.eup %14795  ;;  %v1157_v0 = vmul.f32 %v14794_v2, %v15753_v60  ;;  %14821 = vpow2.f32 %v15909_v16  ;;  %v15978_v24 = vmul.f32 -1.442695, %v15906_v14  ;;  %v15985_v5 = vpack.c.bf16 %v1153_v39, %v1153_v39 }
 0x278   : > { %22145 = vst [vmem:[#allocation20_spill] sm:$0xff] %v15965_v42  ;;  %22146 = vst [vmem:[#allocation21_spill] sm:$0xff] %v15968_v38  ;;  %v14798_v52 = vpop.eup %14797  ;;  %v1158_v32 = vmul.f32 %v14796_v6, %v15758_v54  ;;  %14823 = vpow2.f32 %v15912_v55  ;;  %v15988_v41 = vmul.f32 %v14792_v49, %v15743_v21  ;;  %v1784_v38 = vld [vmem:[#allocation2 + $0x84] sm:$0xf]  ;;  %v1791_v42 = vld [vmem:[#allocation2 + $0x90] sm:$0xf] }
 0x279   : > { %22147 = vst [vmem:[#allocation22_spill] sm:$0xff] %v15978_v24  ;;  %22148 = vst [vmem:[#allocation23_spill] sm:$0xff] %v15985_v5  ;;  %v14800_v36 = vpop.eup %14799  ;;  %v1159_v60 = vmul.f32 %v14798_v52, %v15762_v37  ;;  %v13586_v16 = vpack.c.bf16 %v1157_v0, %v1157_v0  ;;  %14825 = vpow2.f32 %v15915_v47  ;;  %v1809_v43 = vld [vmem:[#allocation2 + $0xb0] sm:$0x1] }
 0x27a   : > { %22149 = vst [vmem:[#allocation24_spill] sm:$0xff] %v15988_v41  ;;  %v14802_v18 = vpop.eup %14801  ;;  %v1160_v9 = vmul.f32 %v14800_v36, %v15769_v59  ;;  %v15993_v44 = vpack.c.bf16 %v1158_v32, %v1158_v32  ;;  %14827 = vpow2.f32 %v15918_v63 }
 0x27b   : > { %v14804_v55 = vpop.eup %14803  ;;  %v1161_v50 = vmul.f32 %v14802_v18, %v15774_v62  ;;  %v13588_v39 = vpack.c.bf16 %v1159_v60, %v1159_v60  ;;  %v1545_v21 = vshrl.u32 %v13586_v16, 16  ;;  %v1548_v49 = vshll.u32 %v13586_v16, 16 }
 0x27c   : > { %v14806_v2 = vpop.eup %14805  ;;  %v1162_v37 = vmul.f32 %v14804_v55, %v15778_v31  ;;  %v13589_v6 = vpack.c.bf16 %v1160_v9, %v1160_v9  ;;  %v1553_v47 = vshrl.u32 %v15993_v44, 16 }
 0x27d   : > { %v14808_v0 = vpop.eup %14807  ;;  %v1163_v52 = vmul.f32 %v14806_v2, %v15781_v10  ;;  %v13590_v63 = vpack.c.bf16 %v1161_v50, %v1161_v50  ;;  %v16002_v32 = vrot.slane %v1545_v21, 7  ;;  %v1562_v36 = vshrl.u32 %v13588_v39, 16 }
 0x27e   : > { %v14810_v54 = vpop.eup %14809  ;;  %v1164_v62 = vmul.f32 %v14808_v0, %v15785_v4  ;;  %v13591_v60 = vpack.c.bf16 %v1162_v37, %v1162_v37  ;;  %v16005_v16 = vrot.slane %v1553_v47, 7  ;;  %v1565_v31 = vshll.u32 %v13588_v39, 16 }
 0x27f   : > { %v14812_v18 = vpop.eup %14811  ;;  %v1165_v9 = vmul.f32 %v14810_v54, %v15788_v11  ;;  %v13592_v55 = vpack.c.bf16 %v1163_v52, %v1163_v52  ;;  %v16009_v59 = vor.u32 %v1548_v49, %v16002_v32  ;;  %v16011_v10 = vrot.slane %v1562_v36, 7 }
 0x280   : > { %v14814_v50 = vpop.eup %14813  ;;  %v1166_v21 = vmul.f32 %v14812_v18, %v15792_v12  ;;  %v13593_v2 = vpack.c.bf16 %v1164_v62, %v1164_v62  ;;  %v1570_v45 = vshrl.u32 %v13589_v6, 16  ;;  %v1573_v34 = vshll.u32 %v13589_v6, 16 }
 0x281   : > { %v14816_v4 = vpop.eup %14815  ;;  %v1167_v37 = vmul.f32 %v14814_v50, %v15798_v27  ;;  %v13594_v47 = vpack.c.bf16 %v1165_v9, %v1165_v9  ;;  %v16016_v39 = vor.u32 %v1565_v31, %v16011_v10  ;;  %v1579_v36 = vshrl.u32 %v13590_v63, 16 }
 0x282   : > { %v14818_v54 = vpop.eup %14817  ;;  %v1168_v49 = vmul.f32 %v14816_v4, %v15801_v17  ;;  %v13595_v0 = vpack.c.bf16 %v1166_v21, %v1166_v21  ;;  %v16020_v52 = vrot.slane %v1570_v45, 7  ;;  %v1582_v18 = vshll.u32 %v13590_v63, 16 }
 0x283   : > { %v14820_v12 = vpop.eup %14819  ;;  %v1169_v62 = vmul.f32 %v14818_v54, %v15805_v51  ;;  %v13596_v6 = vpack.c.bf16 %v1167_v37, %v1167_v37  ;;  %v1587_v61 = vshrl.u32 %v13591_v60, 16  ;;  %v16034_v4 = vrot.slane %v1579_v36, 7 }
 0x284   : > { %v16023_v27 = vpop.eup %14821  ;;  %v1170_v31 = vmul.f32 %v14820_v12, %v15808_v20  ;;  %v13597_v9 = vpack.c.bf16 %v1168_v49, %v1168_v49  ;;  %v16027_v50 = vor.u32 %v1573_v34, %v16020_v52  ;;  %v1590_v63 = vshll.u32 %v13591_v60, 16 }
 0x285   : > { %v16030_v21 = vpop.eup %14823  ;;  %v16032_v45 = vpack.c.bf16 %v1169_v62, %v1169_v62  ;;  %v16036_v51 = vrot.slane %v1587_v61, 7  ;;  %v1596_v20 = vshrl.u32 %v13592_v55, 16  ;;  %v1599_v49 = vshll.u32 %v13592_v55, 16 }
 0x286   : > { %v16038_v37 = vpop.eup %14825  ;;  %v16040_v54 = vpack.c.bf16 %v1170_v31, %v1170_v31  ;;  %v1604_v12 = vshrl.u32 %v13593_v2, 16  ;;  %v16045_v17 = vor.u32 %v1582_v18, %v16034_v4  ;;  %v1607_v19 = vshll.u32 %v13593_v2, 16 }
 0x287   : > { %v16042_v34 = vpop.eup %14827  ;;  %v16049_v36 = vor.u32 %v1590_v63, %v16036_v51  ;;  %v1598_v60 = vrot.slane %v1596_v20, 7  ;;  %v1613_v31 = vshrl.u32 %v13594_v47, 16  ;;  %v22150_v55 = vmov 0 }
 0x288   : > { %v1606_v11 = vrot.slane %v1604_v12, 7  ;;  %v22151_v55 = vsel %vm16054_vm15, 4294967295, %v22150_v55  ;;  %v1616_v14 = vshll.u32 %v13594_v47, 16  ;;  %v1621_v18 = vshrl.u32 %v13595_v0, 16 }
 0x289   : > { %22152 = vst [vmem:[#allocation25_spill] sm:$0xff] %v22151_v55  ;;  %v1624_v15 = vshll.u32 %v13595_v0, 16  ;;  %v1630_v30 = vshrl.u32 %v13596_v6, 16  ;;  %v1601_v62 = vor.u32 %v1599_v49, %v1598_v60  ;;  %v1602_v41 = vrot.slane %v1598_v60, 4 }
 0x28a   : > { %v1609_v63 = vor.u32 %v1607_v19, %v1606_v11  ;;  %v1611_v5 = vrot.slane %v1606_v11, 4  ;;  %v1615_v61 = vrot.slane %v1613_v31, 7  ;;  %v1623_v20 = vrot.slane %v1621_v18, 7  ;;  %v1798_v19 = vld [vmem:[#allocation2 + $0x9c] sm:$0xf] }
 0x28b   : > { %v1632_v12 = vrot.slane %v1630_v30, 7  ;;  %v1633_v2 = vshll.u32 %v13596_v6, 16  ;;  %v1638_v35 = vshrl.u32 %v13597_v9, 16  ;;  %v1641_v28 = vshll.u32 %v13597_v9, 16  ;;  %v1805_v11 = vld [vmem:[#allocation2 + $0xa8] sm:$0xf] }
 0x28c   : > { %v1610_v24 = vsel %vm16054_vm15, %v1602_v41, %v1609_v63  ;;  %v1647_v47 = vshrl.u32 %v16032_v45, 16  ;;  %v1618_v49 = vor.u32 %v1616_v14, %v1615_v61  ;;  %v1619_v60 = vrot.slane %v1615_v61, 4  ;;  %v1802_v31 = vld [vmem:[#allocation2 + $0xa4] sm:$0x1]  ;;  %v1812_v61 = vld [vmem:[#allocation2 + $0xb4] sm:$0xf] }
 0x28d   : > { %v1626_v30 = vor.u32 %v1624_v15, %v1623_v20  ;;  %v1628_v6 = vrot.slane %v1623_v20, 4  ;;  %1801 = vst.msk [vmem:[#allocation2 + $0xa0] sm:$0xf] %vm1171_vm8, %v1610_v24  ;;  %v1635_v41 = vor.u32 %v1633_v2, %v1632_v12  ;;  %v1636_v18 = vrot.slane %v1632_v12, 4  ;;  %v1816_v15 = vld [vmem:[#allocation2 + $0xbc] sm:$0x1] }
 0x28e   : > { %v1640_v9 = vrot.slane %v1638_v35, 7  ;;  %v1649_v63 = vrot.slane %v1647_v47, 7  ;;  %v1650_v25 = vshll.u32 %v16032_v45, 16  ;;  %v1655_v1 = vshrl.u32 %v16040_v54, 16  ;;  %v1819_v12 = vld [vmem:[#allocation2 + $0xc0] sm:$0xf] }
 0x28f   : > { %v1627_v48 = vsel %vm16054_vm15, %v1619_v60, %v1626_v30  ;;  %v1658_v14 = vshll.u32 %v16040_v54, 16  ;;  %v1785_v35 = vsel %vm16063_vm2, %v16016_v39, %v1784_v38  ;;  %v1792_v45 = vsel %vm16063_vm2, %v16045_v17, %v1791_v42 }
 0x290   : > { %v1643_v20 = vor.u32 %v1641_v28, %v1640_v9  ;;  %v1645_v40 = vrot.slane %v1640_v9, 4  ;;  %v1653_v24 = vrot.slane %v1649_v63, 4  ;;  %1808 = vst.msk [vmem:[#allocation2 + $0xac] sm:$0xf] %vm1171_vm8, %v1627_v48  ;;  %v1652_v2 = vor.u32 %v1650_v25, %v1649_v63  ;;  %1786 = vst [vmem:[#allocation2 + $0x84] sm:$0xf] %v1785_v35 }
 0x291   : > { %v1657_v47 = vrot.slane %v1655_v1, 7  ;;  %v1799_v54 = vsel %vm16063_vm2, %v1601_v62, %v1798_v19  ;;  %v1823_v28 = vld [vmem:[#allocation2 + $0xc8] sm:$0x1]  ;;  %v1803_v38 = vsel %vm15161_vm5, %v1611_v5, %v1802_v31  ;;  %v1806_v48 = vsel %vm16063_vm2, %v1618_v49, %v1805_v11  ;;  %1793 = vst [vmem:[#allocation2 + $0x90] sm:$0xf] %v1792_v45 }
 0x292   : > { %v1644_v60 = vsel %vm16054_vm15, %v1636_v18, %v1643_v20  ;;  %v1810_v25 = vsel %vm15161_vm5, %v1628_v6, %v1809_v43  ;;  %1800 = vst [vmem:[#allocation2 + $0x9c] sm:$0xf] %v1799_v54  ;;  %v1777_v1 = vld [vmem:[#allocation2 + $0x78] sm:$0xf]  ;;  %1807 = vst [vmem:[#allocation2 + $0xa8] sm:$0xf] %v1806_v48  ;;  %v1813_v17 = vsel %vm16063_vm2, %v1635_v41, %v1812_v61 }
 0x293   : > { %v1660_v42 = vor.u32 %v1658_v14, %v1657_v47  ;;  %v1662_v39 = vrot.slane %v1657_v47, 4  ;;  %1815 = vst.msk [vmem:[#allocation2 + $0xb8] sm:$0xf] %vm1171_vm8, %v1644_v60  ;;  %v1817_v5 = vsel %vm15161_vm5, %v1645_v40, %v1816_v15  ;;  %1804 = vst [vmem:[#allocation2 + $0xa4] sm:$0x1] %v1803_v38  ;;  %v1820_v43 = vsel %vm16063_vm2, %v1652_v2, %v1819_v12 }
 0x294   : > { %1811 = vst [vmem:[#allocation2 + $0xb0] sm:$0x1] %v1810_v25  ;;  %v1781_v62 = vld [vmem:[#allocation2 + $0x80] sm:$0x1]  ;;  %v1788_v19 = vld [vmem:[#allocation2 + $0x8c] sm:$0x1]  ;;  %v16140_v20 = vpack.c.bf16 %v15981_v22, %v15981_v22  ;;  %v16149_v22 = vpack.c.bf16 %v15973_v57, %v15973_v57 }
 0x295   : > { %1814 = vst [vmem:[#allocation2 + $0xb4] sm:$0xf] %v1813_v17  ;;  %1818 = vst [vmem:[#allocation2 + $0xbc] sm:$0x1] %v1817_v5  ;;  %v1043_v11 = vadd.f32 1.0, %v16023_v27  ;;  %v1044_v49 = vadd.f32 1.0, %v16030_v21  ;;  %v1661_v31 = vsel %vm16054_vm15, %v1653_v24, %v1660_v42  ;;  %v1824_v40 = vsel %vm15161_vm5, %v1662_v39, %v1823_v28 }
 0x296   : > { %v1551_v30 = vrot.slane %v16002_v32, 4  ;;  %v1795_v6 = vld [vmem:[#allocation2 + $0x98] sm:$0x1]  ;;  %1821 = vst [vmem:[#allocation2 + $0xc0] sm:$0xf] %v1820_v43  ;;  %v22155_v41 = vshll.u32 %v15993_v44, 16  ;;  %v1778_v32 = vsel %vm16063_vm2, %v16009_v59, %v1777_v1 }
 0x297   : > { %v1560_v9 = vrot.slane %v16005_v16, 4  ;;  %1822 = vst.msk [vmem:[#allocation2 + $0xc4] sm:$0xf] %vm1171_vm8, %v1661_v31  ;;  %1825 = vst [vmem:[#allocation2 + $0xc8] sm:$0x1] %v1824_v40  ;;  %14829 = vrcp.f32 %v1043_v11  ;;  %v1045_v27 = vadd.f32 1.0, %v16038_v37 }
 0x298   : > { %v1558_v18 = vor.u32 %v22155_v41, %v16005_v16  ;;  %v1046_v21 = vadd.f32 1.0, %v16042_v34  ;;  %14831 = vrcp.f32 %v1044_v49  ;;  %1779 = vst [vmem:[#allocation2 + $0x78] sm:$0xf] %v1778_v32  ;;  %v22156_v16 = vrot.slane %v16011_v10, 4  ;;  %v1848_v34 = vld [vmem:[#allocation2 + $0x84] sm:$0xf] }
 0x299   : > { %v1782_v44 = vsel %vm15161_vm5, %v1560_v9, %v1781_v62  ;;  %14833 = vrcp.f32 %v1045_v27  ;;  %v22157_v59 = vrot.slane %v16020_v52, 4  ;;  %v22158_v61 = vrot.slane %v16034_v4, 4  ;;  %v1850_v4 = vld [vmem:[#allocation2 + $0x90] sm:$0xf]  ;;  %v1852_v35 = vld [vmem:[#allocation2 + $0x9c] sm:$0xf] }
 0x29a   : > { %v1559_v63 = vsel %vm16054_vm15, %v1551_v30, %v1558_v18  ;;  %v1576_v14 = vsel %vm16054_vm15, %v22156_v16, %v16027_v50  ;;  %1783 = vst [vmem:[#allocation2 + $0x80] sm:$0x1] %v1782_v44  ;;  %v22159_v50 = vrot.slane %v16036_v51, 4  ;;  %14835 = vrcp.f32 %v1046_v21  ;;  %v16143_v12 = vld [vmem:[#allocation2 + $0xa0] sm:$0xf] }
 0x29b   : > { %1780 = vst.msk [vmem:[#allocation2 + $0x7c] sm:$0xf] %vm1171_vm8, %v1559_v63  ;;  %1787 = vst.msk [vmem:[#allocation2 + $0x88] sm:$0xf] %vm1171_vm8, %v1576_v14  ;;  %v1789_v37 = vsel %vm15161_vm5, %v22157_v59, %v1788_v19  ;;  %v1593_v10 = vsel %vm16054_vm15, %v22158_v61, %v16049_v36  ;;  %v2143_v52 = vshrl.u32 %v1848_v34, 16  ;;  %v2146_v24 = vshll.u32 %v1848_v34, 16 }
 0x29c   : > { %v1796_v15 = vsel %vm15161_vm5, %v22159_v50, %v1795_v6  ;;  %1790 = vst [vmem:[#allocation2 + $0x8c] sm:$0x1] %v1789_v37  ;;  %1794 = vst.msk [vmem:[#allocation2 + $0x94] sm:$0xf] %vm1171_vm8, %v1593_v10  ;;  %v2167_v36 = vshrl.u32 %v1850_v4, 16  ;;  %v2170_v51 = vshll.u32 %v1850_v4, 16  ;;  %14837 = vpow2.f32 %v15921_v8 }
 0x29d   : > { %1797 = vst [vmem:[#allocation2 + $0x98] sm:$0x1] %v1796_v15  ;;  %v16145_v2 = vld [vmem:[#allocation2 + $0xa4] sm:$0x1]  ;;  %v2191_v47 = vshrl.u32 %v1852_v35, 16  ;;  %v2145_v45 = vrot.slane %v2143_v52, 4  ;;  %14839 = vpow2.f32 %v15928_v26 }
 0x29e   : > { %v2148_v54 = vrot.slane %v2146_v24, 5  ;;  %v2194_v28 = vshll.u32 %v1852_v35, 16  ;;  %v16152_v60 = vld [vmem:[#allocation2 + $0xa8] sm:$0xf]  ;;  %v2169_v38 = vrot.slane %v2167_v36, 4  ;;  %v2172_v48 = vrot.slane %v2170_v51, 5 }
 0x29f   : > { %v16155_v25 = vrot.slane %v2191_v47, 4  ;;  %14841 = vpow2.f32 %v15937_v7  ;;  %v22160_v57 = vshrl.u32 %v15970_v46, 16  ;;  %v1846_v17 = vld [vmem:[#allocation2 + $0x78] sm:$0xf]  ;;  %v2200_v8 = vshll.u32 %v16143_v12, 16 }
 0x2a0   : > { %v2149_v1 = vor.u32 %v2148_v54, %v2145_v45  ;;  %v16158_v42 = vrot.slane %v2194_v28, 5  ;;  %v2204_v5 = vshrl.u32 %v16143_v12, 16  ;;  %v2210_v62 = vshll.u32 %v16145_v2, 16 }
 0x2a1   : > { %v16162_v39 = vrot.slane %v22160_v57, 7  ;;  %v2215_v26 = vshrl.u32 %v16152_v60, 16  ;;  %v1869_v43 = vld [vmem:[#allocation2 + $0x80] sm:$0x1]  ;;  %v2119_v11 = vshrl.u32 %v1846_v17, 16  ;;  %v2122_v49 = vshll.u32 %v1846_v17, 16 }
 0x2a2   : > { %v1847_v19 = vld [vmem:[#allocation2 + $0x7c] sm:$0xf]  ;;  %v2173_v7 = vor.u32 %v2172_v48, %v2169_v38  ;;  %14843 = vpow2.f32 %v15951_v33  ;;  %v2138_v31 = vshll.u32 %v1869_v43, 16  ;;  %v1849_v40 = vld [vmem:[#allocation2 + $0x88] sm:$0xf]  ;;  %v2197_v41 = vor.u32 %v16158_v42, %v16155_v25 }
 0x2a3   : > { %v2128_v30 = vshll.u32 %v1847_v19, 16  ;;  %v2132_v6 = vshrl.u32 %v1847_v19, 16  ;;  %v2121_v18 = vrot.slane %v2119_v11, 4  ;;  %v2124_v9 = vrot.slane %v2122_v49, 5  ;;  %v1870_v32 = vld [vmem:[#allocation2 + $0x8c] sm:$0x1] }
 0x2a4   : > { %v2152_v27 = vshll.u32 %v1849_v40, 16  ;;  %v2156_v21 = vshrl.u32 %v1849_v40, 16  ;;  %v2150_v16 = vrot.slane %v2149_v1, 4  ;;  %v2162_v14 = vshll.u32 %v1870_v32, 16  ;;  %v16171_v59 = vld [vmem:[#allocation2 + $0x94] sm:$0xf]  ;;  %v14830_v37 = vpop.eup %14829 }
 0x2a5   : > { %v2130_v63 = vrot.slane %v2128_v30, 5  ;;  %v2134_v44 = vrot.slane %v2132_v6, 4  ;;  %v2125_v33 = vor.u32 %v2124_v9, %v2121_v18  ;;  %v2140_v34 = vrot.slane %v2138_v31, 5  ;;  %v14832_v50 = vpop.eup %14831  ;;  %v1714_v31 = vld [vmem:[#allocation2 + $0xc] sm:$0xf] }
 0x2a6   : > { %v2154_v61 = vrot.slane %v2152_v27, 5  ;;  %v2158_v10 = vrot.slane %v2156_v21, 4  ;;  %v1139_v15 = vmul.f32 %v14830_v37, %v15832_v53  ;;  %v2164_v24 = vrot.slane %v2162_v14, 5  ;;  %v14834_v35 = vpop.eup %14833  ;;  %v1718_v27 = vld [vmem:[#allocation2 + $0x14] sm:$0x1] }
 0x2a7   : > { %v2135_v52 = vor.u32 %v2134_v44, %v2130_v63  ;;  %v16174_v4 = vrot.slane %v2173_v7, 4  ;;  %v1140_v36 = vmul.f32 %v14832_v50, %v15864_v13  ;;  %v2126_v51 = vrot.slane %v2125_v33, 4  ;;  %v14836_v54 = vpop.eup %14835  ;;  %v16191_v44 = vld [vmem:[%s22040_s4 + $0x6] sm:$0x3]  ;;  %v1721_v33 = vld [vmem:[#allocation2 + $0x18] sm:$0xf] }
 0x2a8   : > { %v2159_v47 = vor.u32 %v2158_v10, %v2154_v61  ;;  %v2176_v45 = vshll.u32 %v16171_v59, 16  ;;  %v13568_v28 = vpack.c.bf16 %v1139_v15, %v1139_v15  ;;  %v1141_v48 = vmul.f32 %v14834_v35, %v15874_v58  ;;  %v1725_v35 = vld [vmem:[#allocation2 + $0x20] sm:$0x1] }
 0x2a9   : > { %v2136_v38 = vrot.slane %v2135_v52, 4  ;;  %v2155_v1 = vsel %vm15628_vm13, %v2150_v16, %v2154_v61  ;;  %v13569_v53 = vpack.c.bf16 %v1140_v36, %v1140_v36  ;;  %v2131_v57 = vsel %vm15628_vm13, %v2126_v51, %v2130_v63  ;;  %v14838_v13 = vpop.eup %14837  ;;  %v1871_v61 = vld [vmem:[#allocation2 + $0x98] sm:$0x1] }
 0x2aa   : > { %v1142_v17 = vmul.f32 %v14836_v54, %v15885_v56  ;;  %v2160_v19 = vrot.slane %v2159_v47, 4  ;;  %v1392_v43 = vshrl.u32 %v13568_v28, 16  ;;  %v1395_v11 = vshll.u32 %v13568_v28, 16  ;;  %v14840_v30 = vpop.eup %14839 }
 0x2ab   : > { %v2141_v49 = vsel %vm15628_vm13, %v2136_v38, %v2140_v34  ;;  %v13570_v7 = vpack.c.bf16 %v1141_v48, %v1141_v48  ;;  %v1400_v6 = vshrl.u32 %v13569_v53, 16  ;;  %v1403_v58 = vshll.u32 %v13569_v53, 16 }
 0x2ac   : > { %v12800_v40 = vcombine.low %v2131_v57, %v2141_v49  ;;  %v13571_v18 = vpack.c.bf16 %v1142_v17, %v1142_v17  ;;  %v14842_v9 = vpop.eup %14841  ;;  %v1394_v32 = vrot.slane %v1392_v43, 7  ;;  %v2165_v56 = vsel %vm15628_vm13, %v2160_v19, %v2164_v24 }
 0x2ad   : > { %v1409_v21 = vshrl.u32 %v13570_v7, 16  ;;  %v1412_v63 = vshll.u32 %v13570_v7, 16  ;;  %v1402_v16 = vrot.slane %v1400_v6, 7  ;;  %v12801_v34 = vcombine.low %v2155_v1, %v2165_v56  ;;  %v22161_v1 = vld [vmem:[#allocation18_spill] sm:$0xff] }
 0x2ae   : > { %13995 = vmatprep.mubr.msk.bf16.mxu1 %vm477_vm4, %v12800_v40  ;;  %v1417_v14 = vshrl.u32 %v13571_v18, 16  ;;  %v1420_v37 = vshll.u32 %v13571_v18, 16  ;;  %v1397_v50 = vor.u32 %v1395_v11, %v1394_v32  ;;  %v1398_v15 = vrot.slane %v1394_v32, 4  ;;  %v16226_v32 = vld [vmem:[#allocation2 + $0xb0] sm:$0x1] }
 0x2af   : > { %v14844_v10 = vpop.eup %14843  ;;  %v1411_v52 = vrot.slane %v1409_v21, 7  ;;  %14845 = vpow2.f32 %v15957_v23  ;;  %v1405_v24 = vor.u32 %v1403_v58, %v1402_v16  ;;  %v1407_v36 = vrot.slane %v1402_v16, 4  ;;  %13996 = vmatmul.mubr.msk.bf16.vlgmr.msra.gmra.mxu1 %vm477_vm4, %v12801_v34  ;;  %v16213_v58 = vld [vmem:[#allocation2 + $0xac] sm:$0xf] }
 0x2b0   : > { %v1419_v51 = vrot.slane %v1417_v14, 7  ;;  %v2180_v47 = vshrl.u32 %v16171_v59, 16  ;;  %v1715_v54 = vsel %vm16063_vm2, %v1397_v50, %v1714_v31  ;;  %v2178_v48 = vrot.slane %v2176_v45, 5  ;;  %14008 = vmatpush3.bf16.msra.mxu1 %v22161_v1 }
 0x2b1   : > { %v1414_v28 = vor.u32 %v1412_v63, %v1411_v52  ;;  %v1415_v38 = vrot.slane %v1411_v52, 4  ;;  %v1406_v53 = vsel %vm16054_vm15, %v1398_v15, %v1405_v24  ;;  %1716 = vst [vmem:[#allocation2 + $0xc] sm:$0xf] %v1715_v54  ;;  %v1719_v23 = vsel %vm15161_vm5, %v1407_v36, %v1718_v27  ;;  %14635 = vmatprep.subr.msk.bf16.mxu1 %vm2360_vm10, %v16191_v44  ;;  %v22162_v36 = vld [vmem:[#allocation19_spill] sm:$0xff] }
 0x2b2   : > { %v1422_v57 = vor.u32 %v1420_v37, %v1419_v51  ;;  %v1424_v17 = vrot.slane %v1419_v51, 4  ;;  %1717 = vst.msk [vmem:[#allocation2 + $0x10] sm:$0xf] %vm1171_vm8, %v1406_v53  ;;  %1720 = vst [vmem:[#allocation2 + $0x14] sm:$0x1] %v1719_v23  ;;  %v2182_v45 = vrot.slane %v2180_v47, 4  ;;  %v2179_v18 = vsel %vm15628_vm13, %v16174_v4, %v2178_v48 }
 0x2b3   : > { %v1722_v59 = vsel %vm16063_vm2, %v1414_v28, %v1721_v33  ;;  %v2186_v19 = vshll.u32 %v1871_v61, 16  ;;  %v1047_v43 = vadd.f32 1.0, %v14838_v13  ;;  %v1048_v7 = vadd.f32 1.0, %v14840_v30 }
 0x2b4   : > { %v1423_v11 = vsel %vm16054_vm15, %v1415_v38, %v1422_v57  ;;  %1723 = vst [vmem:[#allocation2 + $0x18] sm:$0xf] %v1722_v59  ;;  %v1726_v49 = vsel %vm15161_vm5, %v1424_v17, %v1725_v35  ;;  %v1049_v6 = vadd.f32 1.0, %v14842_v9  ;;  %v2183_v31 = vor.u32 %v2182_v45, %v2178_v48 }
 0x2b5   : > { %1724 = vst.msk [vmem:[#allocation2 + $0x1c] sm:$0xf] %vm1171_vm8, %v1423_v11  ;;  %1727 = vst [vmem:[#allocation2 + $0x20] sm:$0x1] %v1726_v49  ;;  %14847 = vrcp.f32 %v1047_v43  ;;  %v1050_v40 = vadd.f32 1.0, %v14844_v10  ;;  %v2198_v13 = vrot.slane %v2197_v41, 4 }
 0x2b6   : > { %14849 = vrcp.f32 %v1048_v7  ;;  %v2202_v30 = vrot.slane %v2200_v8, 5  ;;  %v2206_v9 = vrot.slane %v2204_v5, 4  ;;  %v2184_v27 = vrot.slane %v2183_v31, 4 }
 0x2b7   : > { %v2188_v21 = vrot.slane %v2186_v19, 5  ;;  %14851 = vrcp.f32 %v1049_v6  ;;  %v2218_v63 = vshll.u32 %v16152_v60, 16  ;;  %v2212_v42 = vrot.slane %v2210_v62, 5 }
 0x2b8   : > { %14853 = vrcp.f32 %v1050_v40  ;;  %v2203_v25 = vsel %vm15628_vm13, %v2198_v13, %v2202_v30  ;;  %v2217_v8 = vrot.slane %v2215_v26, 4  ;;  %v16235_v41 = vld [vmem:[#allocation2 + $0xc] sm:$0xf]  ;;  %v2224_v4 = vshll.u32 %v16213_v58, 16 }
 0x2b9   : > { %v2189_v12 = vsel %vm15628_vm13, %v2184_v27, %v2188_v21  ;;  %v2220_v5 = vrot.slane %v2218_v63, 5  ;;  %v2228_v56 = vshrl.u32 %v16213_v58, 16  ;;  %v16241_v16 = vld [vmem:[#allocation2 + $0x10] sm:$0xf]  ;;  %v16243_v14 = vld [vmem:[#allocation2 + $0x14] sm:$0x1]  ;;  %v2207_v26 = vor.u32 %v2206_v9, %v2202_v30 }
 0x2ba   : > { %v1903_v2 = vshrl.u32 %v16235_v41, 16  ;;  %v1906_v62 = vshll.u32 %v16235_v41, 16  ;;  %v12802_v60 = vcombine.low %v2179_v18, %v2189_v12  ;;  %v1912_v37 = vshll.u32 %v16241_v16, 16  ;;  %v22163_v12 = vld [vmem:[#allocation12_spill] sm:$0xff] }
 0x2bb   : > { %v1916_v33 = vshrl.u32 %v16241_v16, 16  ;;  %v1922_v34 = vshll.u32 %v16243_v14, 16  ;;  %v16250_v61 = vld [vmem:[#allocation2 + $0x18] sm:$0xf]  ;;  %v2234_v10 = vshll.u32 %v16226_v32, 16  ;;  %14855 = vpow2.f32 %v22162_v36 }
 0x2bc   : > { %v16253_v50 = vpop.eup %14845  ;;  %v1905_v15 = vrot.slane %v1903_v2, 4  ;;  %v1908_v52 = vrot.slane %v1906_v62, 5  ;;  %v16255_v35 = vld [vmem:[#allocation2 + $0x1c] sm:$0xf]  ;;  %v1927_v24 = vshrl.u32 %v16250_v61, 16  ;;  %13999 = vmatprep.mubr.msk.bf16.mxu1 %vm477_vm4, %v12802_v60  ;;  %v1914_v51 = vrot.slane %v1912_v37, 5 }
 0x2bd   : > { %v1918_v47 = vrot.slane %v1916_v33, 4  ;;  %v1924_v54 = vrot.slane %v1922_v34, 5  ;;  %v16260_v28 = vld [vmem:[#allocation2 + $0x20] sm:$0x1]  ;;  %v1930_v38 = vshll.u32 %v16250_v61, 16  ;;  %v1936_v53 = vshll.u32 %v16255_v35, 16 }
 0x2be   : > { %v1909_v48 = vor.u32 %v1908_v52, %v1905_v15  ;;  %v1929_v1 = vrot.slane %v1927_v24, 4  ;;  %v1940_v23 = vshrl.u32 %v16255_v35, 16  ;;  %v1946_v59 = vshll.u32 %v16260_v28, 16  ;;  %v22165_v15 = vld [vmem:[#allocation8_spill] sm:$0xff] }
 0x2bf   : > { %v1919_v57 = vor.u32 %v1918_v47, %v1914_v51  ;;  %v1932_v17 = vrot.slane %v1930_v38, 5  ;;  %v2208_v45 = vrot.slane %v2207_v26, 4  ;;  %v1938_v43 = vrot.slane %v1936_v53, 5  ;;  %v22164_v26 = vld [vmem:[#allocation15_spill] sm:$0xff]  ;;  %v22167_v38 = vld [vmem:[#allocation17_spill] sm:$0xff] }
 0x2c0   : > { %v1910_v19 = vrot.slane %v1909_v48, 4  ;;  %v1942_v11 = vrot.slane %v1940_v23, 4  ;;  %v2221_v49 = vor.u32 %v2220_v5, %v2217_v8  ;;  %v1948_v58 = vrot.slane %v1946_v59, 5  ;;  %v16298_v32 = vld [vmem:[#allocation2 + $0xb4] sm:$0xf] }
 0x2c1   : > { %v1920_v7 = vrot.slane %v1919_v57, 4  ;;  %v1933_v6 = vor.u32 %v1932_v17, %v1929_v1  ;;  %v2213_v31 = vsel %vm15628_vm13, %v2208_v45, %v2212_v42  ;;  %v2226_v5 = vrot.slane %v2224_v4, 5  ;;  %v16283_v4 = vld [vmem:[%s22040_s4 + $0x8] sm:$0x3] }
 0x2c2   : > { %v14848_v40 = vpop.eup %14847  ;;  %v1915_v13 = vsel %vm15628_vm13, %v1910_v19, %v1914_v51  ;;  %v1943_v18 = vor.u32 %v1942_v11, %v1938_v43  ;;  %v12803_v30 = vcombine.low %v2203_v25, %v2213_v31  ;;  %v2222_v9 = vrot.slane %v2221_v49, 4  ;;  %v22166_v51 = vld [vmem:[#allocation9_spill] sm:$0xff] }
 0x2c3   : > { %v14850_v27 = vpop.eup %14849  ;;  %v1925_v21 = vsel %vm15628_vm13, %v1920_v7, %v1924_v54  ;;  %v1934_v63 = vrot.slane %v1933_v6, 4  ;;  %v1143_v8 = vmul.f32 %v14848_v40, %v22163_v12  ;;  %v2230_v37 = vrot.slane %v2228_v56, 4 }
 0x2c4   : > { %v14852_v2 = vpop.eup %14851  ;;  %v12791_v62 = vcombine.low %v1915_v13, %v1925_v21  ;;  %v1944_v60 = vrot.slane %v1943_v18, 4  ;;  %v1144_v42 = vmul.f32 %v14850_v27, %v22164_v26  ;;  %14000 = vmatmul.mubr.msk.bf16.gmra.mxu1 %vm477_vm4, %v12803_v30  ;;  %v2227_v24 = vsel %vm15628_vm13, %v2222_v9, %v2226_v5  ;;  %v1732_v9 = vld [vmem:[#allocation2 + $0x2c] sm:$0x1] }
 0x2c5   : > { %v14854_v33 = vpop.eup %14853  ;;  %v1939_v25 = vsel %vm15628_vm13, %v1934_v63, %v1938_v43  ;;  %v13572_v34 = vpack.c.bf16 %v1143_v8, %v1143_v8  ;;  %v1145_v52 = vmul.f32 %v14852_v2, %v22165_v15  ;;  %v2231_v54 = vor.u32 %v2230_v37, %v2226_v5  ;;  %v1735_v5 = vld [vmem:[#allocation2 + $0x30] sm:$0xf] }
 0x2c6   : > { %13976 = vmatmul.mubr.msk.bf16.vlgmr.msra.gmra.mxu0 %vm477_vm4, %v12791_v62  ;;  %v1949_v56 = vsel %vm15628_vm13, %v1944_v60, %v1948_v58  ;;  %v13573_v36 = vpack.c.bf16 %v1144_v42, %v1144_v42  ;;  %v1146_v47 = vmul.f32 %v14854_v33, %v22166_v51  ;;  %v2236_v7 = vrot.slane %v2234_v10, 5  ;;  %v1728_v58 = vld [vmem:[#allocation2 + $0x24] sm:$0xf]  ;;  %v16302_v42 = vld [vmem:[#allocation2 + $0xb8] sm:$0xf] }
 0x2c7   : > { %14042 = vmatpush3.bf16.msra.mxu0 %v22167_v38  ;;  %v12792_v48 = vcombine.low %v1939_v25, %v1949_v56  ;;  %v1426_v1 = vshrl.u32 %v13572_v34, 16  ;;  %v1429_v53 = vshll.u32 %v13572_v34, 16  ;;  %v13574_v23 = vpack.c.bf16 %v1145_v52, %v1145_v52  ;;  %v16312_v52 = vld [vmem:[#allocation2 + $0xbc] sm:$0x1] }
 0x2c8   : > { %v1434_v57 = vshrl.u32 %v13573_v36, 16  ;;  %v1437_v17 = vshll.u32 %v13573_v36, 16  ;;  %v13575_v59 = vpack.c.bf16 %v1146_v47, %v1146_v47  ;;  %v2232_v45 = vrot.slane %v2231_v54, 4  ;;  %14636 = vmatprep.subr.msk.bf16.mxu0 %vm2360_vm10, %v16283_v4  ;;  %v14856_v19 = vpop.eup %14855  ;;  %v22168_v54 = vld [vmem:[#allocation22_spill] sm:$0xff] }
 0x2c9   : > { %13979 = vmatprep.mubr.msk.bf16.mxu0 %vm477_vm4, %v12792_v48  ;;  %v1428_v43 = vrot.slane %v1426_v1, 7  ;;  %v1443_v11 = vshrl.u32 %v13574_v23, 16  ;;  %v1446_v49 = vshll.u32 %v13574_v23, 16  ;;  %v1051_v13 = vadd.f32 1.0, %v16253_v50  ;;  %v1739_v50 = vld [vmem:[#allocation2 + $0x38] sm:$0x1] }
 0x2ca   : > { %v1436_v6 = vrot.slane %v1434_v57, 7  ;;  %v1451_v31 = vshrl.u32 %v13575_v59, 16  ;;  %v1454_v40 = vshll.u32 %v13575_v59, 16  ;;  %v2237_v21 = vsel %vm15628_vm13, %v2232_v45, %v2236_v7  ;;  %v22169_v23 = vld [vmem:[#allocation20_spill] sm:$0xff] }
 0x2cb   : > { %v1431_v18 = vor.u32 %v1429_v53, %v1428_v43  ;;  %v1432_v30 = vrot.slane %v1428_v43, 4  ;;  %v1445_v27 = vrot.slane %v1443_v11, 7  ;;  %v12804_v2 = vcombine.low %v2227_v24, %v2237_v21  ;;  %v1760_v53 = vld [vmem:[#allocation2 + $0x5c] sm:$0x1]  ;;  %v22171_v11 = vld [vmem:[#allocation23_spill] sm:$0xff] }
 0x2cc   : > { %v1439_v63 = vor.u32 %v1437_v17, %v1436_v6  ;;  %v1441_v12 = vrot.slane %v1436_v6, 4  ;;  %v1453_v8 = vrot.slane %v1451_v31, 7  ;;  %v1052_v26 = vadd.f32 1.0, %v14856_v19  ;;  %v22170_v43 = vld [vmem:[#allocation21_spill] sm:$0xff] }
 0x2cd   : > { %v1729_v10 = vsel %vm16063_vm2, %v1431_v18, %v1728_v58  ;;  %v1448_v62 = vor.u32 %v1446_v49, %v1445_v27  ;;  %v1449_v60 = vrot.slane %v1445_v27, 4  ;;  %14003 = vmatprep.mubr.msk.bf16.mxu1 %vm477_vm4, %v12804_v2  ;;  %14857 = vrcp.f32 %v1051_v13  ;;  %v22172_v27 = vld [vmem:[#allocation24_spill] sm:$0xff] }
 0x2ce   : > { %v1440_v37 = vsel %vm16054_vm15, %v1432_v30, %v1439_v63  ;;  %1730 = vst [vmem:[#allocation2 + $0x24] sm:$0xf] %v1729_v10  ;;  %v1733_v33 = vsel %vm15161_vm5, %v1441_v12, %v1732_v9  ;;  %v1456_v25 = vor.u32 %v1454_v40, %v1453_v8  ;;  %v1458_v34 = vrot.slane %v1453_v8, 4 }
 0x2cf   : > { %1731 = vst.msk [vmem:[#allocation2 + $0x28] sm:$0xf] %vm1171_vm8, %v1440_v37  ;;  %1734 = vst [vmem:[#allocation2 + $0x2c] sm:$0x1] %v1733_v33  ;;  %v1736_v15 = vsel %vm16063_vm2, %v1448_v62, %v1735_v5  ;;  %v2239_v24 = vshrl.u32 %v16298_v32, 16  ;;  %v2242_v56 = vshll.u32 %v16298_v32, 16  ;;  %14859 = vrcp.f32 %v1052_v26 }
 0x2d0   : > { %v1457_v36 = vsel %vm16054_vm15, %v1449_v60, %v1456_v25  ;;  %1737 = vst [vmem:[#allocation2 + $0x30] sm:$0xf] %v1736_v15  ;;  %v1740_v51 = vsel %vm15161_vm5, %v1458_v34, %v1739_v50  ;;  %v2248_v47 = vshll.u32 %v16302_v42, 16  ;;  %14861 = vpow2.f32 %v22168_v54 }
 0x2d1   : > { %1738 = vst.msk [vmem:[#allocation2 + $0x34] sm:$0xf] %vm1171_vm8, %v1457_v36  ;;  %1741 = vst [vmem:[#allocation2 + $0x38] sm:$0x1] %v1740_v51  ;;  %v2241_v38 = vrot.slane %v2239_v24, 4  ;;  %v2244_v48 = vrot.slane %v2242_v56, 5  ;;  %14863 = vpow2.f32 %v22169_v23  ;;  %v16343_v21 = vpack.c.bf16 %v22172_v27, %v22172_v27 }
 0x2d2   : > { %v2252_v1 = vshrl.u32 %v16302_v42, 16  ;;  %v16325_v57 = vrot.slane %v2248_v47, 5  ;;  %v2258_v17 = vshll.u32 %v16312_v52, 16  ;;  %v1509_v59 = vrot.slane %v16162_v39, 4  ;;  %v16365_v24 = vld [vmem:[#allocation2 + $0x4] sm:$0xf] }
 0x2d3   : > { %v2245_v45 = vor.u32 %v2244_v48, %v2241_v38  ;;  %14865 = vpow2.f32 %v22170_v43  ;;  %v1511_v49 = vshrl.u32 %v22171_v11, 16  ;;  %v1531_v7 = vshll.u32 %v16140_v20, 16  ;;  %v15004_v56 = vld [vmem:[#allocation2] sm:$0xf] }
 0x2d4   : > { %v2254_v19 = vrot.slane %v2252_v1, 4  ;;  %v2260_v58 = vrot.slane %v2258_v17, 5  ;;  %v1761_v31 = vsel %vm15161_vm5, %v1509_v59, %v1760_v53  ;;  %v1514_v30 = vshll.u32 %v22171_v11, 16 }
 0x2d5   : > { %v16335_v40 = vld [vmem:[#allocation2 + $0x24] sm:$0xf]  ;;  %v2246_v13 = vrot.slane %v2245_v45, 4  ;;  %1762 = vst [vmem:[#allocation2 + $0x5c] sm:$0x1] %v1761_v31  ;;  %v16337_v18 = vrot.slane %v1511_v49, 7  ;;  %v12822_v36 = vcombine.low %v15004_v56, %v16365_v24 }
 0x2d6   : > { %v1519_v9 = vshrl.u32 %v16149_v22, 16  ;;  %v16345_v63 = vld [vmem:[#allocation2 + $0x28] sm:$0xf]  ;;  %v16347_v12 = vld [vmem:[#allocation2 + $0x2c] sm:$0x1]  ;;  %v1951_v8 = vshrl.u32 %v16335_v40, 16  ;;  %v2255_v2 = vor.u32 %v2254_v19, %v16325_v57 }
 0x2d7   : > { %v1954_v5 = vshll.u32 %v16335_v40, 16  ;;  %v1960_v10 = vshll.u32 %v16345_v63, 16  ;;  %v1964_v62 = vshrl.u32 %v16345_v63, 16  ;;  %v1970_v60 = vshll.u32 %v16347_v12, 16  ;;  %v16355_v50 = vld [vmem:[#allocation2 + $0x30] sm:$0xf] }
 0x2d8   : > { %v1522_v26 = vshll.u32 %v16149_v22, 16  ;;  %v1953_v37 = vrot.slane %v1951_v8, 4  ;;  %v16358_v25 = vld [vmem:[#allocation2 + $0x34] sm:$0xf]  ;;  %v16360_v34 = vld [vmem:[#allocation2 + $0x38] sm:$0x1]  ;;  %v2251_v15 = vsel %vm15628_vm13, %v2246_v13, %v16325_v57 }
 0x2d9   : > { %v1956_v33 = vrot.slane %v1954_v5, 5  ;;  %v1962_v51 = vrot.slane %v1960_v10, 5  ;;  %v1966_v47 = vrot.slane %v1964_v62, 4  ;;  %v1972_v54 = vrot.slane %v1970_v60, 5  ;;  %v22173_v5 = vld [vmem:[#allocation11_spill] sm:$0xff] }
 0x2da   : > { %v1975_v38 = vshrl.u32 %v16355_v50, 16  ;;  %v1978_v1 = vshll.u32 %v16355_v50, 16  ;;  %v1984_v53 = vshll.u32 %v16358_v25, 16  ;;  %v1988_v23 = vshrl.u32 %v16358_v25, 16  ;;  %v14858_v19 = vpop.eup %14857 }
 0x2db   : > { %v1957_v48 = vor.u32 %v1956_v33, %v1953_v37  ;;  %v1967_v17 = vor.u32 %v1966_v47, %v1962_v51  ;;  %v1994_v57 = vshll.u32 %v16360_v34, 16  ;;  %v2256_v45 = vrot.slane %v2255_v2, 4  ;;  %v22174_v2 = vld [vmem:[#allocation10_spill] sm:$0xff] }
 0x2dc   : > { %v1977_v59 = vrot.slane %v1975_v38, 4  ;;  %v1980_v11 = vrot.slane %v1978_v1, 5  ;;  %v1986_v49 = vrot.slane %v1984_v53, 5  ;;  %v1990_v31 = vrot.slane %v1988_v23, 4  ;;  %v14860_v13 = vpop.eup %14859 }
 0x2dd   : > { %v1958_v43 = vrot.slane %v1957_v48, 4  ;;  %v1968_v27 = vrot.slane %v1967_v17, 4  ;;  %v1996_v8 = vrot.slane %v1994_v57, 5  ;;  %v1147_v10 = vmul.f32 %v14858_v19, %v22173_v5  ;;  %v14862_v60 = vpop.eup %14861 }
 0x2de   : > { %v2261_v62 = vsel %vm15628_vm13, %v2256_v45, %v2260_v58  ;;  %v1981_v33 = vor.u32 %v1980_v11, %v1977_v59  ;;  %v1991_v56 = vor.u32 %v1990_v31, %v1986_v49  ;;  %v1148_v47 = vmul.f32 %v14860_v13, %v22174_v2  ;;  %v14864_v38 = vpop.eup %14863  ;;  %v1763_v11 = vld [vmem:[#allocation2 + $0x60] sm:$0xf] }
 0x2df   : > { %v1963_v37 = vsel %vm15628_vm13, %v1958_v43, %v1962_v51  ;;  %v1973_v48 = vsel %vm15628_vm13, %v1968_v27, %v1972_v54  ;;  %v13576_v1 = vpack.c.bf16 %v1147_v10, %v1147_v10  ;;  %v1053_v53 = vadd.f32 1.0, %v14862_v60 }
 0x2e0   : > { %v12805_v23 = vcombine.low %v2251_v15, %v2261_v62  ;;  %v14866_v17 = vpop.eup %14865  ;;  %v12793_v57 = vcombine.low %v1963_v37, %v1973_v48  ;;  %v1982_v19 = vrot.slane %v1981_v33, 4  ;;  %v1992_v5 = vrot.slane %v1991_v56, 4  ;;  %v1746_v33 = vld [vmem:[#allocation2 + $0x44] sm:$0x1] }
 0x2e1   : > { %v13577_v58 = vpack.c.bf16 %v1148_v47, %v1148_v47  ;;  %v1460_v45 = vshrl.u32 %v13576_v1, 16  ;;  %v1054_v6 = vadd.f32 1.0, %v14864_v38  ;;  %14867 = vrcp.f32 %v1053_v53  ;;  %v1767_v47 = vld [vmem:[#allocation2 + $0x68] sm:$0x1] }
 0x2e2   : > { %14004 = vmatmul.mubr.msk.bf16.gmra.mxu1 %vm477_vm4, %v12805_v23  ;;  %v1516_v51 = vor.u32 %v1514_v30, %v16337_v18  ;;  %13980 = vmatmul.mubr.msk.bf16.gmra.mxu0 %vm477_vm4, %v12793_v57  ;;  %v1987_v54 = vsel %vm15628_vm13, %v1982_v19, %v1986_v49  ;;  %v1997_v15 = vsel %vm15628_vm13, %v1992_v5, %v1996_v8  ;;  %v1463_v59 = vshll.u32 %v13576_v1, 16  ;;  %v1742_v30 = vld [vmem:[#allocation2 + $0x3c] sm:$0xf]  ;;  %v1770_v23 = vld [vmem:[#allocation2 + $0x6c] sm:$0xf] }
 0x2e3   : > { %v1468_v43 = vshrl.u32 %v13577_v58, 16  ;;  %14009 = vmatprep.mubr.msk.bf16.mxu1 %vm477_vm4, %v12822_v36  ;;  %v12794_v31 = vcombine.low %v1987_v54, %v1997_v15  ;;  %v1462_v13 = vrot.slane %v1460_v45, 7  ;;  %14869 = vrcp.f32 %v1054_v6  ;;  %v1774_v45 = vld [vmem:[#allocation2 + $0x74] sm:$0x1]  ;;  %v16425_v54 = vld [vmem:[#allocation2 + $0x5c] sm:$0x1] }
 0x2e4   : > { %v1055_v27 = vadd.f32 1.0, %v14866_v17  ;;  %v1471_v62 = vshll.u32 %v13577_v58, 16  ;;  %v1517_v60 = vrot.slane %v16337_v18, 4  ;;  %v1521_v49 = vrot.slane %v1519_v9, 7  ;;  %v2818_v17 = vld [vmem:[#allocation2 + $0xc] sm:$0xe] }
 0x2e5   : > { %v1470_v10 = vrot.slane %v1468_v43, 7  ;;  %13983 = vmatprep.mubr.msk.bf16.mxu0 %vm477_vm4, %v12794_v31  ;;  %v1465_v8 = vor.u32 %v1463_v59, %v1462_v13  ;;  %v1466_v37 = vrot.slane %v1462_v13, 4  ;;  %v1764_v36 = vsel %vm16063_vm2, %v1516_v51, %v1763_v11 }
 0x2e6   : > { %14871 = vrcp.f32 %v1055_v27  ;;  %v1524_v2 = vor.u32 %v1522_v26, %v1521_v49  ;;  %1765 = vst [vmem:[#allocation2 + $0x60] sm:$0xf] %v1764_v36  ;;  %v12823_v18 = vcombine.low %v16235_v41, %v16241_v16  ;;  %v1526_v38 = vrot.slane %v1521_v49, 4 }
 0x2e7   : > { %v1473_v56 = vor.u32 %v1471_v62, %v1470_v10  ;;  %v1475_v6 = vrot.slane %v1470_v10, 4  ;;  %v1743_v9 = vsel %vm16063_vm2, %v1465_v8, %v1742_v30  ;;  %v1528_v48 = vshrl.u32 %v16140_v20, 16 }
 0x2e8   : > { %v1536_v1 = vshrl.u32 %v16343_v21, 16  ;;  %1744 = vst [vmem:[#allocation2 + $0x3c] sm:$0xf] %v1743_v9  ;;  %v1525_v26 = vsel %vm16054_vm15, %v1517_v60, %v1524_v2  ;;  %v12824_v41 = vcombine.low %v16250_v61, %v16255_v35  ;;  %v1768_v57 = vsel %vm15161_vm5, %v1526_v38, %v1767_v47  ;;  %v16420_v61 = vld [vmem:[%s22040_s4 + $0xa] sm:$0x3] }
 0x2e9   : > { %v1474_v53 = vsel %vm16054_vm15, %v1466_v37, %v1473_v56  ;;  %v1747_v22 = vsel %vm15161_vm5, %v1475_v6, %v1746_v33  ;;  %1766 = vst.msk [vmem:[#allocation2 + $0x64] sm:$0xf] %vm1171_vm8, %v1525_v26  ;;  %v1530_v19 = vrot.slane %v1528_v48, 7  ;;  %v1539_v58 = vshll.u32 %v16343_v21, 16  ;;  %1769 = vst [vmem:[#allocation2 + $0x68] sm:$0x1] %v1768_v57 }
 0x2ea   : > { %1745 = vst.msk [vmem:[#allocation2 + $0x40] sm:$0xf] %vm1171_vm8, %v1474_v53  ;;  %1748 = vst [vmem:[#allocation2 + $0x44] sm:$0x1] %v1747_v22  ;;  %14010 = vmatmul.mubr.msk.bf16.vlgmr.msra.gmra.mxu1 %vm477_vm4, %v12823_v18  ;;  %v1538_v5 = vrot.slane %v1536_v1, 7  ;;  %v3437_v51 = vsel %vm2360_vm10, %v16191_v44, 0 }
 0x2eb   : > { %14013 = vmatprep.mubr.msk.bf16.mxu1 %vm477_vm4, %v12824_v41  ;;  %v1533_v15 = vor.u32 %v1531_v7, %v1530_v19  ;;  %v1534_v21 = vrot.slane %v1530_v19, 4  ;;  %14076 = vmatpush3.bf16.msra.mxu1 %v3437_v51  ;;  %v22175_v11 = vmov 0  ;;  %v12855_v31 = vrot.slane %v2818_v17, 9  ;;  %v22179_v37 = vld [vmem:[#allocation16_spill] sm:$0xff]  ;;  %v22181_v22 = vld [vmem:[#allocation13_spill] sm:$0xff] }
 0x2ec   : > { %v1541_v59 = vor.u32 %v1539_v58, %v1538_v5  ;;  %v1543_v43 = vrot.slane %v1538_v5, 4  ;;  %v22176_v11 = vsel %vm16429_vm14, 4294967295, %v22175_v11  ;;  %v22178_v13 = vrot.slane %v16241_v16, 5  ;;  %14637 = vmatprep.subr.msk.bf16.mxu1 %vm2360_vm10, %v16420_v61  ;;  %v2821_v38 = vld [vmem:[#allocation2 + $0x30] sm:$0xe] }
 0x2ed   : > { %22177 = vst [vmem:[#allocation18_spill] sm:$0xff] %v22176_v11  ;;  %v2880_v44 = vrot.slane %v16243_v14, 5  ;;  %v16438_v10 = vld [vmem:[#allocation2 + $0x60] sm:$0xf]  ;;  %v1771_v7 = vsel %vm16063_vm2, %v1533_v15, %v1770_v23  ;;  %v1505_v60 = vshll.u32 %v15970_v46, 16  ;;  %v2066_v49 = vshll.u32 %v16425_v54, 16 }
 0x2ee   : > { %v2879_v27 = vrot.slane %v22178_v13, 4  ;;  %v1542_v20 = vsel %vm16054_vm15, %v1534_v21, %v1541_v59  ;;  %v1775_v62 = vsel %vm15161_vm5, %v1543_v43, %v1774_v45  ;;  %v14868_v30 = vpop.eup %14867  ;;  %1772 = vst [vmem:[#allocation2 + $0x6c] sm:$0xf] %v1771_v7  ;;  %v12825_v14 = vcombine.low %v16335_v40, %v16345_v63  ;;  %v22182_v59 = vld [vmem:[#allocation14_spill] sm:$0xff] }
 0x2ef   : > { %1773 = vst.msk [vmem:[#allocation2 + $0x70] sm:$0xf] %vm1171_vm8, %v1542_v20  ;;  %1776 = vst [vmem:[#allocation2 + $0x74] sm:$0x1] %v1775_v62  ;;  %v16451_v8 = vld [vmem:[#allocation2 + $0x3c] sm:$0xf]  ;;  %v1149_v33 = vmul.f32 %v14868_v30, %v22179_v37  ;;  %v22180_v56 = vmov %v22178_v13  ;;  %v12826_v16 = vcombine.low %v16355_v50, %v16358_v25  ;;  %v1507_v45 = vor.u32 %v1505_v60, %v16162_v39 }
 0x2f0   : > { %v2071_v36 = vshrl.u32 %v16438_v10, 16  ;;  %v16459_v46 = vsel %vm16429_vm14, %v12855_v31, %v22180_v56  ;;  %v16463_v6 = vsel %vm16429_vm14, %v2879_v27, %v2880_v44  ;;  %v14870_v2 = vpop.eup %14869  ;;  %v1999_v18 = vshrl.u32 %v16451_v8, 16  ;;  %v16483_v51 = vld [vmem:[#allocation2 + $0x64] sm:$0xf]  ;;  %v1749_v56 = vld [vmem:[#allocation2 + $0x48] sm:$0xf] }
 0x2f1   : > { %v16465_v47 = vld [vmem:[#allocation2 + $0x40] sm:$0xf]  ;;  %v16467_v40 = vld [vmem:[#allocation2 + $0x44] sm:$0x1]  ;;  %v2002_v9 = vshll.u32 %v16451_v8, 16  ;;  %v1150_v26 = vmul.f32 %v14870_v2, %v22181_v22  ;;  %v13578_v57 = vpack.c.bf16 %v1149_v33, %v1149_v33  ;;  %v2074_v19 = vshll.u32 %v16438_v10, 16 }
 0x2f2   : > { %v2008_v48 = vshll.u32 %v16465_v47, 16  ;;  %v2012_v1 = vshrl.u32 %v16465_v47, 16  ;;  %v2018_v53 = vshll.u32 %v16467_v40, 16  ;;  %14014 = vmatmul.mubr.msk.bf16.gmra.mxu1 %vm477_vm4, %v12825_v14  ;;  %v2001_v23 = vrot.slane %v1999_v18, 4 }
 0x2f3   : > { %v14872_v41 = vpop.eup %14871  ;;  %v2004_v17 = vrot.slane %v2002_v9, 5  ;;  %14017 = vmatprep.mubr.msk.bf16.mxu1 %vm477_vm4, %v12826_v16  ;;  %v13579_v58 = vpack.c.bf16 %v1150_v26, %v1150_v26  ;;  %v1477_v21 = vshrl.u32 %v13578_v57, 16  ;;  %v2073_v31 = vrot.slane %v2071_v36, 4  ;;  %v1753_v9 = vld [vmem:[#allocation2 + $0x50] sm:$0x1] }
 0x2f4   : > { %v2010_v50 = vrot.slane %v2008_v48, 5  ;;  %v2014_v5 = vrot.slane %v2012_v1, 4  ;;  %v1151_v43 = vmul.f32 %v14872_v41, %v22182_v59  ;;  %v2020_v27 = vrot.slane %v2018_v53, 5 }
 0x2f5   : > { %v2005_v15 = vor.u32 %v2004_v17, %v2001_v23  ;;  %v1480_v44 = vshll.u32 %v13578_v57, 16  ;;  %v1485_v20 = vshrl.u32 %v13579_v58, 16  ;;  %v1479_v62 = vrot.slane %v1477_v21, 7 }
 0x2f6   : > { %v2015_v13 = vor.u32 %v2014_v5, %v2010_v50  ;;  %v1488_v30 = vshll.u32 %v13579_v58, 16  ;;  %v13580_v14 = vpack.c.bf16 %v1151_v43, %v1151_v43  ;;  %v2080_v39 = vshll.u32 %v16483_v51, 16  ;;  %v1756_v5 = vld [vmem:[#allocation2 + $0x54] sm:$0xf]  ;;  %v16498_v58 = vld [vmem:[#allocation2 + $0x68] sm:$0x1] }
 0x2f7   : > { %v2006_v7 = vrot.slane %v2005_v15, 4  ;;  %v1487_v33 = vrot.slane %v1485_v20, 7  ;;  %v2084_v60 = vshrl.u32 %v16483_v51, 16  ;;  %v1482_v18 = vor.u32 %v1480_v44, %v1479_v62 }
 0x2f8   : > { %v2016_v37 = vrot.slane %v2015_v13, 4  ;;  %v1483_v36 = vrot.slane %v1479_v62, 4  ;;  %v1494_v16 = vshrl.u32 %v13580_v14, 16  ;;  %v2076_v22 = vrot.slane %v2074_v19, 5  ;;  %v16504_v13 = vld [vmem:[#allocation2 + $0x6c] sm:$0xf] }
 0x2f9   : > { %v2011_v2 = vsel %vm15628_vm13, %v2006_v7, %v2010_v50  ;;  %v1490_v1 = vor.u32 %v1488_v30, %v1487_v33  ;;  %v1492_v53 = vrot.slane %v1487_v33, 4  ;;  %v1750_v41 = vsel %vm16063_vm2, %v1482_v18, %v1749_v56  ;;  %v16512_v62 = vld [vmem:[#allocation2 + $0x8] sm:$0x1] }
 0x2fa   : > { %v2021_v48 = vsel %vm15628_vm13, %v2016_v37, %v2020_v27  ;;  %v1496_v23 = vrot.slane %v1494_v16, 7  ;;  %v1497_v17 = vshll.u32 %v13580_v14, 16  ;;  %1751 = vst [vmem:[#allocation2 + $0x48] sm:$0xf] %v1750_v41  ;;  %v16500_v15 = vrot.slane %v2080_v39, 5 }
 0x2fb   : > { %v12795_v26 = vcombine.low %v2011_v2, %v2021_v48  ;;  %v1491_v57 = vsel %vm16054_vm15, %v1483_v36, %v1490_v1  ;;  %v1754_v50 = vsel %vm15161_vm5, %v1492_v53, %v1753_v9  ;;  %v2086_v21 = vrot.slane %v2084_v60, 4  ;;  %v16520_v14 = vld [vmem:[#allocation2 + $0x70] sm:$0xf] }
 0x2fc   : > { %1752 = vst.msk [vmem:[#allocation2 + $0x4c] sm:$0xf] %vm1171_vm8, %v1491_v57  ;;  %1755 = vst [vmem:[#allocation2 + $0x50] sm:$0x1] %v1754_v50  ;;  %v1499_v19 = vor.u32 %v1497_v17, %v1496_v23  ;;  %v1500_v59 = vrot.slane %v1496_v23, 4  ;;  %v2077_v43 = vor.u32 %v2076_v22, %v2073_v31  ;;  %v2090_v7 = vshll.u32 %v16498_v58, 16 }
 0x2fd   : > { %13984 = vmatmul.mubr.msk.bf16.gmra.mxu0 %vm477_vm4, %v12795_v26  ;;  %v2087_v20 = vor.u32 %v2086_v21, %v16500_v15  ;;  %v2873_v30 = vrot.slane %v16512_v62, 5  ;;  %v16518_v31 = vrot.slane %v2066_v49, 5  ;;  %v2095_v0 = vshrl.u32 %v16504_v13, 16 }
 0x2fe   : > { %v1508_v27 = vsel %vm16054_vm15, %v1500_v59, %v1507_v45  ;;  %v1757_v44 = vsel %vm16063_vm2, %v1499_v19, %v1756_v5  ;;  %v2098_v45 = vshll.u32 %v16504_v13, 16  ;;  %v12827_v37 = vcombine.low %v16451_v8, %v16465_v47  ;;  %v2820_v59 = vld [vmem:[#allocation2 + $0x24] sm:$0xe] }
 0x2ff   : > { %1758 = vst [vmem:[#allocation2 + $0x54] sm:$0xf] %v1757_v44  ;;  %1759 = vst.msk [vmem:[#allocation2 + $0x58] sm:$0xf] %vm1171_vm8, %v1508_v27  ;;  %v16526_v33 = vrot.slane %v2077_v43, 4  ;;  %v2870_v56 = vrot.slane %v16365_v24, 5 }
 0x300   : > { %v16529_v60 = vrot.slane %v2087_v20, 4  ;;  %v16531_v2 = vrot.slane %v2090_v7, 5  ;;  %v2104_v49 = vshll.u32 %v16520_v14, 16  ;;  %v2108_v18 = vshrl.u32 %v16520_v14, 16  ;;  %14018 = vmatmul.mubr.msk.bf16.gmra.mxu1 %vm477_vm4, %v12827_v37 }
 0x301   : > { %v1838_v39 = vld [vmem:[#allocation2 + $0x48] sm:$0xf]  ;;  %v16542_v53 = vrot.slane %v2095_v0, 4  ;;  %v16544_v22 = vrot.slane %v2098_v45, 5  ;;  %v2083_v17 = vsel %vm15628_vm13, %v16526_v33, %v16500_v15  ;;  %vm6425_vm8 = vcmask 64512  }
 0x302   : > { %v2023_v8 = vshrl.u32 %v1838_v39, 16  ;;  %v2026_v16 = vshll.u32 %v1838_v39, 16  ;;  %v2093_v21 = vsel %vm15628_vm13, %v16529_v60, %v16531_v2  ;;  %v16555_v19 = vrot.slane %v2104_v49, 5 }
 0x303   : > { %v16536_v36 = vld [vmem:[#allocation2 + $0x4c] sm:$0xf]  ;;  %v16538_v9 = vld [vmem:[#allocation2 + $0x50] sm:$0x1]  ;;  %v2110_v7 = vrot.slane %v2108_v18, 4  ;;  %v2101_v37 = vor.u32 %v16544_v22, %v16542_v53 }
 0x304   : > { %v2032_v48 = vshll.u32 %v16536_v36, 16  ;;  %v2036_v1 = vshrl.u32 %v16536_v36, 16  ;;  %v2025_v26 = vrot.slane %v2023_v8, 4  ;;  %v2028_v41 = vrot.slane %v2026_v16, 5 }
 0x305   : > { %v2042_v23 = vshll.u32 %v16538_v9, 16 }
 0x306   : > { %v2034_v57 = vrot.slane %v2032_v48, 5  ;;  %v2038_v50 = vrot.slane %v2036_v1, 4  ;;  %v1840_v5 = vld [vmem:[#allocation2 + $0x54] sm:$0xf]  ;;  %v2029_v43 = vor.u32 %v2028_v41, %v2025_v26  ;;  %v16557_v27 = vld [vmem:[#allocation2 + $0x58] sm:$0xf]  ;;  %v12828_v1 = vcombine.low %v1838_v39, %v16536_v36 }
 0x307   : > { %v2047_v44 = vshrl.u32 %v1840_v5, 16  ;;  %v2050_v20 = vshll.u32 %v1840_v5, 16  ;;  %v2056_v15 = vshll.u32 %v16557_v27, 16  ;;  %v2060_v45 = vshrl.u32 %v16557_v27, 16 }
 0x308   : > { %v2039_v0 = vor.u32 %v2038_v50, %v2034_v57  ;;  %v2030_v33 = vrot.slane %v2029_v43, 4  ;;  %v2044_v8 = vrot.slane %v2042_v23, 5  ;;  %v12857_v41 = vrot.slane %v2820_v59, 9  ;;  %v16569_v23 = vld [vmem:[#allocation2 + $0x74] sm:$0x1]  ;;  %14021 = vmatprep.mubr.msk.bf16.mxu1 %vm477_vm4, %v12828_v1 }
 0x309   : > { %v2049_v60 = vrot.slane %v2047_v44, 4  ;;  %v2052_v2 = vrot.slane %v2050_v20, 5  ;;  %v2058_v16 = vrot.slane %v2056_v15, 5  ;;  %v2062_v48 = vrot.slane %v2060_v45, 4  ;;  %v2817_v20 = vld [vmem:[#allocation2] sm:$0xe] }
 0x30a   : > { %v2040_v49 = vrot.slane %v2039_v0, 4  ;;  %v2035_v18 = vsel %vm15628_vm13, %v2030_v33, %v2034_v57  ;;  %v2891_v50 = vrot.slane %v16345_v63, 5  ;;  %v12829_v43 = vcombine.low %v1840_v5, %v16557_v27 }
 0x30b   : > { %v2053_v26 = vor.u32 %v2052_v2, %v2049_v60  ;;  %v2063_v22 = vor.u32 %v2062_v48, %v2058_v16  ;;  %v12830_v39 = vcombine.low %v16438_v10, %v16483_v51  ;;  %v2894_v63 = vrot.slane %v16347_v12, 5 }
 0x30c   : > { %v2045_v53 = vsel %vm15628_vm13, %v2040_v49, %v2044_v8  ;;  %v2893_v59 = vrot.slane %v2891_v50, 4  ;;  %v2111_v15 = vor.u32 %v2110_v7, %v16555_v19  ;;  %14022 = vmatmul.mubr.msk.bf16.gmra.mxu1 %vm477_vm4, %v12829_v43  ;;  %v12858_v45 = vrot.slane %v2821_v38, 9 }
 0x30d   : > { %v12796_v44 = vcombine.low %v2035_v18, %v2045_v53  ;;  %v2054_v57 = vrot.slane %v2053_v26, 4  ;;  %v2064_v0 = vrot.slane %v2063_v22, 4  ;;  %v2898_v33 = vrot.slane %v16358_v25, 5  ;;  %14025 = vmatprep.mubr.msk.bf16.mxu1 %vm477_vm4, %v12830_v39  ;;  %v16622_v53 = vld [vmem:[#allocation2 + $0x7c] sm:$0xf] }
 0x30e   : > { %v2114_v10 = vshll.u32 %v16569_v23, 16  ;;  %v16585_v8 = vsel %vm16429_vm14, %v12857_v41, %v2891_v50  ;;  %v16589_v12 = vsel %vm16429_vm14, %v2893_v59, %v2894_v63  ;;  %v2901_v60 = vrot.slane %v16360_v34, 5  ;;  %v15006_v50 = vld [vmem:[#allocation2 + $0x78] sm:$0xf]  ;;  %v15010_v63 = vld [vmem:[#allocation2 + $0x90] sm:$0xf] }
 0x30f   : > { %13987 = vmatprep.mubr.msk.bf16.mxu0 %vm477_vm4, %v12796_v44  ;;  %v2059_v5 = vsel %vm15628_vm13, %v2054_v57, %v2058_v16  ;;  %v2069_v25 = vsel %vm15628_vm13, %v2064_v0, %v16518_v31  ;;  %v12874_v38 = vcombine.low %v16585_v8, %v16589_v12  ;;  %v2900_v7 = vrot.slane %v2898_v33, 4  ;;  %v16636_v57 = vld [vmem:[#allocation2 + $0x88] sm:$0xf]  ;;  %v16640_v0 = vld [vmem:[#allocation2 + $0x94] sm:$0xf] }
 0x310   : > { %v12797_v2 = vcombine.low %v2059_v5, %v2069_v25  ;;  %v12798_v49 = vcombine.low %v2083_v17, %v2093_v21  ;;  %v12854_v16 = vrot.slane %v2817_v20, 9  ;;  %v2872_v48 = vrot.slane %v2870_v56, 4 }
 0x311   : > { %v2102_v1 = vrot.slane %v2101_v37, 4  ;;  %v2112_v18 = vrot.slane %v2111_v15, 4  ;;  %v16602_v26 = vsel %vm16429_vm14, %v12858_v45, %v2898_v33  ;;  %v16606_v31 = vsel %vm16429_vm14, %v2900_v7, %v2901_v60  ;;  %v2822_v33 = vld [vmem:[#allocation2 + $0x3c] sm:$0xe]  ;;  %v2823_v7 = vld [vmem:[#allocation2 + $0x48] sm:$0xe] }
 0x312   : > { %13988 = vmatmul.mubr.msk.bf16.gmra.mxu0 %vm477_vm4, %v12797_v2  ;;  %v12875_v34 = vcombine.low %v16602_v26, %v16606_v31  ;;  %v2116_v17 = vrot.slane %v2114_v10, 5  ;;  %v12831_v21 = vcombine.low %v16504_v13, %v16520_v14  ;;  %v2871_v37 = vsel %vm16429_vm14, %v12854_v16, %v2870_v56  ;;  %v2819_v56 = vld [vmem:[#allocation2 + $0x18] sm:$0xe] }
 0x313   : > { %13991 = vmatprep.mubr.msk.bf16.mxu0 %vm477_vm4, %v12798_v49  ;;  %v2874_v41 = vsel %vm16429_vm14, %v2872_v48, %v2873_v30  ;;  %v12832_v22 = vcombine.low %v15006_v50, %v16622_v53  ;;  %v2107_v43 = vsel %vm15628_vm13, %v2102_v1, %v16555_v19  ;;  %v2884_v13 = vrot.slane %v16255_v35, 5  ;;  %v15008_v19 = vld [vmem:[#allocation2 + $0x84] sm:$0xf]  ;;  %v2824_v48 = vld [vmem:[#allocation2 + $0x54] sm:$0xe] }
 0x314   : > { %v2117_v24 = vsel %vm15628_vm13, %v2112_v18, %v2116_v17  ;;  %14026 = vmatmul.mubr.msk.bf16.gmra.mxu1 %vm477_vm4, %v12831_v21  ;;  %v12871_v62 = vcombine.low %v2871_v37, %v2874_v41  ;;  %v2905_v44 = vrot.slane %v16465_v47, 5  ;;  %v12833_v20 = vcombine.low %v15008_v19, %v16636_v57  ;;  %v2825_v1 = vld [vmem:[#allocation2 + $0x60] sm:$0xe]  ;;  %v15012_v21 = vld [vmem:[#allocation2 + $0x9c] sm:$0xf] }
 0x315   : > { %14029 = vmatprep.mubr.msk.bf16.mxu1 %vm477_vm4, %v12832_v22  ;;  %v12799_v30 = vcombine.low %v2107_v43, %v2117_v24  ;;  %v2886_v39 = vrot.slane %v2884_v13, 4  ;;  %v12856_v59 = vrot.slane %v2819_v56, 9  ;;  %v2887_v35 = vrot.slane %v16260_v28, 5  ;;  %v16670_v37 = vld [vmem:[#allocation2 + $0xa0] sm:$0xf] }
 0x316   : > { %v12834_v15 = vcombine.low %v15010_v63, %v16640_v0  ;;  %v2912_v47 = vrot.slane %v16536_v36, 5  ;;  %v2907_v5 = vrot.slane %v2905_v44, 4  ;;  %v2919_v10 = vrot.slane %v16557_v27, 5  ;;  %v16658_v36 = vld [vmem:[%s22040_s4 + $0xc] sm:$0x3] }
 0x317   : > { %v2888_v45 = vsel %vm16429_vm14, %v2886_v39, %v2887_v35  ;;  %v4163_v28 = vsel %vm2360_vm10, %v16283_v4, 0  ;;  %v2885_v25 = vsel %vm16429_vm14, %v12856_v59, %v2884_v13  ;;  %v2926_v60 = vrot.slane %v16483_v51, 5  ;;  %v2826_v50 = vld [vmem:[#allocation2 + $0x6c] sm:$0xe]  ;;  %v15014_v22 = vld [vmem:[#allocation2 + $0xa8] sm:$0xf] }
 0x318   : > { %v12873_v2 = vcombine.low %v2885_v25, %v2888_v45  ;;  %v12859_v49 = vrot.slane %v2822_v33, 9  ;;  %v2908_v16 = vrot.slane %v16467_v40, 5  ;;  %v22183_v27 = vcombine.low %v16459_v46, %v16463_v6  ;;  %v16675_v43 = vld [vmem:[#allocation2 + $0xac] sm:$0xf]  ;;  %v2827_v56 = vld [vmem:[#allocation2 + $0x78] sm:$0xe] }
 0x319   : > { %v2914_v4 = vrot.slane %v2912_v47, 4  ;;  %v2933_v18 = vrot.slane %v16520_v14, 5  ;;  %v12860_v51 = vrot.slane %v2823_v7, 9  ;;  %v2921_v17 = vrot.slane %v2919_v10, 4  ;;  %v2828_v63 = vld [vmem:[#allocation2 + $0x84] sm:$0xe] }
 0x31a   : > { %13992 = vmatmul.mubr.msk.bf16.gmra.mxu0 %vm477_vm4, %v12799_v30  ;;  %v16668_v40 = vsel %vm16429_vm14, %v2907_v5, %v2908_v16  ;;  %v12835_v46 = vcombine.low %v15012_v21, %v16670_v37  ;;  %v2915_v6 = vrot.slane %v16538_v9, 5  ;;  %v2928_v41 = vrot.slane %v2926_v60, 4  ;;  %v15016_v7 = vld [vmem:[#allocation2 + $0x80] sm:$0x1] }
 0x31b   : > { %14043 = vmatprep.mubr.msk.bf16.mxu0 %vm477_vm4, %v12871_v62  ;;  %v2940_v14 = vrot.slane %v16622_v53, 5  ;;  %v12836_v24 = vcombine.low %v15014_v22, %v16675_v43  ;;  %v16682_v13 = vsel %vm16429_vm14, %v12859_v49, %v2905_v44  ;;  %v12861_v62 = vrot.slane %v2824_v48, 9  ;;  %v2830_v49 = vld [vmem:[#allocation2 + $0x9c] sm:$0xe]  ;;  %v3632_v48 = vld [vmem:[#allocation2 + $0xc] sm:$0xf] }
 0x31c   : > { %14030 = vmatmul.mubr.msk.bf16.gmra.mxu1 %vm477_vm4, %v12833_v20  ;;  %v2922_v30 = vrot.slane %v16425_v54, 5  ;;  %v12862_v9 = vrot.slane %v2825_v1, 9  ;;  %v12876_v53 = vcombine.low %v16682_v13, %v16668_v40  ;;  %v16690_v39 = vsel %vm16429_vm14, %v2914_v4, %v2915_v6  ;;  %v14663_v4 = vld [vmem:[#allocation2 + $0xc] sm:$0xff]  }
 0x31d   : > { %14033 = vmatprep.mubr.msk.bf16.mxu1 %vm477_vm4, %v12834_v15  ;;  %v2929_v19 = vrot.slane %v16498_v58, 5  ;;  %v2935_v20 = vrot.slane %v2933_v18, 4  ;;  %v16696_v44 = vsel %vm16429_vm14, %v12860_v51, %v2912_v47  ;;  %v12863_v59 = vrot.slane %v2826_v50, 9 }
 0x31e   : > { %v16700_v54 = vsel %vm16429_vm14, %v2921_v17, %v2922_v30  ;;  %v2936_v35 = vrot.slane %v16569_v23, 5  ;;  %v12864_v58 = vrot.slane %v2827_v56, 9  ;;  %v2942_v45 = vrot.slane %v2940_v14, 4  ;;  %v2829_v23 = vld [vmem:[#allocation2 + $0x90] sm:$0xe] }
 0x31f   : > { %v16705_v15 = vsel %vm16429_vm14, %v2928_v41, %v2929_v19  ;;  %v2947_v33 = vrot.slane %v16636_v57, 5  ;;  %v12877_v47 = vcombine.low %v16696_v44, %v16690_v39  ;;  %v16712_v5 = vsel %vm16429_vm14, %v12861_v62, %v2919_v10  ;;  %v16753_v17 = vld [vmem:[#allocation2 + $0x10] sm:$0xf]  ;;  %v15019_v56 = vld [vmem:[#allocation2 + $0xa4] sm:$0x1] }
 0x320   : > { %v2954_v25 = vrot.slane %v16640_v0, 5  ;;  %v16725_v57 = vsel %vm16429_vm14, %v2935_v20, %v2936_v35  ;;  %v12865_v10 = vrot.slane %v2828_v63, 9  ;;  %v2961_v16 = vrot.slane %v16670_v37, 5  ;;  %v16782_v35 = vld [vmem:[#allocation2 + $0x18] sm:$0xf] }
 0x321   : > { %v12878_v8 = vcombine.low %v16712_v5, %v16700_v54  ;;  %v12837_v0 = vcombine.low %v16298_v32, %v16302_v42  ;;  %v2949_v31 = vrot.slane %v2947_v33, 4  ;;  %v12867_v51 = vrot.slane %v2830_v49, 9  ;;  %v14665_v49 = vld [vmem:[#allocation2 + $0x24] sm:$0xff]  }
 0x322   : > { %14044 = vmatmul.mubr.msk.bf16.vlgmr.msra.gmra.mxu0 %vm477_vm4, %v22183_v27  ;;  %v2956_v32 = vrot.slane %v2954_v25, 4  ;;  %v16757_v21 = vsel %vm16429_vm14, %v12865_v10, %v2947_v33  ;;  %v2963_v37 = vrot.slane %v2961_v16, 4  ;;  %v2968_v6 = vrot.slane %v16675_v43, 5  ;;  %v14664_v10 = vld [vmem:[#allocation2 + $0x18] sm:$0xff]  }
 0x323   : > { %14110 = vmatpush3.bf16.msra.mxu0 %v4163_v28  ;;  %14047 = vmatprep.mubr.msk.bf16.mxu0 %vm477_vm4, %v12873_v2  ;;  %v16716_v28 = vsel %vm16429_vm14, %v12862_v9, %v2926_v60  ;;  %v2943_v2 = vrot.slane %v15016_v7, 5  ;;  %v16744_v60 = vsel %vm16429_vm14, %v12864_v58, %v2940_v14  ;;  %v2975_v41 = vrot.slane %v16302_v42, 5  ;;  %v15018_v14 = vld [vmem:[#allocation2 + $0x98] sm:$0x1]  ;;  %v15020_v7 = vld [vmem:[#allocation2 + $0xb0] sm:$0x1] }
 0x324   : > { %14638 = vmatprep.subr.msk.bf16.mxu0 %vm2360_vm10, %v16658_v36  ;;  %14034 = vmatmul.mubr.msk.bf16.gmra.mxu1 %vm477_vm4, %v12835_v46  ;;  %v12879_v12 = vcombine.low %v16716_v28, %v16705_v15  ;;  %v2831_v46 = vld [vmem:[#allocation2 + $0xa8] sm:$0xe]  ;;  %v2957_v22 = vrot.slane %v15018_v14, 5  ;;  %v3681_v62 = vshrl.u32 %v3632_v48, 16  ;;  %v3684_v30 = vshll.u32 %v3632_v48, 16 }
 0x325   : > { %14037 = vmatprep.mubr.msk.bf16.mxu1 %vm477_vm4, %v12836_v24  ;;  %v16748_v26 = vsel %vm16429_vm14, %v2942_v45, %v2943_v2  ;;  %v2832_v24 = vld [vmem:[#allocation2 + $0xb4] sm:$0xe]  ;;  %v2964_v39 = vrot.slane %v15019_v56, 5  ;;  %v3690_v19 = vshll.u32 %v16753_v17, 16  ;;  %v3694_v43 = vshrl.u32 %v16753_v17, 16 }
 0x326   : > { %v16776_v20 = vsel %vm16429_vm14, %v2956_v32, %v2957_v22  ;;  %v16780_v44 = vsel %vm16429_vm14, %v12867_v51, %v2961_v16  ;;  %v2970_v58 = vrot.slane %v2968_v6, 4  ;;  %v12869_v45 = vrot.slane %v2832_v24, 9  ;;  %v16821_v48 = vld [vmem:[#allocation2 + $0x20] sm:$0x1]  ;;  %v16838_v14 = vld [vmem:[#allocation2 + $0x34] sm:$0xf] }
 0x327   : > { %v16790_v63 = vsel %vm16429_vm14, %v2963_v37, %v2964_v39  ;;  %v2977_v33 = vrot.slane %v2975_v41, 4  ;;  %v2971_v2 = vrot.slane %v15020_v7, 5  ;;  %v3683_v40 = vrot.slane %v3681_v62, 4  ;;  %v3644_v56 = vld [vmem:[#allocation2 + $0x3c] sm:$0xf] }
 0x328   : > { %v3686_v13 = vrot.slane %v3684_v30, 5  ;;  %v2978_v16 = vrot.slane %v16312_v52, 5  ;;  %v16830_v51 = vsel %vm16429_vm14, %v12869_v45, %v2975_v41  ;;  %v3708_v62 = vshll.u32 %v16782_v35, 16 }
 0x329   : > { %v16825_v32 = vsel %vm16429_vm14, %v2970_v58, %v2971_v2 }
 0x32a   : > { %14048 = vmatmul.mubr.msk.bf16.gmra.mxu0 %vm477_vm4, %v12874_v38  ;;  %v16738_v38 = vsel %vm16429_vm14, %v12863_v59, %v2933_v18  ;;  %v12866_v18 = vrot.slane %v2829_v23, 9  ;;  %v12868_v59 = vrot.slane %v2831_v46, 9  ;;  %v16792_v23 = vld [vmem:[#allocation2 + $0x14] sm:$0x1]  ;;  %v16834_v37 = vsel %vm16429_vm14, %v2977_v33, %v2978_v16  ;;  %v16836_v46 = vld [vmem:[#allocation2 + $0x28] sm:$0xf] }
 0x32b   : > { %14051 = vmatprep.mubr.msk.bf16.mxu0 %vm477_vm4, %v12875_v34  ;;  %v15017_v34 = vld [vmem:[#allocation2 + $0x8c] sm:$0x1]  ;;  %v12880_v1 = vcombine.low %v16738_v38, %v16725_v57  ;;  %v3687_v22 = vor.u32 %v3686_v13, %v3683_v40  ;;  %v3700_v24 = vshll.u32 %v16792_v23, 16  ;;  %v3742_v33 = vshrl.u32 %v16836_v46, 16  ;;  %v14666_v40 = vld [vmem:[#allocation2 + $0x30] sm:$0xff]  }
 0x32c   : > { %v2950_v27 = vrot.slane %v15017_v34, 5  ;;  %14038 = vmatmul.mubr.msk.bf16.gmra.mxu1 %vm477_vm4, %v12837_v0  ;;  %v16772_v42 = vsel %vm16429_vm14, %v12866_v18, %v2954_v25  ;;  %v16794_v25 = vld [vmem:[#allocation2 + $0x1c] sm:$0xf]  ;;  %v16800_v0 = vrot.slane %v3690_v19, 5  ;;  %v3705_v34 = vshrl.u32 %v16782_v35, 16 }
 0x32d   : > { %14077 = vmatprep.mubr.msk.bf16.mxu1 %vm477_vm4, %v14663_v4  ;;  %v3638_v18 = vld [vmem:[#allocation2 + $0x24] sm:$0xf]  ;;  %v3714_v30 = vshll.u32 %v16794_v25, 16  ;;  %v3718_v19 = vshrl.u32 %v16794_v25, 16  ;;  %v3738_v35 = vshll.u32 %v16836_v46, 16  ;;  %v3777_v13 = vshrl.u32 %v3644_v56, 16 }
 0x32e   : > { %v16766_v9 = vsel %vm16429_vm14, %v2949_v31, %v2950_v27  ;;  %v16802_v31 = vrot.slane %v3694_v43, 4  ;;  %v16847_v39 = vrot.slane %v3705_v34, 4  ;;  %v3724_v43 = vshll.u32 %v16821_v48, 16 }
 0x32f   : > { %v3729_v58 = vshrl.u32 %v3638_v18, 16  ;;  %v3732_v45 = vshll.u32 %v3638_v18, 16  ;;  %v16867_v5 = vrot.slane %v3687_v22, 4  ;;  %v16869_v34 = vrot.slane %v3714_v30, 5 }
 0x330   : > { %v3697_v41 = vor.u32 %v16802_v31, %v16800_v0  ;;  %v3710_v31 = vrot.slane %v3708_v62, 5  ;;  %v3720_v18 = vrot.slane %v3718_v19, 4  ;;  %v16872_v28 = vrot.slane %v3738_v35, 5  ;;  %v16879_v62 = vld [vmem:[#allocation2 + $0x38] sm:$0x1] }
 0x331   : > { %v3734_v15 = vrot.slane %v3732_v45, 5  ;;  %v3779_v30 = vrot.slane %v3777_v13, 4  ;;  %v16885_v35 = vrot.slane %v3700_v24, 5 }
 0x332   : > { %14052 = vmatmul.mubr.msk.bf16.gmra.mxu0 %vm477_vm4, %v12876_v53  ;;  %v4633_v53 = vsel %vm2360_vm10, %v16420_v61, 0  ;;  %v16818_v61 = vsel %vm16429_vm14, %v12868_v59, %v2968_v6  ;;  %v3641_v6 = vld [vmem:[#allocation2 + $0x30] sm:$0xf]  ;;  %v16851_v59 = vld [vmem:[#allocation2 + $0x40] sm:$0xf]  ;;  %v16883_v45 = vrot.slane %v3697_v41, 4 }
 0x333   : > { %14055 = vmatprep.mubr.msk.bf16.mxu0 %vm477_vm4, %v12877_v47  ;;  %v16808_v47 = vld [vmem:[%s22040_s4 + $0xe] sm:$0x3]  ;;  %v3753_v7 = vshrl.u32 %v3641_v6, 16  ;;  %v3756_v2 = vshll.u32 %v3641_v6, 16  ;;  %v3786_v16 = vshll.u32 %v16851_v59, 16  ;;  %v3790_v54 = vshrl.u32 %v16851_v59, 16 }
 0x334   : > { %14078 = vmatmul.mubr.msk.bf16.vlgmr.msra.gmra.mxu1 %vm477_vm4, %v14664_v10  ;;  %v3762_v10 = vshll.u32 %v16838_v14, 16  ;;  %v3731_v6 = vrot.slane %v3729_v58, 4 }
 0x335   : > { %14081 = vmatprep.mubr.msk.bf16.mxu1 %vm477_vm4, %v14665_v49  ;;  %14144 = vmatpush3.bf16.msra.mxu1 %v4633_v53  ;;  %v3766_v49 = vshrl.u32 %v16838_v14, 16  ;;  %v3780_v53 = vshll.u32 %v3644_v56, 16  ;;  %v16875_v56 = vld [vmem:[#allocation2 + $0x2c] sm:$0x1]  ;;  %v3755_v52 = vrot.slane %v3753_v7, 4  ;;  %v3758_v4 = vrot.slane %v3756_v2, 5 }
 0x336   : > { %14639 = vmatprep.subr.msk.bf16.mxu1 %vm2360_vm10, %v16808_v47  ;;  %v16877_v22 = vrot.slane %v3762_v10, 5  ;;  %v16881_v50 = vrot.slane %v3786_v16, 5  ;;  %v3792_v58 = vrot.slane %v3790_v54, 4  ;;  %v3647_v7 = vld [vmem:[#allocation2 + $0x48] sm:$0xf]  ;;  %v3721_v10 = vor.u32 %v3720_v18, %v16869_v34 }
 0x337   : > { %v3768_v27 = vrot.slane %v3766_v49, 4  ;;  %v3782_v19 = vrot.slane %v3780_v53, 5  ;;  %v3735_v49 = vor.u32 %v3734_v15, %v3731_v6  ;;  %v3748_v13 = vshll.u32 %v16875_v56, 16  ;;  %v16896_v53 = vld [vmem:[#allocation2 + $0x4c] sm:$0xf] }
 0x338   : > { %v3759_v41 = vor.u32 %v3758_v4, %v3755_v52  ;;  %v16905_v16 = vld [vmem:[#allocation2 + $0x44] sm:$0x1]  ;;  %v22184_v54 = vcombine.low %v16744_v60, %v16748_v26  ;;  %v3793_v57 = vor.u32 %v3792_v58, %v16881_v50  ;;  %v3801_v38 = vshrl.u32 %v3647_v7, 16  ;;  %v14669_v52 = vld [vmem:[#allocation2 + $0x54] sm:$0xff]  }
 0x339   : > { %v3810_v18 = vshll.u32 %v16896_v53, 16  ;;  %v3814_v6 = vshrl.u32 %v16896_v53, 16  ;;  %v3722_v60 = vrot.slane %v3721_v10, 4  ;;  %v3736_v26 = vrot.slane %v3735_v49, 4  ;;  %v16925_v49 = vld [vmem:[#allocation2 + $0x58] sm:$0xf] }
 0x33a   : > { %14056 = vmatmul.mubr.msk.bf16.gmra.mxu0 %vm477_vm4, %v12878_v8  ;;  %v14667_v8 = vld [vmem:[#allocation2 + $0x3c] sm:$0xff]   ;;  %v3750_v15 = vrot.slane %v3748_v13, 5  ;;  %v3760_v58 = vrot.slane %v3759_v41, 4  ;;  %v3803_v2 = vrot.slane %v3801_v38, 4 }
 0x33b   : > { %14059 = vmatprep.mubr.msk.bf16.mxu0 %vm477_vm4, %v12879_v12  ;;  %v3744_v12 = vrot.slane %v3742_v33, 4  ;;  %v3711_v33 = vor.u32 %v3710_v31, %v16847_v39  ;;  %v3769_v39 = vor.u32 %v3768_v27, %v16877_v22  ;;  %v3783_v31 = vor.u32 %v3782_v19, %v3779_v30  ;;  %v3650_v30 = vld [vmem:[#allocation2 + $0x54] sm:$0xf] }
 0x33c   : > { %14082 = vmatmul.mubr.msk.bf16.gmra.mxu1 %vm477_vm4, %v14666_v40  ;;  %v16888_v40 = vrot.slane %v3724_v43, 5  ;;  %v3772_v43 = vshll.u32 %v16879_v62, 16  ;;  %v3703_v27 = vsel %vm15628_vm13, %v16883_v45, %v16885_v35  ;;  %v16923_v10 = vrot.slane %v3810_v18, 5  ;;  %v14671_v18 = vld [vmem:[#allocation2 + $0x6c] sm:$0xff]  }
 0x33d   : > { %14085 = vmatprep.mubr.msk.bf16.mxu1 %vm477_vm4, %v14667_v8  ;;  %v3745_v24 = vor.u32 %v3744_v12, %v16872_v28  ;;  %v14668_v8 = vld [vmem:[#allocation2 + $0x48] sm:$0xff]   ;;  %v3712_v4 = vrot.slane %v3711_v33, 4  ;;  %v3796_v12 = vshll.u32 %v16905_v16, 16  ;;  %v3784_v35 = vrot.slane %v3783_v31, 4 }
 0x33e   : > { %v3774_v45 = vrot.slane %v3772_v43, 5  ;;  %v3794_v33 = vrot.slane %v3793_v57, 4  ;;  %v3825_v13 = vshrl.u32 %v3650_v30, 16  ;;  %v3828_v3 = vshll.u32 %v3650_v30, 16 }
 0x33f   : > { %v3746_v19 = vrot.slane %v3745_v24, 4  ;;  %v3717_v24 = vsel %vm15628_vm13, %v3712_v4, %v16869_v34  ;;  %v3727_v41 = vsel %vm15628_vm13, %v3722_v60, %v16888_v40  ;;  %v3798_v43 = vrot.slane %v3796_v12, 5 }
 0x340   : > { %v22185_v31 = vcombine.low %v16757_v21, %v16766_v9  ;;  %v3765_v34 = vsel %vm15628_vm13, %v3760_v58, %v16877_v22  ;;  %v14670_v21 = vld [vmem:[#allocation2 + $0x60] sm:$0xff]   ;;  %v3789_v9 = vsel %vm15628_vm13, %v3784_v35, %v16881_v50  ;;  %v3827_v60 = vrot.slane %v3825_v13, 4  ;;  %v16991_v13 = vld [vmem:[#allocation2 + $0x7c] sm:$0xf] }
 0x341   : > { %v3751_v57 = vsel %vm15628_vm13, %v3746_v19, %v3750_v15  ;;  %v3799_v4 = vsel %vm15628_vm13, %v3794_v33, %v3798_v43  ;;  %v12886_v15 = vcombine.low %v16830_v51, %v16834_v37  ;;  %v16976_v30 = vsel %vm2360_vm10, %v16658_v36, 0  ;;  %v3659_v19 = vld [vmem:[#allocation2 + $0x78] sm:$0xf]  ;;  %v14675_v37 = vld [vmem:[#allocation2 + $0x9c] sm:$0xff]  }
 0x342   : > { %14060 = vmatmul.mubr.msk.bf16.gmra.mxu0 %vm477_vm4, %v12880_v1  ;;  %v3804_v1 = vshll.u32 %v3647_v7, 16  ;;  %v3770_v7 = vrot.slane %v3769_v39, 4  ;;  %v3741_v39 = vsel %vm15628_vm13, %v3736_v26, %v16872_v28  ;;  %v22186_v28 = vcombine.low %v16772_v42, %v16776_v20 }
 0x343   : > { %14063 = vmatprep.mubr.msk.bf16.mxu0 %vm477_vm4, %v22184_v54  ;;  %v16921_v54 = vld [vmem:[#allocation2 + $0x50] sm:$0x1]  ;;  %v3830_v26 = vrot.slane %v3828_v3, 5  ;;  %v3838_v42 = vshrl.u32 %v16925_v49, 16  ;;  %v12885_v20 = vcombine.low %v16818_v61, %v16825_v32  ;;  %v16972_v3 = vcombine.low %v3717_v24, %v3727_v41  ;;  %v16981_v32 = vld [vmem:[#allocation2 + $0x64] sm:$0xf] }
 0x344   : > { %14086 = vmatmul.mubr.msk.bf16.gmra.mxu1 %vm477_vm4, %v14668_v8  ;;  %v3806_v55 = vrot.slane %v3804_v1, 5  ;;  %v3816_v8 = vrot.slane %v3814_v6, 4  ;;  %v3775_v40 = vsel %vm15628_vm13, %v3770_v7, %v3774_v45  ;;  %v3820_v38 = vshll.u32 %v16921_v54, 16  ;;  %v3653_v1 = vld [vmem:[#allocation2 + $0x60] sm:$0xf] }
 0x345   : > { %14089 = vmatprep.mubr.msk.bf16.mxu1 %vm477_vm4, %v14669_v52  ;;  %v3834_v52 = vshll.u32 %v16925_v49, 16  ;;  %v3849_v50 = vshrl.u32 %v3653_v1, 16  ;;  %v3852_v12 = vshll.u32 %v3653_v1, 16  ;;  %v16978_v61 = vcombine.low %v3741_v39, %v3751_v57  ;;  %v16987_v45 = vld [vmem:[#allocation2 + $0x70] sm:$0xf] }
 0x346   : > { %v3807_v22 = vor.u32 %v3806_v55, %v3803_v2  ;;  %v3817_v6 = vor.u32 %v3816_v8, %v16923_v10  ;;  %v22187_v55 = vsel %vm15628_vm13, %v16867_v5, %v16800_v0  ;;  %v16983_v58 = vcombine.low %v3765_v34, %v3775_v40  ;;  %v16993_v24 = vld [vmem:[#allocation2 + $0x5c] sm:$0x1] }
 0x347   : > { %v16970_v2 = vcombine.low %v22187_v55, %v3703_v27  ;;  %v16985_v7 = vcombine.low %v3789_v9, %v3799_v4  ;;  %v3822_v5 = vrot.slane %v3820_v38, 5  ;;  %v3656_v27 = vld [vmem:[#allocation2 + $0x6c] sm:$0xf]  ;;  %v3831_v33 = vor.u32 %v3830_v26, %v3827_v60 }
 0x348   : > { %v3808_v0 = vrot.slane %v3807_v22, 4  ;;  %v3818_v35 = vrot.slane %v3817_v6, 4  ;;  %v16989_v36 = vrot.slane %v3834_v52, 5  ;;  %v3840_v8 = vrot.slane %v3838_v42, 4  ;;  %v14673_v6 = vld [vmem:[#allocation2 + $0x84] sm:$0xff]  }
 0x349   : > { %v3851_v41 = vrot.slane %v3849_v50, 4  ;;  %v3854_v39 = vrot.slane %v3852_v12, 5  ;;  %v3858_v43 = vshll.u32 %v16981_v32, 16  ;;  %v22188_v57 = vcombine.low %v16780_v44, %v16790_v63  ;;  %v3662_v50 = vld [vmem:[#allocation2 + $0x84] sm:$0xf] }
 0x34a   : > { %14064 = vmatmul.mubr.msk.bf16.gmra.mxu0 %vm477_vm4, %v22185_v31  ;;  %v3862_v31 = vshrl.u32 %v16981_v32, 16  ;;  %v3873_v34 = vshrl.u32 %v3656_v27, 16  ;;  %v3876_v40 = vshll.u32 %v3656_v27, 16  ;;  %v3882_v38 = vshll.u32 %v16987_v45, 16  ;;  %v17018_v12 = vld [vmem:[#allocation2 + $0x88] sm:$0xf] }
 0x34b   : > { %14067 = vmatprep.mubr.msk.bf16.mxu0 %vm477_vm4, %v22186_v28  ;;  %v3886_v1 = vshrl.u32 %v16987_v45, 16  ;;  %v14672_v28 = vld [vmem:[#allocation2 + $0x78] sm:$0xff]   ;;  %v3900_v9 = vshll.u32 %v3659_v19, 16  ;;  %v3906_v4 = vshll.u32 %v16991_v13, 16  ;;  %v3910_v22 = vshrl.u32 %v16991_v13, 16  ;;  %22189 = vst [vmem:[#allocation19_spill] sm:$0xff] %v17018_v12 }
 0x34c   : > { %14090 = vmatmul.mubr.msk.bf16.gmra.mxu1 %vm477_vm4, %v14670_v21  ;;  %v3897_v21 = vshrl.u32 %v3659_v19, 16  ;;  %v3813_v44 = vsel %vm15628_vm13, %v3808_v0, %v16923_v10  ;;  %v3823_v63 = vsel %vm15628_vm13, %v3818_v35, %v3822_v5  ;;  %v17011_v52 = vrot.slane %v3831_v33, 4  ;;  %v17021_v10 = vld [vmem:[#allocation2 + $0x68] sm:$0x1]  ;;  %v17025_v27 = vld [vmem:[#allocation2 + $0x74] sm:$0x1] }
 0x34d   : > { %14093 = vmatprep.mubr.msk.bf16.mxu1 %vm477_vm4, %v14671_v18  ;;  %v3844_v18 = vshll.u32 %v16993_v24, 16  ;;  %v3841_v60 = vor.u32 %v3840_v8, %v16989_v36  ;;  %v3855_v26 = vor.u32 %v3854_v39, %v3851_v41  ;;  %v17016_v42 = vrot.slane %v3858_v43, 5  ;;  %22190 = vst [vmem:[#allocation12_spill] sm:$0xff] %v17021_v10  ;;  %22191 = vst [vmem:[#allocation15_spill] sm:$0xff] %v17025_v27 }
 0x34e   : > { %v3875_v55 = vrot.slane %v3873_v34, 4  ;;  %v3878_v19 = vrot.slane %v3876_v40, 5  ;;  %v17023_v0 = vrot.slane %v3882_v38, 5  ;;  %v3888_v5 = vrot.slane %v3886_v1, 4 }
 0x34f   : > { %v3899_v35 = vrot.slane %v3897_v21, 4  ;;  %v3902_v33 = vrot.slane %v3900_v9, 5  ;;  %v17027_v8 = vrot.slane %v3906_v4, 5  ;;  %v3912_v41 = vrot.slane %v3910_v22, 4  ;;  %v3665_v22 = vld [vmem:[#allocation2 + $0x90] sm:$0xf] }
 0x350   : > { %v3921_v39 = vshrl.u32 %v3662_v50, 16  ;;  %v3924_v43 = vshll.u32 %v3662_v50, 16  ;;  %v17033_v34 = vrot.slane %v3841_v60, 4  ;;  %v17035_v40 = vrot.slane %v3844_v18, 5  ;;  %v17056_v60 = vld [vmem:[#allocation2 + $0x80] sm:$0x1] }
 0x351   : > { %v3868_v38 = vshll.u32 %v17021_v10, 16  ;;  %v17046_v21 = vrot.slane %v3855_v26, 4  ;;  %v3892_v4 = vshll.u32 %v17025_v27, 16  ;;  %v3889_v51 = vor.u32 %v3888_v5, %v17023_v0  ;;  %v17086_v27 = vld [vmem:[#allocation2 + $0xa0] sm:$0xf] }
 0x352   : > { %14068 = vmatmul.mubr.msk.bf16.gmra.mxu0 %vm477_vm4, %v22188_v57  ;;  %v3934_v57 = vshrl.u32 %v17018_v12, 16  ;;  %v3913_v18 = vor.u32 %v3912_v41, %v17027_v8  ;;  %v3923_v26 = vrot.slane %v3921_v39, 4  ;;  %v3948_v5 = vshll.u32 %v3665_v22, 16  ;;  %v17074_v41 = vld [vmem:[#allocation2 + $0x8c] sm:$0x1] }
 0x353   : > { %14071 = vmatprep.mubr.msk.bf16.mxu0 %vm477_vm4, %v12885_v20  ;;  %v3864_v20 = vrot.slane %v3862_v31, 4  ;;  %v3930_v31 = vshll.u32 %v17018_v12, 16  ;;  %22193 = vst [vmem:[#allocation9_spill] sm:$0xff] %v17074_v41  ;;  %v3940_v10 = vshll.u32 %v17074_v41, 16 }
 0x354   : > { %14094 = vmatmul.mubr.msk.bf16.gmra.mxu1 %vm477_vm4, %v14672_v28  ;;  %v17031_v28 = vcombine.low %v3813_v44, %v3823_v63  ;;  %v14674_v44 = vld [vmem:[#allocation2 + $0x90] sm:$0xff]   ;;  %v3879_v63 = vor.u32 %v3878_v19, %v3875_v55  ;;  %v3936_v1 = vrot.slane %v3934_v57, 4  ;;  %v17064_v55 = vrot.slane %v3868_v38, 5 }
 0x355   : > { %14097 = vmatprep.mubr.msk.bf16.mxu1 %vm477_vm4, %v14673_v6  ;;  %v3865_v9 = vor.u32 %v3864_v20, %v17016_v42  ;;  %v17054_v6 = vld [vmem:[#allocation2 + $0x94] sm:$0xf]  ;;  %v3926_v20 = vrot.slane %v3924_v43, 5  ;;  %v17058_v50 = vrot.slane %v3930_v31, 5  ;;  %v3945_v19 = vshrl.u32 %v3665_v22, 16 }
 0x356   : > { %22192 = vst [vmem:[#allocation8_spill] sm:$0xff] %v17054_v6  ;;  %v3954_v39 = vshll.u32 %v17054_v6, 16  ;;  %v3958_v43 = vshrl.u32 %v17054_v6, 16  ;;  %v17078_v31 = vrot.slane %v3879_v63, 4  ;;  %v17080_v57 = vrot.slane %v3889_v51, 4 }
 0x357   : > { %v17082_v38 = vrot.slane %v3892_v4, 5  ;;  %v3916_v22 = vshll.u32 %v17056_v60, 16  ;;  %v3947_v12 = vrot.slane %v3945_v19, 4  ;;  %v3950_v6 = vrot.slane %v3948_v5, 5  ;;  %v17093_v4 = vld [vmem:[%s22040_s4 + $0x10] sm:$0x3] }
 0x358   : > { %v4424_v63 = vrot.slane %v16753_v17, 5  ;;  %22194 = vst [vmem:[#allocation17_spill] sm:$0xff] %v17093_v4  ;;  %v17097_v51 = vrot.slane %v3954_v39, 5  ;;  %v3978_v19 = vshll.u32 %v17086_v27, 16  ;;  %v3885_v5 = vsel %vm15628_vm13, %v17078_v31, %v17023_v0  ;;  %v17124_v0 = vld [vmem:[#allocation2 + $0x98] sm:$0x1] }
 0x359   : > { %v3951_v31 = vor.u32 %v3950_v6, %v3947_v12  ;;  %v3964_v6 = vshll.u32 %v17124_v0, 16 }
 0x35a   : > { %14072 = vmatmul.mubr.msk.bf16.gmra.mxu0 %vm477_vm4, %v12886_v15  ;;  %v3903_v15 = vor.u32 %v3902_v33, %v3899_v35  ;;  %v17071_v33 = vrot.slane %v3865_v9, 4  ;;  %v3914_v9 = vrot.slane %v3913_v18, 4  ;;  %v17130_v41 = vrot.slane %v3978_v19, 5 }
 0x35b   : > { %14111 = vmatprep.mubr.msk.bf16.mxu0 %vm477_vm4, %v16970_v2  ;;  %v3927_v2 = vor.u32 %v3926_v20, %v3923_v26  ;;  %v3918_v26 = vrot.slane %v3916_v22, 5  ;;  %v14676_v20 = vld [vmem:[#allocation2 + $0xa8] sm:$0xff]   ;;  %v22197_v19 = vsel %vm15628_vm13, %v17046_v21, %v17016_v42  ;;  %v4359_v42 = vld [vmem:[#allocation2 + $0x18] sm:$0xe] }
 0x35c   : > { %14098 = vmatmul.mubr.msk.bf16.gmra.mxu1 %vm477_vm4, %v14674_v44  ;;  %v3668_v44 = vld [vmem:[#allocation2 + $0x9c] sm:$0xf]  ;;  %v3904_v35 = vrot.slane %v3903_v15, 4  ;;  %v3960_v15 = vrot.slane %v3958_v43, 4  ;;  %v3871_v17 = vsel %vm15628_vm13, %v17071_v33, %v17064_v55  ;;  %v14677_v43 = vld [vmem:[#allocation2 + $0xb4] sm:$0xff]  }
 0x35d   : > { %14101 = vmatprep.mubr.msk.bf16.mxu1 %vm477_vm4, %v14675_v37  ;;  %v3937_v37 = vor.u32 %v3936_v1, %v17058_v50  ;;  %v3969_v1 = vshrl.u32 %v3668_v44, 16  ;;  %v3972_v18 = vshll.u32 %v3668_v44, 16  ;;  %v4358_v55 = vld [vmem:[#allocation2 + $0xc] sm:$0xe]  ;;  %v3919_v22 = vsel %vm15628_vm13, %v3914_v9, %v3918_v26  ;;  %v17128_v44 = vld [vmem:[#allocation2 + $0xa4] sm:$0x1] }
 0x35e   : > { %v3909_v33 = vsel %vm15628_vm13, %v3904_v35, %v17027_v8  ;;  %v12969_v35 = vrot.slane %v4358_v55, 9  ;;  %v4427_v9 = vrot.slane %v16792_v23, 5  ;;  %v17140_v26 = vrot.slane %v3951_v31, 4  ;;  %v4360_v55 = vld [vmem:[#allocation2 + $0x24] sm:$0xe] }
 0x35f   : > { %v3938_v39 = vrot.slane %v3937_v37, 4  ;;  %v3971_v37 = vrot.slane %v3969_v1, 4  ;;  %v3988_v1 = vshll.u32 %v17128_v44, 16  ;;  %v4438_v23 = vrot.slane %v16836_v46, 5 }
 0x360   : > { %v17163_v46 = vcombine.low %v22197_v19, %v3871_v17  ;;  %v17178_v17 = vrot.slane %v3964_v6, 5  ;;  %v4452_v19 = vrot.slane %v16851_v59, 5  ;;  %v4361_v59 = vld [vmem:[#allocation2 + $0x30] sm:$0xe] }
 0x362   : > { %14112 = vmatmul.mubr.msk.bf16.vlgmr.msra.gmra.mxu0 %vm477_vm4, %v16972_v3  ;;  %v3982_v3 = vshrl.u32 %v17086_v27, 16 }
 0x363   : > { %14178 = vmatpush3.bf16.msra.mxu0 %v16976_v30  ;;  %14115 = vmatprep.mubr.msk.bf16.mxu0 %vm477_vm4, %v16978_v61  ;;  %v3895_v30 = vsel %vm15628_vm13, %v17080_v57, %v17082_v38  ;;  %v3928_v61 = vrot.slane %v3927_v2, 4  ;;  %v4426_v57 = vrot.slane %v4424_v63, 4  ;;  %v3942_v2 = vrot.slane %v3940_v10, 5 }
 0x364   : > { %14640 = vmatprep.subr.msk.bf16.mxu0 %vm2360_vm10, %v17093_v4  ;;  %14102 = vmatmul.mubr.msk.bf16.gmra.mxu1 %vm477_vm4, %v14676_v20  ;;  %v3961_v38 = vor.u32 %v3960_v15, %v17097_v51  ;;  %v3974_v4 = vrot.slane %v3972_v18, 5  ;;  %v3984_v8 = vrot.slane %v3982_v3, 4  ;;  %v4431_v15 = vrot.slane %v16794_v25, 5 }
 0x365   : > { %14105 = vmatprep.mubr.msk.bf16.mxu1 %vm477_vm4, %v14677_v43  ;;  %v3933_v12 = vsel %vm15628_vm13, %v3928_v61, %v17058_v50  ;;  %v3943_v10 = vsel %vm15628_vm13, %v3938_v39, %v3942_v2  ;;  %v4428_v18 = vsel %vm16429_vm14, %v4426_v57, %v4427_v9  ;;  %v22195_v50 = vsel %vm15628_vm13, %v17033_v34, %v17035_v40  ;;  %v3671_v61 = vld [vmem:[#allocation2 + $0xa8] sm:$0xf]  ;;  %v3674_v57 = vld [vmem:[#allocation2 + $0xb4] sm:$0xf] }
 0x366   : > { %v22196_v25 = vsel %vm15628_vm13, %v17011_v52, %v16989_v36  ;;  %v17165_v3 = vrot.slane %v3961_v38, 4  ;;  %v17169_v34 = vcombine.low %v3885_v5, %v3895_v30  ;;  %v17171_v40 = vcombine.low %v3909_v33, %v3919_v22  ;;  %v14678_v36 = vld [vmem:[#allocation2 + $0xc0] sm:$0xff]   ;;  %v17187_v30 = vld [vmem:[#allocation2 + $0xac] sm:$0xf] }
 0x367   : > { %v12943_v20 = vcombine.low %v22196_v25, %v22195_v50  ;;  %v3985_v52 = vor.u32 %v3984_v8, %v17130_v41  ;;  %v4425_v39 = vsel %vm16429_vm14, %v12969_v35, %v4424_v63  ;;  %v17176_v21 = vcombine.low %v3933_v12, %v3943_v10  ;;  %v17199_v35 = vld [vmem:[#allocation2 + $0xb8] sm:$0xf] }
 0x368   : > { %v4433_v43 = vrot.slane %v4431_v15, 4  ;;  %v17185_v5 = vrot.slane %v3988_v1, 5  ;;  %v3993_v63 = vshrl.u32 %v3671_v61, 16  ;;  %v4440_v33 = vrot.slane %v4438_v23, 4 }
 0x369   : > { %v3967_v22 = vsel %vm15628_vm13, %v17165_v3, %v17178_v17  ;;  %v12970_v2 = vrot.slane %v4359_v42, 9  ;;  %v4434_v38 = vrot.slane %v16821_v48, 5  ;;  %v3996_v8 = vshll.u32 %v3671_v61, 16  ;;  %v3677_v42 = vld [vmem:[#allocation2 + $0xc0] sm:$0xf]  ;;  %v22204_v3 = vld [vmem:[#allocation8_spill] sm:$0xff] }
 0x36a   : > { %14116 = vmatmul.mubr.msk.bf16.gmra.mxu0 %vm477_vm4, %v16983_v58  ;;  %v3975_v58 = vor.u32 %v3974_v4, %v3971_v37  ;;  %v12986_v4 = vcombine.low %v4425_v39, %v4428_v18  ;;  %v17197_v37 = vrot.slane %v3985_v52, 4  ;;  %v12971_v9 = vrot.slane %v4360_v55, 9 }
 0x36b   : > { %14119 = vmatprep.mubr.msk.bf16.mxu0 %vm477_vm4, %v16985_v7  ;;  %v3957_v7 = vsel %vm15628_vm13, %v17140_v26, %v17097_v51  ;;  %v4441_v12 = vrot.slane %v16875_v56, 5  ;;  %v4002_v10 = vshll.u32 %v17187_v30, 16  ;;  %v4006_v6 = vshrl.u32 %v17187_v30, 16 }
 0x36c   : > { %14106 = vmatmul.mubr.msk.bf16.gmra.mxu1 %vm477_vm4, %v14678_v36  ;;  %v17193_v31 = vrot.slane %v3975_v58, 4  ;;  %v4435_v1 = vsel %vm16429_vm14, %v4433_v43, %v4434_v38  ;;  %v4445_v18 = vrot.slane %v16838_v14, 5  ;;  %v4017_v50 = vshrl.u32 %v3674_v57, 16 }
 0x36d   : > { %14145 = vmatprep.mubr.msk.bf16.mxu1 %vm477_vm4, %v12986_v4  ;;  %v4020_v25 = vshll.u32 %v3674_v57, 16  ;;  %v4442_v48 = vsel %vm16429_vm14, %v4440_v33, %v4441_v12  ;;  %v3995_v56 = vrot.slane %v3993_v63, 4  ;;  %v4026_v58 = vshll.u32 %v17199_v35, 16  ;;  %v4362_v33 = vld [vmem:[#allocation2 + $0x3c] sm:$0xe] }
 0x36e   : > { %v4030_v61 = vshrl.u32 %v17199_v35, 16  ;;  %v4432_v36 = vsel %vm16429_vm14, %v12970_v2, %v4431_v15  ;;  %v3998_v14 = vrot.slane %v3996_v8, 5  ;;  %v4439_v39 = vsel %vm16429_vm14, %v12971_v9, %v4438_v23  ;;  %v17234_v12 = vld [vmem:[#allocation2 + $0xb0] sm:$0x1] }
 0x36f   : > { %v12987_v52 = vcombine.low %v4432_v36, %v4435_v1  ;;  %v17221_v4 = vrot.slane %v4002_v10, 5  ;;  %v4008_v43 = vrot.slane %v4006_v6, 4  ;;  %v12988_v55 = vcombine.low %v4439_v39, %v4442_v48 }
 0x370   : > { %v4447_v63 = vrot.slane %v4445_v18, 4  ;;  %v3981_v15 = vsel %vm15628_vm13, %v17193_v31, %v17130_v41  ;;  %v4022_v57 = vrot.slane %v4020_v25, 5  ;;  %v4454_v23 = vrot.slane %v4452_v19, 4  ;;  %v4368_v41 = vld [vmem:[#allocation2 + $0x84] sm:$0xe] }
 0x371   : > { %v17228_v2 = vrot.slane %v4026_v58, 5  ;;  %v4032_v38 = vrot.slane %v4030_v61, 4  ;;  %v12972_v8 = vrot.slane %v4361_v59, 9  ;;  %v4448_v9 = vrot.slane %v16879_v62, 5 }
 0x372   : > { %14120 = vmatmul.mubr.msk.bf16.gmra.mxu0 %vm477_vm4, %v17031_v28  ;;  %v5718_v28 = vsel %vm2360_vm10, %v16808_v47, 0  ;;  %v17231_v47 = vld [vmem:[#allocation2 + $0xc4] sm:$0xf]  ;;  %v4041_v10 = vshrl.u32 %v3677_v42, 16  ;;  %v4044_v6 = vshll.u32 %v3677_v42, 16  ;;  %v12973_v1 = vrot.slane %v4362_v33, 9 }
 0x373   : > { %14123 = vmatprep.mubr.msk.bf16.mxu0 %vm477_vm4, %v12943_v20  ;;  %v4019_v20 = vrot.slane %v4017_v50, 4  ;;  %v4455_v50 = vrot.slane %v16905_v16, 5  ;;  %v22198_v25 = vmov 0.0   ;;  %v3999_v48 = vor.u32 %v3998_v14, %v3995_v56 }
 0x374   : > { %14146 = vmatmul.mubr.msk.bf16.vlgmr.msra.gmra.mxu1 %vm477_vm4, %v12987_v52  ;;  %v4009_v58 = vor.u32 %v4008_v43, %v17221_v4  ;;  %v4449_v61 = vsel %vm16429_vm14, %v4447_v63, %v4448_v9  ;;  %v4459_v36 = vrot.slane %v16896_v53, 5  ;;  %v17242_v52 = vld [vmem:[#allocation2 + $0xbc] sm:$0x1]  ;;  %v4050_v62 = vshll.u32 %v17231_v47, 16  ;;  %v4363_v63 = vld [vmem:[#allocation2 + $0x48] sm:$0xe] }
 0x375   : > { %14149 = vmatprep.mubr.msk.bf16.mxu1 %vm477_vm4, %v12988_v55  ;;  %14212 = vmatpush3.bf16.msra.mxu1 %v5718_v28  ;;  %v4054_v39 = vshrl.u32 %v17231_v47, 16  ;;  %v4456_v42 = vsel %vm16429_vm14, %v4454_v23, %v4455_v50  ;;  %v4466_v16 = vrot.slane %v16925_v49, 5  ;;  %v4012_v56 = vshll.u32 %v17234_v12, 16 }
 0x376   : > { %14279 = vmatprep.subr.mxu1 %v22198_v25  ;;  %v4023_v14 = vor.u32 %v4022_v57, %v4019_v20  ;;  %v4033_v59 = vor.u32 %v4032_v38, %v17228_v2  ;;  %v4446_v53 = vsel %vm16429_vm14, %v12972_v8, %v4445_v18  ;;  %v4043_v28 = vrot.slane %v4041_v10, 4  ;;  %v4364_v57 = vld [vmem:[#allocation2 + $0x54] sm:$0xe] }
 0x377   : > { %v4046_v43 = vrot.slane %v4044_v6, 5  ;;  %v12989_v55 = vcombine.low %v4446_v53, %v4449_v61  ;;  %v4453_v49 = vsel %vm16429_vm14, %v12973_v1, %v4452_v19  ;;  %v4000_v33 = vrot.slane %v3999_v48, 4 }
 0x378   : > { %v12990_v23 = vcombine.low %v4453_v49, %v4456_v42  ;;  %v4461_v20 = vrot.slane %v4459_v36, 4  ;;  %v4010_v38 = vrot.slane %v4009_v58, 4  ;;  %v17260_v9 = vrot.slane %v4050_v62, 5  ;;  %v17266_v58 = vld [vmem:[#allocation2 + $0xc8] sm:$0x1] }
 0x379   : > { %v4056_v18 = vrot.slane %v4054_v39, 4  ;;  %v4024_v8 = vrot.slane %v4023_v14, 4  ;;  %v4034_v10 = vrot.slane %v4033_v59, 4  ;;  %v12974_v6 = vrot.slane %v4363_v63, 9  ;;  %v17272_v59 = vpop.f32.mrf.mxu1  ;;  %v4366_v49 = vld [vmem:[#allocation2 + $0x6c] sm:$0xe] }
 0x37a   : > { %14124 = vmatmul.mubr.msk.bf16.gmra.mxu0 %vm477_vm4, %v17163_v46  ;;  %v4036_v46 = vshll.u32 %v17242_v52, 16  ;;  %v4462_v19 = vrot.slane %v16921_v54, 5  ;;  %v4014_v1 = vrot.slane %v4012_v56, 5  ;;  %v4047_v50 = vor.u32 %v4046_v43, %v4043_v28  ;;  %22199 = vst [vmem:[#allocation22_spill] sm:$0xff] %v17272_v59 }
 0x37b   : > { %14127 = vmatprep.mubr.msk.bf16.mxu0 %vm477_vm4, %v17169_v34  ;;  %v4468_v34 = vrot.slane %v4466_v16, 4  ;;  %v12975_v48 = vrot.slane %v4364_v57, 9  ;;  %v4469_v61 = vrot.slane %v16993_v24, 5  ;;  %v4473_v39 = vrot.slane %v16981_v32, 5 }
 0x37c   : > { %14150 = vmatmul.mubr.msk.bf16.gmra.mxu1 %vm477_vm4, %v12989_v55  ;;  %v4038_v42 = vrot.slane %v4036_v46, 5  ;;  %v4463_v62 = vsel %vm16429_vm14, %v4461_v20, %v4462_v19  ;;  %v4480_v14 = vrot.slane %v16987_v45, 5  ;;  %v3991_v54 = vsel %vm15628_vm13, %v17197_v37, %v17185_v5  ;;  %v22201_v20 = vld [vmem:[#allocation19_spill] sm:$0xff] }
 0x37d   : > { %14153 = vmatprep.mubr.msk.bf16.mxu1 %vm477_vm4, %v12990_v23  ;;  %v4005_v24 = vsel %vm15628_vm13, %v4000_v33, %v17221_v4  ;;  %v4057_v56 = vor.u32 %v4056_v18, %v17260_v9  ;;  %v4470_v53 = vsel %vm16429_vm14, %v4468_v34, %v4469_v61  ;;  %v4015_v32 = vsel %vm15628_vm13, %v4010_v38, %v4014_v1  ;;  %v4365_v4 = vld [vmem:[#allocation2 + $0x60] sm:$0xe]  ;;  %v17303_v23 = vpop.f32.mrf.mxu1  ;;  %v22203_v34 = vld [vmem:[#allocation15_spill] sm:$0xff] }
 0x37e   : > { %v4029_v45 = vsel %vm15628_vm13, %v4024_v8, %v17228_v2  ;;  %v4039_v5 = vsel %vm15628_vm13, %v4034_v10, %v4038_v42  ;;  %v4460_v37 = vsel %vm16429_vm14, %v12974_v6, %v4459_v36  ;;  %v17297_v28 = vrot.slane %v4047_v50, 4  ;;  %22200 = vst [vmem:[#allocation20_spill] sm:$0xff] %v17303_v23  ;;  %v4367_v10 = vld [vmem:[#allocation2 + $0x78] sm:$0xe]  ;;  %v4369_v42 = vld [vmem:[#allocation2 + $0x90] sm:$0xe] }
 0x37f   : > { %v12991_v43 = vcombine.low %v4460_v37, %v4463_v62  ;;  %v4467_v55 = vsel %vm16429_vm14, %v12975_v48, %v4466_v16  ;;  %v4475_v63 = vrot.slane %v4473_v39, 4  ;;  %v4482_v33 = vrot.slane %v4480_v14, 4  ;;  %v17338_v31 = vpop.f32.mrf.mxu1  ;;  %v4370_v62 = vld [vmem:[#allocation2 + $0x9c] sm:$0xe] }
 0x380   : > { %v12992_v2 = vcombine.low %v4467_v55, %v4470_v53  ;;  %v4487_v46 = vrot.slane %v16991_v13, 5  ;;  %v4058_v36 = vrot.slane %v4057_v56, 4  ;;  %v12976_v16 = vrot.slane %v4365_v4, 9  ;;  %v22202_v13 = vld [vmem:[#allocation12_spill] sm:$0xff]  ;;  %22205 = vst [vmem:[#allocation21_spill] sm:$0xff] %v17338_v31  ;;  %v22206_v37 = vld [vmem:[#allocation9_spill] sm:$0xff] }
 0x381   : > { %v4494_v57 = vrot.slane %v22201_v20, 5  ;;  %v4476_v38 = vrot.slane %v22202_v13, 5  ;;  %v12977_v18 = vrot.slane %v4366_v49, 9  ;;  %v4483_v8 = vrot.slane %v22203_v34, 5  ;;  %v17354_v55 = vpop.f32.mrf.mxu1 }
 0x382   : > { %14128 = vmatmul.mubr.msk.bf16.gmra.mxu0 %vm477_vm4, %v17171_v40  ;;  %v4060_v40 = vshll.u32 %v17266_v58, 16  ;;  %v4501_v17 = vrot.slane %v22204_v3, 5  ;;  %v12949_v51 = vcombine.low %v3981_v15, %v3991_v54  ;;  %v17326_v26 = vcombine.low %v4005_v24, %v4015_v32  ;;  %v4371_v32 = vld [vmem:[#allocation2 + $0xa8] sm:$0xe]  ;;  %22207 = vst [vmem:[#allocation23_spill] sm:$0xff] %v17354_v55 }
 0x383   : > { %14131 = vmatprep.mubr.msk.bf16.mxu0 %vm477_vm4, %v17176_v21  ;;  %v12948_v21 = vcombine.low %v3957_v7, %v3967_v22  ;;  %v17328_v7 = vcombine.low %v4029_v45, %v4039_v5  ;;  %v4053_v6 = vsel %vm15628_vm13, %v17297_v28, %v17260_v9  ;;  %v4477_v19 = vsel %vm16429_vm14, %v4475_v63, %v4476_v38  ;;  %v1234_v28 = vld [vmem:[#allocation2 + $0xcc] sm:$0x1]  ;;  %v17597_v55 = vld [vmem:[#allocation2 + $0x68] sm:$0x1] }
 0x384   : > { %14154 = vmatmul.mubr.msk.bf16.gmra.mxu1 %vm477_vm4, %v12991_v43  ;;  %v4062_v22 = vrot.slane %v4060_v40, 5  ;;  %v4484_v1 = vsel %vm16429_vm14, %v4482_v33, %v4483_v8  ;;  %v4489_v50 = vrot.slane %v4487_v46, 4  ;;  %v4474_v48 = vsel %vm16429_vm14, %v12976_v16, %v4473_v39  ;;  %v22208_v33 = vld [vmem:[#allocation17_spill] sm:$0xff]  ;;  %v17371_v16 = vld [vmem:[#allocation2 + $0xb4] sm:$0xe] }
 0x385   : > { %14157 = vmatprep.mubr.msk.bf16.mxu1 %vm477_vm4, %v12992_v2  ;;  %v4496_v61 = vrot.slane %v4494_v57, 4  ;;  %v4508_v9 = vrot.slane %v17086_v27, 5  ;;  %v4481_v54 = vsel %vm16429_vm14, %v12977_v18, %v4480_v14  ;;  %v12978_v24 = vrot.slane %v4367_v10, 9  ;;  %v5187_v8 = vld [vmem:[#allocation2 + $0x18] sm:$0xf] }
 0x386   : > { %v4063_v15 = vsel %vm15628_vm13, %v4058_v36, %v4062_v22  ;;  %v4490_v56 = vrot.slane %v17056_v60, 5  ;;  %v4503_v53 = vrot.slane %v4501_v17, 4  ;;  %v12993_v45 = vcombine.low %v4474_v48, %v4477_v19  ;;  %v17386_v22 = vpop.f32.mrf.mxu1 }
 0x387   : > { %v12994_v5 = vcombine.low %v4481_v54, %v4484_v1  ;;  %v12979_v39 = vrot.slane %v4368_v41, 9  ;;  %v4497_v4 = vrot.slane %v22206_v37, 5  ;;  %v12980_v40 = vrot.slane %v4369_v42, 9  ;;  %22210 = vst [vmem:[#allocation24_spill] sm:$0xff] %v17386_v22  ;;  %v17404_v41 = vld [vmem:[#allocation2 + $0x28] sm:$0xf] }
 0x388   : > { %v4491_v27 = vsel %vm16429_vm14, %v4489_v50, %v4490_v56  ;;  %v4504_v43 = vrot.slane %v17124_v0, 5  ;;  %v12981_v14 = vrot.slane %v4370_v62, 9  ;;  %v4510_v49 = vrot.slane %v4508_v9, 4  ;;  %v5190_v50 = vld [vmem:[#allocation2 + $0x24] sm:$0xf]  ;;  %v17415_v56 = vpop.f32.mrf.mxu1 }
 0x389   : > { %v4498_v60 = vsel %vm16429_vm14, %v4496_v61, %v4497_v4  ;;  %v12982_v2 = vrot.slane %v4371_v32, 9  ;;  %v4515_v63 = vrot.slane %v17187_v30, 5  ;;  %v4488_v0 = vsel %vm16429_vm14, %v12978_v24, %v4487_v46  ;;  %v5193_v42 = vld [vmem:[#allocation2 + $0x30] sm:$0xf]  ;;  %22211 = vst [vmem:[#allocation11_spill] sm:$0xff] %v17415_v56 }
 0x38a   : > { %14132 = vmatmul.mubr.msk.bf16.gmra.mxu0 %vm477_vm4, %v12948_v21  ;;  %v17362_v21 = vsel %vm2360_vm10, %v22208_v33, 0  ;;  %v17369_v36 = vsel %vm16429_vm14, %v4503_v53, %v4504_v43  ;;  %v1235_v13 = vsel %vm15161_vm5, 0, %v1234_v28  ;;  %v12952_v38 = vcombine.low %v4053_v6, %v4063_v15  ;;  %v17389_v6 = vld [vmem:[#allocation2 + $0xc0] sm:$0xe]  ;;  %v17419_v32 = vld [vmem:[#allocation2 + $0x34] sm:$0xf] }
 0x38b   : > { %14135 = vmatprep.mubr.msk.bf16.mxu0 %vm477_vm4, %v12949_v51  ;;  %v12995_v30 = vcombine.low %v4488_v0, %v4491_v27  ;;  %v4495_v18 = vsel %vm16429_vm14, %v12979_v39, %v4494_v57  ;;  %v4511_v34 = vrot.slane %v17128_v44, 5  ;;  %1236 = vst [vmem:[#allocation2 + $0xcc] sm:$0x1] %v1235_v13  ;;  %v17380_v46 = vsel %vm16429_vm14, %v12980_v40, %v4501_v17  ;;  %v17391_v57 = vld [vmem:[#allocation2 + $0x1c] sm:$0xf] }
 0x38c   : > { %14158 = vmatmul.mubr.msk.bf16.gmra.mxu1 %vm477_vm4, %v12993_v45  ;;  %v12996_v3 = vcombine.low %v4495_v18, %v4498_v60  ;;  %v17384_v51 = vsel %vm16429_vm14, %v12981_v14, %v4508_v9  ;;  %v4518_v10 = vrot.slane %v17234_v12, 5  ;;  %v12997_v44 = vcombine.low %v17380_v46, %v17369_v36  ;;  %v17425_v27 = vld [vmem:[#allocation2 + $0x20] sm:$0x1]  ;;  %v14679_v0 = vld [vmem:[#allocation2 + $0x18] sm:$0xff]   ;;  %v17441_v13 = vld [vmem:[#allocation2 + $0x2c] sm:$0x1] }
 0x38d   : > { %14161 = vmatprep.mubr.msk.bf16.mxu1 %vm477_vm4, %v12994_v5  ;;  %v17397_v19 = vsel %vm16429_vm14, %v4510_v49, %v4511_v34  ;;  %v17401_v17 = vsel %vm16429_vm14, %v12982_v2, %v4515_v63  ;;  %v12983_v1 = vrot.slane %v17371_v16, 9  ;;  %v4522_v12 = vrot.slane %v17199_v35, 5  ;;  %v17431_v49 = vpop.f32.mrf.mxu1  ;;  %v17444_v34 = vpop.f32.mrf.mxu0  ;;  %v17650_v22 = vld [vmem:[#allocation2 + $0x74] sm:$0x1] }
 0x38e   : > { %v4529_v15 = vrot.slane %v17231_v47, 5  ;;  %v5236_v48 = vshrl.u32 %v5187_v8, 16  ;;  %v5239_v61 = vshll.u32 %v5187_v8, 16  ;;  %v4517_v62 = vrot.slane %v4515_v63, 4  ;;  %22212 = vst [vmem:[#allocation10_spill] sm:$0xff] %v17431_v49  ;;  %22221 = vst [vmem:[#allocation17_spill] sm:$0xff] %v17650_v22 }
 0x38f   : > { %v4525_v9 = vrot.slane %v17242_v52, 5  ;;  %v5245_v54 = vshll.u32 %v17391_v57, 16  ;;  %v5249_v24 = vshrl.u32 %v17391_v57, 16  ;;  %v5263_v53 = vshll.u32 %v5190_v50, 16  ;;  %v17644_v49 = vld [vmem:[#allocation2 + $0x88] sm:$0xf] }
 0x390   : > { %v5269_v35 = vshll.u32 %v17404_v41, 16  ;;  %v5273_v47 = vshrl.u32 %v17404_v41, 16  ;;  %v4532_v52 = vrot.slane %v17266_v58, 5  ;;  %v5284_v45 = vshrl.u32 %v5193_v42, 16  ;;  %22220 = vst [vmem:[#allocation9_spill] sm:$0xff] %v17644_v49 }
 0x391   : > { %v5287_v5 = vshll.u32 %v5193_v42, 16  ;;  %v4524_v39 = vrot.slane %v4522_v12, 4  ;;  %v4531_v37 = vrot.slane %v4529_v15, 4  ;;  %v5238_v4 = vrot.slane %v5236_v48, 4  ;;  %v17465_v48 = vpop.f32.mrf.mxu1 }
 0x392   : > { %14136 = vmatmul.mubr.msk.bf16.gmra.mxu0 %vm477_vm4, %v17326_v26  ;;  %v5260_v26 = vshrl.u32 %v5190_v50, 16  ;;  %v5241_v28 = vrot.slane %v5239_v61, 5  ;;  %v17427_v40 = vrot.slane %v5245_v54, 5  ;;  %v5251_v43 = vrot.slane %v5249_v24, 4  ;;  %22213 = vst [vmem:[#allocation16_spill] sm:$0xff] %v17465_v48 }
 0x393   : > { %14139 = vmatprep.mubr.msk.bf16.mxu0 %vm477_vm4, %v17328_v7  ;;  %v12984_v7 = vrot.slane %v17389_v6, 9  ;;  %v5293_v14 = vshll.u32 %v17419_v32, 16  ;;  %v5297_v60 = vshrl.u32 %v17419_v32, 16  ;;  %v5265_v2 = vrot.slane %v5263_v53, 5  ;;  %v5196_v6 = vld [vmem:[#allocation2 + $0x3c] sm:$0xf] }
 0x394   : > { %14162 = vmatmul.mubr.msk.bf16.gmra.mxu1 %vm477_vm4, %v12995_v30  ;;  %v5262_v58 = vrot.slane %v5260_v26, 4  ;;  %v17433_v63 = vrot.slane %v5269_v35, 5  ;;  %v5275_v33 = vrot.slane %v5273_v47, 4  ;;  %v12998_v16 = vcombine.low %v17384_v51, %v17397_v19  ;;  %v17459_v19 = vld [vmem:[#allocation2 + $0x40] sm:$0xf]  ;;  %v14680_v47 = vld [vmem:[#allocation2 + $0x24] sm:$0xff]  }
 0x395   : > { %14165 = vmatprep.mubr.msk.bf16.mxu1 %vm477_vm4, %v12996_v3  ;;  %v17439_v20 = vsel %vm16429_vm14, %v4517_v62, %v4518_v10  ;;  %v5286_v30 = vrot.slane %v5284_v45, 4  ;;  %v5289_v18 = vrot.slane %v5287_v5, 5  ;;  %v17448_v8 = vsel %vm16429_vm14, %v12983_v1, %v4522_v12  ;;  %v17477_v54 = vld [vmem:[#allocation2 + $0x38] sm:$0x1] }
 0x396   : > { %v17452_v3 = vsel %vm16429_vm14, %v4524_v39, %v4525_v9  ;;  %v17456_v51 = vsel %vm16429_vm14, %v4531_v37, %v4532_v52  ;;  %v5255_v10 = vshll.u32 %v17425_v27, 16  ;;  %v5252_v50 = vor.u32 %v5251_v43, %v17427_v40  ;;  %v14681_v52 = vld [vmem:[#allocation2 + $0x30] sm:$0xff]  }
 0x397   : > { %v17463_v1 = vrot.slane %v5293_v14, 5  ;;  %v5299_v12 = vrot.slane %v5297_v60, 4  ;;  %v17469_v61 = vsel %vm16429_vm14, %v12984_v7, %v4529_v15  ;;  %v5266_v42 = vor.u32 %v5265_v2, %v5262_v58  ;;  %v17480_v15 = vpop.f32.mrf.mxu0  ;;  %v17494_v58 = vld [vmem:[#allocation2 + $0x4c] sm:$0xf] }
 0x398   : > { %v5276_v62 = vor.u32 %v5275_v33, %v17433_v63  ;;  %v5279_v9 = vshll.u32 %v17441_v13, 16  ;;  %v5290_v24 = vor.u32 %v5289_v18, %v5286_v30  ;;  %v5308_v26 = vshrl.u32 %v5196_v6, 16  ;;  %v17496_v33 = vld [vmem:[#allocation2 + $0x44] sm:$0x1] }
 0x399   : > { %v5311_v53 = vshll.u32 %v5196_v6, 16  ;;  %v5317_v35 = vshll.u32 %v17459_v19, 16  ;;  %v12999_v7 = vcombine.low %v17401_v17, %v17439_v20  ;;  %v13000_v36 = vcombine.low %v17448_v8, %v17452_v3  ;;  %v17501_v30 = vpop.f32.mrf.mxu0  ;;  %v5913_v3 = vld [vmem:[#allocation2 + $0x18] sm:$0xe] }
 0x39a   : > { %14140 = vmatmul.mubr.msk.bf16.gmra.mxu0 %vm477_vm4, %v12952_v38  ;;  %v5242_v38 = vor.u32 %v5241_v28, %v5238_v4  ;;  %v13001_v46 = vcombine.low %v17469_v61, %v17456_v51  ;;  %v5253_v5 = vrot.slane %v5252_v50, 4  ;;  %v5257_v39 = vrot.slane %v5255_v10, 5  ;;  %v5199_v4 = vld [vmem:[#allocation2 + $0x48] sm:$0xf]  ;;  %v14685_v61 = vld [vmem:[#allocation2 + $0x60] sm:$0xff]  }
 0x39b   : > { %14179 = vmatprep.mubr.msk.bf16.mxu0 %vm477_vm4, %v14679_v0  ;;  %v5300_v37 = vor.u32 %v5299_v12, %v17463_v1  ;;  %v5267_v43 = vrot.slane %v5266_v42, 4  ;;  %v5277_v14 = vrot.slane %v5276_v62, 4  ;;  %v5281_v17 = vrot.slane %v5279_v9, 5 }
 0x39c   : > { %14166 = vmatmul.mubr.msk.bf16.gmra.mxu1 %vm477_vm4, %v12997_v44  ;;  %v5321_v44 = vshrl.u32 %v17459_v19, 16  ;;  %v5243_v45 = vrot.slane %v5242_v38, 4  ;;  %v5303_v60 = vshll.u32 %v17477_v54, 16  ;;  %v5291_v2 = vrot.slane %v5290_v24, 4 }
 0x39d   : > { %14169 = vmatprep.mubr.msk.bf16.mxu1 %vm477_vm4, %v12998_v16  ;;  %v5310_v0 = vrot.slane %v5308_v26, 4  ;;  %v5313_v16 = vrot.slane %v5311_v53, 5  ;;  %v17498_v20 = vrot.slane %v5317_v35, 5  ;;  %v5979_v10 = vrot.slane %v17391_v57, 5  ;;  %v5202_v53 = vld [vmem:[#allocation2 + $0x54] sm:$0xf] }
 0x39e   : > { %v5323_v8 = vrot.slane %v5321_v44, 4  ;;  %v5332_v6 = vshrl.u32 %v5199_v4, 16  ;;  %v5335_v38 = vshll.u32 %v5199_v4, 16  ;;  %v5248_v50 = vsel %vm15628_vm13, %v5243_v45, %v17427_v40 }
 0x39f   : > { %v5301_v12 = vrot.slane %v5300_v37, 4  ;;  %v5341_v42 = vshll.u32 %v17494_v58, 16  ;;  %v5345_v62 = vshrl.u32 %v17494_v58, 16  ;;  %v5258_v9 = vsel %vm15628_vm13, %v5253_v5, %v5257_v39 }
 0x3a0   : > { %v5282_v57 = vsel %vm15628_vm13, %v5277_v14, %v5281_v17  ;;  %v5305_v26 = vrot.slane %v5303_v60, 5  ;;  %v5296_v40 = vsel %vm15628_vm13, %v5291_v2, %v17463_v1  ;;  %v5314_v35 = vor.u32 %v5313_v16, %v5310_v0  ;;  %v14682_v14 = vld [vmem:[#allocation2 + $0x3c] sm:$0xff]   ;;  %v17538_v0 = vld [vmem:[#allocation2 + $0x58] sm:$0xf] }
 0x3a1   : > { %v13084_v44 = vrot.slane %v5913_v3, 9  ;;  %v5981_v5 = vrot.slane %v5979_v10, 4  ;;  %v5334_v39 = vrot.slane %v5332_v6, 4  ;;  %v5337_v37 = vrot.slane %v5335_v38, 5 }
 0x3a2   : > { %v17491_v28 = vpop.f32.mrf.mxu1  ;;  %14180 = vmatmul.mubr.msk.bf16.vlgmr.msra.gmra.mxu0 %vm477_vm4, %v14680_v47  ;;  %v5327_v47 = vshll.u32 %v17496_v33, 16  ;;  %v17533_v4 = vrot.slane %v5341_v42, 5  ;;  %v5347_v1 = vrot.slane %v5345_v62, 4  ;;  %v13052_v17 = vcombine.low %v5248_v50, %v5258_v9  ;;  %v5205_v50 = vld [vmem:[#allocation2 + $0x60] sm:$0xf] }
 0x3a3   : > { %22214 = vst [vmem:[#allocation13_spill] sm:$0xff] %v17491_v28  ;;  %14246 = vmatpush3.bf16.msra.mxu0 %v17362_v21  ;;  %14183 = vmatprep.mubr.msk.bf16.mxu0 %vm477_vm4, %v14681_v52  ;;  %v5272_v21 = vsel %vm15628_vm13, %v5267_v43, %v17433_v63  ;;  %v2401_v52 = vpop.f32.mrf.mxu0  ;;  %v5324_v63 = vor.u32 %v5323_v8, %v17498_v20  ;;  %v5356_v43 = vshrl.u32 %v5202_v53, 16  ;;  %v5359_v16 = vshll.u32 %v5202_v53, 16  ;;  %v14683_v8 = vld [vmem:[#allocation2 + $0x48] sm:$0xff]  }
 0x3a4   : > { %v17503_v18 = vpop.f32.mrf.mxu1  ;;  %14170 = vmatmul.mubr.msk.bf16.gmra.mxu1 %vm477_vm4, %v12999_v7  ;;  %v5306_v7 = vsel %vm15628_vm13, %v5301_v12, %v5305_v26  ;;  %v17535_v2 = vcombine.low %v5272_v21, %v5282_v57  ;;  %v17543_v6 = vrot.slane %v5314_v35, 4  ;;  %v5329_v38 = vrot.slane %v5327_v47, 5  ;;  %v17556_v57 = vld [vmem:[#allocation2 + $0x64] sm:$0xf]  ;;  %v17562_v26 = vld [vmem:[#allocation2 + $0x50] sm:$0x1] }
 0x3a5   : > { %22215 = vst [vmem:[#allocation14_spill] sm:$0xff] %v17503_v18  ;;  %14173 = vmatprep.mubr.msk.bf16.mxu1 %vm477_vm4, %v13000_v36  ;;  %v5982_v36 = vrot.slane %v17425_v27, 5  ;;  %v17547_v12 = vsel %vm16429_vm14, %v13084_v44, %v5979_v10  ;;  %v13981_v42 = vpop.f32.mrf.mxu0  ;;  %v17550_v62 = vcombine.low %v5296_v40, %v5306_v7  ;;  %v5325_v9 = vrot.slane %v5324_v63, 4  ;;  %v17565_v40 = vld [vmem:[#allocation2 + $0x24] sm:$0xe]  ;;  %v14687_v18 = vld [vmem:[#allocation2 + $0x78] sm:$0xff]  }
 0x3a6   : > { %v17515_v24 = vpop.f32.mrf.mxu1  ;;  %v5348_v53 = vor.u32 %v5347_v1, %v17533_v4  ;;  %v5358_v35 = vrot.slane %v5356_v43, 4  ;;  %v5365_v47 = vshll.u32 %v17538_v0, 16  ;;  %v5361_v63 = vrot.slane %v5359_v16, 5 }
 0x3a7   : > { %22216 = vst [vmem:[#allocation19_spill] sm:$0xff] %v17515_v24  ;;  %v17554_v21 = vsel %vm16429_vm14, %v5981_v5, %v5982_v36  ;;  %v5369_v5 = vshrl.u32 %v17538_v0, 16  ;;  %v5320_v7 = vsel %vm15628_vm13, %v17543_v6, %v17498_v20  ;;  %v5389_v1 = vshll.u32 %v17556_v57, 16  ;;  %v5208_v36 = vld [vmem:[#allocation2 + $0x6c] sm:$0xf] }
 0x3a8   : > { %v17528_v45 = vpop.f32.mrf.mxu1  ;;  %v5393_v43 = vshrl.u32 %v17556_v57, 16  ;;  %v5330_v51 = vsel %vm15628_vm13, %v5325_v9, %v5329_v38  ;;  %v17591_v6 = vrot.slane %v5365_v47, 5  ;;  %v5986_v24 = vrot.slane %v17404_v41, 5 }
 0x3a9   : > { %22217 = vst [vmem:[#allocation12_spill] sm:$0xff] %v17528_v45  ;;  %v5371_v38 = vrot.slane %v5369_v5, 4  ;;  %vm7115_vm5 = vcmask 60416  }
 0x3aa   : > { %v14011_v60 = vpop.f32.mrf.mxu1  ;;  %14184 = vmatmul.mubr.msk.bf16.gmra.mxu0 %vm477_vm4, %v14682_v14  ;;  %v2414_v14 = vpop.f32.mrf.mxu0 }
 0x3ab   : > { %v17541_v3 = vadd.f32 %v14011_v60, %v17444_v34  ;;  %v5338_v34 = vor.u32 %v5337_v37, %v5334_v39  ;;  %14187 = vmatprep.mubr.msk.bf16.mxu0 %vm477_vm4, %v14683_v8  ;;  %v5380_v39 = vshrl.u32 %v5205_v50, 16  ;;  %v5383_v37 = vshll.u32 %v5205_v50, 16  ;;  %v14684_v50 = vld [vmem:[#allocation2 + $0x54] sm:$0xff]  }
 0x3ac   : > { %v2690_v27 = vpop.f32.mrf.mxu1  ;;  %14174 = vmatmul.mubr.msk.bf16.gmra.mxu1 %vm477_vm4, %v13001_v46  ;;  %v5351_v46 = vshll.u32 %v17562_v26, 16  ;;  %v5349_v8 = vrot.slane %v5348_v53, 4  ;;  %v13982_v53 = vpop.f32.mrf.mxu0 }
 0x3ad   : > { %v17560_v10 = vadd.f32 %v2690_v27, %v17480_v15  ;;  %14213 = vmatprep.mubr.msk.bf16.mxu1 %vm477_vm4, %v13052_v17  ;;  %v5339_v16 = vrot.slane %v5338_v34, 4  ;;  %v17593_v27 = vld [vmem:[#allocation2 + $0x5c] sm:$0x1]  ;;  %v5382_v9 = vrot.slane %v5380_v39, 4  ;;  %v5385_v45 = vrot.slane %v5383_v37, 5 }
 0x3ae   : > { %v14012_v44 = vpop.f32.mrf.mxu1  ;;  %v5404_v34 = vshrl.u32 %v5208_v36, 16  ;;  %v5353_v47 = vrot.slane %v5351_v46, 5  ;;  %v5375_v37 = vshll.u32 %v17593_v27, 16 }
 0x3af   : > { %v17574_v15 = vadd.f32 %v14012_v44, %v17501_v30  ;;  %v13085_v30 = vrot.slane %v17565_v40, 9  ;;  %v5362_v44 = vor.u32 %v5361_v63, %v5358_v35  ;;  %v17599_v40 = vrot.slane %v5389_v1, 5  ;;  %v17611_v1 = vld [vmem:[#allocation2 + $0x70] sm:$0xf] }
 0x3b0   : > { %v2693_v60 = vpop.f32.mrf.mxu1  ;;  %v5407_v63 = vshll.u32 %v5208_v36, 16  ;;  %v5344_v5 = vsel %vm15628_vm13, %v5339_v16, %v17533_v4  ;;  %v5354_v41 = vsel %vm15628_vm13, %v5349_v8, %v5353_v47  ;;  %v5406_v16 = vrot.slane %v5404_v34, 4 }
 0x3b1   : > { %v17589_v20 = vadd.f32 %v2693_v60, %v2401_v52  ;;  %v5395_v52 = vrot.slane %v5393_v43, 4  ;;  %v5211_v43 = vld [vmem:[#allocation2 + $0x78] sm:$0xf]  ;;  %v5417_v47 = vshrl.u32 %v17611_v1, 16  ;;  %v17636_v34 = vsel %vm16429_vm14, %v13085_v30, %v5986_v24 }
 0x3b2   : > { %v14015_v17 = vpop.f32.mrf.mxu1  ;;  %14188 = vmatmul.mubr.msk.bf16.gmra.mxu0 %vm477_vm4, %v14684_v50  ;;  %v17615_v50 = vrot.slane %v5362_v44, 4  ;;  %v5409_v44 = vrot.slane %v5407_v63, 5  ;;  %v5377_v63 = vrot.slane %v5375_v37, 5  ;;  %v5217_v37 = vld [vmem:[#allocation2 + $0x90] sm:$0xf] }
 0x3b3   : > { %v17595_v48 = vadd.f32 %v14015_v17, %v13981_v42  ;;  %14191 = vmatprep.mubr.msk.bf16.mxu0 %vm477_vm4, %v14685_v61  ;;  %v13055_v42 = vcombine.low %v5320_v7, %v5330_v51  ;;  %v5372_v61 = vor.u32 %v5371_v38, %v17591_v6  ;;  %v5399_v7 = vshll.u32 %v17597_v55, 16  ;;  %v17619_v51 = vld [vmem:[#allocation2 + $0x7c] sm:$0xf]  ;;  %v2417_v17 = vpop.f32.mrf.mxu0 }
 0x3b4   : > { %v2706_v60 = vpop.f32.mrf.mxu1  ;;  %14214 = vmatmul.mubr.msk.bf16.vlgmr.msra.gmra.mxu1 %vm477_vm4, %v17535_v2  ;;  %v5396_v36 = vor.u32 %v5395_v52, %v17599_v40  ;;  %v5413_v38 = vshll.u32 %v17611_v1, 16  ;;  %v5431_v2 = vshll.u32 %v5211_v43, 16  ;;  %v13056_v52 = vcombine.low %v5344_v5, %v5354_v41 }
 0x3b5   : > { %v17608_v39 = vadd.f32 %v2706_v60, %v2414_v14  ;;  %v5386_v14 = vor.u32 %v5385_v45, %v5382_v9  ;;  %14217 = vmatprep.mubr.msk.bf16.mxu1 %vm477_vm4, %v17550_v62  ;;  %v5428_v60 = vshrl.u32 %v5211_v43, 16  ;;  %v5441_v45 = vshrl.u32 %v17619_v51, 16  ;;  %v14686_v9 = vld [vmem:[#allocation2 + $0x6c] sm:$0xff]  }
 0x3b6   : > { %v14016_v46 = vpop.f32.mrf.mxu1  ;;  %v17638_v62 = vrot.slane %v5986_v24, 4  ;;  %v5368_v43 = vsel %vm15628_vm13, %v17615_v50, %v17591_v6  ;;  %v5401_v28 = vrot.slane %v5399_v7, 5  ;;  %v5397_v5 = vrot.slane %v5396_v36, 4 }
 0x3b7   : > { %v17623_v4 = vadd.f32 %v14016_v46, %v13982_v53  ;;  %v5437_v53 = vshll.u32 %v17619_v51, 16  ;;  %v5214_v46 = vld [vmem:[#allocation2 + $0x84] sm:$0xf]  ;;  %v5410_v30 = vor.u32 %v5409_v44, %v5406_v16  ;;  %v17647_v41 = vrot.slane %v5413_v38, 5  ;;  %v17656_v16 = vld [vmem:[#allocation2 + $0x94] sm:$0xf] }
 0x3b8   : > { %v2709_v8 = vpop.f32.mrf.mxu1  ;;  %v5419_v24 = vrot.slane %v5417_v47, 4  ;;  %v5430_v31 = vrot.slane %v5428_v60, 4  ;;  %v5433_v6 = vrot.slane %v5431_v2, 5  ;;  %v5452_v7 = vshrl.u32 %v5214_v46, 16  ;;  %22222 = vst [vmem:[#allocation4_spill] sm:$0xff] %v17656_v16 }
 0x3b9   : > { %22218 = vst [vmem:[#allocation15_spill] sm:$0xff] %v17623_v4  ;;  %v17630_v35 = vadd.f32 %v2709_v8, %v2417_v17  ;;  %v5373_v17 = vrot.slane %v5372_v61, 4  ;;  %v5387_v8 = vrot.slane %v5386_v14, 4  ;;  %v17652_v50 = vrot.slane %v5437_v53, 5  ;;  %v5220_v4 = vld [vmem:[#allocation2 + $0x9c] sm:$0xf] }
 0x3ba   : > { %14192 = vmatmul.mubr.msk.bf16.gmra.mxu0 %vm477_vm4, %v14686_v9  ;;  %v5443_v61 = vrot.slane %v5441_v45, 4  ;;  %v5455_v14 = vshll.u32 %v5214_v46, 16  ;;  %v5461_v9 = vshll.u32 %v17644_v49, 16  ;;  %v5465_v36 = vshrl.u32 %v17644_v49, 16  ;;  %v17671_v45 = vld [vmem:[#allocation2 + $0x80] sm:$0x1] }
 0x3bb   : > { %22219 = vst [vmem:[#allocation8_spill] sm:$0xff] %v17630_v35  ;;  %14195 = vmatprep.mubr.msk.bf16.mxu0 %vm477_vm4, %v14687_v18  ;;  %v5378_v18 = vsel %vm15628_vm13, %v5373_v17, %v5377_v63  ;;  %v5392_v44 = vsel %vm15628_vm13, %v5387_v8, %v17599_v40  ;;  %v5476_v38 = vshrl.u32 %v5217_v37, 16  ;;  %v5479_v47 = vshll.u32 %v5217_v37, 16 }
 0x3bc   : > { %14218 = vmatmul.mubr.msk.bf16.gmra.mxu1 %vm477_vm4, %v13055_v42  ;;  %v5402_v60 = vsel %vm15628_vm13, %v5397_v5, %v5401_v28  ;;  %v17667_v2 = vrot.slane %v5410_v30, 4  ;;  %v5420_v53 = vor.u32 %v5419_v24, %v17647_v41  ;;  %v5423_v42 = vshll.u32 %v17650_v22, 16  ;;  %v14689_v30 = vld [vmem:[#allocation2 + $0x90] sm:$0xff]  }
 0x3bd   : > { %v13985_v56 = vpop.f32.mrf.mxu0  ;;  %14221 = vmatprep.mubr.msk.bf16.mxu1 %vm477_vm4, %v13056_v52  ;;  %v5434_v46 = vor.u32 %v5433_v6, %v5430_v31  ;;  %v5444_v17 = vor.u32 %v5443_v61, %v17652_v50  ;;  %v5485_v40 = vshll.u32 %v17656_v16, 16  ;;  %v5489_v8 = vshrl.u32 %v17656_v16, 16  ;;  %v14688_v52 = vld [vmem:[#allocation2 + $0x84] sm:$0xff]  }
 0x3be   : > { %v5454_v37 = vrot.slane %v5452_v7, 4  ;;  %v5457_v23 = vrot.slane %v5455_v14, 5  ;;  %v17676_v28 = vrot.slane %v5461_v9, 5  ;;  %v5467_v5 = vrot.slane %v5465_v36, 4 }
 0x3bf   : > { %v2430_v63 = vpop.f32.mrf.mxu0  ;;  %v13057_v59 = vcombine.low %v5368_v43, %v5378_v18  ;;  %v5447_v49 = vshll.u32 %v17671_v45, 16  ;;  %v5478_v22 = vrot.slane %v5476_v38, 4  ;;  %v5481_v35 = vrot.slane %v5479_v47, 5  ;;  %v17685_v18 = vld [vmem:[#allocation2 + $0xa0] sm:$0xf] }
 0x3c0   : > { %v14019_v24 = vpop.f32.mrf.mxu1  ;;  %v13058_v6 = vcombine.low %v5392_v44, %v5402_v60  ;;  %v5421_v61 = vrot.slane %v5420_v53, 4  ;;  %v5425_v16 = vrot.slane %v5423_v42, 5  ;;  %v5435_v9 = vrot.slane %v5434_v46, 4  ;;  %22223 = vst [vmem:[#allocation26_spill] sm:$0xff] %v17685_v18  ;;  %v17693_v44 = vld [vmem:[#allocation2 + $0x8c] sm:$0x1] }
 0x3c1   : > { %v17680_v31 = vadd.f32 %v14019_v24, %v13985_v56  ;;  %v13986_v7 = vpop.f32.mrf.mxu0  ;;  %v5445_v36 = vrot.slane %v5444_v17, 4  ;;  %v17683_v25 = vrot.slane %v5485_v40, 5  ;;  %v5491_v43 = vrot.slane %v5489_v8, 4  ;;  %22224 = vst [vmem:[#allocation27_spill] sm:$0xff] %v17693_v44  ;;  %v17697_v46 = vld [vmem:[#allocation2 + $0x98] sm:$0x1] }
 0x3c2   : > { %14196 = vmatmul.mubr.msk.bf16.gmra.mxu0 %vm477_vm4, %v14688_v52  ;;  %v2722_v14 = vpop.f32.mrf.mxu1  ;;  %v5416_v56 = vsel %vm15628_vm13, %v17667_v2, %v17647_v41  ;;  %v5458_v47 = vor.u32 %v5457_v23, %v5454_v37  ;;  %v5468_v60 = vor.u32 %v5467_v5, %v17676_v28  ;;  %v5449_v42 = vrot.slane %v5447_v49, 5  ;;  %22225 = vst [vmem:[#allocation28_spill] sm:$0xff] %v17697_v46  ;;  %v5223_v52 = vld [vmem:[#allocation2 + $0xa8] sm:$0xf]  ;;  %v17713_v5 = vld [vmem:[#allocation2 + $0xac] sm:$0xf] }
 0x3c3   : > { %14199 = vmatprep.mubr.msk.bf16.mxu0 %vm477_vm4, %v14689_v30  ;;  %v17687_v38 = vadd.f32 %v2722_v14, %v2430_v63  ;;  %v5482_v17 = vor.u32 %v5481_v35, %v5478_v22  ;;  %v5500_v40 = vshrl.u32 %v5220_v4, 16  ;;  %v5503_v63 = vshll.u32 %v5220_v4, 16  ;;  %22226 = vst [vmem:[#allocation29_spill] sm:$0xff] %v17713_v5 }
 0x3c4   : > { %14222 = vmatmul.mubr.msk.bf16.gmra.mxu1 %vm477_vm4, %v13057_v59  ;;  %v14020_v53 = vpop.f32.mrf.mxu1  ;;  %v5426_v41 = vsel %vm15628_vm13, %v5421_v61, %v5425_v16  ;;  %v5509_v23 = vshll.u32 %v17685_v18, 16  ;;  %v5513_v2 = vshrl.u32 %v17685_v18, 16  ;;  %v2433_v59 = vpop.f32.mrf.mxu0  ;;  %v5440_v22 = vsel %vm15628_vm13, %v5435_v9, %v17652_v50  ;;  %v14690_v16 = vld [vmem:[#allocation2 + $0x9c] sm:$0xff]  }
 0x3c5   : > { %14225 = vmatprep.mubr.msk.bf16.mxu1 %vm477_vm4, %v13058_v6  ;;  %v17700_v8 = vadd.f32 %v14020_v53, %v13986_v7  ;;  %v5450_v49 = vsel %vm15628_vm13, %v5445_v36, %v5449_v42  ;;  %v5471_v35 = vshll.u32 %v17693_v44, 16  ;;  %v5492_v4 = vor.u32 %v5491_v43, %v17683_v25  ;;  %v14691_v7 = vld [vmem:[#allocation2 + $0xa8] sm:$0xff]  }
 0x3c6   : > { %v2725_v37 = vpop.f32.mrf.mxu1  ;;  %v5459_v24 = vrot.slane %v5458_v47, 4  ;;  %v5469_v6 = vrot.slane %v5468_v60, 4  ;;  %v5495_v61 = vshll.u32 %v17697_v46, 16  ;;  %v5483_v14 = vrot.slane %v5482_v17, 4  ;;  %v17723_v60 = vld [vmem:[#allocation2 + $0xa4] sm:$0x1] }
 0x3c7   : > { %v17715_v30 = vadd.f32 %v2725_v37, %v2433_v59  ;;  %v5502_v53 = vrot.slane %v5500_v40, 4  ;;  %v5505_v50 = vrot.slane %v5503_v63, 5  ;;  %v5524_v9 = vshrl.u32 %v5223_v52, 16  ;;  %22228 = vst [vmem:[#allocation31_spill] sm:$0xff] %v17723_v60 }
 0x3c8   : > { %v17719_v36 = vrot.slane %v5509_v23, 5  ;;  %v5515_v42 = vrot.slane %v5513_v2, 4  ;;  %v5527_v43 = vshll.u32 %v5223_v52, 16  ;;  %v5533_v18 = vshll.u32 %v17713_v5, 16  ;;  %v5226_v23 = vld [vmem:[#allocation2 + $0xb4] sm:$0xf] }
 0x3c9   : > { %22227 = vst [vmem:[#allocation30_spill] sm:$0xff] %v17715_v30  ;;  %v13059_v59 = vcombine.low %v5416_v56, %v5426_v41  ;;  %v5493_v47 = vrot.slane %v5492_v4, 4  ;;  %v5526_v37 = vrot.slane %v5524_v9, 4  ;;  %v5537_v17 = vshrl.u32 %v17713_v5, 16  ;;  %v5229_v5 = vld [vmem:[#allocation2 + $0xc0] sm:$0xf] }
 0x3ca   : > { %14200 = vmatmul.mubr.msk.bf16.gmra.mxu0 %vm477_vm4, %v14690_v16  ;;  %v13060_v40 = vcombine.low %v5440_v22, %v5450_v49  ;;  %v5473_v63 = vrot.slane %v5471_v35, 5  ;;  %v5529_v46 = vrot.slane %v5527_v43, 5  ;;  %v17726_v44 = vrot.slane %v5533_v18, 5  ;;  %v17739_v35 = vld [vmem:[#allocation2 + $0xb8] sm:$0xf] }
 0x3cb   : > { %14203 = vmatprep.mubr.msk.bf16.mxu0 %vm477_vm4, %v14691_v7  ;;  %v22229_v2 = vrot.slane %v17441_v13, 5  ;;  %v5464_v41 = vsel %vm15628_vm13, %v5459_v24, %v17676_v28  ;;  %v5497_v22 = vrot.slane %v5495_v61, 5  ;;  %v5539_v49 = vrot.slane %v5537_v17, 4  ;;  %22230 = vst [vmem:[#allocation32_spill] sm:$0xff] %v17739_v35  ;;  %v5915_v18 = vld [vmem:[#allocation2 + $0x30] sm:$0xe] }
 0x3cc   : > { %v14023_v56 = vpop.f32.mrf.mxu1  ;;  %14226 = vmatmul.mubr.msk.bf16.gmra.mxu1 %vm477_vm4, %v13059_v59  ;;  %v5474_v13 = vsel %vm15628_vm13, %v5469_v6, %v5473_v63  ;;  %v5506_v4 = vor.u32 %v5505_v50, %v5502_v53  ;;  %v5516_v16 = vor.u32 %v5515_v42, %v17719_v36  ;;  %v5519_v24 = vshll.u32 %v17723_v60, 16  ;;  %v17751_v61 = vld [vmem:[#allocation2 + $0xb0] sm:$0x1]  ;;  %v14692_v59 = vld [vmem:[#allocation2 + $0xb4] sm:$0xff]  }
 0x3cd   : > { %v17733_v52 = vsel %vm16429_vm14, %v17638_v62, %v22229_v2  ;;  %14229 = vmatprep.mubr.msk.bf16.mxu1 %vm477_vm4, %v13060_v40  ;;  %v5488_v62 = vsel %vm15628_vm13, %v5483_v14, %v17683_v25  ;;  %v5498_v28 = vsel %vm15628_vm13, %v5493_v47, %v5497_v22  ;;  %v5530_v9 = vor.u32 %v5529_v46, %v5526_v37  ;;  %v14693_v14 = vld [vmem:[#allocation2 + $0xc0] sm:$0xff]  }
 0x3ce   : > { %v2738_v7 = vpop.f32.mrf.mxu1  ;;  %v5548_v43 = vshrl.u32 %v5226_v23, 16  ;;  %v5540_v6 = vor.u32 %v5539_v49, %v17726_v44  ;;  %v5551_v17 = vshll.u32 %v5226_v23, 16  ;;  %v5557_v40 = vshll.u32 %v17739_v35, 16 }
 0x3cf   : > { %v5561_v25 = vshrl.u32 %v17739_v35, 16  ;;  %v13086_v50 = vrot.slane %v5915_v18, 9  ;;  %v5993_v42 = vrot.slane %v17419_v32, 5  ;;  %v13061_v63 = vcombine.low %v5464_v41, %v5474_v13 }
 0x3d0   : > { %v14024_v47 = vpop.f32.mrf.mxu1  ;;  %v13062_v46 = vcombine.low %v5488_v62, %v5498_v28  ;;  %v5507_v37 = vrot.slane %v5506_v4, 4  ;;  %v5517_v22 = vrot.slane %v5516_v16, 4  ;;  %v5543_v23 = vshll.u32 %v17751_v61, 16 }
 0x3d1   : > { %v5531_v60 = vrot.slane %v5530_v9, 4  ;;  %v5550_v53 = vrot.slane %v5548_v43, 4  ;;  %v5553_v18 = vrot.slane %v5551_v17, 5  ;;  %v5521_v30 = vrot.slane %v5519_v24, 5  ;;  %v17774_v9 = vld [vmem:[#allocation2 + $0xc4] sm:$0xf] }
 0x3d2   : > { %v13989_v2 = vpop.f32.mrf.mxu0  ;;  %14204 = vmatmul.mubr.msk.bf16.gmra.mxu0 %vm477_vm4, %v14692_v59  ;;  %v2741_v35 = vpop.f32.mrf.mxu1  ;;  %v5541_v41 = vrot.slane %v5540_v6, 4  ;;  %v17764_v13 = vrot.slane %v5557_v40, 5  ;;  %v5563_v59 = vrot.slane %v5561_v25, 4  ;;  %v17768_v62 = vsel %vm16429_vm14, %v13086_v50, %v5993_v42  ;;  %v14694_v24 = vld [vmem:[#allocation2 + $0xcc] sm:$0xff]   ;;  %v17789_v50 = vld [vmem:[#allocation2 + $0xbc] sm:$0x1] }
 0x3d3   : > { %14207 = vmatprep.mubr.msk.bf16.mxu0 %vm477_vm4, %v14693_v14  ;;  %v17762_v49 = vadd.f32 %v14023_v56, %v13989_v2  ;;  %v5995_v4 = vrot.slane %v5993_v42, 4  ;;  %v5996_v16 = vrot.slane %v17477_v54, 5  ;;  %v5512_v6 = vsel %vm15628_vm13, %v5507_v37, %v17719_v36  ;;  %22231 = vst [vmem:[#allocation33_spill] sm:$0xff] %v17789_v50 }
 0x3d4   : > { %v2446_v32 = vpop.f32.mrf.mxu0  ;;  %v14027_v28 = vpop.f32.mrf.mxu1  ;;  %14230 = vmatmul.mubr.msk.bf16.gmra.mxu1 %vm477_vm4, %v13061_v63  ;;  %v5522_v17 = vsel %vm15628_vm13, %v5517_v22, %v5521_v30  ;;  %v5545_v40 = vrot.slane %v5543_v23, 5  ;;  %v5572_v54 = vshrl.u32 %v5229_v5, 16  ;;  %v5536_v14 = vsel %vm15628_vm13, %v5531_v60, %v17726_v44  ;;  %v1290_v23 = vld [vmem:[#allocation2 + $0xd4] sm:$0x1] }
 0x3d5   : > { %v17771_v56 = vadd.f32 %v2738_v7, %v2446_v32  ;;  %14233 = vmatprep.mubr.msk.bf16.mxu1 %vm477_vm4, %v13062_v46  ;;  %v5554_v42 = vor.u32 %v5553_v18, %v5550_v53  ;;  %v5575_v63 = vshll.u32 %v5229_v5, 16  ;;  %v5564_v30 = vor.u32 %v5563_v59, %v17764_v13  ;;  %v17802_v53 = vld [vmem:[#allocation2 + $0xc8] sm:$0x1] }
 0x3d6   : > { %v13990_v43 = vpop.f32.mrf.mxu0  ;;  %v17784_v25 = vpop.f32.mrf.mxu1  ;;  %v5546_v36 = vsel %vm15628_vm13, %v5541_v41, %v5545_v40  ;;  %v5574_v46 = vrot.slane %v5572_v54, 4  ;;  %v17797_v37 = vsel %vm16429_vm14, %v5995_v4, %v5996_v16  ;;  %v13063_v32 = vcombine.low %v5512_v6, %v5522_v17 }
 0x3d7   : > { %v17782_v7 = vadd.f32 %v14024_v47, %v13990_v43  ;;  %v5581_v47 = vshll.u32 %v17774_v9, 16  ;;  %v5577_v5 = vrot.slane %v5575_v63, 5  ;;  %v5567_v41 = vshll.u32 %v17789_v50, 16 }
 0x3d8   : > { %v2449_v2 = vpop.f32.mrf.mxu0  ;;  %v14028_v60 = vpop.f32.mrf.mxu1  ;;  %v5585_v43 = vshrl.u32 %v17774_v9, 16  ;;  %v22232_v4 = vcombine.low %v17547_v12, %v17554_v21  ;;  %v13064_v40 = vcombine.low %v5536_v14, %v5546_v36  ;;  %v5555_v54 = vrot.slane %v5554_v42, 4  ;;  %v17820_v12 = vld [vmem:[#allocation2 + $0xd0] sm:$0xf] }
 0x3d9   : > { %v17800_v44 = vadd.f32 %v2741_v35, %v2449_v2  ;;  %v5583_v59 = vrot.slane %v5581_v47, 5  ;;  %v5578_v63 = vor.u32 %v5577_v5, %v5574_v46  ;;  %v5232_v2 = vld [vmem:[#allocation2 + $0xcc] sm:$0xf]  ;;  %v5565_v6 = vrot.slane %v5564_v30, 4 }
 0x3da   : > { %v13993_v18 = vpop.f32.mrf.mxu0  ;;  %14208 = vmatmul.mubr.msk.bf16.gmra.mxu0 %vm477_vm4, %v14694_v24  ;;  %v17813_v16 = vpop.f32.mrf.mxu1  ;;  %v5587_v17 = vrot.slane %v5585_v43, 4  ;;  %v5591_v47 = vshll.u32 %v17802_v53, 16  ;;  %v1291_v50 = vsel %vm15226_vm7, 0, %v1290_v23  ;;  %v13103_v21 = vcombine.low %v17768_v62, %v17797_v37  ;;  %v5916_v43 = vld [vmem:[#allocation2 + $0x3c] sm:$0xe]  ;;  %vm18138_vm7 = vmand %vm7118_vm9, %vm1181_vm3 }
 0x3db   : > { %14247 = vmatprep.mubr.msk.bf16.mxu0 %vm477_vm4, %v22232_v4  ;;  %v17811_v35 = vadd.f32 %v14027_v28, %v13993_v18  ;;  %22233 = vst [vmem:[#allocation34_spill] sm:$0xff] %v17813_v16  ;;  %v22235_v28 = vrot.slane %v17459_v19, 5  ;;  %v5579_v30 = vrot.slane %v5578_v63, 4  ;;  %1292 = vst [vmem:[#allocation2 + $0xd4] sm:$0x1] %v1291_v50  ;;  %v5569_v22 = vrot.slane %v5567_v41, 5 }
 0x3dc   : > { %v17815_v24 = vpop.f32.mrf.mxu0  ;;  %v17827_v36 = vpop.f32.mrf.mxu1  ;;  %14234 = vmatmul.mubr.msk.bf16.gmra.mxu1 %vm477_vm4, %v13063_v32  ;;  %v5588_v5 = vor.u32 %v5587_v17, %v5583_v59  ;;  %v5596_v23 = vshrl.u32 %v5232_v2, 16  ;;  %v5599_v18 = vshll.u32 %v5232_v2, 16  ;;  %v6003_v62 = vrot.slane %v17496_v33, 5  ;;  %vm18158_vm3 = vmand %vm7118_vm9, %vm1237_vm6 }
 0x3dd   : > { %v6002_v14 = vrot.slane %v22235_v28, 4  ;;  %14237 = vmatprep.mubr.msk.bf16.mxu1 %vm477_vm4, %v13064_v40  ;;  %v5560_v32 = vsel %vm15628_vm13, %v5555_v54, %v17764_v13  ;;  %v5605_v50 = vshll.u32 %v17820_v12, 16  ;;  %v5570_v41 = vsel %vm15628_vm13, %v5565_v6, %v5569_v22  ;;  %v5917_v28 = vld [vmem:[#allocation2 + $0x48] sm:$0xe] }
 0x3de   : > { %v13994_v46 = vpop.f32.mrf.mxu0  ;;  %v17834_v4 = vpop.f32.mrf.mxu1  ;;  %v5589_v40 = vrot.slane %v5588_v5, 4  ;;  %v5593_v2 = vrot.slane %v5591_v47, 5  ;;  %v5598_v17 = vrot.slane %v5596_v23, 4  ;;  %v5609_v13 = vshrl.u32 %v17820_v12, 16 }
 0x3df   : > { %v17832_v37 = vadd.f32 %v14028_v60, %v13994_v46  ;;  %v5584_v60 = vsel %vm15628_vm13, %v5579_v30, %v5583_v59  ;;  %v5601_v46 = vrot.slane %v5599_v18, 5  ;;  %v5607_v42 = vrot.slane %v5605_v50, 5 }
 0x3e0   : > { %v17840_v63 = vpop.f32.mrf.mxu0  ;;  %v17844_v33 = vpop.f32.mrf.mxu1  ;;  %v22236_v16 = vcombine.low %v17636_v34, %v17733_v52  ;;  %v13087_v6 = vrot.slane %v5916_v43, 9  ;;  %v6004_v47 = vsel %vm16429_vm14, %v6002_v14, %v6003_v62  ;;  %v22237_v22 = vrot.slane %v17494_v58, 5 }
 0x3e1   : > { %v5594_v59 = vsel %vm15628_vm13, %v5589_v40, %v5593_v2  ;;  %v13065_v34 = vcombine.low %v5560_v32, %v5570_v41  ;;  %v5602_v52 = vor.u32 %v5601_v46, %v5598_v17  ;;  %v13088_v43 = vrot.slane %v5917_v28, 9 }
 0x3e2   : > { %v14045_v54 = vpop.f32.mrf.mxu0  ;;  %14248 = vmatmul.mubr.msk.bf16.vlgmr.msra.gmra.mxu0 %vm477_vm4, %v22236_v16  ;;  %v6009_v5 = vrot.slane %v22237_v22, 4  ;;  %v17863_v23 = vpop.f32.mrf.mxu1  ;;  %v5611_v16 = vrot.slane %v5609_v13, 4  ;;  %v6010_v14 = vrot.slane %v17562_v26, 5  ;;  %v6014_v62 = vrot.slane %v17538_v0, 5  ;;  %v17867_v22 = vld [vmem:[#allocation2 + $0xd4] sm:$0x1] }
 0x3e3   : > { %v17860_v30 = vadd.f32 %v14045_v54, %v17541_v3  ;;  %14251 = vmatprep.mubr.msk.bf16.mxu0 %vm477_vm4, %v13103_v21  ;;  %22238 = vst [vmem:[#allocation5_spill] sm:$0xff] %v17863_v23  ;;  %v13066_v50 = vcombine.low %v5584_v60, %v5594_v59  ;;  %v5603_v21 = vrot.slane %v5602_v52, 4  ;;  %v5615_v41 = vshll.u32 %v17867_v22, 16 }
 0x3e4   : > { %v3115_v18 = vpop.f32.mrf.mxu0  ;;  %v17872_v3 = vpop.f32.mrf.mxu1  ;;  %14238 = vmatmul.mubr.msk.bf16.gmra.mxu1 %vm477_vm4, %v13065_v34  ;;  %v5612_v32 = vor.u32 %v5611_v16, %v5607_v42  ;;  %v22239_v17 = vrot.slane %v17459_v19, 5  ;;  %v6011_v26 = vsel %vm16429_vm14, %v6009_v5, %v6010_v14  ;;  %v6016_v52 = vrot.slane %v6014_v62, 4  ;;  %v5919_v16 = vld [vmem:[#allocation2 + $0x60] sm:$0xe] }
 0x3e5   : > { %v17870_v40 = vadd.f32 %v3115_v18, %v17560_v10  ;;  %v6021_v10 = vrot.slane %v17556_v57, 5  ;;  %14241 = vmatprep.mubr.msk.bf16.mxu1 %vm477_vm4, %v13066_v50  ;;  %v5608_v46 = vsel %vm15628_vm13, %v5603_v21, %v5607_v42  ;;  %v5617_v19 = vrot.slane %v5615_v41, 5  ;;  %v5918_v57 = vld [vmem:[#allocation2 + $0x54] sm:$0xe] }
 0x3e6   : > { %v14046_v2 = vpop.f32.mrf.mxu0  ;;  %v6001_v0 = vsel %vm16429_vm14, %v13087_v6, %v22239_v17  ;;  %v17887_v60 = vpop.f32.mrf.mxu1  ;;  %v5613_v13 = vrot.slane %v5612_v32, 4  ;;  %v22240_v6 = vrot.slane %v17494_v58, 5  ;;  %v13090_v41 = vrot.slane %v5919_v16, 9 }
 0x3e7   : > { %v17885_v28 = vadd.f32 %v14046_v2, %v17574_v15  ;;  %v13104_v59 = vcombine.low %v6001_v0, %v6004_v47  ;;  %v6023_v47 = vrot.slane %v6021_v10, 4  ;;  %v6024_v2 = vrot.slane %v17597_v55, 5  ;;  %v22243_v55 = vld [vmem:[#allocation15_spill] sm:$0xff] }
 0x3e8   : > { %v3118_v54 = vpop.f32.mrf.mxu0  ;;  %v6008_v5 = vsel %vm16429_vm14, %v13088_v43, %v22240_v6  ;;  %v17898_v18 = vpop.f32.mrf.mxu1  ;;  %v5618_v42 = vsel %vm15628_vm13, %v5613_v13, %v5617_v19  ;;  %v6017_v43 = vrot.slane %v17593_v27, 5  ;;  %v6035_v13 = vrot.slane %v17619_v51, 5 }
 0x3e9   : > { %v17896_v34 = vadd.f32 %v3118_v54, %v17589_v20  ;;  %v13105_v15 = vcombine.low %v6008_v5, %v6011_v26  ;;  %v13067_v58 = vcombine.low %v5608_v46, %v5618_v42  ;;  %v13089_v20 = vrot.slane %v5918_v57, 9  ;;  %v5920_v57 = vld [vmem:[#allocation2 + $0x6c] sm:$0xe]  ;;  %v5921_v42 = vld [vmem:[#allocation2 + $0x78] sm:$0xe] }
 0x3ea   : > { %v14049_v14 = vpop.f32.mrf.mxu0  ;;  %14252 = vmatmul.mubr.msk.bf16.gmra.mxu0 %vm477_vm4, %v13104_v59  ;;  %v17908_v21 = vpop.f32.mrf.mxu1  ;;  %v6018_v0 = vsel %vm16429_vm14, %v6016_v52, %v6017_v43  ;;  %v6025_v27 = vsel %vm16429_vm14, %v6023_v47, %v6024_v2  ;;  %v22242_v19 = vmov 0.0   ;;  %v6022_v5 = vsel %vm16429_vm14, %v13090_v41, %v6021_v10  ;;  %v22245_v10 = vld [vmem:[#allocation17_spill] sm:$0xff] }
 0x3eb   : > { %v17904_v50 = vadd.f32 %v14049_v14, %v17595_v48  ;;  %14255 = vmatprep.mubr.msk.bf16.mxu0 %vm477_vm4, %v13105_v15  ;;  %22241 = vst [vmem:[#allocation35_spill] sm:$0xff] %v17908_v21  ;;  %v6028_v48 = vrot.slane %v17611_v1, 5  ;;  %v6015_v54 = vsel %vm16429_vm14, %v13089_v20, %v6014_v62  ;;  %v22244_v15 = vld [vmem:[#allocation8_spill] sm:$0xff]  ;;  %v13107_v51 = vcombine.low %v6022_v5, %v6025_v27 }
 0x3ec   : > { %v3131_v32 = vpop.f32.mrf.mxu0  ;;  %v17917_v26 = vpop.f32.mrf.mxu1  ;;  %14242 = vmatmul.mubr.msk.bf16.gmra.mxu1 %vm477_vm4, %v13067_v58  ;;  %v13106_v6 = vcombine.low %v6015_v54, %v6018_v0  ;;  %v6037_v62 = vrot.slane %v6035_v13, 4  ;;  %v13091_v20 = vrot.slane %v5920_v57, 9  ;;  %v6031_v43 = vrot.slane %v22245_v10, 5  ;;  %v22248_v5 = vld [vmem:[#allocation4_spill] sm:$0xff]  ;;  %v5922_v10 = vld [vmem:[#allocation2 + $0x84] sm:$0xe] }
 0x3ed   : > { %v17912_v17 = vadd.f32 %v3131_v32, %v17608_v39  ;;  %14281 = vmatprep.mubr.msk.f32.mxu1 %vm15067_vm1, %v22242_v19  ;;  %v6030_v16 = vrot.slane %v6028_v48, 4  ;;  %v13092_v2 = vrot.slane %v5921_v42, 9  ;;  %v6038_v0 = vrot.slane %v17671_v45, 5 }
 0x3ee   : > { %v14050_v46 = vpop.f32.mrf.mxu0  ;;  %v17930_v1 = vpop.f32.mrf.mxu1  ;;  %v6049_v57 = vrot.slane %v22248_v5, 5 }
 0x3ef   : > { %v17926_v39 = vadd.f32 %v14050_v46, %v22243_v55  ;;  %v6032_v27 = vsel %vm16429_vm14, %v6030_v16, %v6031_v43  ;;  %v22247_v55 = vld [vmem:[#allocation9_spill] sm:$0xff]  ;;  %v22249_v43 = vld [vmem:[#allocation30_spill] sm:$0xff] }
 0x3f0   : > { %v3134_v59 = vpop.f32.mrf.mxu0  ;;  %v17937_v14 = vpop.f32.mrf.mxu1 }
 0x3f1   : > { %v17935_v52 = vadd.f32 %v3134_v59, %v22244_v15 }
 0x3f2   : > { %v14053_v47 = vpop.f32.mrf.mxu0  ;;  %14256 = vmatmul.mubr.msk.bf16.gmra.mxu0 %vm477_vm4, %v13106_v6  ;;  %v17945_v32 = vpop.f32.mrf.mxu1  ;;  %v6039_v6 = vsel %vm16429_vm14, %v6037_v62, %v6038_v0 }
 0x3f3   : > { %v17941_v58 = vadd.f32 %v14053_v47, %v17680_v31  ;;  %14259 = vmatprep.mubr.msk.bf16.mxu0 %vm477_vm4, %v13107_v51  ;;  %22246 = vst [vmem:[#allocation15_spill] sm:$0xff] %v17945_v32  ;;  %v6042_v31 = vrot.slane %v22247_v55, 5  ;;  %v6036_v47 = vsel %vm16429_vm14, %v13092_v2, %v6035_v13  ;;  %v22250_v2 = vld [vmem:[#allocation27_spill] sm:$0xff] }
 0x3f4   : > { %v3147_v41 = vpop.f32.mrf.mxu0  ;;  %v14079_v54 = vpop.f32.mrf.mxu1 }
 0x3f5   : > { %v17949_v46 = vadd.f32 %v3147_v41, %v17687_v38  ;;  %v17958_v15 = vadd.f32 %v14079_v54, %v17860_v30  ;;  %v6029_v38 = vsel %vm16429_vm14, %v13091_v20, %v6028_v48  ;;  %v13109_v30 = vcombine.low %v6036_v47, %v6039_v6 }
 0x3f6   : > { %v14054_v59 = vpop.f32.mrf.mxu0  ;;  %v3473_v51 = vpop.f32.mrf.mxu1  ;;  %v13108_v42 = vcombine.low %v6029_v38, %v6032_v27  ;;  %v6044_v0 = vrot.slane %v6042_v31, 4  ;;  %v6051_v48 = vrot.slane %v6049_v57, 4  ;;  %v6045_v27 = vrot.slane %v22250_v2, 5  ;;  %v22251_v38 = vld [vmem:[#allocation28_spill] sm:$0xff] }
 0x3f7   : > { %v17961_v45 = vadd.f32 %v14054_v59, %v17700_v8  ;;  %v17968_v62 = vadd.f32 %v3473_v51, %v17870_v40  ;;  %v5923_v8 = vld [vmem:[#allocation2 + $0x90] sm:$0xe]  ;;  %v13093_v40 = vrot.slane %v5922_v10, 9  ;;  %v6052_v51 = vrot.slane %v22251_v38, 5  ;;  %v5924_v38 = vld [vmem:[#allocation2 + $0x9c] sm:$0xe] }
 0x3f8   : > { %v3150_v16 = vpop.f32.mrf.mxu0  ;;  %v14080_v55 = vpop.f32.mrf.mxu1  ;;  %v13094_v5 = vrot.slane %v5923_v8, 9 }
 0x3f9   : > { %v17971_v41 = vadd.f32 %v3150_v16, %v22249_v43  ;;  %v17975_v20 = vadd.f32 %v14080_v55, %v17885_v28  ;;  %v6046_v28 = vsel %vm16429_vm14, %v6044_v0, %v6045_v27  ;;  %v6053_v10 = vsel %vm16429_vm14, %v6051_v48, %v6052_v51 }
 0x3fa   : > { %v14057_v54 = vpop.f32.mrf.mxu0  ;;  %14260 = vmatmul.mubr.msk.bf16.gmra.mxu0 %vm477_vm4, %v13108_v42  ;;  %v17982_v59 = vpop.f32.mrf.mxu1  ;;  %v22252_v42 = vld [vmem:[#allocation26_spill] sm:$0xff] }
 0x3fb   : > { %v17978_v13 = vadd.f32 %v14057_v54, %v17762_v49  ;;  %14263 = vmatprep.mubr.msk.bf16.mxu0 %vm477_vm4, %v13109_v30  ;;  %v6056_v49 = vrot.slane %v22252_v42, 5  ;;  %v22253_v30 = vld [vmem:[#allocation29_spill] sm:$0xff] }
 0x3fc   : > { %v3163_v6 = vpop.f32.mrf.mxu0  ;;  %v14083_v47 = vpop.f32.mrf.mxu1  ;;  %v6063_v55 = vrot.slane %v22253_v30, 5 }
 0x3fd   : > { %v17986_v16 = vadd.f32 %v3163_v6, %v17771_v56  ;;  %v17995_v54 = vadd.f32 %v14083_v47, %v17904_v50  ;;  %v6043_v56 = vsel %vm16429_vm14, %v13093_v40, %v6042_v31  ;;  %v6050_v6 = vsel %vm16429_vm14, %v13094_v5, %v6049_v57  ;;  %v22254_v5 = vld [vmem:[#allocation31_spill] sm:$0xff] }
 0x3fe   : > { %v14058_v43 = vpop.f32.mrf.mxu0  ;;  %v3489_v2 = vpop.f32.mrf.mxu1  ;;  %v13110_v27 = vcombine.low %v6043_v56, %v6046_v28  ;;  %v13111_v50 = vcombine.low %v6050_v6, %v6053_v10  ;;  %v6058_v42 = vrot.slane %v6056_v49, 4  ;;  %v6065_v31 = vrot.slane %v6063_v55, 4 }
 0x3ff   : > { %v17998_v8 = vadd.f32 %v14058_v43, %v17782_v7  ;;  %v18005_v48 = vadd.f32 %v3489_v2, %v17912_v17  ;;  %v5925_v7 = vld [vmem:[#allocation2 + $0xa8] sm:$0xe]  ;;  %v2755_v57 = vadd.f32 %v17784_v25, %v17815_v24  ;;  %v6059_v28 = vrot.slane %v22254_v5, 5  ;;  %v22255_v25 = vld [vmem:[#allocation32_spill] sm:$0xff] }
 0x400   : > { %v3166_v0 = vpop.f32.mrf.mxu0  ;;  %v14084_v47 = vpop.f32.mrf.mxu1  ;;  %v13096_v56 = vrot.slane %v5925_v7, 9  ;;  %v6066_v2 = vrot.slane %v17751_v61, 5  ;;  %v6070_v24 = vrot.slane %v22255_v25, 5 }
 0x401   : > { %v18008_v51 = vadd.f32 %v3166_v0, %v17800_v44  ;;  %v18012_v40 = vadd.f32 %v14084_v47, %v17926_v39  ;;  %v13095_v44 = vrot.slane %v5924_v38, 9  ;;  %v6060_v39 = vsel %vm16429_vm14, %v6058_v42, %v6059_v28  ;;  %v5926_v47 = vld [vmem:[#allocation2 + $0xb4] sm:$0xe] }
 0x402   : > { %v14061_v43 = vpop.f32.mrf.mxu0  ;;  %14264 = vmatmul.mubr.msk.bf16.gmra.mxu0 %vm477_vm4, %v13110_v27  ;;  %v18021_v10 = vpop.f32.mrf.mxu1  ;;  %v6067_v6 = vsel %vm16429_vm14, %v6065_v31, %v6066_v2  ;;  %v6077_v38 = vrot.slane %v17774_v9, 5  ;;  %v6064_v5 = vsel %vm16429_vm14, %v13096_v56, %v6063_v55  ;;  %v22257_v9 = vld [vmem:[#allocation22_spill] sm:$0xff]  ;;  %v22259_v56 = vld [vmem:[#allocation33_spill] sm:$0xff] }
 0x403   : > { %v18017_v17 = vadd.f32 %v14061_v43, %v17811_v35  ;;  %14267 = vmatprep.mubr.msk.bf16.mxu0 %vm477_vm4, %v13111_v50  ;;  %v6057_v61 = vsel %vm16429_vm14, %v13095_v44, %v6056_v49  ;;  %v13113_v28 = vcombine.low %v6064_v5, %v6067_v6  ;;  %v13097_v49 = vrot.slane %v5926_v47, 9  ;;  %v22260_v5 = vld [vmem:[#allocation21_spill] sm:$0xff] }
 0x404   : > { %v3179_v30 = vpop.f32.mrf.mxu0  ;;  %v14087_v35 = vpop.f32.mrf.mxu1  ;;  %v6079_v44 = vrot.slane %v6077_v38, 4  ;;  %v6080_v47 = vrot.slane %v17802_v53, 5 }
 0x405   : > { %v18024_v0 = vadd.f32 %v3179_v30, %v2755_v57  ;;  %v18033_v50 = vadd.f32 %v14087_v35, %v17941_v58  ;;  %v13112_v57 = vcombine.low %v6057_v61, %v6060_v39  ;;  %v2779_v58 = vadd.f32 %v17827_v36, %v22257_v9  ;;  %v5927_v30 = vld [vmem:[#allocation2 + $0xc0] sm:$0xe]  ;;  %v22258_v35 = vld [vmem:[#allocation20_spill] sm:$0xff] }
 0x406   : > { %v14062_v27 = vpop.f32.mrf.mxu0  ;;  %v3505_v42 = vpop.f32.mrf.mxu1  ;;  %v2771_v55 = vadd.f32 %v17834_v4, %v22258_v35  ;;  %v6073_v36 = vrot.slane %v22259_v56, 5 }
 0x407   : > { %v18036_v7 = vadd.f32 %v14062_v27, %v17832_v37  ;;  %v18045_v31 = vadd.f32 %v3505_v42, %v17949_v46  ;;  %v6072_v37 = vrot.slane %v6070_v24, 4  ;;  %v6084_v27 = vrot.slane %v17820_v12, 5 }
 0x408   : > { %v18040_v43 = vpop.f32.mrf.mxu0  ;;  %v14088_v2 = vpop.f32.mrf.mxu1  ;;  %v13098_v42 = vrot.slane %v5927_v30, 9  ;;  %v6081_v12 = vsel %vm16429_vm14, %v6079_v44, %v6080_v47 }
 0x409   : > { %22256 = vst [vmem:[#allocation8_spill] sm:$0xff] %v18040_v43  ;;  %v18051_v39 = vadd.f32 %v14088_v2, %v17961_v45  ;;  %v2782_v45 = vadd.f32 %v17844_v33, %v22260_v5  ;;  %v6074_v4 = vsel %vm16429_vm14, %v6072_v37, %v6073_v36  ;;  %v6071_v2 = vsel %vm16429_vm14, %v13097_v49, %v6070_v24  ;;  %v22262_v49 = vld [vmem:[#allocation24_spill] sm:$0xff] }
 0x40a   : > { %v14065_v25 = vpop.f32.mrf.mxu0  ;;  %14268 = vmatmul.mubr.msk.bf16.gmra.mxu0 %vm477_vm4, %v13112_v57  ;;  %v18058_v6 = vpop.f32.mrf.mxu1  ;;  %v5928_v57 = vld [vmem:[#allocation2 + $0xcc] sm:$0xe]  ;;  %v6086_v35 = vrot.slane %v6084_v27, 4  ;;  %v6087_v33 = vrot.slane %v17867_v22, 5  ;;  %v13114_v37 = vcombine.low %v6071_v2, %v6074_v4  ;;  %v6078_v36 = vsel %vm16429_vm14, %v13098_v42, %v6077_v38  ;;  %v22264_v4 = vld [vmem:[#allocation10_spill] sm:$0xff] }
 0x40b   : > { %v3264_v46 = vadd.f32 %v14065_v25, %v2779_v58  ;;  %14271 = vmatprep.mubr.msk.bf16.mxu0 %vm477_vm4, %v13113_v28  ;;  %v13099_v25 = vrot.slane %v5928_v57, 9  ;;  %v2795_v44 = vadd.f32 %v17872_v3, %v22262_v49  ;;  %v22263_v57 = vld [vmem:[#allocation11_spill] sm:$0xff] }
 0x40c   : > { %v3195_v61 = vpop.f32.mrf.mxu0  ;;  %v14091_v58 = vpop.f32.mrf.mxu1  ;;  %v2787_v5 = vadd.f32 %v17887_v60, %v22263_v57  ;;  %v6088_v3 = vsel %vm16429_vm14, %v6086_v35, %v6087_v33  ;;  %v22269_v57 = vld [vmem:[#allocation19_spill] sm:$0xff] }
 0x40d   : > { %v3262_v9 = vadd.f32 %v3195_v61, %v2771_v55  ;;  %v18070_v30 = vadd.f32 %v14091_v58, %v17978_v13  ;;  %v13115_v13 = vcombine.low %v6078_v36, %v6081_v12  ;;  %v2798_v58 = vadd.f32 %v17898_v18, %v22264_v4 }
 0x40e   : > { %v14066_v28 = vpop.f32.mrf.mxu0  ;;  %v3521_v55 = vpop.f32.mrf.mxu1 }
 0x40f   : > { %v3265_v53 = vadd.f32 %v14066_v28, %v2782_v45  ;;  %v18078_v24 = vadd.f32 %v3521_v55, %v17986_v16  ;;  %v6085_v16 = vsel %vm16429_vm14, %v13099_v25, %v6084_v27  ;;  %v22266_v25 = vld [vmem:[#allocation13_spill] sm:$0xff] }
 0x410   : > { %v18073_v56 = vpop.f32.mrf.mxu0  ;;  %v14092_v61 = vpop.f32.mrf.mxu1  ;;  %v13116_v12 = vcombine.low %v6085_v16, %v6088_v3  ;;  %v2811_v35 = vadd.f32 %v17917_v26, %v22266_v25 }
 0x411   : > { %22261 = vst [vmem:[#allocation17_spill] sm:$0xff] %v18073_v56  ;;  %v18084_v22 = vadd.f32 %v14092_v61, %v17998_v8 }
 0x412   : > { %v14069_v47 = vpop.f32.mrf.mxu0  ;;  %14272 = vmatmul.mubr.msk.bf16.gmra.mxu0 %vm477_vm4, %v13114_v37  ;;  %v18093_v38 = vpop.f32.mrf.mxu1 }
 0x413   : > { %v3268_v45 = vadd.f32 %v14069_v47, %v2795_v44  ;;  %14275 = vmatprep.mubr.msk.bf16.mxu0 %vm477_vm4, %v13115_v13  ;;  %v22267_v44 = vld [vmem:[#allocation14_spill] sm:$0xff] }
 0x414   : > { %v3211_v42 = vpop.f32.mrf.mxu0  ;;  %v14095_v28 = vpop.f32.mrf.mxu1 }
 0x415   : > { %v3266_v8 = vadd.f32 %v3211_v42, %v2787_v5  ;;  %v18098_v60 = vadd.f32 %v14095_v28, %v18017_v17  ;;  %v2803_v17 = vadd.f32 %v17930_v1, %v22267_v44 }
 0x416   : > { %v14070_v2 = vpop.f32.mrf.mxu0  ;;  %v3537_v37 = vpop.f32.mrf.mxu1 }
 0x417   : > { %v3269_v55 = vadd.f32 %v14070_v2, %v2798_v58  ;;  %v18103_v27 = vadd.f32 %v3537_v37, %v18024_v0  ;;  %v2814_v0 = vadd.f32 %v17937_v14, %v22269_v57 }
 0x418   : > { %v18100_v36 = vpop.f32.mrf.mxu0  ;;  %v14096_v33 = vpop.f32.mrf.mxu1 }
 0x419   : > { %22265 = vst [vmem:[#allocation9_spill] sm:$0xff] %v18100_v36  ;;  %v18109_v18 = vadd.f32 %v14096_v33, %v18036_v7 }
 0x41a   : > { %v14073_v49 = vpop.f32.mrf.mxu0  ;;  %14276 = vmatmul.mubr.msk.bf16.gmra.mxu0 %vm477_vm4, %v13116_v12  ;;  %v18113_v61 = vpop.f32.mrf.mxu1 }
 0x41b   : > { %v3272_v13 = vadd.f32 %v14073_v49, %v2811_v35  ;;  %22268 = vst [vmem:[#allocation4_spill] sm:$0xff] %v18113_v61 }
 0x41c   : > { %v3227_v47 = vpop.f32.mrf.mxu0  ;;  %v14099_v16 = vpop.f32.mrf.mxu1 }
 0x41d   : > { %v3270_v5 = vadd.f32 %v3227_v47, %v2803_v17  ;;  %v18117_v3 = vadd.f32 %v14099_v16, %v3264_v46  ;;  %v22275_v17 = vmov 0   ;;  %v7129_v47 = vld [vmem:[#allocation3 + $0xc] sm:$0x1] }
 0x41e   : > { %v14074_v26 = vpop.f32.mrf.mxu0  ;;  %v3553_v4 = vpop.f32.mrf.mxu1  ;;  %7116 = vst.msk [vmem:[#allocation3] sm:$0xf] %vm7115_vm5, %v22275_v17  ;;  %7117 = vst.msk [vmem:[#allocation3 + $0x4] sm:$0xf] %vm7115_vm5, %v22275_v17  ;;  %v7130_v16 = vsel %vm18138_vm7, 0, %v7129_v47 }
 0x41f   : > { %v3273_v42 = vadd.f32 %v14074_v26, %v2814_v0  ;;  %v18121_v7 = vadd.f32 %v3553_v4, %v3262_v9  ;;  %7121 = vst.msk [vmem:[#allocation3 + $0xcc] sm:$0xf] %vm7115_vm5, %v22275_v17  ;;  %7122 = vst.msk [vmem:[#allocation3 + $0xd0] sm:$0xf] %vm7115_vm5, %v22275_v17  ;;  %v7138_v47 = vld [vmem:[#allocation3 + $0x30] sm:$0x1] }
 0x420   : > { %v18119_v58 = vpop.f32.mrf.mxu0  ;;  %v14100_v28 = vpop.f32.mrf.mxu1  ;;  %7131 = vst [vmem:[#allocation3 + $0xc] sm:$0x1] %v7130_v16  ;;  %v7139_v16 = vsel %vm18138_vm7, 0, %v7138_v47 }
 0x421   : > { %22270 = vst [vmem:[#allocation30_spill] sm:$0xff] %v18119_v58  ;;  %v18123_v2 = vadd.f32 %v14100_v28, %v3265_v53  ;;  %v22272_v53 = vmov 0  ;;  %v7187_v28 = vld [vmem:[#allocation3 + $0x20] sm:$0x1]  ;;  %7140 = vst [vmem:[#allocation3 + $0x30] sm:$0x1] %v7139_v16 }
 0x422   : > { %v14113_v1 = vpop.f32.mrf.mxu0  ;;  %v18126_v37 = vpop.f32.mrf.mxu1  ;;  %v22273_v53 = vsel %vm18138_vm7, 4294967295, %v22272_v53 }
 0x423   : > { %v4328_v12 = vadd.f32 %v14113_v1, %v17958_v15  ;;  %22271 = vst [vmem:[#allocation27_spill] sm:$0xff] %v18126_v37  ;;  %22274 = vst [vmem:[#allocation28_spill] sm:$0xff] %v22273_v53  ;;  %v7132_v15 = vld [vmem:[#allocation3 + $0x18] sm:$0x1] }
 0x424   : > { %v4199_v14 = vpop.f32.mrf.mxu0  ;;  %v14103_v46 = vpop.f32.mrf.mxu1 }
 0x425   : > { %v18129_v25 = vadd.f32 %v4199_v14, %v17968_v62  ;;  %v18131_v33 = vadd.f32 %v14103_v46, %v3268_v45  ;;  %v7133_v45 = vsel %vm18138_vm7, 0, %v7132_v15  ;;  %v7188_v14 = vsel %vm18158_vm3, 0, %v7187_v28 }
 0x426   : > { %v14114_v35 = vpop.f32.mrf.mxu0  ;;  %v3569_v9 = vpop.f32.mrf.mxu1  ;;  %7134 = vst [vmem:[#allocation3 + $0x18] sm:$0x1] %v7133_v45  ;;  %7189 = vst [vmem:[#allocation3 + $0x20] sm:$0x1] %v7188_v14  ;;  %v7135_v14 = vld [vmem:[#allocation3 + $0x24] sm:$0x1] }
 0x427   : > { %v18134_v49 = vadd.f32 %v14114_v35, %v17975_v20  ;;  %v18144_v62 = vadd.f32 %v3569_v9, %v3266_v8  ;;  %v22276_v20 = vmov 0 }
 0x428   : > { %v18142_v44 = vpop.f32.mrf.mxu0  ;;  %v22277_v20 = vsel %vm18158_vm3, 4294967295, %v22276_v20  ;;  %v14104_v8 = vpop.f32.mrf.mxu1 }
 0x429   : > { %22278 = vst [vmem:[#allocation26_spill] sm:$0xff] %v22277_v20  ;;  %v18162_v0 = vadd.f32 %v14104_v8, %v3269_v55  ;;  %v7184_v8 = vld [vmem:[#allocation3 + $0x14] sm:$0x1] }
 0x42a   : > { %v14117_v57 = vpop.f32.mrf.mxu0  ;;  %v18167_v4 = vpop.f32.mrf.mxu1 }
 0x42b   : > { %v4332_v26 = vadd.f32 %v14117_v57, %v17995_v54  ;;  %22279 = vst [vmem:[#allocation29_spill] sm:$0xff] %v18167_v4 }
 0x42c   : > { %v4215_v1 = vpop.f32.mrf.mxu0  ;;  %v14107_v35 = vpop.f32.mrf.mxu1 }
 0x42d   : > { %v18172_v46 = vadd.f32 %v4215_v1, %v18005_v48  ;;  %v18174_v9 = vadd.f32 %v14107_v35, %v3272_v13  ;;  %v7185_v48 = vsel %vm18158_vm3, 0, %v7184_v8  ;;  %v7193_v35 = vld [vmem:[#allocation3 + $0x38] sm:$0x1]  ;;  %v7136_v8 = vsel %vm18138_vm7, 0, %v7135_v14 }
 0x42e   : > { %v14118_v55 = vpop.f32.mrf.mxu0  ;;  %v3585_v54 = vpop.f32.mrf.mxu1  ;;  %7186 = vst [vmem:[#allocation3 + $0x14] sm:$0x1] %v7185_v48  ;;  %7137 = vst [vmem:[#allocation3 + $0x24] sm:$0x1] %v7136_v8 }
 0x42f   : > { %v18177_v15 = vadd.f32 %v14118_v55, %v18012_v40  ;;  %v18181_v17 = vadd.f32 %v3585_v54, %v3270_v5 }
 0x430   : > { %v18179_v45 = vpop.f32.mrf.mxu0  ;;  %v14108_v57 = vpop.f32.mrf.mxu1 }
 0x431   : > { %v18187_v13 = vadd.f32 %v14108_v57, %v3273_v42  ;;  %v7194_v42 = vsel %vm18158_vm3, 0, %v7193_v35 }
 0x432   : > { %v14121_v28 = vpop.f32.mrf.mxu0  ;;  %v18192_v1 = vpop.f32.mrf.mxu1  ;;  %7195 = vst [vmem:[#allocation3 + $0x38] sm:$0x1] %v7194_v42 }
 0x433   : > { %v18190_v40 = vadd.f32 %v14121_v28, %v18033_v50  ;;  %22280 = vst [vmem:[#allocation31_spill] sm:$0xff] %v18192_v1  ;;  %v7190_v28 = vld [vmem:[#allocation3 + $0x2c] sm:$0x1]  ;;  %v7147_v1 = vld [vmem:[#allocation3 + $0x54] sm:$0x1] }
 0x434   : > { %v4231_v5 = vpop.f32.mrf.mxu0  ;;  %v14147_v54 = vpop.f32.mrf.mxu1  ;;  %v7191_v35 = vsel %vm18158_vm3, 0, %v7190_v28 }
 0x435   : > { %v18195_v55 = vadd.f32 %v4231_v5, %v18045_v31  ;;  %v18201_v57 = vadd.f32 %v14147_v54, %v4328_v12  ;;  %v7144_v5 = vld [vmem:[#allocation3 + $0x48] sm:$0x1]  ;;  %7192 = vst [vmem:[#allocation3 + $0x2c] sm:$0x1] %v7191_v35 }
 0x436   : > { %v14122_v47 = vpop.f32.mrf.mxu0  ;;  %v4669_v48 = vpop.f32.mrf.mxu1  ;;  %v7145_v12 = vsel %vm18138_vm7, 0, %v7144_v5 }
 0x437   : > { %v18204_v50 = vadd.f32 %v14122_v47, %v18051_v39  ;;  %v18209_v31 = vadd.f32 %v4669_v48, %v18129_v25  ;;  %7146 = vst [vmem:[#allocation3 + $0x48] sm:$0x1] %v7145_v12  ;;  %v7141_v47 = vld [vmem:[#allocation3 + $0x3c] sm:$0x1]  ;;  %v7199_v48 = vld [vmem:[#allocation3 + $0x50] sm:$0x1] }
 0x438   : > { %v18206_v16 = vpop.f32.mrf.mxu0  ;;  %v14148_v14 = vpop.f32.mrf.mxu1  ;;  %v7142_v5 = vsel %vm18138_vm7, 0, %v7141_v47  ;;  %v7150_v47 = vld [vmem:[#allocation3 + $0x60] sm:$0x1] }
 0x439   : > { %v18216_v8 = vadd.f32 %v14148_v14, %v18134_v49  ;;  %v7200_v49 = vsel %vm18158_vm3, 0, %v7199_v48  ;;  %7143 = vst [vmem:[#allocation3 + $0x3c] sm:$0x1] %v7142_v5 }
 0x43a   : > { %v14125_v54 = vpop.f32.mrf.mxu0  ;;  %v18221_v25 = vpop.f32.mrf.mxu1  ;;  %7201 = vst [vmem:[#allocation3 + $0x50] sm:$0x1] %v7200_v49 }
 0x43b   : > { %v18219_v39 = vadd.f32 %v14125_v54, %v18070_v30 }
 0x43c   : > { %v4247_v42 = vpop.f32.mrf.mxu0  ;;  %v14151_v28 = vpop.f32.mrf.mxu1 }
 0x43d   : > { %v18224_v11 = vadd.f32 %v4247_v42, %v18078_v24  ;;  %v18230_v35 = vadd.f32 %v14151_v28, %v4332_v26  ;;  %v7196_v24 = vld [vmem:[#allocation3 + $0x44] sm:$0x1]  ;;  %v18240_v42 = vld [vmem:[%s22044_s8] sm:$0xff] }
 0x43e   : > { %v14126_v14 = vpop.f32.mrf.mxu0  ;;  %v18233_v12 = vpop.f32.mrf.mxu1  ;;  %22281 = vst [vmem:[#allocation32_spill] sm:$0xff] %v18240_v42  ;;  %v7197_v26 = vsel %vm18158_vm3, 0, %v7196_v24  ;;  %14280 = vmatpush3.msra.mxu1 %v18240_v42  ;;  %v7205_v24 = vld [vmem:[#allocation3 + $0x68] sm:$0x1] }
 0x43f   : > { %v4341_v30 = vadd.f32 %v14126_v14, %v18084_v22  ;;  %v7151_v22 = vsel %vm18138_vm7, 0, %v7150_v47  ;;  %7198 = vst [vmem:[#allocation3 + $0x44] sm:$0x1] %v7197_v26  ;;  %14284 = vmatprep.subr.mxu1 %v22242_v19  ;;  %v7148_v47 = vsel %vm18138_vm7, 0, %v7147_v1 }
 0x440   : > { %v18235_v54 = vpop.f32.mrf.mxu0  ;;  %v14152_v29 = vpop.f32.mrf.mxu1  ;;  %7152 = vst [vmem:[#allocation3 + $0x60] sm:$0x1] %v7151_v22  ;;  %7149 = vst [vmem:[#allocation3 + $0x54] sm:$0x1] %v7148_v47 }
 0x441   : > { %v18248_v28 = vadd.f32 %v14152_v29, %v18177_v15  ;;  %v7206_v29 = vsel %vm18158_vm3, 0, %v7205_v24 }
 0x442   : > { %v14129_v48 = vpop.f32.mrf.mxu0  ;;  %v18252_v49 = vpop.f32.mrf.mxu1  ;;  %7207 = vst [vmem:[#allocation3 + $0x68] sm:$0x1] %v7206_v29  ;;  %v7153_v29 = vld [vmem:[#allocation3 + $0x6c] sm:$0x1] }
 0x443   : > { %v4344_v5 = vadd.f32 %v14129_v48, %v18098_v60 }
 0x444   : > { %v4263_v14 = vpop.f32.mrf.mxu0  ;;  %v14155_v58 = vpop.f32.mrf.mxu1 }
 0x445   : > { %v18255_v42 = vadd.f32 %v4263_v14, %v18103_v27  ;;  %v18262_v26 = vadd.f32 %v14155_v58, %v18190_v40  ;;  %v7202_v27 = vld [vmem:[#allocation3 + $0x5c] sm:$0x1]  ;;  %v7156_v14 = vld [vmem:[#allocation3 + $0x78] sm:$0x1] }
 0x446   : > { %v14130_v15 = vpop.f32.mrf.mxu0  ;;  %v18265_v22 = vpop.f32.mrf.mxu1  ;;  %v7203_v1 = vsel %vm18158_vm3, 0, %v7202_v27  ;;  %v7157_v24 = vsel %vm18138_vm7, 0, %v7156_v14  ;;  %v7154_v14 = vsel %vm18138_vm7, 0, %v7153_v29 }
 0x447   : > { %22282 = vst [vmem:[#allocation22_spill] sm:$0xff] %v18255_v42  ;;  %v4345_v60 = vadd.f32 %v14130_v15, %v18109_v18  ;;  %7204 = vst [vmem:[#allocation3 + $0x5c] sm:$0x1] %v7203_v1  ;;  %v7211_v15 = vld [vmem:[#allocation3 + $0x80] sm:$0x1] }
 0x448   : > { %v18267_v48 = vpop.f32.mrf.mxu0  ;;  %v14156_v19 = vpop.f32.mrf.mxu1  ;;  %7158 = vst [vmem:[#allocation3 + $0x78] sm:$0x1] %v7157_v24  ;;  %7155 = vst [vmem:[#allocation3 + $0x6c] sm:$0x1] %v7154_v14 }
 0x449   : > { %22283 = vst [vmem:[#allocation20_spill] sm:$0xff] %v18267_v48  ;;  %v18274_v58 = vadd.f32 %v14156_v19, %v18204_v50  ;;  %v7212_v19 = vsel %vm18158_vm3, 0, %v7211_v15 }
 0x44a   : > { %v14133_v32 = vpop.f32.mrf.mxu0  ;;  %v18277_v40 = vpop.f32.mrf.mxu1  ;;  %7213 = vst [vmem:[#allocation3 + $0x80] sm:$0x1] %v7212_v19  ;;  %v7159_v19 = vld [vmem:[#allocation3 + $0x84] sm:$0x1] }
 0x44b   : > { %v4348_v18 = vadd.f32 %v14133_v32, %v18117_v3 }
 0x44c   : > { %v4279_v47 = vpop.f32.mrf.mxu0  ;;  %v14159_v27 = vpop.f32.mrf.mxu1 }
 0x44d   : > { %v18280_v4 = vadd.f32 %v4279_v47, %v18121_v7  ;;  %v18287_v1 = vadd.f32 %v14159_v27, %v18219_v39  ;;  %v7208_v7 = vld [vmem:[#allocation3 + $0x74] sm:$0x1]  ;;  %v7162_v47 = vld [vmem:[#allocation3 + $0x90] sm:$0x1] }
 0x44e   : > { %v14134_v50 = vpop.f32.mrf.mxu0  ;;  %v18290_v3 = vpop.f32.mrf.mxu1  ;;  %v7209_v29 = vsel %vm18158_vm3, 0, %v7208_v7  ;;  %v7163_v15 = vsel %vm18138_vm7, 0, %v7162_v47  ;;  %v7160_v7 = vsel %vm18138_vm7, 0, %v7159_v19 }
 0x44f   : > { %22284 = vst [vmem:[#allocation33_spill] sm:$0xff] %v18280_v4  ;;  %v4349_v32 = vadd.f32 %v14134_v50, %v18123_v2  ;;  %7210 = vst [vmem:[#allocation3 + $0x74] sm:$0x1] %v7209_v29  ;;  %v7217_v50 = vld [vmem:[#allocation3 + $0x98] sm:$0x1] }
 0x450   : > { %v18292_v24 = vpop.f32.mrf.mxu0  ;;  %v14160_v36 = vpop.f32.mrf.mxu1  ;;  %7164 = vst [vmem:[#allocation3 + $0x90] sm:$0x1] %v7163_v15  ;;  %7161 = vst [vmem:[#allocation3 + $0x84] sm:$0x1] %v7160_v7  ;;  %v7168_v15 = vld [vmem:[#allocation3 + $0xa8] sm:$0x1] }
 0x451   : > { %22285 = vst [vmem:[#allocation21_spill] sm:$0xff] %v18292_v24  ;;  %v18298_v39 = vadd.f32 %v14160_v36, %v4341_v30  ;;  %v7218_v36 = vsel %vm18158_vm3, 0, %v7217_v50  ;;  %v7169_v50 = vsel %vm18138_vm7, 0, %v7168_v15 }
 0x452   : > { %v14137_v21 = vpop.f32.mrf.mxu0  ;;  %v18301_v27 = vpop.f32.mrf.mxu1  ;;  %7219 = vst [vmem:[#allocation3 + $0x98] sm:$0x1] %v7218_v36  ;;  %7170 = vst [vmem:[#allocation3 + $0xa8] sm:$0x1] %v7169_v50  ;;  %v7165_v36 = vld [vmem:[#allocation3 + $0x9c] sm:$0x1] }
 0x453   : > { %v4352_v2 = vadd.f32 %v14137_v21, %v18131_v33  ;;  %22286 = vst [vmem:[#allocation24_spill] sm:$0xff] %v18301_v27  ;;  %v7174_v50 = vld [vmem:[#allocation3 + $0xc0] sm:$0x1] }
 0x454   : > { %v4295_v14 = vpop.f32.mrf.mxu0  ;;  %v14163_v4 = vpop.f32.mrf.mxu1 }
 0x455   : > { %v18304_v24 = vadd.f32 %v4295_v14, %v18144_v62  ;;  %v18310_v47 = vadd.f32 %v14163_v4, %v4344_v5  ;;  %v7214_v62 = vld [vmem:[#allocation3 + $0x8c] sm:$0x1] }
 0x456   : > { %v14138_v30 = vpop.f32.mrf.mxu0  ;;  %v18313_v33 = vpop.f32.mrf.mxu1  ;;  %v7215_v19 = vsel %vm18158_vm3, 0, %v7214_v62  ;;  %v7166_v62 = vsel %vm18138_vm7, 0, %v7165_v36 }
 0x457   : > { %22287 = vst [vmem:[#allocation11_spill] sm:$0xff] %v18304_v24  ;;  %v4353_v21 = vadd.f32 %v14138_v30, %v18162_v0  ;;  %22288 = vst [vmem:[#allocation10_spill] sm:$0xff] %v18313_v33  ;;  %v7223_v30 = vld [vmem:[#allocation3 + $0xb0] sm:$0x1] }
 0x458   : > { %v18315_v29 = vpop.f32.mrf.mxu0  ;;  %v14164_v14 = vpop.f32.mrf.mxu1  ;;  %7216 = vst [vmem:[#allocation3 + $0x8c] sm:$0x1] %v7215_v19  ;;  %7167 = vst [vmem:[#allocation3 + $0x9c] sm:$0x1] %v7166_v62 }
 0x459   : > { %22289 = vst [vmem:[#allocation13_spill] sm:$0xff] %v18315_v29  ;;  %v18321_v4 = vadd.f32 %v14164_v14, %v4345_v60  ;;  %v7224_v60 = vsel %vm18158_vm3, 0, %v7223_v30  ;;  %v7175_v30 = vsel %vm18138_vm7, 0, %v7174_v50 }
 0x45a   : > { %v14141_v24 = vpop.f32.mrf.mxu0  ;;  %v18324_v5 = vpop.f32.mrf.mxu1  ;;  %7225 = vst [vmem:[#allocation3 + $0xb0] sm:$0x1] %v7224_v60  ;;  %7176 = vst [vmem:[#allocation3 + $0xc0] sm:$0x1] %v7175_v30  ;;  %v7171_v60 = vld [vmem:[#allocation3 + $0xb4] sm:$0x1] }
 0x45b   : > { %v4356_v0 = vadd.f32 %v14141_v24, %v18174_v9  ;;  %22290 = vst [vmem:[#allocation14_spill] sm:$0xff] %v18324_v5  ;;  %v7172_v50 = vsel %vm18138_vm7, 0, %v7171_v60 }
 0x45c   : > { %v4311_v7 = vpop.f32.mrf.mxu0  ;;  %v14167_v37 = vpop.f32.mrf.mxu1  ;;  %7173 = vst [vmem:[#allocation3 + $0xb4] sm:$0x1] %v7172_v50 }
 0x45d   : > { %v18327_v29 = vadd.f32 %v4311_v7, %v18181_v17  ;;  %v18333_v14 = vadd.f32 %v14167_v37, %v4348_v18  ;;  %v7220_v17 = vld [vmem:[#allocation3 + $0xa4] sm:$0x1] }
 0x45e   : > { %v14142_v15 = vpop.f32.mrf.mxu0  ;;  %v18336_v24 = vpop.f32.mrf.mxu1  ;;  %v7221_v36 = vsel %vm18158_vm3, 0, %v7220_v17 }
 0x45f   : > { %22291 = vst [vmem:[#allocation19_spill] sm:$0xff] %v18327_v29  ;;  %v4357_v9 = vadd.f32 %v14142_v15, %v18187_v13  ;;  %22292 = vst [vmem:[#allocation36_spill] sm:$0xff] %v18336_v24  ;;  %v7229_v15 = vld [vmem:[#allocation3 + $0xc8] sm:$0x1] }
 0x460   : > { %v18338_v19 = vpop.f32.mrf.mxu0  ;;  %v14168_v7 = vpop.f32.mrf.mxu1  ;;  %7222 = vst [vmem:[#allocation3 + $0xa4] sm:$0x1] %v7221_v36 }
 0x461   : > { %22293 = vst [vmem:[#allocation37_spill] sm:$0xff] %v18338_v19  ;;  %v18344_v37 = vadd.f32 %v14168_v7, %v4349_v32  ;;  %v7230_v32 = vsel %vm18158_vm3, 0, %v7229_v15 }
 0x462   : > { %v14181_v29 = vpop.f32.mrf.mxu0  ;;  %v18349_v18 = vpop.f32.mrf.mxu1  ;;  %7231 = vst [vmem:[#allocation3 + $0xc8] sm:$0x1] %v7230_v32 }
 0x463   : > { %v18347_v13 = vadd.f32 %v14181_v29, %v18201_v57  ;;  %22294 = vst [vmem:[#allocation38_spill] sm:$0xff] %v18349_v18 }
 0x464   : > { %v5028_v62 = vpop.f32.mrf.mxu0  ;;  %v14171_v17 = vpop.f32.mrf.mxu1 }
 0x465   : > { %v18352_v19 = vadd.f32 %v5028_v62, %v18209_v31  ;;  %v4822_v36 = vadd.f32 %v14171_v17, %v4352_v2 }
 0x466   : > { %v14182_v7 = vpop.f32.mrf.mxu0  ;;  %v18361_v29 = vpop.f32.mrf.mxu1 }
 0x467   : > { %v18359_v57 = vadd.f32 %v14182_v7, %v18216_v8  ;;  %22295 = vst [vmem:[#allocation39_spill] sm:$0xff] %v18361_v29 }
 0x468   : > { %v18363_v30 = vpop.f32.mrf.mxu0  ;;  %v14172_v31 = vpop.f32.mrf.mxu1 }
 0x469   : > { %v4823_v18 = vadd.f32 %v14172_v31, %v4353_v21 }
 0x46a   : > { %v14185_v62 = vpop.f32.mrf.mxu0  ;;  %v18368_v60 = vpop.f32.mrf.mxu1 }
 0x46b   : > { %v18366_v53 = vadd.f32 %v14185_v62, %v18230_v35  ;;  %22296 = vst [vmem:[#allocation40_spill] sm:$0xff] %v18368_v60 }
 0x46c   : > { %v18370_v15 = vpop.f32.mrf.mxu0  ;;  %v14175_v2 = vpop.f32.mrf.mxu1 }
 0x46d   : > { %v4826_v50 = vadd.f32 %v14175_v2, %v4356_v0  ;;  %v7226_v0 = vld [vmem:[#allocation3 + $0xbc] sm:$0x1] }
 0x46e   : > { %v14186_v17 = vpop.f32.mrf.mxu0  ;;  %v18375_v32 = vpop.f32.mrf.mxu1 }
 0x46f   : > { %v18373_v8 = vadd.f32 %v14186_v17, %v18248_v28  ;;  %22297 = vst [vmem:[#allocation41_spill] sm:$0xff] %v18375_v32  ;;  %v7227_v17 = vsel %vm18158_vm3, 0, %v7226_v0 }
 0x470   : > { %v18377_v7 = vpop.f32.mrf.mxu0  ;;  %v14176_v29 = vpop.f32.mrf.mxu1  ;;  %7228 = vst [vmem:[#allocation3 + $0xbc] sm:$0x1] %v7227_v17 }
 0x471   : > { %v4827_v21 = vadd.f32 %v14176_v29, %v4357_v9 }
 0x472   : > { %v14189_v24 = vpop.f32.mrf.mxu0  ;;  %v18382_v31 = vpop.f32.mrf.mxu1 }
 0x473   : > { %v18380_v35 = vadd.f32 %v14189_v24, %v18262_v26  ;;  %22298 = vst [vmem:[#allocation42_spill] sm:$0xff] %v18382_v31 }
 0x474   : > { %v18384_v62 = vpop.f32.mrf.mxu0  ;;  %v14215_v60 = vpop.f32.mrf.mxu1 }
 0x476   : > { %v14190_v56 = vpop.f32.mrf.mxu0  ;;  %v5754_v2 = vpop.f32.mrf.mxu1 }
 0x477   : > { %v18387_v28 = vadd.f32 %v14190_v56, %v18274_v58 }
 0x478   : > { %v18391_v32 = vpop.f32.mrf.mxu0  ;;  %v14216_v9 = vpop.f32.mrf.mxu1 }
 0x47a   : > { %v14193_v26 = vpop.f32.mrf.mxu0  ;;  %v5757_v29 = vpop.f32.mrf.mxu1 }
 0x47b   : > { %v18394_v24 = vadd.f32 %v14193_v26, %v18287_v1 }
 0x47c   : > { %v18396_v31 = vpop.f32.mrf.mxu0  ;;  %v18398_v5 = vpop.f32.mrf.mxu1 }
 0x47d   : > { %22299 = vst [vmem:[#allocation43_spill] sm:$0xff] %v18394_v24 }
 0x47e   : > { %v14194_v23 = vpop.f32.mrf.mxu0  ;;  %v18403_v58 = vpop.f32.mrf.mxu1 }
 0x47f   : > { %v18401_v56 = vadd.f32 %v14194_v23, %v18298_v39 }
 0x480   : > { %v18405_v0 = vpop.f32.mrf.mxu0  ;;  %v18407_v20 = vpop.f32.mrf.mxu1 }
 0x481   : > { %22300 = vst [vmem:[#allocation44_spill] sm:$0xff] %v18401_v56  ;;  %22301 = vst [vmem:[#allocation45_spill] sm:$0xff] %v18405_v0 }
 0x482   : > { %v14197_v17 = vpop.f32.mrf.mxu0  ;;  %v18412_v1 = vpop.f32.mrf.mxu1 }
 0x483   : > { %v18410_v48 = vadd.f32 %v14197_v17, %v18310_v47 }
 0x484   : > { %v18414_v26 = vpop.f32.mrf.mxu0  ;;  %v18416_v33 = vpop.f32.mrf.mxu1 }
 0x485   : > { %22302 = vst [vmem:[#allocation46_spill] sm:$0xff] %v18410_v48  ;;  %22303 = vst [vmem:[#allocation47_spill] sm:$0xff] %v18414_v26 }
 0x486   : > { %v14198_v42 = vpop.f32.mrf.mxu0  ;;  %v18421_v39 = vpop.f32.mrf.mxu1 }
 0x487   : > { %v18419_v23 = vadd.f32 %v14198_v42, %v18321_v4 }
 0x488   : > { %v18423_v56 = vpop.f32.mrf.mxu0  ;;  %v18425_v61 = vpop.f32.mrf.mxu1 }
 0x489   : > { %22304 = vst [vmem:[#allocation48_spill] sm:$0xff] %v18419_v23  ;;  %22305 = vst [vmem:[#allocation49_spill] sm:$0xff] %v18423_v56 }
 0x48a   : > { %v14201_v24 = vpop.f32.mrf.mxu0  ;;  %v18432_v48 = vpop.f32.mrf.mxu1 }
 0x48b   : > { %v18428_v47 = vadd.f32 %v14201_v24, %v18333_v14 }
 0x48c   : > { %v18430_v17 = vpop.f32.mrf.mxu0  ;;  %v18439_v4 = vpop.f32.mrf.mxu1 }
 0x48d   : > { %22306 = vst [vmem:[#allocation50_spill] sm:$0xff] %v18428_v47  ;;  %22307 = vst [vmem:[#allocation51_spill] sm:$0xff] %v18430_v17 }
 0x48e   : > { %v14202_v26 = vpop.f32.mrf.mxu0  ;;  %v18445_v27 = vpop.f32.mrf.mxu1 }
 0x48f   : > { %v18435_v0 = vadd.f32 %v14202_v26, %v18344_v37 }
 0x490   : > { %v18437_v42 = vpop.f32.mrf.mxu0  ;;  %v18451_v17 = vpop.f32.mrf.mxu1 }
 0x491   : > { %22308 = vst [vmem:[#allocation52_spill] sm:$0xff] %v18435_v0  ;;  %22309 = vst [vmem:[#allocation53_spill] sm:$0xff] %v18437_v42 }
 0x492   : > { %v14205_v23 = vpop.f32.mrf.mxu0  ;;  %v18457_v42 = vpop.f32.mrf.mxu1 }
 0x493   : > { %v18441_v56 = vadd.f32 %v14205_v23, %v4822_v36  ;;  %v3601_v23 = vadd.f32 %v17982_v59, %v17896_v34  ;;  %v5883_v34 = vadd.f32 %v14215_v60, %v18347_v13 }
 0x494   : > { %v18443_v43 = vpop.f32.mrf.mxu0 }
 0x495   : > { %22310 = vst [vmem:[#allocation54_spill] sm:$0xff] %v18441_v56  ;;  %22311 = vst [vmem:[#allocation55_spill] sm:$0xff] %v18443_v43 }
 0x496   : > { %v14206_v14 = vpop.f32.mrf.mxu0 }
 0x497   : > { %v18447_v24 = vadd.f32 %v14206_v14, %v4823_v18  ;;  %v18465_v18 = vpop.f32.mrf.mxu1  ;;  %v4327_v14 = vadd.f32 %v18142_v44, %v3601_v23  ;;  %v4800_v44 = vadd.f32 %v18233_v12, %v18172_v46  ;;  %v5884_v23 = vadd.f32 %v14216_v9, %v18359_v57 }
 0x498   : > { %v18449_v47 = vpop.f32.mrf.mxu0 }
 0x499   : > { %22312 = vst [vmem:[#allocation56_spill] sm:$0xff] %v18447_v24  ;;  %22313 = vst [vmem:[#allocation57_spill] sm:$0xff] %v18449_v47 }
 0x49a   : > { %v14209_v37 = vpop.f32.mrf.mxu0 }
 0x49b   : > { %v18453_v26 = vadd.f32 %v14209_v37, %v4826_v50  ;;  %v4797_v50 = vadd.f32 %v18221_v25, %v4327_v14  ;;  %v5881_v37 = vadd.f32 %v5754_v2, %v18352_v19 }
 0x49c   : > { %v18455_v0 = vpop.f32.mrf.mxu0 }
 0x49d   : > { %22314 = vst [vmem:[#allocation58_spill] sm:$0xff] %v18453_v26  ;;  %22315 = vst [vmem:[#allocation59_spill] sm:$0xff] %v18455_v0  ;;  %v18470_v0 = vpop.f32.mrf.mxu1  ;;  %v5156_v47 = vadd.f32 %v18363_v30, %v4797_v50  ;;  %v18483_v30 = vld [vmem:[%s22041_s5] ss:$0 sm:$0xff] }
 0x49e   : > { %v14210_v36 = vpop.f32.mrf.mxu0 }
 0x49f   : > { %v18461_v56 = vadd.f32 %v14210_v36, %v4827_v21  ;;  %v3605_v21 = vadd.f32 %v18021_v10, %v17935_v52  ;;  %v5882_v25 = vadd.f32 %v5757_v29, %v5156_v47  ;;  %v18485_v60 = vpop.f32.mrf.mxu1  ;;  %v5159_v52 = vadd.f32 %v18370_v15, %v4800_v44 }
 0x4a0   : > { %v18463_v43 = vpop.f32.mrf.mxu0  ;;  %v5887_v15 = vadd.f32 %v18398_v5, %v18366_v53  ;;  %v4804_v53 = vadd.f32 %v18265_v22, %v18195_v55  ;;  %v5888_v5 = vadd.f32 %v18407_v20, %v18373_v8 }
 0x4a1   : > { %v4331_v19 = vadd.f32 %v18179_v45, %v3605_v21  ;;  %v5885_v45 = vadd.f32 %v18403_v58, %v5159_v52 }
 0x4a2   : > { %v14249_v24 = vpop.f32.mrf.mxu0  ;;  %v5163_v55 = vadd.f32 %v18384_v62, %v4804_v53 }
 0x4a3   : > { %v6353_v14 = vadd.f32 %v14249_v24, %v5883_v34  ;;  %v4801_v57 = vadd.f32 %v18252_v49, %v4331_v19 }
 0x4a4   : > { %v6224_v26 = vpop.f32.mrf.mxu0  ;;  %v5889_v52 = vadd.f32 %v18421_v39, %v5163_v55  ;;  %v22318_v55 = vld [vmem:[#allocation8_spill] sm:$0xff] }
 0x4a5   : > { %v6351_v59 = vadd.f32 %v6224_v26, %v5881_v37  ;;  %v18494_v9 = vadd.f32 %v18483_v30, %v6353_v14  ;;  %v5160_v47 = vadd.f32 %v18377_v7, %v4801_v57  ;;  %v18502_v26 = vpop.f32.mrf.mxu1  ;;  %v3609_v7 = vadd.f32 %v18058_v6, %v17971_v41 }
 0x4a6   : > { %v14250_v36 = vpop.f32.mrf.mxu0 }
 0x4a7   : > { %v18489_v10 = vadd.f32 %v18483_v30, %v6351_v59  ;;  %v6354_v46 = vadd.f32 %v14250_v36, %v5884_v23  ;;  %v5886_v21 = vadd.f32 %v18412_v1, %v5160_v47  ;;  %v6429_v36 = vsel %vm6425_vm8, %v18494_v9, 0.0  ;;  %v18524_v14 = vpop.f32.mrf.mxu1 }
 0x4a8   : > { %v6227_v13 = vpop.f32.mrf.mxu0 }
 0x4a9   : > { %v6352_v12 = vadd.f32 %v6227_v13, %v5882_v25  ;;  %v6426_v49 = vsel %vm6425_vm8, %v18489_v10, 0.0  ;;  %v18507_v58 = vadd.f32 %v18483_v30, %v6354_v46  ;;  %v4335_v25 = vadd.f32 %v18206_v16, %v3609_v7 }
 0x4aa   : > { %v14253_v2 = vpop.f32.mrf.mxu0 }
 0x4ab   : > { %v18497_v29 = vadd.f32 %v18483_v30, %v6352_v12  ;;  %v6357_v44 = vadd.f32 %v14253_v2, %v5887_v15  ;;  %v6431_v20 = vsel %vm6425_vm8, %v18507_v58, 0.0  ;;  %v4805_v1 = vadd.f32 %v18277_v40, %v4335_v25 }
 0x4ac   : > { %v6240_v24 = vpop.f32.mrf.mxu0  ;;  %v5891_v40 = vadd.f32 %v18416_v33, %v18380_v35 }
 0x4ad   : > { %v6427_v50 = vsel %vm6425_vm8, %v18497_v29, 0.0  ;;  %v6355_v37 = vadd.f32 %v6240_v24, %v5885_v45  ;;  %v18532_v46 = vadd.f32 %v18483_v30, %v6357_v44  ;;  %v5164_v62 = vadd.f32 %v18391_v32, %v4805_v1  ;;  %v18540_v45 = vpop.f32.mrf.mxu1 }
 0x4ae   : > { %v6428_v34 = vadd.f32 %v6427_v50, %v6426_v49  ;;  %v14254_v59 = vpop.f32.mrf.mxu0  ;;  %v3613_v24 = vadd.f32 %v18093_v38, %v18008_v51  ;;  %v4808_v32 = vadd.f32 %v18290_v3, %v18224_v11  ;;  %v5892_v49 = vadd.f32 %v18425_v61, %v18387_v28  ;;  %v22316_v28 = vld [vmem:[#allocation34_spill] sm:$0xff] }
 0x4af   : > { %v18521_v23 = vadd.f32 %v18483_v30, %v6355_v37  ;;  %v6358_v22 = vadd.f32 %v14254_v59, %v5888_v5  ;;  %v5890_v33 = vadd.f32 %v18432_v48, %v5164_v62  ;;  %v6437_v35 = vsel %vm6425_vm8, %v18532_v46, 0.0 }
 0x4b0   : > { %v6430_v41 = vadd.f32 %v6429_v36, %v6428_v34  ;;  %v6243_v6 = vpop.f32.mrf.mxu0  ;;  %v4339_v5 = vadd.f32 %v18235_v54, %v3613_v24  ;;  %v18562_v34 = vpop.f32.mrf.mxu1  ;;  %v5167_v11 = vadd.f32 %v18396_v31, %v4808_v32  ;;  %v2758_v59 = vadd.f32 %v22316_v28, %v17840_v63  ;;  %v22324_v24 = vld [vmem:[#allocation44_spill] sm:$0xff]  ;;  %v22327_v28 = vld [vmem:[#allocation23_spill] sm:$0xff] }
 0x4b1   : > { %v6356_v8 = vadd.f32 %v6243_v6, %v5886_v21  ;;  %v6433_v16 = vsel %vm6425_vm8, %v18521_v23, 0.0  ;;  %v18545_v39 = vadd.f32 %v18483_v30, %v6358_v22  ;;  %v22317_v21 = vld [vmem:[#allocation24_spill] sm:$0xff]  ;;  %v22319_v22 = vld [vmem:[#allocation45_spill] sm:$0xff]  ;;  %v5896_v32 = vadd.f32 %v18451_v17, %v22324_v24 }
 0x4b2   : > { %v6432_v19 = vadd.f32 %v6431_v20, %v6430_v41  ;;  %v14257_v13 = vpop.f32.mrf.mxu0  ;;  %v4809_v36 = vadd.f32 %v22317_v21, %v4339_v5  ;;  %v5893_v54 = vadd.f32 %v18445_v27, %v5167_v11  ;;  %v3259_v20 = vadd.f32 %v22318_v55, %v2758_v59  ;;  %v22328_v59 = vld [vmem:[#allocation5_spill] sm:$0xff] }
 0x4b3   : > { %v18537_v12 = vadd.f32 %v18483_v30, %v6356_v8  ;;  %v6361_v7 = vadd.f32 %v14257_v13, %v5891_v40  ;;  %v6439_v61 = vsel %vm6425_vm8, %v18545_v39, 0.0  ;;  %v22320_v13 = vld [vmem:[#allocation43_spill] sm:$0xff]  ;;  %v22322_v40 = vld [vmem:[#allocation22_spill] sm:$0xff]  ;;  %v2774_v21 = vadd.f32 %v22328_v59, %v22327_v28 }
 0x4b4   : > { %v6434_v57 = vadd.f32 %v6433_v16, %v6432_v19  ;;  %v6256_v2 = vpop.f32.mrf.mxu0  ;;  %v5168_v8 = vadd.f32 %v22319_v22, %v4809_v36  ;;  %v18581_v19 = vpop.f32.mrf.mxu1  ;;  %v5895_v27 = vadd.f32 %v18439_v4, %v22320_v13  ;;  %v22329_v36 = vld [vmem:[#allocation14_spill] sm:$0xff]  ;;  %v22338_v28 = vld [vmem:[#allocation51_spill] sm:$0xff] }
 0x4b5   : > { %v6435_v47 = vsel %vm6425_vm8, %v18537_v12, 0.0  ;;  %v6359_v15 = vadd.f32 %v6256_v2, %v5889_v52  ;;  %v18572_v41 = vadd.f32 %v18483_v30, %v6361_v7  ;;  %v22325_v7 = vld [vmem:[#allocation20_spill] sm:$0xff] }
 0x4b6   : > { %v6436_v50 = vadd.f32 %v6435_v47, %v6434_v57  ;;  %v14258_v37 = vpop.f32.mrf.mxu0  ;;  %v22321_v57 = vld [vmem:[#allocation4_spill] sm:$0xff]  ;;  %v22323_v47 = vld [vmem:[#allocation10_spill] sm:$0xff]  ;;  %v18602_v11 = vpop.f32.mrf.mxu1 }
 0x4b7   : > { %v18559_v53 = vadd.f32 %v18483_v30, %v6359_v15  ;;  %v6362_v3 = vadd.f32 %v14258_v37, %v5892_v49  ;;  %v3617_v2 = vadd.f32 %v22321_v57, %v3259_v20  ;;  %v4812_v15 = vadd.f32 %v22323_v47, %v22322_v40  ;;  %v22332_v57 = vld [vmem:[#allocation46_spill] sm:$0xff] }
 0x4b8   : > { %v6438_v51 = vadd.f32 %v6437_v35, %v6436_v50  ;;  %v6259_v38 = vpop.f32.mrf.mxu0  ;;  %v5894_v37 = vadd.f32 %v18457_v42, %v5168_v8  ;;  %v6445_v4 = vsel %vm6425_vm8, %v18572_v41, 0.0  ;;  %v22330_v8 = vld [vmem:[#allocation17_spill] sm:$0xff] }
 0x4b9   : > { %v6360_v48 = vadd.f32 %v6259_v38, %v5890_v33  ;;  %v6441_v31 = vsel %vm6425_vm8, %v18559_v53, 0.0  ;;  %v18586_v52 = vadd.f32 %v18483_v30, %v6362_v3  ;;  %v4343_v5 = vadd.f32 %v22325_v7, %v3617_v2 }
 0x4ba   : > { %v6440_v44 = vadd.f32 %v6439_v61, %v6438_v51  ;;  %v14261_v25 = vpop.f32.mrf.mxu0  ;;  %v22326_v61 = vld [vmem:[#allocation47_spill] sm:$0xff]  ;;  %v5899_v2 = vadd.f32 %v18465_v18, %v22332_v57 }
 0x4bb   : > { %v18577_v6 = vadd.f32 %v18483_v30, %v6360_v48  ;;  %v6365_v33 = vadd.f32 %v14261_v25, %v5895_v27  ;;  %v5171_v3 = vadd.f32 %v22326_v61, %v4812_v15  ;;  %v6447_v17 = vsel %vm6425_vm8, %v18586_v52, 0.0  ;;  %v22333_v15 = vld [vmem:[#allocation27_spill] sm:$0xff]  ;;  %v22337_v61 = vld [vmem:[#allocation21_spill] sm:$0xff] }
 0x4bc   : > { %v6442_v63 = vadd.f32 %v6441_v31, %v6440_v44  ;;  %v6272_v1 = vpop.f32.mrf.mxu0  ;;  %v4813_v44 = vadd.f32 %v22329_v36, %v4343_v5 }
 0x4bd   : > { %v6443_v16 = vsel %vm6425_vm8, %v18577_v6, 0.0  ;;  %v6363_v62 = vadd.f32 %v6272_v1, %v5893_v54  ;;  %v5897_v31 = vadd.f32 %v18470_v0, %v5171_v3  ;;  %v18612_v55 = vadd.f32 %v18483_v30, %v6365_v33  ;;  %v22331_v1 = vld [vmem:[#allocation49_spill] sm:$0xff] }
 0x4be   : > { %v6444_v49 = vadd.f32 %v6443_v16, %v6442_v63  ;;  %v14262_v50 = vpop.f32.mrf.mxu0  ;;  %v3263_v63 = vadd.f32 %v22330_v8, %v2774_v21  ;;  %v5172_v13 = vadd.f32 %v22331_v1, %v4813_v44  ;;  %v22340_v44 = vld [vmem:[#allocation35_spill] sm:$0xff] }
 0x4bf   : > { %v18599_v35 = vadd.f32 %v18483_v30, %v6363_v62  ;;  %v6366_v48 = vadd.f32 %v14262_v50, %v5896_v32  ;;  %v5850_v62 = vpop.f32.mrf.mxu1  ;;  %v22334_v32 = vld [vmem:[#allocation33_spill] sm:$0xff]  ;;  %v6453_v18 = vsel %vm6425_vm8, %v18612_v55, 0.0 }
 0x4c0   : > { %v6446_v51 = vadd.f32 %v6445_v4, %v6444_v49  ;;  %v6275_v38 = vpop.f32.mrf.mxu0  ;;  %v3621_v24 = vadd.f32 %v22333_v15, %v3263_v63  ;;  %v22335_v49 = vld [vmem:[#allocation36_spill] sm:$0xff]  ;;  %v5898_v5 = vadd.f32 %v18502_v26, %v5172_v13 }
 0x4c1   : > { %v6364_v42 = vadd.f32 %v6275_v38, %v5894_v37  ;;  %v6449_v20 = vsel %vm6425_vm8, %v18599_v35, 0.0  ;;  %v18624_v0 = vadd.f32 %v18483_v30, %v6366_v48  ;;  %v4816_v50 = vadd.f32 %v22335_v49, %v22334_v32  ;;  %v22336_v37 = vld [vmem:[#allocation48_spill] sm:$0xff]  ;;  %v14240_v48 = vpop.f32.mrf.mxu1  ;;  %v22344_v32 = vld [vmem:[#allocation50_spill] sm:$0xff] }
 0x4c2   : > { %v6448_v25 = vadd.f32 %v6447_v17, %v6446_v51  ;;  %v14265_v54 = vpop.f32.mrf.mxu0  ;;  %v5900_v4 = vadd.f32 %v18485_v60, %v22336_v37  ;;  %v4347_v3 = vadd.f32 %v22337_v61, %v3621_v24  ;;  %v22339_v26 = vld [vmem:[#allocation16_spill] sm:$0xff]  ;;  %v5903_v49 = vadd.f32 %v18524_v14, %v22344_v32 }
 0x4c3   : > { %v18617_v22 = vadd.f32 %v18483_v30, %v6364_v42  ;;  %v6369_v51 = vadd.f32 %v14265_v54, %v5899_v2  ;;  %v5175_v59 = vadd.f32 %v22338_v28, %v4816_v50  ;;  %v6455_v60 = vsel %vm6425_vm8, %v18624_v0, 0.0  ;;  %v22343_v2 = vld [vmem:[#allocation53_spill] sm:$0xff]  ;;  %v5853_v15 = vpop.f32.mrf.mxu1 }
 0x4c4   : > { %v6450_v27 = vadd.f32 %v6449_v20, %v6448_v25  ;;  %v6288_v16 = vpop.f32.mrf.mxu0  ;;  %v2790_v25 = vadd.f32 %v22340_v44, %v22339_v26 }
 0x4c5   : > { %v6451_v40 = vsel %vm6425_vm8, %v18617_v22, 0.0  ;;  %v6367_v47 = vadd.f32 %v6288_v16, %v5897_v31  ;;  %v22341_v31 = vld [vmem:[#allocation38_spill] sm:$0xff]  ;;  %v5901_v63 = vadd.f32 %v18540_v45, %v5175_v59  ;;  %v18648_v1 = vadd.f32 %v18483_v30, %v6369_v51  ;;  %v22342_v16 = vld [vmem:[#allocation9_spill] sm:$0xff]  ;;  %v22348_v51 = vld [vmem:[#allocation52_spill] sm:$0xff]  ;;  %v14243_v26 = vpop.f32.mrf.mxu1 }
 0x4c6   : > { %v6452_v33 = vadd.f32 %v6451_v40, %v6450_v27  ;;  %v14266_v7 = vpop.f32.mrf.mxu0  ;;  %v4817_v54 = vadd.f32 %v22341_v31, %v4347_v3  ;;  %v3267_v57 = vadd.f32 %v22342_v16, %v2790_v25  ;;  %v5904_v61 = vadd.f32 %v18562_v34, %v22348_v51  ;;  %v22350_v25 = vld [vmem:[#allocation55_spill] sm:$0xff]  ;;  %v22353_v16 = vld [vmem:[#allocation40_spill] sm:$0xff] }
 0x4c7   : > { %v18637_v38 = vadd.f32 %v18483_v30, %v6367_v47  ;;  %v6370_v21 = vadd.f32 %v14266_v7, %v5900_v4  ;;  %v22345_v4 = vld [vmem:[#allocation29_spill] sm:$0xff]  ;;  %v22346_v7 = vld [vmem:[#allocation11_spill] sm:$0xff]  ;;  %v6461_v14 = vsel %vm6425_vm8, %v18648_v1, 0.0 }
 0x4c8   : > { %v6454_v17 = vadd.f32 %v6453_v18, %v6452_v33  ;;  %v6291_v42 = vpop.f32.mrf.mxu0  ;;  %v5176_v40 = vadd.f32 %v22343_v2, %v4817_v54  ;;  %v3625_v33 = vadd.f32 %v22345_v4, %v3267_v57 }
 0x4c9   : > { %v6368_v36 = vadd.f32 %v6291_v42, %v5898_v5  ;;  %v6457_v13 = vsel %vm6425_vm8, %v18637_v38, 0.0  ;;  %v18660_v45 = vadd.f32 %v18483_v30, %v6370_v21  ;;  %v22347_v5 = vld [vmem:[#allocation39_spill] sm:$0xff] }
 0x4ca   : > { %v6456_v20 = vadd.f32 %v6455_v60, %v6454_v17  ;;  %v14269_v8 = vpop.f32.mrf.mxu0  ;;  %v4820_v18 = vadd.f32 %v22347_v5, %v22346_v7  ;;  %v5902_v42 = vadd.f32 %v18581_v19, %v5176_v40  ;;  %v22349_v60 = vld [vmem:[#allocation13_spill] sm:$0xff]  ;;  %v22351_v19 = vld [vmem:[#allocation12_spill] sm:$0xff]  ;;  %v5866_v7 = vpop.f32.mrf.mxu1 }
 0x4cb   : > { %v18653_v27 = vadd.f32 %v18483_v30, %v6368_v36  ;;  %v6373_v28 = vadd.f32 %v14269_v8, %v5903_v49  ;;  %v4351_v21 = vadd.f32 %v22349_v60, %v3625_v33  ;;  %v6463_v34 = vsel %vm6425_vm8, %v18660_v45, 0.0  ;;  %v22354_v49 = vld [vmem:[#allocation30_spill] sm:$0xff] }
 0x4cc   : > { %v6458_v47 = vadd.f32 %v6457_v13, %v6456_v20  ;;  %v6304_v24 = vpop.f32.mrf.mxu0  ;;  %v5179_v31 = vadd.f32 %v22350_v25, %v4820_v18  ;;  %v22356_v18 = vld [vmem:[#allocation54_spill] sm:$0xff] }
 0x4cd   : > { %v6459_v50 = vsel %vm6425_vm8, %v18653_v27, 0.0  ;;  %v6371_v37 = vadd.f32 %v6304_v24, %v5901_v63  ;;  %v22352_v63 = vld [vmem:[#allocation15_spill] sm:$0xff]  ;;  %v4821_v8 = vadd.f32 %v22353_v16, %v4351_v21  ;;  %v5907_v51 = vadd.f32 %v18602_v11, %v22356_v18  ;;  %v22360_v21 = vld [vmem:[#allocation56_spill] sm:$0xff] }
 0x4ce   : > { %v6460_v3 = vadd.f32 %v6459_v50, %v6458_v47  ;;  %v14270_v17 = vpop.f32.mrf.mxu0  ;;  %v2806_v13 = vadd.f32 %v22352_v63, %v22351_v19  ;;  %v5905_v40 = vadd.f32 %v5850_v62, %v5179_v31  ;;  %v18683_v47 = vadd.f32 %v18483_v30, %v6373_v28  ;;  %v22359_v28 = vld [vmem:[#allocation41_spill] sm:$0xff]  ;;  %v14244_v63 = vpop.f32.mrf.mxu1 }
 0x4cf   : > { %v18673_v59 = vadd.f32 %v18483_v30, %v6371_v37  ;;  %v6374_v54 = vadd.f32 %v14270_v17, %v5904_v61  ;;  %v22355_v37 = vld [vmem:[#allocation57_spill] sm:$0xff]  ;;  %v22357_v17 = vld [vmem:[#allocation31_spill] sm:$0xff] }
 0x4d0   : > { %v6462_v36 = vadd.f32 %v6461_v14, %v6460_v3  ;;  %v6307_v44 = vpop.f32.mrf.mxu0  ;;  %v3271_v50 = vadd.f32 %v22354_v49, %v2806_v13  ;;  %v5180_v4 = vadd.f32 %v22355_v37, %v4821_v8  ;;  %v22358_v14 = vld [vmem:[#allocation19_spill] sm:$0xff]  ;;  %v6469_v11 = vsel %vm6425_vm8, %v18683_v47, 0.0 }
 0x4d1   : > { %v6372_v20 = vadd.f32 %v6307_v44, %v5902_v42  ;;  %v6465_v24 = vsel %vm6425_vm8, %v18673_v59, 0.0  ;;  %v18695_v62 = vadd.f32 %v18483_v30, %v6374_v54  ;;  %v4824_v60 = vadd.f32 %v22359_v28, %v22358_v14  ;;  %v22362_v8 = vld [vmem:[#allocation59_spill] sm:$0xff] }
 0x4d2   : > { %v6464_v57 = vadd.f32 %v6463_v34, %v6462_v36  ;;  %v14273_v2 = vpop.f32.mrf.mxu0  ;;  %v3629_v42 = vadd.f32 %v22357_v17, %v3271_v50  ;;  %v5908_v36 = vadd.f32 %v14240_v48, %v22360_v21  ;;  %v5906_v31 = vadd.f32 %v5853_v15, %v5180_v4  ;;  %v22363_v15 = vld [vmem:[#allocation42_spill] sm:$0xff] }
 0x4d3   : > { %v18688_v32 = vadd.f32 %v18483_v30, %v6372_v20  ;;  %v6377_v34 = vadd.f32 %v14273_v2, %v5907_v51  ;;  %v22361_v20 = vld [vmem:[#allocation37_spill] sm:$0xff]  ;;  %v6471_v48 = vsel %vm6425_vm8, %v18695_v62, 0.0  ;;  %v5869_v51 = vpop.f32.mrf.mxu1  ;;  %v22364_v17 = vld [vmem:[#allocation58_spill] sm:$0xff] }
 0x4d4   : > { %v6466_v33 = vadd.f32 %v6465_v24, %v6464_v57  ;;  %v6320_v5 = vpop.f32.mrf.mxu0  ;;  %v4355_v19 = vadd.f32 %v22361_v20, %v3629_v42  ;;  %v5183_v57 = vadd.f32 %v22362_v8, %v4824_v60  ;;  %v5911_v42 = vadd.f32 %v14243_v26, %v22364_v17 }
 0x4d5   : > { %v6467_v61 = vsel %vm6425_vm8, %v18688_v32, 0.0  ;;  %v6375_v3 = vadd.f32 %v6320_v5, %v5905_v40  ;;  %v18714_v4 = vadd.f32 %v18483_v30, %v6377_v34  ;;  %v5912_v60 = vadd.f32 %v14244_v63, %v18461_v56 }
 0x4d6   : > { %v6468_v44 = vadd.f32 %v6467_v61, %v6466_v33  ;;  %v14274_v25 = vpop.f32.mrf.mxu0  ;;  %v4825_v49 = vadd.f32 %v22363_v15, %v4355_v19  ;;  %v5909_v2 = vadd.f32 %v5866_v7, %v5183_v57 }
 0x4d7   : > { %v18706_v54 = vadd.f32 %v18483_v30, %v6375_v3  ;;  %v6378_v40 = vadd.f32 %v14274_v25, %v5908_v36 }
 0x4d8   : > { %v6470_v13 = vadd.f32 %v6469_v11, %v6468_v44  ;;  %v6323_v16 = vpop.f32.mrf.mxu0  ;;  %v5184_v18 = vadd.f32 %v18463_v43, %v4825_v49  ;;  %v6477_v43 = vsel %vm6425_vm8, %v18714_v4, 0.0 }
 0x4d9   : > { %v6376_v24 = vadd.f32 %v6323_v16, %v5906_v31  ;;  %v6473_v33 = vsel %vm6425_vm8, %v18706_v54, 0.0  ;;  %v18724_v14 = vadd.f32 %v18483_v30, %v6378_v40 }
 0x4da   : > { %v6472_v50 = vadd.f32 %v6471_v48, %v6470_v13  ;;  %v14277_v37 = vpop.f32.mrf.mxu0  ;;  %v5910_v44 = vadd.f32 %v5869_v51, %v5184_v18 }
 0x4db   : > { %v18719_v5 = vadd.f32 %v18483_v30, %v6376_v24  ;;  %v6381_v25 = vadd.f32 %v14277_v37, %v5911_v42  ;;  %v6479_v34 = vsel %vm6425_vm8, %v18724_v14, 0.0 }
 0x4dc   : > { %v6474_v61 = vadd.f32 %v6473_v33, %v6472_v50  ;;  %v6336_v3 = vpop.f32.mrf.mxu0 }
 0x4dd   : > { %v6475_v7 = vsel %vm6425_vm8, %v18719_v5, 0.0  ;;  %v6379_v28 = vadd.f32 %v6336_v3, %v5909_v2  ;;  %v18737_v56 = vadd.f32 %v18483_v30, %v6381_v25  ;;  %v22366_v3 = vmov 0.0  }
 0x4de   : > { %v6476_v21 = vadd.f32 %v6475_v7, %v6474_v61  ;;  %v14278_v36 = vpop.f32.mrf.mxu0  ;;  %v22367_v7 = vld [vmem:[#allocation6_spill] sm:$0xff] }
 0x4df   : > { %v18732_v31 = vadd.f32 %v18483_v30, %v6379_v28  ;;  %v6382_v20 = vadd.f32 %v14278_v36, %v5912_v60  ;;  %v6485_v24 = vsel %vm6425_vm8, %v18737_v56, 0.0 }
 0x4e0   : > { %v6478_v26 = vadd.f32 %v6477_v43, %v6476_v21  ;;  %v6339_v11 = vpop.f32.mrf.mxu0 }
 0x4e1   : > { %v6380_v19 = vadd.f32 %v6339_v11, %v5910_v44  ;;  %v6481_v63 = vsel %vm6425_vm8, %v18732_v31, 0.0  ;;  %v18745_v57 = vadd.f32 %v18483_v30, %v6382_v20 }
 0x4e2   : > { %v6480_v13 = vadd.f32 %v6479_v34, %v6478_v26 }
 0x4e3   : > { %v18742_v16 = vadd.f32 %v18483_v30, %v6380_v19  ;;  %v6487_v49 = vsel %vm6425_vm8, %v18745_v57, 0.0  ;;  %v22365_v30 = vld [vmem:[#allocation32_spill] sm:$0xff] }
 0x4e4   : > { %v6482_v8 = vadd.f32 %v6481_v63, %v6480_v13 }
 0x4e5   : > { %v6483_v48 = vsel %vm6425_vm8, %v18742_v16, 0.0 }
 0x4e6   : > { %v6484_v40 = vadd.f32 %v6483_v48, %v6482_v8 }
 0x4e8   : > { %v6486_v15 = vadd.f32 %v6485_v24, %v6484_v40 }
 0x4ea   : > { %v6488_v50 = vadd.f32 %v6487_v49, %v6486_v15 }
 0x4ec   : > { %v6489_v37 = vrot.slane %v6488_v50, 4 }
 0x4ee   : > { %v6490_v2 = vadd.f32 %v6489_v37, %v6488_v50 }
 0x4f0   : > { %v6491_v33 = vrot.slane %v6490_v2, 2 }
 0x4f2   : > { %v6492_v18 = vadd.f32 %v6491_v33, %v6490_v2 }
 0x4f4   : > { %v6493_v51 = vrot.slane %v6492_v18, 1 }
 0x4f6   : > { %v6494_v61 = vadd.f32 %v6493_v51, %v6492_v18 }
 0x4f8   : > { %14282 = vmatmul.mubr.msk.f32.vlgmr.msra.gmra.mxu1 %vm6425_vm8, %v6494_v61 }
 0x4f9   : > { %14285 = vmatpush3.msra.mxu1 %v22365_v30  ;;  %14286 = vmatprep.mubr.msk.f32.mxu1 %vm15067_vm1, %v22366_v3  ;;  %vm19311_vm1 = vmand %vm7115_vm5, %vm1237_vm6 }
 0x5b8   : > { %v6564_v17 = vpop.f32.mrf.mxu1 }
 0x5b9   : > { %v18758_v28 = vrot.slane %v6564_v17, %v22367_v7 }
 0x5ba   : > { %v14283_v42 = vpop.f32.mrf.mxu1 }
 0x5bb   : > { %v18762_v60 = vsub.f32 %v18489_v10, %v18758_v28  ;;  %v18766_v21 = vsub.f32 %v18497_v29, %v18758_v28  ;;  %v18770_v36 = vsub.f32 %v18494_v9, %v18758_v28  ;;  %v18774_v44 = vsub.f32 %v18507_v58, %v18758_v28 }
 0x5bc   : > { %v18782_v10 = vsub.f32 %v18521_v23, %v18758_v28  ;;  %v18788_v9 = vsub.f32 %v18537_v12, %v18758_v28  ;;  %v18796_v20 = vsub.f32 %v18532_v46, %v18758_v28  ;;  %v18803_v12 = vsub.f32 %v18545_v39, %v18758_v28 }
 0x5bd   : > { %v6604_v43 = vmul.f32 %v18762_v60, %v18762_v60  ;;  %v6605_v25 = vmul.f32 %v18766_v21, %v18766_v21  ;;  %v6606_v29 = vmul.f32 %v18770_v36, %v18770_v36  ;;  %v6607_v58 = vmul.f32 %v18774_v44, %v18774_v44 }
 0x5be   : > { %v6608_v23 = vmul.f32 %v18782_v10, %v18782_v10  ;;  %v6609_v63 = vmul.f32 %v18788_v9, %v18788_v9  ;;  %v18810_v46 = vsub.f32 %v18559_v53, %v18758_v28  ;;  %v6610_v40 = vmul.f32 %v18796_v20, %v18796_v20 }
 0x5bf   : > { %v6636_v26 = vsel %vm6425_vm8, %v6604_v43, 0.0  ;;  %v6637_v11 = vsel %vm6425_vm8, %v6605_v25, 0.0  ;;  %v6639_v19 = vsel %vm6425_vm8, %v6606_v29, 0.0  ;;  %v6641_v8 = vsel %vm6425_vm8, %v6607_v58, 0.0 }
 0x5c0   : > { %v6638_v34 = vadd.f32 %v6637_v11, %v6636_v26  ;;  %v6643_v24 = vsel %vm6425_vm8, %v6608_v23, 0.0  ;;  %v18817_v39 = vsub.f32 %v18577_v6, %v18758_v28  ;;  %v6611_v49 = vmul.f32 %v18803_v12, %v18803_v12 }
 0x5c1   : > { %v6645_v50 = vsel %vm6425_vm8, %v6609_v63, 0.0  ;;  %v18824_v53 = vsub.f32 %v18572_v41, %v18758_v28  ;;  %v6612_v2 = vmul.f32 %v18810_v46, %v18810_v46  ;;  %v6647_v33 = vsel %vm6425_vm8, %v6610_v40, 0.0 }
 0x5c2   : > { %v6640_v13 = vadd.f32 %v6639_v19, %v6638_v34  ;;  %v18831_v6 = vsub.f32 %v18586_v52, %v18758_v28  ;;  %v6613_v51 = vmul.f32 %v18817_v39, %v18817_v39  ;;  %v6649_v61 = vsel %vm6425_vm8, %v6611_v49, 0.0 }
 0x5c3   : > { %v18838_v41 = vsub.f32 %v18599_v35, %v18758_v28  ;;  %v6614_v3 = vmul.f32 %v18824_v53, %v18824_v53  ;;  %v6651_v17 = vsel %vm6425_vm8, %v6612_v2, 0.0  ;;  %v18845_v52 = vsub.f32 %v18617_v22, %v18758_v28 }
 0x5c4   : > { %v6642_v48 = vadd.f32 %v6641_v8, %v6640_v13  ;;  %v6615_v43 = vmul.f32 %v18831_v6, %v18831_v6  ;;  %v6653_v25 = vsel %vm6425_vm8, %v6613_v51, 0.0  ;;  %v18852_v35 = vsub.f32 %v18612_v55, %v18758_v28 }
 0x5c5   : > { %v6616_v58 = vmul.f32 %v18838_v41, %v18838_v41  ;;  %v6655_v26 = vsel %vm6425_vm8, %v6614_v3, 0.0  ;;  %v18859_v22 = vsub.f32 %v18624_v0, %v18758_v28  ;;  %v6617_v34 = vmul.f32 %v18845_v52, %v18845_v52 }
 0x5c6   : > { %v6644_v15 = vadd.f32 %v6643_v24, %v6642_v48  ;;  %v6657_v23 = vsel %vm6425_vm8, %v6615_v43, 0.0  ;;  %v18866_v55 = vsub.f32 %v18637_v38, %v18758_v28  ;;  %v6618_v13 = vmul.f32 %v18852_v35, %v18852_v35 }
 0x5c7   : > { %v6659_v63 = vsel %vm6425_vm8, %v6616_v58, 0.0  ;;  %v18873_v0 = vsub.f32 %v18653_v27, %v18758_v28  ;;  %v6619_v48 = vmul.f32 %v18859_v22, %v18859_v22  ;;  %v6661_v40 = vsel %vm6425_vm8, %v6617_v34, 0.0 }
 0x5c8   : > { %v6646_v37 = vadd.f32 %v6645_v50, %v6644_v15  ;;  %v18880_v38 = vsub.f32 %v18648_v1, %v18758_v28  ;;  %v6620_v15 = vmul.f32 %v18866_v55, %v18866_v55  ;;  %v6663_v49 = vsel %vm6425_vm8, %v6618_v13, 0.0 }
 0x5c9   : > { %v18887_v27 = vsub.f32 %v18660_v45, %v18758_v28  ;;  %v6665_v2 = vsel %vm6425_vm8, %v6619_v48, 0.0  ;;  %v18894_v1 = vsub.f32 %v18673_v59, %v18758_v28  ;;  %v18901_v45 = vsub.f32 %v18688_v32, %v18758_v28 }
 0x5ca   : > { %v6648_v18 = vadd.f32 %v6647_v33, %v6646_v37  ;;  %v6621_v37 = vmul.f32 %v18873_v0, %v18873_v0  ;;  %v6667_v51 = vsel %vm6425_vm8, %v6620_v15, 0.0  ;;  %v18908_v59 = vsub.f32 %v18683_v47, %v18758_v28 }
 0x5cb   : > { %v18915_v32 = vsub.f32 %v18695_v62, %v18758_v28  ;;  %v18922_v47 = vsub.f32 %v18706_v54, %v18758_v28  ;;  %v18929_v62 = vsub.f32 %v18719_v5, %v18758_v28  ;;  %v18936_v54 = vsub.f32 %v18714_v4, %v18758_v28 }
 0x5cc   : > { %v6650_v30 = vadd.f32 %v6649_v61, %v6648_v18  ;;  %v6622_v18 = vmul.f32 %v18880_v38, %v18880_v38  ;;  %v6669_v3 = vsel %vm6425_vm8, %v6621_v37, 0.0  ;;  %v18943_v5 = vsub.f32 %v18724_v14, %v18758_v28 }
 0x5cd   : > { %v18950_v4 = vsub.f32 %v18732_v31, %v18758_v28  ;;  %v18957_v14 = vsub.f32 %v18742_v16, %v18758_v28  ;;  %v18964_v31 = vsub.f32 %v18737_v56, %v18758_v28  ;;  %v18971_v16 = vsub.f32 %v18745_v57, %v18758_v28 }
 0x5ce   : > { %v6652_v42 = vadd.f32 %v6651_v17, %v6650_v30  ;;  %v6623_v30 = vmul.f32 %v18887_v27, %v18887_v27  ;;  %v6671_v43 = vsel %vm6425_vm8, %v6622_v18, 0.0 }
 0x5cf   : > { %v6634_v56 = vmul.f32 %v18964_v31, %v18964_v31 }
 0x5d0   : > { %v6654_v29 = vadd.f32 %v6653_v25, %v6652_v42  ;;  %v6624_v42 = vmul.f32 %v18894_v1, %v18894_v1  ;;  %v6673_v58 = vsel %vm6425_vm8, %v6623_v30, 0.0 }
 0x5d1   : > { %v6695_v57 = vsel %vm6425_vm8, %v6634_v56, 0.0 }
 0x5d2   : > { %v6656_v11 = vadd.f32 %v6655_v26, %v6654_v29  ;;  %v6625_v29 = vmul.f32 %v18901_v45, %v18901_v45  ;;  %v6675_v34 = vsel %vm6425_vm8, %v6624_v42, 0.0 }
 0x5d4   : > { %v6658_v19 = vadd.f32 %v6657_v23, %v6656_v11  ;;  %v6626_v11 = vmul.f32 %v18908_v59, %v18908_v59  ;;  %v6677_v13 = vsel %vm6425_vm8, %v6625_v29, 0.0 }
 0x5d6   : > { %v6660_v8 = vadd.f32 %v6659_v63, %v6658_v19  ;;  %v6627_v19 = vmul.f32 %v18915_v32, %v18915_v32  ;;  %v6679_v48 = vsel %vm6425_vm8, %v6626_v11, 0.0 }
 0x5d8   : > { %v6662_v24 = vadd.f32 %v6661_v40, %v6660_v8  ;;  %v6628_v8 = vmul.f32 %v18922_v47, %v18922_v47  ;;  %v6681_v15 = vsel %vm6425_vm8, %v6627_v19, 0.0 }
 0x5da   : > { %v6664_v50 = vadd.f32 %v6663_v49, %v6662_v24  ;;  %v6629_v24 = vmul.f32 %v18929_v62, %v18929_v62  ;;  %v6683_v37 = vsel %vm6425_vm8, %v6628_v8, 0.0 }
 0x5dc   : > { %v6666_v33 = vadd.f32 %v6665_v2, %v6664_v50  ;;  %v6630_v50 = vmul.f32 %v18936_v54, %v18936_v54  ;;  %v6685_v18 = vsel %vm6425_vm8, %v6629_v24, 0.0  ;;  %v7798_v24 = vld [vmem:[%s22045_s9] sm:$0xf] }
 0x5dd   : > { %14642 = vmatprep.subr.msk.bf16.mxu0 %vm550_vm0, %v7798_v24 }
 0x5de   : > { %v6668_v61 = vadd.f32 %v6667_v51, %v6666_v33  ;;  %v6631_v33 = vmul.f32 %v18943_v5, %v18943_v5  ;;  %v6687_v30 = vsel %vm6425_vm8, %v6630_v50, 0.0 }
 0x5e0   : > { %v6670_v17 = vadd.f32 %v6669_v3, %v6668_v61  ;;  %v6632_v61 = vmul.f32 %v18950_v4, %v18950_v4  ;;  %v6689_v42 = vsel %vm6425_vm8, %v6631_v33, 0.0 }
 0x5e2   : > { %v6672_v25 = vadd.f32 %v6671_v43, %v6670_v17  ;;  %v6633_v17 = vmul.f32 %v18957_v14, %v18957_v14 }
 0x5e4   : > { %v6674_v26 = vadd.f32 %v6673_v58, %v6672_v25  ;;  %v6691_v25 = vsel %vm6425_vm8, %v6632_v61, 0.0  ;;  %v6635_v58 = vmul.f32 %v18971_v16, %v18971_v16 }
 0x5e6   : > { %v6676_v23 = vadd.f32 %v6675_v34, %v6674_v26  ;;  %v6693_v26 = vsel %vm6425_vm8, %v6633_v17, 0.0  ;;  %v6697_v34 = vsel %vm6425_vm8, %v6635_v58, 0.0 }
 0x5e8   : > { %v6678_v63 = vadd.f32 %v6677_v13, %v6676_v23 }
 0x5ea   : > { %v6680_v40 = vadd.f32 %v6679_v48, %v6678_v63 }
 0x5ec   : > { %v6682_v49 = vadd.f32 %v6681_v15, %v6680_v40  ;;  %v8590_v15 = vsel %vm550_vm0, %v7798_v24, 0 }
 0x5ed   : > { %14324 = vmatpush3.bf16.msra.mxu0 %v8590_v15 }
 0x5ee   : > { %v6684_v2 = vadd.f32 %v6683_v37, %v6682_v49  ;;  %v7126_v49 = vld [vmem:[#allocation3] sm:$0x1] }
 0x5ef   : > { %v7127_v37 = vsel %vm18138_vm7, 0, %v7126_v49 }
 0x5f0   : > { %v6686_v51 = vadd.f32 %v6685_v18, %v6684_v2  ;;  %7128 = vst [vmem:[#allocation3] sm:$0x1] %v7127_v37  ;;  %v18992_v2 = vld [vmem:[#allocation3 + $0x4] sm:$0xf]  ;;  %v13202_v37 = vld [vmem:[%s22045_s9 + $0x4] sm:$0xf] }
 0x5f1   : > { %14641 = vmatprep.subr.msk.bf16.mxu1 %vm550_vm0, %v13202_v37 }
 0x5f2   : > { %v6688_v3 = vadd.f32 %v6687_v30, %v6686_v51 }
 0x5f4   : > { %v6690_v43 = vadd.f32 %v6689_v42, %v6688_v3 }
 0x5f6   : > { %v6692_v29 = vadd.f32 %v6691_v25, %v6690_v43  ;;  %v7829_v25 = vshrl.u32 %v18992_v2, 16 }
 0x5f7   : > { %v7766_v33 = vld [vmem:[#allocation3] sm:$0xf] }
 0x5f8   : > { %v6694_v11 = vadd.f32 %v6693_v26, %v6692_v29  ;;  %v13235_v18 = vcombine.low %v7766_v33, %v18992_v2  ;;  %v7816_v17 = vshrl.u32 %v7766_v33, 16  ;;  %v7819_v43 = vshll.u32 %v7766_v33, 16 }
 0x5fa   : > { %v6696_v28 = vadd.f32 %v6695_v57, %v6694_v11  ;;  %14325 = vmatprep.mubr.msk.bf16.mxu0 %vm6425_vm8, %v13235_v18  ;;  %v18997_v56 = vrot.slane %v7816_v17, 4  ;;  %v19003_v11 = vrot.slane %v7819_v43, 5 }
 0x5fc   : > { %v6698_v23 = vadd.f32 %v6697_v34, %v6696_v28 }
 0x5fe   : > { %v6699_v19 = vrot.slane %v6698_v23, 4 }
 0x600   : > { %v6700_v13 = vadd.f32 %v6699_v19, %v6698_v23 }
 0x602   : > { %v6701_v63 = vrot.slane %v6700_v13, 2 }
 0x604   : > { %v6702_v8 = vadd.f32 %v6701_v63, %v6700_v13 }
 0x606   : > { %v6703_v48 = vrot.slane %v6702_v8, 1 }
 0x608   : > { %v6704_v40 = vadd.f32 %v6703_v48, %v6702_v8 }
 0x60a   : > { %14287 = vmatmul.mubr.msk.f32.vlgmr.msra.gmra.mxu1 %vm6425_vm8, %v6704_v40 }
 0x6ca   : > { %v6774_v51 = vpop.f32.mrf.mxu1 }
 0x6cb   : > { %v6775_v30 = vadd.f32 1e-05, %v6774_v51 }
 0x6cc   : > { %v14288_v61 = vpop.f32.mrf.mxu1 }
 0x6cd   : > { %14873 = vrsqrt.f32 %v6775_v30 }
 0x6da   : > { %v14874_v3 = vpop.eup %14873 }
 0x6db   : > { %v6782_v42 = vrot.slane %v14874_v3, %v22367_v7 }
 0x6dd   : > { %v6783_v29 = vmul.f32 %v6782_v42, %v18762_v60  ;;  %v6784_v58 = vmul.f32 %v6782_v42, %v18766_v21  ;;  %v6785_v26 = vmul.f32 %v6782_v42, %v18770_v36  ;;  %v6786_v57 = vmul.f32 %v6782_v42, %v18774_v44 }
 0x6de   : > { %v6787_v28 = vmul.f32 %v6782_v42, %v18782_v10  ;;  %v6788_v34 = vmul.f32 %v6782_v42, %v18788_v9  ;;  %v6789_v7 = vmul.f32 %v6782_v42, %v18796_v20  ;;  %v6790_v23 = vmul.f32 %v6782_v42, %v18803_v12  ;;  %v19020_v9 = vld [vmem:[%s22042_s6] ss:$0 sm:$0xff] }
 0x6df   : > { %v6791_v19 = vmul.f32 %v6782_v42, %v18810_v46  ;;  %v6792_v60 = vmul.f32 %v6782_v42, %v18817_v39  ;;  %v6793_v21 = vmul.f32 %v6782_v42, %v18824_v53  ;;  %v6794_v36 = vmul.f32 %v6782_v42, %v18831_v6 }
 0x6e0   : > { %v6795_v13 = vmul.f32 %v6782_v42, %v18838_v41  ;;  %v6796_v44 = vmul.f32 %v6782_v42, %v18845_v52  ;;  %v6797_v10 = vmul.f32 %v6782_v42, %v18852_v35  ;;  %v6798_v20 = vmul.f32 %v6782_v42, %v18859_v22 }
 0x6e1   : > { %v6799_v12 = vmul.f32 %v6782_v42, %v18866_v55  ;;  %v6800_v46 = vmul.f32 %v6782_v42, %v18873_v0  ;;  %v6801_v39 = vmul.f32 %v6782_v42, %v18880_v38  ;;  %v6802_v53 = vmul.f32 %v6782_v42, %v18887_v27 }
 0x6e2   : > { %v6803_v6 = vmul.f32 %v6782_v42, %v18894_v1  ;;  %v6804_v41 = vmul.f32 %v6782_v42, %v18901_v45  ;;  %v6805_v52 = vmul.f32 %v6782_v42, %v18908_v59  ;;  %v6806_v35 = vmul.f32 %v6782_v42, %v18915_v32  ;;  %v19041_v45 = vld [vmem:[%s22043_s7] ss:$0 sm:$0xff] }
 0x6e3   : > { %v6807_v63 = vmul.f32 %v6782_v42, %v18922_v47  ;;  %v6808_v22 = vmul.f32 %v6782_v42, %v18929_v62  ;;  %v6809_v55 = vmul.f32 %v6782_v42, %v18936_v54  ;;  %v6810_v0 = vmul.f32 %v6782_v42, %v18943_v5 }
 0x6e4   : > { %v6821_v38 = vmul.f32 %v19020_v9, %v6783_v29  ;;  %v6822_v27 = vmul.f32 %v19020_v9, %v6784_v58  ;;  %v6823_v1 = vmul.f32 %v19020_v9, %v6785_v26  ;;  %v6811_v59 = vmul.f32 %v6782_v42, %v18950_v4 }
 0x6e5   : > { %v6812_v32 = vmul.f32 %v6782_v42, %v18957_v14  ;;  %v19046_v47 = vmul.f32 %v6782_v42, %v18964_v31  ;;  %v6824_v62 = vmul.f32 %v19020_v9, %v6786_v57  ;;  %v19050_v54 = vmul.f32 %v6782_v42, %v18971_v16 }
 0x6e6   : > { %v6825_v5 = vmul.f32 %v19020_v9, %v6787_v28  ;;  %v6826_v8 = vmul.f32 %v19020_v9, %v6788_v34  ;;  %v6827_v48 = vmul.f32 %v19020_v9, %v6789_v7  ;;  %v6828_v40 = vmul.f32 %v19020_v9, %v6790_v23 }
 0x6e7   : > { %v6829_v4 = vmul.f32 %v19020_v9, %v6791_v19  ;;  %v6830_v14 = vmul.f32 %v19020_v9, %v6792_v60  ;;  %v6831_v31 = vmul.f32 %v19020_v9, %v6793_v21  ;;  %v6832_v24 = vmul.f32 %v19020_v9, %v6794_v36 }
 0x6e8   : > { %v19061_v15 = vadd.f32 %v19041_v45, %v6821_v38  ;;  %v19064_v16 = vadd.f32 %v19041_v45, %v6822_v27  ;;  %v19067_v49 = vadd.f32 %v19041_v45, %v6823_v1  ;;  %v6833_v33 = vmul.f32 %v19020_v9, %v6795_v13 }
 0x6e9   : > { %v6834_v18 = vmul.f32 %v19020_v9, %v6796_v44  ;;  %v6835_v51 = vmul.f32 %v19020_v9, %v6797_v10  ;;  %v19076_v61 = vadd.f32 %v19041_v45, %v6824_v62  ;;  %v6836_v30 = vmul.f32 %v19020_v9, %v6798_v20 }
 0x6ea   : > { %v6837_v3 = vmul.f32 %v19020_v9, %v6799_v12  ;;  %v6838_v17 = vmul.f32 %v19020_v9, %v6800_v46  ;;  %v19083_v42 = vadd.f32 %v19041_v45, %v6825_v5  ;;  %v6839_v43 = vmul.f32 %v19020_v9, %v6801_v39  ;;  %v7181_v5 = vld [vmem:[#allocation3 + $0x8] sm:$0x1] }
 0x6eb   : > { %v6840_v29 = vmul.f32 %v19020_v9, %v6802_v53  ;;  %v19088_v58 = vmul.f32 %v19020_v9, %v6803_v6  ;;  %v19091_v26 = vadd.f32 %v19041_v45, %v6826_v8  ;;  %v19094_v57 = vadd.f32 %v19041_v45, %v6827_v48 }
 0x6ec   : > { %v13138_v28 = vmul.f32 -1.442695, %v19061_v15  ;;  %v13139_v34 = vmul.f32 -1.442695, %v19064_v16  ;;  %v13140_v7 = vmul.f32 -1.442695, %v19067_v49  ;;  %v19100_v23 = vmul.f32 %v19020_v9, %v6804_v41 }
 0x6ed   : > { %v19103_v19 = vmul.f32 %v19020_v9, %v6805_v52  ;;  %v19106_v60 = vadd.f32 %v19041_v45, %v6828_v40  ;;  %v13141_v21 = vmul.f32 -1.442695, %v19076_v61  ;;  %v19110_v36 = vmul.f32 %v19020_v9, %v6806_v35 }
 0x6ee   : > { %v19113_v13 = vadd.f32 %v19041_v45, %v6829_v4  ;;  %v13142_v44 = vmul.f32 -1.442695, %v19083_v42  ;;  %14875 = vpow2.f32 %v13138_v28  ;;  %v19117_v10 = vmul.f32 %v19020_v9, %v6807_v63 }
 0x6ef   : > { %v19120_v20 = vadd.f32 %v19041_v45, %v6830_v14  ;;  %v13143_v12 = vmul.f32 -1.442695, %v19091_v26  ;;  %14877 = vpow2.f32 %v13139_v34  ;;  %v19124_v46 = vmul.f32 %v19020_v9, %v6808_v22 }
 0x6f0   : > { %v19127_v39 = vadd.f32 %v19041_v45, %v6831_v31  ;;  %v13144_v53 = vmul.f32 -1.442695, %v19094_v57  ;;  %14879 = vpow2.f32 %v13140_v7  ;;  %v19131_v6 = vmul.f32 %v19020_v9, %v6809_v55 }
 0x6f1   : > { %v19134_v41 = vadd.f32 %v19041_v45, %v6832_v24  ;;  %v13145_v52 = vmul.f32 -1.442695, %v19106_v60  ;;  %14881 = vpow2.f32 %v13141_v21  ;;  %v19138_v35 = vmul.f32 %v19020_v9, %v6810_v0 }
 0x6f2   : > { %v19141_v63 = vadd.f32 %v19041_v45, %v6833_v33  ;;  %v13146_v22 = vmul.f32 -1.442695, %v19113_v13  ;;  %14883 = vpow2.f32 %v13142_v44  ;;  %v19145_v38 = vmul.f32 %v19020_v9, %v6811_v59 }
 0x6f3   : > { %v19148_v55 = vadd.f32 %v19041_v45, %v6834_v18  ;;  %v13147_v27 = vmul.f32 -1.442695, %v19120_v20  ;;  %14885 = vpow2.f32 %v13143_v12  ;;  %v19152_v1 = vmul.f32 %v19020_v9, %v6812_v32  ;;  %v19168_v32 = vld [vmem:[%s22045_s9 + $0x8] sm:$0xf] }
 0x6f4   : > { %v19155_v0 = vadd.f32 %v19041_v45, %v6835_v51  ;;  %v13148_v62 = vmul.f32 -1.442695, %v19127_v39  ;;  %14887 = vpow2.f32 %v13144_v53  ;;  %v19159_v8 = vadd.f32 %v19041_v45, %v6836_v30 }
 0x6f5   : > { %v19162_v59 = vadd.f32 %v19041_v45, %v6837_v3  ;;  %v13149_v48 = vmul.f32 -1.442695, %v19134_v41  ;;  %14889 = vpow2.f32 %v13145_v52  ;;  %v19171_v40 = vadd.f32 %v19041_v45, %v6838_v17 }
 0x6f6   : > { %v13150_v4 = vmul.f32 -1.442695, %v19141_v63  ;;  %14891 = vpow2.f32 %v13146_v22  ;;  %v8298_v14 = vsel %vm550_vm0, %v13202_v37, 0  ;;  %v13151_v31 = vmul.f32 -1.442695, %v19148_v55 }
 0x6f7   : > { %14893 = vpow2.f32 %v13147_v27  ;;  %14290 = vmatpush3.bf16.msra.mxu1 %v8298_v14  ;;  %v7182_v33 = vsel %vm18158_vm3, 0, %v7181_v5  ;;  %v7825_v18 = vshll.u32 %v18992_v2, 16  ;;  %v19180_v51 = vadd.f32 %v19041_v45, %v6839_v43  ;;  %v19190_v37 = vld [vmem:[%s22045_s9 + $0xc] sm:$0xf] }
 0x6f8   : > { %v13152_v30 = vmul.f32 -1.442695, %v19155_v0  ;;  %14895 = vpow2.f32 %v13148_v62  ;;  %7183 = vst [vmem:[#allocation3 + $0x8] sm:$0x1] %v7182_v33  ;;  %v7831_v3 = vrot.slane %v7829_v25, 4  ;;  %14643 = vmatprep.subr.msk.bf16.mxu1 %vm550_vm0, %v19168_v32  ;;  %v19193_v17 = vadd.f32 %v19041_v45, %v6840_v29  ;;  %14644 = vmatprep.subr.msk.bf16.mxu0 %vm550_vm0, %v19190_v37 }
 0x6f9   : > { %v13153_v43 = vmul.f32 -1.442695, %v19159_v8  ;;  %14897 = vpow2.f32 %v13149_v48  ;;  %v7827_v28 = vrot.slane %v7825_v18, 5  ;;  %v19200_v2 = vadd.f32 %v19041_v45, %v19088_v58 }
 0x6fa   : > { %v13154_v25 = vmul.f32 -1.442695, %v19162_v59  ;;  %14899 = vpow2.f32 %v13150_v4  ;;  %v7822_v34 = vor.u32 %v19003_v11, %v18997_v56  ;;  %v6851_v29 = vmul.f32 %v19020_v9, %v19046_v47 }
 0x6fb   : > { %v19205_v7 = vpop.eup %14875  ;;  %v19211_v21 = vadd.f32 %v19041_v45, %v19100_v23  ;;  %v13155_v44 = vmul.f32 -1.442695, %v19171_v40  ;;  %14901 = vpow2.f32 %v13151_v31  ;;  %v19218_v12 = vadd.f32 %v19041_v45, %v19103_v19 }
 0x6fc   : > { %v19214_v58 = vpop.eup %14877  ;;  %v13156_v56 = vmul.f32 -1.442695, %v19180_v51  ;;  %14903 = vpow2.f32 %v13152_v30  ;;  %v7832_v11 = vor.u32 %v7831_v3, %v7827_v28  ;;  %v6852_v47 = vmul.f32 %v19020_v9, %v19050_v54 }
 0x6fd   : > { %v19221_v53 = vpop.eup %14879  ;;  %v19227_v23 = vadd.f32 %v19041_v45, %v19110_v36  ;;  %v13157_v52 = vmul.f32 -1.442695, %v19193_v17  ;;  %14905 = vpow2.f32 %v13153_v43  ;;  %v19234_v19 = vadd.f32 %v19041_v45, %v19117_v10 }
 0x6fe   : > { %v19230_v22 = vpop.eup %14881  ;;  %v13158_v27 = vmul.f32 -1.442695, %v19200_v2  ;;  %14907 = vpow2.f32 %v13154_v25  ;;  %v7823_v62 = vrot.slane %v7822_v34, 4  ;;  %v19239_v9 = vadd.f32 %v19041_v45, %v19124_v46 }
 0x6ff   : > { %v14884_v5 = vpop.eup %14883  ;;  %v19243_v54 = vadd.f32 %v19041_v45, %v19131_v6  ;;  %v13159_v36 = vmul.f32 -1.442695, %v19211_v21  ;;  %14909 = vpow2.f32 %v13155_v44  ;;  %v7799_v48 = vld [vmem:[#allocation3 + $0x8] sm:$0x1]  ;;  %v13160_v10 = vmul.f32 -1.442695, %v19218_v12 }
 0x700   : > { %v14886_v4 = vpop.eup %14885  ;;  %14911 = vpow2.f32 %v13156_v56  ;;  %v7833_v14 = vrot.slane %v7832_v11, 4  ;;  %v7835_v31 = vshll.u32 %v7799_v48, 16  ;;  %v19249_v18 = vadd.f32 %v19041_v45, %v19138_v35 }
 0x701   : > { %22370 = vst [vmem:[#allocation34_spill] sm:$0xff] %v19243_v54  ;;  %v14888_v33 = vpop.eup %14887  ;;  %v19253_v46 = vadd.f32 %v19041_v45, %v19145_v38  ;;  %v13161_v6 = vmul.f32 -1.442695, %v19227_v23  ;;  %14913 = vpow2.f32 %v13157_v52  ;;  %v13162_v3 = vmul.f32 -1.442695, %v19234_v19 }
 0x702   : > { %22371 = vst [vmem:[#allocation24_spill] sm:$0xff] %v19249_v18  ;;  %v14890_v30 = vpop.eup %14889  ;;  %14915 = vpow2.f32 %v13158_v27  ;;  %v7828_v25 = vsel %vm15628_vm13, %v7823_v62, %v7827_v28  ;;  %v7837_v34 = vrot.slane %v7835_v31, 5  ;;  %v19261_v35 = vadd.f32 %v19041_v45, %v19152_v1 }
 0x703   : > { %22372 = vst [vmem:[#allocation8_spill] sm:$0xff] %v19253_v46  ;;  %v14892_v44 = vpop.eup %14891  ;;  %v13163_v56 = vmul.f32 -1.442695, %v19239_v9  ;;  %14917 = vpow2.f32 %v13159_v36  ;;  %v19265_v11 = vadd.f32 %v19041_v45, %v6851_v29  ;;  %v13164_v52 = vmul.f32 -1.442695, %v19243_v54 }
 0x704   : > { %22374 = vst [vmem:[#allocation45_spill] sm:$0xff] %v19261_v35  ;;  %v14894_v38 = vpop.eup %14893  ;;  %14919 = vpow2.f32 %v13160_v10  ;;  %v7838_v27 = vsel %vm15628_vm13, %v7833_v14, %v7837_v34  ;;  %v19271_v62 = vadd.f32 %v19041_v45, %v6852_v47  ;;  %v13165_v1 = vmul.f32 -1.442695, %v19249_v18 }
 0x705   : > { %22375 = vst [vmem:[#allocation43_spill] sm:$0xff] %v19265_v11  ;;  %v14896_v28 = vpop.eup %14895  ;;  %14921 = vpow2.f32 %v13161_v6  ;;  %v13203_v48 = vcombine.low %v7828_v25, %v7838_v27  ;;  %v13166_v36 = vmul.f32 -1.442695, %v19253_v46  ;;  %v13167_v24 = vmul.f32 -1.442695, %v19261_v35 }
 0x706   : > { %22376 = vst [vmem:[#allocation4_spill] sm:$0xff] %v19271_v62  ;;  %v14898_v31 = vpop.eup %14897  ;;  %14923 = vpow2.f32 %v13162_v3  ;;  %v13168_v14 = vmul.f32 -1.442695, %v19265_v11  ;;  %v13169_v47 = vmul.f32 -1.442695, %v19271_v62  ;;  %v6987_v25 = vadd.f32 1.0, %v19205_v7 }
 0x707   : > { %v14900_v29 = vpop.eup %14899  ;;  %14925 = vpow2.f32 %v13163_v56  ;;  %14291 = vmatprep.mubr.msk.bf16.mxu1 %vm6425_vm8, %v13203_v48  ;;  %v6988_v3 = vadd.f32 1.0, %v19214_v58  ;;  %v6989_v56 = vadd.f32 1.0, %v19221_v53  ;;  %v6991_v62 = vadd.f32 1.0, %v14884_v5 }
 0x708   : > { %v14902_v10 = vpop.eup %14901  ;;  %14927 = vpow2.f32 %v13164_v52  ;;  %v6990_v52 = vadd.f32 1.0, %v19230_v22  ;;  %v6993_v7 = vadd.f32 1.0, %v14888_v33  ;;  %v6994_v35 = vadd.f32 1.0, %v14890_v30 }
 0x709   : > { %v14904_v45 = vpop.eup %14903  ;;  %14929 = vpow2.f32 %v13165_v1  ;;  %v6996_v46 = vadd.f32 1.0, %v14894_v38  ;;  %v6997_v22 = vadd.f32 1.0, %v14896_v28  ;;  %v6998_v5 = vadd.f32 1.0, %v14898_v31 }
 0x70a   : > { %v14906_v6 = vpop.eup %14905  ;;  %14931 = vpow2.f32 %v13166_v36  ;;  %v6992_v36 = vadd.f32 1.0, %v14886_v4  ;;  %v6999_v4 = vadd.f32 1.0, %v14900_v29  ;;  %v19285_v30 = vsel %vm550_vm0, %v19168_v32, 0 }
 0x70b   : > { %v14908_v34 = vpop.eup %14907  ;;  %14933 = vpow2.f32 %v13167_v24  ;;  %22377 = vst [vmem:[#allocation22_spill] sm:$0xff] %v19285_v30  ;;  %v7001_v28 = vadd.f32 1.0, %v14904_v45 }
 0x70c   : > { %v14910_v27 = vpop.eup %14909  ;;  %14935 = vpow2.f32 %v13168_v14  ;;  %v6995_v14 = vadd.f32 1.0, %v14892_v44  ;;  %v19289_v44 = vsel %vm550_vm0, %v19190_v37, 0 }
 0x70d   : > { %v14912_v48 = vpop.eup %14911  ;;  %14937 = vpow2.f32 %v13169_v47  ;;  %v7004_v31 = vadd.f32 1.0, %v14910_v27 }
 0x70e   : > { %v14914_v43 = vpop.eup %14913  ;;  %14939 = vrcp.f32 %v6987_v25  ;;  %v7005_v29 = vadd.f32 1.0, %v14912_v48 }
 0x70f   : > { %v14916_v1 = vpop.eup %14915  ;;  %14941 = vrcp.f32 %v6988_v3 }
 0x710   : > { %v14918_v11 = vpop.eup %14917  ;;  %14943 = vrcp.f32 %v6989_v56  ;;  %v7000_v56 = vadd.f32 1.0, %v14902_v10 }
 0x711   : > { %v14920_v24 = vpop.eup %14919  ;;  %14945 = vrcp.f32 %v6990_v52  ;;  %v7003_v52 = vadd.f32 1.0, %v14908_v34 }
 0x712   : > { %v14922_v58 = vpop.eup %14921  ;;  %14947 = vrcp.f32 %v6991_v62  ;;  %v7002_v62 = vadd.f32 1.0, %v14906_v6 }
 0x713   : > { %v14924_v53 = vpop.eup %14923  ;;  %14949 = vrcp.f32 %v6992_v36  ;;  %v7006_v36 = vadd.f32 1.0, %v14914_v43  ;;  %v7010_v30 = vadd.f32 1.0, %v14922_v58 }
 0x714   : > { %v14926_v47 = vpop.eup %14925  ;;  %14951 = vrcp.f32 %v6993_v7  ;;  %v7008_v7 = vadd.f32 1.0, %v14918_v11  ;;  %v7011_v18 = vadd.f32 1.0, %v14924_v53 }
 0x715   : > { %v14928_v25 = vpop.eup %14927  ;;  %14953 = vrcp.f32 %v6994_v35  ;;  %v19291_v37 = vadd.f32 1.0, %v14926_v47 }
 0x716   : > { %v14930_v3 = vpop.eup %14929  ;;  %14955 = vrcp.f32 %v6995_v14  ;;  %v7009_v14 = vadd.f32 1.0, %v14920_v24  ;;  %v19294_v34 = vadd.f32 1.0, %v14928_v25 }
 0x717   : > { %v14932_v33 = vpop.eup %14931  ;;  %14957 = vrcp.f32 %v6996_v46  ;;  %v7007_v46 = vadd.f32 1.0, %v14916_v1  ;;  %v19296_v27 = vadd.f32 1.0, %v14930_v3 }
 0x718   : > { %v14934_v38 = vpop.eup %14933  ;;  %14959 = vrcp.f32 %v6997_v22  ;;  %v19299_v11 = vadd.f32 1.0, %v14932_v33 }
 0x719   : > { %v14936_v35 = vpop.eup %14935  ;;  %14961 = vrcp.f32 %v6998_v5  ;;  %v19301_v1 = vadd.f32 1.0, %v14934_v38 }
 0x71a   : > { %v14938_v10 = vpop.eup %14937  ;;  %14963 = vrcp.f32 %v6999_v4  ;;  %v19303_v53 = vadd.f32 1.0, %v14936_v35 }
 0x71b   : > { %v14940_v32 = vpop.eup %14939  ;;  %14965 = vrcp.f32 %v7000_v56  ;;  %v19306_v25 = vadd.f32 1.0, %v14938_v10 }
 0x71c   : > { %v14942_v45 = vpop.eup %14941  ;;  %v7083_v6 = vmul.f32 %v14940_v32, %v19061_v15  ;;  %14967 = vrcp.f32 %v7001_v28 }
 0x71d   : > { %v14944_v43 = vpop.eup %14943  ;;  %v7084_v48 = vmul.f32 %v14942_v45, %v19064_v16  ;;  %14969 = vrcp.f32 %v7002_v62 }
 0x71e   : > { %v14946_v24 = vpop.eup %14945  ;;  %v13600_v58 = vpack.c.bf16 %v7083_v6, %v7083_v6  ;;  %v7085_v47 = vmul.f32 %v14944_v43, %v19067_v49  ;;  %14971 = vrcp.f32 %v7003_v52 }
 0x71f   : > { %v14948_v15 = vpop.eup %14947  ;;  %v13601_v22 = vpack.c.bf16 %v7084_v48, %v7084_v48  ;;  %v7086_v5 = vmul.f32 %v14946_v24, %v19076_v61  ;;  %14973 = vrcp.f32 %v7004_v31  ;;  %v7654_v31 = vld [vmem:[#allocation3 + $0xc] sm:$0xf] }
 0x720   : > { %v14950_v16 = vpop.eup %14949  ;;  %v7332_v3 = vshrl.u32 %v13600_v58, 16  ;;  %v7335_v4 = vshll.u32 %v13600_v58, 16  ;;  %v13602_v33 = vpack.c.bf16 %v7085_v47, %v7085_v47  ;;  %14975 = vrcp.f32 %v7005_v29  ;;  %v7661_v47 = vld [vmem:[#allocation3 + $0x18] sm:$0xf] }
 0x721   : > { %v14952_v56 = vpop.eup %14951  ;;  %v7340_v38 = vshrl.u32 %v13601_v22, 16  ;;  %v7343_v28 = vshll.u32 %v13601_v22, 16  ;;  %v13603_v62 = vpack.c.bf16 %v7086_v5, %v7086_v5  ;;  %14977 = vrcp.f32 %v7006_v36 }
 0x722   : > { %v14954_v35 = vpop.eup %14953  ;;  %v7334_v49 = vrot.slane %v7332_v3, 7  ;;  %v7349_v52 = vshrl.u32 %v13602_v33, 16  ;;  %v7352_v32 = vshll.u32 %v13602_v33, 16  ;;  %14979 = vrcp.f32 %v7007_v46  ;;  %v7658_v46 = vld [vmem:[#allocation3 + $0x14] sm:$0x1] }
 0x723   : > { %v14956_v10 = vpop.eup %14955  ;;  %v7342_v45 = vrot.slane %v7340_v38, 7  ;;  %v7357_v29 = vshrl.u32 %v13603_v62, 16  ;;  %v7360_v6 = vshll.u32 %v13603_v62, 16  ;;  %14981 = vrcp.f32 %v7008_v7 }
 0x724   : > { %v14958_v43 = vpop.eup %14957  ;;  %v7337_v48 = vor.u32 %v7335_v4, %v7334_v49  ;;  %v7338_v36 = vrot.slane %v7334_v49, 4  ;;  %v7351_v24 = vrot.slane %v7349_v52, 7  ;;  %14983 = vrcp.f32 %v7009_v14  ;;  %v7756_v4 = vld [vmem:[#allocation3 + $0xbc] sm:$0x1] }
 0x725   : > { %v14960_v58 = vpop.eup %14959  ;;  %v7345_v22 = vor.u32 %v7343_v28, %v7342_v45  ;;  %v7347_v5 = vrot.slane %v7342_v45, 4  ;;  %v19315_v3 = vrot.slane %v7357_v29, 7  ;;  %14985 = vrcp.f32 %v7010_v30 }
 0x726   : > { %v14962_v33 = vpop.eup %14961  ;;  %v7655_v38 = vsel %vm19311_vm1, %v7337_v48, %v7654_v31  ;;  %v7354_v54 = vor.u32 %v7352_v32, %v7351_v24  ;;  %v7355_v62 = vrot.slane %v7351_v24, 4  ;;  %14987 = vrcp.f32 %v7011_v18 }
 0x727   : > { %v14964_v7 = vpop.eup %14963  ;;  %v7346_v49 = vsel %vm16054_vm15, %v7338_v36, %v7345_v22  ;;  %7656 = vst [vmem:[#allocation3 + $0xc] sm:$0xf] %v7655_v38  ;;  %v7362_v14 = vor.u32 %v7360_v6, %v19315_v3  ;;  %14989 = vrcp.f32 %v19291_v37  ;;  %v7364_v28 = vrot.slane %v19315_v3, 4 }
 0x728   : > { %v14966_v52 = vpop.eup %14965  ;;  %7657 = vst.msk [vmem:[#allocation3 + $0x10] sm:$0xf] %vm7115_vm5, %v7346_v49  ;;  %v7662_v30 = vsel %vm19311_vm1, %v7354_v54, %v7661_v47  ;;  %14991 = vrcp.f32 %v19294_v34  ;;  %v7659_v18 = vsel %vm18138_vm7, %v7347_v5, %v7658_v46  ;;  %v7087_v32 = vmul.f32 %v14948_v15, %v19083_v42 }
 0x729   : > { %v14968_v31 = vpop.eup %14967  ;;  %v7363_v45 = vsel %vm16054_vm15, %v7355_v62, %v7362_v14  ;;  %7663 = vst [vmem:[#allocation3 + $0x18] sm:$0xf] %v7662_v30  ;;  %14993 = vrcp.f32 %v19296_v27  ;;  %v7088_v37 = vmul.f32 %v14950_v16, %v19091_v26  ;;  %v7089_v29 = vmul.f32 %v14952_v56, %v19094_v57  ;;  %7660 = vst [vmem:[#allocation3 + $0x14] sm:$0x1] %v7659_v18 }
 0x72a   : > { %v14970_v54 = vpop.eup %14969  ;;  %7664 = vst.msk [vmem:[#allocation3 + $0x1c] sm:$0xf] %vm7115_vm5, %v7363_v45  ;;  %14995 = vrcp.f32 %v19299_v11  ;;  %v7090_v34 = vmul.f32 %v14954_v35, %v19106_v60  ;;  %v7091_v42 = vmul.f32 %v14956_v10, %v19113_v13  ;;  %v7092_v15 = vmul.f32 %v14958_v43, %v19120_v20 }
 0x72b   : > { %v14972_v6 = vpop.eup %14971  ;;  %14997 = vrcp.f32 %v19301_v1  ;;  %v7093_v27 = vmul.f32 %v14960_v58, %v19127_v39  ;;  %v7094_v26 = vmul.f32 %v14962_v33, %v19134_v41  ;;  %v7095_v57 = vmul.f32 %v14964_v7, %v19141_v63  ;;  %v7665_v7 = vld [vmem:[#allocation3 + $0x20] sm:$0x1] }
 0x72c   : > { %v14974_v16 = vpop.eup %14973  ;;  %14999 = vrcp.f32 %v19303_v53  ;;  %v7096_v11 = vmul.f32 %v14966_v52, %v19148_v55  ;;  %v7097_v60 = vmul.f32 %v14968_v31, %v19155_v0  ;;  %v7098_v13 = vmul.f32 %v14970_v54, %v19159_v8 }
 0x72d   : > { %v14976_v56 = vpop.eup %14975  ;;  %15001 = vrcp.f32 %v19306_v25  ;;  %v7099_v20 = vmul.f32 %v14972_v6, %v19162_v59  ;;  %v7100_v39 = vmul.f32 %v14974_v16, %v19171_v40  ;;  %v19352_v1 = vpack.c.bf16 %v7087_v32, %v7087_v32  ;;  %v22384_v6 = vld [vmem:[#allocation34_spill] sm:$0xff] }
 0x72e   : > { %v14978_v41 = vpop.eup %14977  ;;  %v19354_v63 = vld [vmem:[#allocation3 + $0xc] sm:$0xf]  ;;  %v7101_v53 = vmul.f32 %v14976_v56, %v19180_v51  ;;  %v19357_v35 = vpack.c.bf16 %v7088_v37, %v7088_v37  ;;  %v19359_v55 = vpack.c.bf16 %v7089_v29, %v7089_v29  ;;  %v19361_v0 = vpack.c.bf16 %v7090_v34, %v7090_v34 }
 0x72f   : > { %v14980_v8 = vpop.eup %14979  ;;  %v19363_v10 = vld [vmem:[#allocation3 + $0x10] sm:$0xf]  ;;  %v7102_v59 = vmul.f32 %v14978_v41, %v19193_v17  ;;  %v19366_v25 = vpack.c.bf16 %v7091_v42, %v7091_v42  ;;  %v19368_v40 = vpack.c.bf16 %v7092_v15, %v7092_v15  ;;  %v19370_v43 = vpack.c.bf16 %v7093_v27, %v7093_v27 }
 0x730   : > { %v14982_v48 = vpop.eup %14981  ;;  %v13236_v51 = vcombine.low %v19354_v63, %v19363_v10  ;;  %v7770_v36 = vld [vmem:[#allocation3 + $0x18] sm:$0xf]  ;;  %v7103_v24 = vmul.f32 %v14980_v8, %v19200_v2  ;;  %v19375_v58 = vpack.c.bf16 %v7094_v26, %v7094_v26  ;;  %v19377_v47 = vpack.c.bf16 %v7095_v57, %v7095_v57 }
 0x731   : > { %v14984_v46 = vpop.eup %14983  ;;  %v19379_v22 = vld [vmem:[#allocation3 + $0x1c] sm:$0xf]  ;;  %v7864_v17 = vshrl.u32 %v7770_v36, 16  ;;  %v7867_v5 = vshll.u32 %v7770_v36, 16  ;;  %v7104_v33 = vmul.f32 %v14982_v48, %v19211_v21  ;;  %v19382_v38 = vpack.c.bf16 %v7096_v11, %v7096_v11 }
 0x732   : > { %22381 = vst [vmem:[#allocation10_spill] sm:$0xff] %v19379_v22  ;;  %v14986_v62 = vpop.eup %14985  ;;  %14326 = vmatmul.mubr.msk.bf16.vlgmr.msra.gmra.mxu0 %vm6425_vm8, %v13236_v51  ;;  %v13237_v2 = vcombine.low %v7770_v36, %v19379_v22  ;;  %v7105_v49 = vmul.f32 %v14984_v46, %v19218_v12  ;;  %v19388_v14 = vpack.c.bf16 %v7097_v60, %v7097_v60  ;;  %v22385_v11 = vld [vmem:[#allocation24_spill] sm:$0xff]  ;;  %v7369_v56 = vshll.u32 %v19352_v1, 16  ;;  %v22387_v51 = vld [vmem:[#allocation45_spill] sm:$0xff] }
 0x733   : > { %v14988_v52 = vpop.eup %14987  ;;  %v19390_v30 = vrot.slane %v7864_v17, 4  ;;  %v19392_v18 = vrot.slane %v7867_v5, 5  ;;  %v7106_v21 = vmul.f32 %v14986_v62, %v19227_v23  ;;  %v19395_v32 = vpack.c.bf16 %v7098_v13, %v7098_v13  ;;  %14392 = vmatpush3.bf16.msra.mxu0 %v19289_v44 }
 0x734   : > { %v14990_v31 = vpop.eup %14989  ;;  %14329 = vmatprep.mubr.msk.bf16.mxu0 %vm6425_vm8, %v13237_v2  ;;  %v7107_v45 = vmul.f32 %v14988_v52, %v19234_v19  ;;  %v19400_v37 = vpack.c.bf16 %v7099_v20, %v7099_v20  ;;  %v19402_v12 = vpack.c.bf16 %v7100_v39, %v7100_v39  ;;  %v19404_v29 = vpack.c.bf16 %v7101_v53, %v7101_v53  ;;  %v22386_v39 = vld [vmem:[#allocation8_spill] sm:$0xff] }
 0x735   : > { %22382 = vst [vmem:[#allocation44_spill] sm:$0xff] %v19390_v30  ;;  %22383 = vst [vmem:[#allocation20_spill] sm:$0xff] %v19392_v18  ;;  %v14992_v54 = vpop.eup %14991  ;;  %v7108_v34 = vmul.f32 %v14990_v31, %v19239_v9  ;;  %v19407_v42 = vpack.c.bf16 %v7102_v59, %v7102_v59  ;;  %v19409_v23 = vpack.c.bf16 %v7103_v24, %v7103_v24  ;;  %v7366_v9 = vshrl.u32 %v19352_v1, 16  ;;  %v22389_v52 = vld [vmem:[#allocation4_spill] sm:$0xff]  ;;  %v7724_v18 = vld [vmem:[#allocation3 + $0x84] sm:$0xf] }
 0x736   : > { %v19411_v15 = vpack.c.bf16 %v7104_v33, %v7104_v33  ;;  %v14994_v44 = vpop.eup %14993  ;;  %v7109_v27 = vmul.f32 %v14992_v54, %v22384_v6  ;;  %v19414_v26 = vpack.c.bf16 %v7105_v49, %v7105_v49  ;;  %v19416_v19 = vpack.c.bf16 %v7106_v21, %v7106_v21  ;;  %v22388_v33 = vld [vmem:[#allocation43_spill] sm:$0xff]  ;;  %v13398_v54 = vld [vmem:[%s22045_s9 + $0x14] sm:$0xf] }
 0x737   : > { %v19418_v57 = vpack.c.bf16 %v7107_v45, %v7107_v45  ;;  %v14996_v16 = vpop.eup %14995  ;;  %v7110_v60 = vmul.f32 %v14994_v44, %v22385_v11  ;;  %v19421_v13 = vpack.c.bf16 %v7108_v34, %v7108_v34  ;;  %v7374_v8 = vshrl.u32 %v19357_v35, 16  ;;  %14646 = vmatprep.subr.msk.bf16.mxu0 %vm550_vm0, %v13398_v54 }
 0x738   : > { %v14998_v20 = vpop.eup %14997  ;;  %v7111_v41 = vmul.f32 %v14996_v16, %v22386_v39  ;;  %v19426_v53 = vpack.c.bf16 %v7109_v27, %v7109_v27  ;;  %v7377_v59 = vshll.u32 %v19357_v35, 16  ;;  %v7368_v46 = vrot.slane %v7366_v9, 7 }
 0x739   : > { %v15000_v48 = vpop.eup %14999  ;;  %v7112_v36 = vmul.f32 %v14998_v20, %v22387_v51  ;;  %v19431_v24 = vpack.c.bf16 %v7110_v60, %v7110_v60  ;;  %v7383_v17 = vshrl.u32 %v19359_v55, 16  ;;  %v19437_v2 = vrot.slane %v7374_v8, 7 }
 0x73a   : > { %v15002_v5 = vpop.eup %15001  ;;  %v7113_v1 = vmul.f32 %v15000_v48, %v22388_v33  ;;  %v19435_v62 = vpack.c.bf16 %v7111_v41, %v7111_v41  ;;  %v7386_v49 = vshll.u32 %v19359_v55, 16  ;;  %v19443_v31 = vor.u32 %v7369_v56, %v7368_v46 }
 0x73b   : > { %v7114_v21 = vmul.f32 %v15002_v5, %v22389_v52  ;;  %v19441_v35 = vpack.c.bf16 %v7112_v36, %v7112_v36  ;;  %v7372_v45 = vrot.slane %v7368_v46, 4  ;;  %v7379_v44 = vor.u32 %v7377_v59, %v19437_v2 }
 0x73c   : > { %v19448_v34 = vpack.c.bf16 %v7113_v1, %v7113_v1  ;;  %v7385_v27 = vrot.slane %v7383_v17, 7  ;;  %v7391_v16 = vshrl.u32 %v19361_v0, 16  ;;  %v7394_v11 = vshll.u32 %v19361_v0, 16 }
 0x73d   : > { %v19453_v55 = vpack.c.bf16 %v7114_v21, %v7114_v21  ;;  %v7400_v60 = vshrl.u32 %v19366_v25, 16  ;;  %v7380_v9 = vsel %vm16054_vm15, %v7372_v45, %v7379_v44  ;;  %v7403_v39 = vshll.u32 %v19366_v25, 16  ;;  %v7710_v44 = vld [vmem:[#allocation3 + $0x6c] sm:$0xf] }
 0x73e   : > { %v19460_v56 = vor.u32 %v7386_v49, %v7385_v27  ;;  %v7389_v20 = vrot.slane %v7385_v27, 4  ;;  %v19463_v41 = vrot.slane %v7391_v16, 7  ;;  %v7408_v59 = vshrl.u32 %v19368_v40, 16  ;;  %7671 = vst.msk [vmem:[#allocation3 + $0x28] sm:$0xf] %vm7115_vm5, %v7380_v9 }
 0x73f   : > { %v7402_v8 = vrot.slane %v7400_v60, 7  ;;  %v7411_v48 = vshll.u32 %v19368_v40, 16  ;;  %v7417_v0 = vshrl.u32 %v19370_v43, 16  ;;  %v7420_v51 = vshll.u32 %v19370_v43, 16  ;;  %v7693_v60 = vld [vmem:[#allocation3 + $0x50] sm:$0x1] }
 0x740   : > { %v7425_v36 = vshrl.u32 %v19375_v58, 16  ;;  %v7428_v46 = vshll.u32 %v19375_v58, 16  ;;  %v7396_v17 = vor.u32 %v7394_v11, %v19463_v41  ;;  %v19476_v1 = vrot.slane %v7408_v59, 7 }
 0x741   : > { %v19474_v5 = vor.u32 %v7403_v39, %v7402_v8  ;;  %v7406_v33 = vrot.slane %v7402_v8, 4  ;;  %v7419_v40 = vrot.slane %v7417_v0, 7  ;;  %v7434_v52 = vshrl.u32 %v19377_v47, 16 }
 0x742   : > { %v19478_v49 = vrot.slane %v7425_v36, 7  ;;  %v7397_v43 = vsel %vm16054_vm15, %v7389_v20, %v7396_v17  ;;  %v7437_v21 = vshll.u32 %v19377_v47, 16  ;;  %v7442_v58 = vshrl.u32 %v19382_v38, 16 }
 0x743   : > { %v7445_v45 = vshll.u32 %v19382_v38, 16  ;;  %v7413_v54 = vor.u32 %v7411_v48, %v19476_v1  ;;  %v19488_v27 = vor.u32 %v7420_v51, %v7419_v40  ;;  %v7423_v16 = vrot.slane %v7419_v40, 4  ;;  %7678 = vst.msk [vmem:[#allocation3 + $0x34] sm:$0xf] %vm7115_vm5, %v7397_v43 }
 0x744   : > { %v7430_v11 = vor.u32 %v7428_v46, %v19478_v49  ;;  %v7436_v9 = vrot.slane %v7434_v52, 7  ;;  %v19493_v20 = vrot.slane %v7442_v58, 7  ;;  %v7451_v38 = vshrl.u32 %v19388_v14, 16 }
 0x745   : > { %v7414_v47 = vsel %vm16054_vm15, %v7406_v33, %v7413_v54  ;;  %v7454_v39 = vshll.u32 %v19388_v14, 16  ;;  %v7459_v8 = vshrl.u32 %v19395_v32, 16  ;;  %v7462_v33 = vshll.u32 %v19395_v32, 16 }
 0x746   : > { %v7431_v59 = vsel %vm16054_vm15, %v7423_v16, %v7430_v11  ;;  %v19502_v48 = vor.u32 %v7437_v21, %v7436_v9  ;;  %v7440_v0 = vrot.slane %v7436_v9, 4  ;;  %v7447_v51 = vor.u32 %v7445_v45, %v19493_v20  ;;  %7685 = vst.msk [vmem:[#allocation3 + $0x40] sm:$0xf] %vm7115_vm5, %v7414_v47 }
 0x747   : > { %v7453_v46 = vrot.slane %v7451_v38, 7  ;;  %v19507_v17 = vrot.slane %v7459_v8, 7  ;;  %7692 = vst.msk [vmem:[#allocation3 + $0x4c] sm:$0xf] %vm7115_vm5, %v7431_v59  ;;  %v7468_v40 = vshrl.u32 %v19400_v37, 16  ;;  %v7471_v52 = vshll.u32 %v19400_v37, 16 }
 0x748   : > { %v7448_v14 = vsel %vm16054_vm15, %v7440_v0, %v7447_v51  ;;  %v7476_v43 = vshrl.u32 %v19402_v12, 16  ;;  %v7479_v11 = vshll.u32 %v19402_v12, 16  ;;  %v7485_v9 = vshrl.u32 %v19404_v29, 16  ;;  %v7686_v51 = vld [vmem:[#allocation3 + $0x44] sm:$0x1] }
 0x749   : > { %v19516_v21 = vor.u32 %v7454_v39, %v7453_v46  ;;  %v7457_v58 = vrot.slane %v7453_v46, 4  ;;  %v7464_v45 = vor.u32 %v7462_v33, %v19507_v17  ;;  %7699 = vst.msk [vmem:[#allocation3 + $0x58] sm:$0xf] %vm7115_vm5, %v7448_v14  ;;  %v7470_v32 = vrot.slane %v7468_v40, 7 }
 0x74a   : > { %v19521_v16 = vrot.slane %v7476_v43, 7  ;;  %v7488_v47 = vshll.u32 %v19404_v29, 16  ;;  %v7493_v38 = vshrl.u32 %v19407_v42, 16  ;;  %v7496_v39 = vshll.u32 %v19407_v42, 16 }
 0x74b   : > { %v7465_v37 = vsel %vm16054_vm15, %v7457_v58, %v7464_v45  ;;  %v19530_v8 = vor.u32 %v7471_v52, %v7470_v32  ;;  %v7474_v59 = vrot.slane %v7470_v32, 4  ;;  %v7487_v12 = vrot.slane %v7485_v9, 7  ;;  %v7679_v32 = vld [vmem:[#allocation3 + $0x38] sm:$0x1] }
 0x74c   : > { %v7481_v0 = vor.u32 %v7479_v11, %v19521_v16  ;;  %7706 = vst.msk [vmem:[#allocation3 + $0x64] sm:$0xf] %vm7115_vm5, %v7465_v37  ;;  %v19535_v46 = vrot.slane %v7493_v38, 7  ;;  %v7502_v33 = vshrl.u32 %v19409_v23, 16  ;;  %v7505_v29 = vshll.u32 %v19409_v23, 16 }
 0x74d   : > { %v7510_v42 = vshrl.u32 %v19411_v15, 16  ;;  %v7513_v40 = vshll.u32 %v19411_v15, 16  ;;  %v7519_v52 = vshrl.u32 %v19414_v26, 16  ;;  %v19544_v43 = vor.u32 %v7488_v47, %v7487_v12 }
 0x74e   : > { %v7482_v14 = vsel %vm16054_vm15, %v7474_v59, %v7481_v0  ;;  %v7491_v58 = vrot.slane %v7487_v12, 4  ;;  %v7498_v45 = vor.u32 %v7496_v39, %v19535_v46  ;;  %v7504_v11 = vrot.slane %v7502_v33, 7  ;;  %v7672_v33 = vld [vmem:[#allocation3 + $0x2c] sm:$0x1] }
 0x74f   : > { %7713 = vst.msk [vmem:[#allocation3 + $0x70] sm:$0xf] %vm7115_vm5, %v7482_v14  ;;  %v19549_v23 = vrot.slane %v7510_v42, 7  ;;  %v7521_v9 = vrot.slane %v7519_v52, 7  ;;  %v7522_v37 = vshll.u32 %v19414_v26, 16  ;;  %v7527_v38 = vshrl.u32 %v19416_v19, 16 }
 0x750   : > { %v7499_v15 = vsel %vm16054_vm15, %v7491_v58, %v7498_v45  ;;  %v7530_v47 = vshll.u32 %v19416_v19, 16  ;;  %v7536_v59 = vshrl.u32 %v19418_v57, 16  ;;  %v19557_v39 = vor.u32 %v7505_v29, %v7504_v11 }
 0x751   : > { %v7508_v0 = vrot.slane %v7504_v11, 4  ;;  %v7515_v12 = vor.u32 %v7513_v40, %v19549_v23  ;;  %7720 = vst.msk [vmem:[#allocation3 + $0x7c] sm:$0xf] %vm7115_vm5, %v7499_v15  ;;  %v19562_v14 = vor.u32 %v7522_v37, %v7521_v9  ;;  %v7525_v26 = vrot.slane %v7521_v9, 4 }
 0x752   : > { %v19564_v42 = vrot.slane %v7527_v38, 7  ;;  %v7538_v52 = vrot.slane %v7536_v59, 7  ;;  %v7539_v58 = vshll.u32 %v19418_v57, 16  ;;  %v7544_v29 = vshrl.u32 %v19421_v13, 16 }
 0x753   : > { %v7516_v19 = vsel %vm16054_vm15, %v7508_v0, %v7515_v12  ;;  %v7547_v45 = vshll.u32 %v19421_v13, 16  ;;  %v7553_v37 = vshrl.u32 %v19426_v53, 16  ;;  %v7556_v59 = vshll.u32 %v19426_v53, 16  ;;  %v7675_v53 = vld [vmem:[#allocation3 + $0x30] sm:$0xf] }
 0x754   : > { %v7532_v40 = vor.u32 %v7530_v47, %v19564_v42  ;;  %v7542_v15 = vrot.slane %v7538_v52, 4  ;;  %7727 = vst.msk [vmem:[#allocation3 + $0x88] sm:$0xf] %vm7115_vm5, %v7516_v19  ;;  %v19575_v9 = vor.u32 %v7539_v58, %v7538_v52  ;;  %v19577_v38 = vrot.slane %v7544_v29, 7  ;;  %v7668_v29 = vld [vmem:[#allocation3 + $0x24] sm:$0xf] }
 0x755   : > { %v7561_v57 = vshrl.u32 %v19431_v24, 16  ;;  %v7555_v0 = vrot.slane %v7553_v37, 7  ;;  %v7564_v47 = vshll.u32 %v19431_v24, 16  ;;  %v7570_v12 = vshrl.u32 %v19435_v62, 16 }
 0x756   : > { %v7533_v13 = vsel %vm16054_vm15, %v7525_v26, %v7532_v40  ;;  %v7549_v11 = vor.u32 %v7547_v45, %v19577_v38  ;;  %v7573_v58 = vshll.u32 %v19435_v62, 16  ;;  %v7578_v37 = vshrl.u32 %v19441_v35, 16 }
 0x757   : > { %v19587_v19 = vrot.slane %v7561_v57, 7  ;;  %7734 = vst.msk [vmem:[#allocation3 + $0x94] sm:$0xf] %vm7115_vm5, %v7533_v13  ;;  %v19591_v26 = vor.u32 %v7556_v59, %v7555_v0  ;;  %v7559_v40 = vrot.slane %v7555_v0, 4  ;;  %v7572_v24 = vrot.slane %v7570_v12, 7 }
 0x758   : > { %v7550_v45 = vsel %vm16054_vm15, %v7542_v15, %v7549_v11  ;;  %v7581_v62 = vshll.u32 %v19441_v35, 16  ;;  %v7682_v13 = vld [vmem:[#allocation3 + $0x3c] sm:$0xf]  ;;  %v19601_v36 = vrot.slane %v7578_v37, 7  ;;  %v7587_v0 = vshrl.u32 %v19448_v34, 16 }
 0x759   : > { %v7566_v57 = vor.u32 %v7564_v47, %v19587_v19  ;;  %v19599_v54 = vor.u32 %v7573_v58, %v7572_v24  ;;  %v7576_v59 = vrot.slane %v7572_v24, 4  ;;  %7741 = vst.msk [vmem:[#allocation3 + $0xa0] sm:$0xf] %vm7115_vm5, %v7550_v45  ;;  %v7689_v12 = vld [vmem:[#allocation3 + $0x48] sm:$0xf]  ;;  %v7590_v35 = vshll.u32 %v19448_v34, 16 }
 0x75a   : > { %v7696_v11 = vld [vmem:[#allocation3 + $0x54] sm:$0xf]  ;;  %v7700_v15 = vld [vmem:[#allocation3 + $0x5c] sm:$0x1]  ;;  %v7595_v52 = vshrl.u32 %v19453_v55, 16  ;;  %v7598_v58 = vshll.u32 %v19453_v55, 16  ;;  %v7583_v25 = vor.u32 %v7581_v62, %v19601_v36  ;;  %v7666_v22 = vsel %vm18138_vm7, %v7364_v28, %v7665_v7 }
 0x75b   : > { %v7567_v47 = vsel %vm16054_vm15, %v7559_v40, %v7566_v57  ;;  %v7703_v24 = vld [vmem:[#allocation3 + $0x60] sm:$0xf]  ;;  %v7707_v37 = vld [vmem:[#allocation3 + $0x68] sm:$0x1]  ;;  %v7589_v6 = vrot.slane %v7587_v0, 7  ;;  %v7669_v62 = vsel %vm19311_vm1, %v19443_v31, %v7668_v29  ;;  %v22390_v0 = vrot.slane %v19437_v2, 4 }
 0x75c   : > { %7748 = vst.msk [vmem:[#allocation3 + $0xac] sm:$0xf] %vm7115_vm5, %v7567_v47  ;;  %v7717_v34 = vld [vmem:[#allocation3 + $0x78] sm:$0xf]  ;;  %v7721_v40 = vld [vmem:[#allocation3 + $0x80] sm:$0x1]  ;;  %v7676_v28 = vsel %vm19311_vm1, %v19460_v56, %v7675_v53 }
 0x75d   : > { %v7714_v57 = vld [vmem:[#allocation3 + $0x74] sm:$0x1]  ;;  %v19617_v55 = vrot.slane %v7595_v52, 7  ;;  %7667 = vst [vmem:[#allocation3 + $0x20] sm:$0x1] %v7666_v22  ;;  %v7673_v3 = vsel %vm18138_vm7, %v22390_v0, %v7672_v33  ;;  %v7584_v52 = vsel %vm16054_vm15, %v7576_v59, %v7583_v25  ;;  %v19631_v22 = vor.u32 %v7590_v35, %v7589_v6 }
 0x75e   : > { %v7731_v7 = vld [vmem:[#allocation3 + $0x90] sm:$0xf]  ;;  %v7735_v47 = vld [vmem:[#allocation3 + $0x98] sm:$0x1]  ;;  %v7728_v45 = vld [vmem:[#allocation3 + $0x8c] sm:$0x1]  ;;  %v7683_v25 = vsel %vm19311_vm1, %v19474_v5, %v7682_v13 }
 0x75f   : > { %v7593_v30 = vrot.slane %v7589_v6, 4  ;;  %7670 = vst [vmem:[#allocation3 + $0x24] sm:$0xf] %v7669_v62  ;;  %7674 = vst [vmem:[#allocation3 + $0x2c] sm:$0x1] %v7673_v3  ;;  %v22391_v2 = vrot.slane %v19463_v41, 4  ;;  %v7600_v56 = vor.u32 %v7598_v58, %v19617_v55  ;;  %v7690_v58 = vsel %vm19311_vm1, %v19488_v27, %v7689_v12 }
 0x760   : > { %7677 = vst [vmem:[#allocation3 + $0x30] sm:$0xf] %v7676_v28  ;;  %v7745_v33 = vld [vmem:[#allocation3 + $0xa8] sm:$0xf]  ;;  %v7738_v29 = vld [vmem:[#allocation3 + $0x9c] sm:$0xf] }
 0x761   : > { %v7680_v31 = vsel %vm18138_vm7, %v22391_v2, %v7679_v32  ;;  %v7602_v53 = vrot.slane %v19617_v55, 4  ;;  %v22392_v6 = vrot.slane %v19476_v1, 4  ;;  %7755 = vst.msk [vmem:[#allocation3 + $0xb8] sm:$0xf] %vm7115_vm5, %v7584_v52  ;;  %v7749_v41 = vld [vmem:[#allocation3 + $0xb0] sm:$0x1]  ;;  %v7697_v1 = vsel %vm19311_vm1, %v19502_v48, %v7696_v11 }
 0x762   : > { %7681 = vst [vmem:[#allocation3 + $0x38] sm:$0x1] %v7680_v31  ;;  %v7742_v32 = vld [vmem:[#allocation3 + $0xa4] sm:$0x1]  ;;  %v7759_v35 = vld [vmem:[#allocation3 + $0xc0] sm:$0xf]  ;;  %v7601_v0 = vsel %vm16054_vm15, %v7593_v30, %v7600_v56 }
 0x763   : > { %v7687_v59 = vsel %vm18138_vm7, %v22392_v6, %v7686_v51  ;;  %7684 = vst [vmem:[#allocation3 + $0x3c] sm:$0xf] %v7683_v25  ;;  %v22393_v55 = vrot.slane %v19478_v49, 4  ;;  %v22394_v51 = vrot.slane %v19493_v20, 4  ;;  %v7752_v62 = vld [vmem:[#allocation3 + $0xb4] sm:$0xf]  ;;  %v7704_v49 = vsel %vm19311_vm1, %v19516_v21, %v7703_v24 }
 0x764   : > { %7688 = vst [vmem:[#allocation3 + $0x44] sm:$0x1] %v7687_v59  ;;  %7691 = vst [vmem:[#allocation3 + $0x48] sm:$0xf] %v7690_v58  ;;  %v22395_v27 = vrot.slane %v19507_v17, 4  ;;  %v7711_v20 = vsel %vm19311_vm1, %v19530_v8, %v7710_v44  ;;  %v22396_v30 = vrot.slane %v19521_v16, 4  ;;  %v7718_v17 = vsel %vm19311_vm1, %v19544_v43, %v7717_v34 }
 0x765   : > { %v7694_v5 = vsel %vm18138_vm7, %v22393_v55, %v7693_v60  ;;  %v7701_v13 = vsel %vm18138_vm7, %v22394_v51, %v7700_v15  ;;  %7698 = vst [vmem:[#allocation3 + $0x54] sm:$0xf] %v7697_v1  ;;  %v7763_v48 = vld [vmem:[#allocation3 + $0xc8] sm:$0x1]  ;;  %7705 = vst [vmem:[#allocation3 + $0x60] sm:$0xf] %v7704_v49  ;;  %v7725_v44 = vsel %vm19311_vm1, %v19557_v39, %v7724_v18 }
 0x766   : > { %7695 = vst [vmem:[#allocation3 + $0x50] sm:$0x1] %v7694_v5  ;;  %7702 = vst [vmem:[#allocation3 + $0x5c] sm:$0x1] %v7701_v13  ;;  %v7708_v60 = vsel %vm18138_vm7, %v22395_v27, %v7707_v37  ;;  %v7715_v12 = vsel %vm18138_vm7, %v22396_v30, %v7714_v57  ;;  %v22397_v21 = vrot.slane %v19535_v46, 4  ;;  %v22398_v16 = vrot.slane %v19549_v23, 4 }
 0x767   : > { %7709 = vst [vmem:[#allocation3 + $0x68] sm:$0x1] %v7708_v60  ;;  %7712 = vst [vmem:[#allocation3 + $0x6c] sm:$0xf] %v7711_v20  ;;  %v19688_v8 = vld [vmem:[#allocation3 + $0x28] sm:$0xf]  ;;  %v7732_v43 = vsel %vm19311_vm1, %v19562_v14, %v7731_v7  ;;  %v7739_v39 = vsel %vm19311_vm1, %v19575_v9, %v7738_v29  ;;  %v7746_v14 = vsel %vm19311_vm1, %v19591_v26, %v7745_v33 }
 0x768   : > { %v7722_v11 = vsel %vm18138_vm7, %v22397_v21, %v7721_v40  ;;  %7762 = vst.msk [vmem:[#allocation3 + $0xc4] sm:$0xf] %vm7115_vm5, %v7601_v0  ;;  %7716 = vst [vmem:[#allocation3 + $0x74] sm:$0x1] %v7715_v12  ;;  %v7729_v46 = vsel %vm18138_vm7, %v22398_v16, %v7728_v45  ;;  %v22399_v15 = vrot.slane %v19564_v42, 4  ;;  %v22400_v23 = vrot.slane %v19577_v38, 4 }
 0x769   : > { %7719 = vst [vmem:[#allocation3 + $0x78] sm:$0xf] %v7718_v17  ;;  %7723 = vst [vmem:[#allocation3 + $0x80] sm:$0x1] %v7722_v11  ;;  %v22401_v42 = vrot.slane %v19587_v19, 4  ;;  %v7753_v9 = vsel %vm19311_vm1, %v19599_v54, %v7752_v62  ;;  %v22402_v38 = vrot.slane %v19601_v36, 4  ;;  %v7760_v19 = vsel %vm19311_vm1, %v19631_v22, %v7759_v35 }
 0x76a   : > { %7726 = vst [vmem:[#allocation3 + $0x84] sm:$0xf] %v7725_v44  ;;  %v7736_v18 = vsel %vm18138_vm7, %v22399_v15, %v7735_v47  ;;  %7730 = vst [vmem:[#allocation3 + $0x8c] sm:$0x1] %v7729_v46  ;;  %v7743_v24 = vsel %vm18138_vm7, %v22400_v23, %v7742_v32  ;;  %v19718_v45 = vld [vmem:[#allocation3 + $0x14] sm:$0x1]  ;;  %v7764_v34 = vsel %vm18138_vm7, %v7602_v53, %v7763_v48 }
 0x76b   : > { %7733 = vst [vmem:[#allocation3 + $0x90] sm:$0xf] %v7732_v43  ;;  %7737 = vst [vmem:[#allocation3 + $0x98] sm:$0x1] %v7736_v18  ;;  %v7750_v37 = vsel %vm18138_vm7, %v22401_v42, %v7749_v41  ;;  %v7757_v26 = vsel %vm18138_vm7, %v22402_v38, %v7756_v4  ;;  %v7772_v40 = vld [vmem:[#allocation3 + $0x24] sm:$0xf] }
 0x76c   : > { %7740 = vst [vmem:[#allocation3 + $0x9c] sm:$0xf] %v7739_v39  ;;  %7744 = vst [vmem:[#allocation3 + $0xa4] sm:$0x1] %v7743_v24  ;;  %v7901_v54 = vshrl.u32 %v19688_v8, 16  ;;  %v7888_v57 = vshrl.u32 %v7772_v40, 16  ;;  %v13238_v36 = vcombine.low %v7772_v40, %v19688_v8 }
 0x76d   : > { %7747 = vst [vmem:[#allocation3 + $0xa8] sm:$0xf] %v7746_v14  ;;  %7751 = vst [vmem:[#allocation3 + $0xb0] sm:$0x1] %v7750_v37  ;;  %v7891_v3 = vshll.u32 %v7772_v40, 16  ;;  %v7840_v28 = vshrl.u32 %v19354_v63, 16 }
 0x76e   : > { %7754 = vst [vmem:[#allocation3 + $0xb4] sm:$0xf] %v7753_v9  ;;  %7758 = vst [vmem:[#allocation3 + $0xbc] sm:$0x1] %v7757_v26  ;;  %v19732_v7 = vld [vmem:[#allocation3 + $0x34] sm:$0xf]  ;;  %14330 = vmatmul.mubr.msk.bf16.gmra.mxu0 %vm6425_vm8, %v13238_v36 }
 0x76f   : > { %7761 = vst [vmem:[#allocation3 + $0xc0] sm:$0xf] %v7760_v19  ;;  %7765 = vst [vmem:[#allocation3 + $0xc8] sm:$0x1] %v7764_v34  ;;  %v7843_v61 = vshll.u32 %v19354_v63, 16  ;;  %v7849_v47 = vshll.u32 %v19363_v10, 16 }
 0x770   : > { %v7853_v52 = vshrl.u32 %v19363_v10, 16  ;;  %v7859_v22 = vshll.u32 %v19718_v45, 16  ;;  %v7774_v2 = vld [vmem:[#allocation3 + $0x30] sm:$0xf]  ;;  %v7890_v31 = vrot.slane %v7888_v57, 4  ;;  %v7893_v33 = vrot.slane %v7891_v3, 5 }
 0x771   : > { %v7842_v29 = vrot.slane %v7840_v28, 4  ;;  %v8813_v56 = vrot.slane %v19718_v45, 5  ;;  %v7845_v53 = vrot.slane %v7843_v61, 5  ;;  %v7851_v25 = vrot.slane %v7849_v47, 5  ;;  %v19740_v41 = vld [vmem:[#allocation3 + $0x20] sm:$0x1] }
 0x772   : > { %v7855_v6 = vrot.slane %v7853_v52, 4  ;;  %v7861_v59 = vrot.slane %v7859_v22, 5  ;;  %v7912_v63 = vshrl.u32 %v7774_v2, 16  ;;  %v7915_v32 = vshll.u32 %v7774_v2, 16  ;;  %v22403_v5 = vld [vmem:[#allocation44_spill] sm:$0xff]  ;;  %v22405_v13 = vld [vmem:[#allocation10_spill] sm:$0xff] }
 0x773   : > { %v7925_v10 = vshrl.u32 %v19732_v7, 16  ;;  %v13239_v35 = vcombine.low %v7774_v2, %v19732_v7  ;;  %v7846_v58 = vor.u32 %v7845_v53, %v7842_v29  ;;  %v22404_v1 = vld [vmem:[#allocation20_spill] sm:$0xff]  ;;  %v7873_v62 = vshll.u32 %v22405_v13, 16  ;;  %v19747_v49 = vld [vmem:[#allocation3 + $0x40] sm:$0xf]  ;;  %v22408_v52 = vld [vmem:[#allocation22_spill] sm:$0xff] }
 0x774   : > { %v7856_v55 = vor.u32 %v7855_v6, %v7851_v25  ;;  %v7870_v51 = vor.u32 %v22404_v1, %v22403_v5  ;;  %v7776_v0 = vld [vmem:[#allocation3 + $0x3c] sm:$0xf]  ;;  %v7914_v27 = vrot.slane %v7912_v63, 4  ;;  %v7917_v60 = vrot.slane %v7915_v32, 5  ;;  %v19760_v24 = vld [vmem:[#allocation3 + $0x2c] sm:$0x1] }
 0x775   : > { %14333 = vmatprep.mubr.msk.bf16.mxu0 %vm6425_vm8, %v13239_v35  ;;  %v22406_v20 = vshrl.u32 %v22405_v13, 16  ;;  %v7883_v4 = vshll.u32 %v19740_v41, 16  ;;  %v7847_v30 = vrot.slane %v7846_v58, 4  ;;  %v7875_v21 = vrot.slane %v7873_v62, 5  ;;  %v7778_v14 = vld [vmem:[#allocation3 + $0x48] sm:$0xf] }
 0x776   : > { %v7857_v12 = vrot.slane %v7856_v55, 4  ;;  %v7871_v17 = vrot.slane %v7870_v51, 4  ;;  %v7936_v44 = vshrl.u32 %v7776_v0, 16  ;;  %v7939_v16 = vshll.u32 %v7776_v0, 16  ;;  %v19762_v42 = vld [vmem:[#allocation3 + $0x4c] sm:$0xf] }
 0x777   : > { %v7879_v48 = vrot.slane %v22406_v20, 4  ;;  %v7885_v11 = vrot.slane %v7883_v4, 5  ;;  %v7949_v46 = vshrl.u32 %v19747_v49, 16  ;;  %v7852_v15 = vsel %vm15628_vm13, %v7847_v30, %v7851_v25  ;;  %v19769_v3 = vld [vmem:[%s22045_s9 + $0x10] sm:$0xf] }
 0x778   : > { %v7862_v18 = vsel %vm15628_vm13, %v7857_v12, %v7861_v59  ;;  %v7876_v39 = vsel %vm15628_vm13, %v7871_v17, %v7875_v21  ;;  %v7938_v9 = vrot.slane %v7936_v44, 4  ;;  %v7941_v38 = vrot.slane %v7939_v16, 5  ;;  %v7780_v29 = vld [vmem:[#allocation3 + $0x54] sm:$0xf]  ;;  %v19781_v63 = vld [vmem:[#allocation3 + $0x58] sm:$0xf] }
 0x779   : > { %v7880_v23 = vor.u32 %v7879_v48, %v7875_v21  ;;  %v13204_v37 = vcombine.low %v7852_v15, %v7862_v18  ;;  %v13240_v26 = vcombine.low %v7776_v0, %v19747_v49  ;;  %v7894_v34 = vor.u32 %v7893_v33, %v7890_v31  ;;  %v19779_v33 = vld [vmem:[#allocation3 + $0x38] sm:$0x1]  ;;  %v19792_v4 = vld [vmem:[#allocation3 + $0x44] sm:$0x1]  ;;  %v7782_v21 = vld [vmem:[#allocation3 + $0x60] sm:$0xf] }
 0x77a   : > { %v7897_v40 = vshll.u32 %v19688_v8, 16  ;;  %v7903_v57 = vrot.slane %v7901_v54, 4  ;;  %v7907_v36 = vshll.u32 %v19760_v24, 16  ;;  %v7960_v28 = vshrl.u32 %v7778_v14, 16  ;;  %v19794_v30 = vld [vmem:[#allocation3 + $0x64] sm:$0xf] }
 0x77b   : > { %v7881_v19 = vrot.slane %v7880_v23, 4  ;;  %14292 = vmatmul.mubr.msk.bf16.vlgmr.msra.gmra.mxu1 %vm6425_vm8, %v13204_v37  ;;  %14334 = vmatmul.mubr.msk.bf16.gmra.mxu0 %vm6425_vm8, %v13240_v26  ;;  %v7963_v61 = vshll.u32 %v7778_v14, 16  ;;  %v7973_v47 = vshrl.u32 %v19762_v42, 16  ;;  %v7895_v22 = vrot.slane %v7894_v34, 4 }
 0x77c   : > { %14358 = vmatpush3.bf16.msra.mxu1 %v22408_v52  ;;  %v7899_v2 = vrot.slane %v7897_v40, 5  ;;  %v13241_v31 = vcombine.low %v7778_v14, %v19762_v42  ;;  %v7909_v25 = vrot.slane %v7907_v36, 5  ;;  %v7962_v6 = vrot.slane %v7960_v28, 4  ;;  %v19806_v14 = vld [vmem:[#allocation3 + $0x50] sm:$0x1] }
 0x77d   : > { %v7886_v54 = vsel %vm15628_vm13, %v7881_v19, %v7885_v11  ;;  %v7965_v59 = vrot.slane %v7963_v61, 5  ;;  %14645 = vmatprep.subr.msk.bf16.mxu1 %vm550_vm0, %v19769_v3  ;;  %v7918_v58 = vor.u32 %v7917_v60, %v7914_v27  ;;  %v7921_v55 = vshll.u32 %v19732_v7, 16  ;;  %v7784_v40 = vld [vmem:[#allocation3 + $0x6c] sm:$0xf] }
 0x77e   : > { %v13205_v53 = vcombine.low %v7876_v39, %v7886_v54  ;;  %v7900_v32 = vsel %vm15628_vm13, %v7895_v22, %v7899_v2  ;;  %v7904_v35 = vor.u32 %v7903_v57, %v7899_v2  ;;  %14337 = vmatprep.mubr.msk.bf16.mxu0 %vm6425_vm8, %v13241_v31  ;;  %v7927_v5 = vrot.slane %v7925_v10, 4  ;;  %v19813_v54 = vld [vmem:[#allocation3 + $0x70] sm:$0xf] }
 0x77f   : > { %v7931_v1 = vshll.u32 %v19779_v33, 16  ;;  %v7984_v51 = vshrl.u32 %v7780_v29, 16  ;;  %v7987_v13 = vshll.u32 %v7780_v29, 16  ;;  %v7919_v0 = vrot.slane %v7918_v58, 4  ;;  %v19822_v58 = vld [vmem:[#allocation3 + $0x5c] sm:$0x1] }
 0x780   : > { %14295 = vmatprep.mubr.msk.bf16.mxu1 %vm6425_vm8, %v13205_v53  ;;  %v7905_v62 = vrot.slane %v7904_v35, 4  ;;  %v7923_v20 = vrot.slane %v7921_v55, 5  ;;  %v7997_v48 = vshrl.u32 %v19781_v63, 16  ;;  %v13242_v17 = vcombine.low %v7780_v29, %v19781_v63 }
 0x781   : > { %v7933_v12 = vrot.slane %v7931_v1, 5  ;;  %v7986_v27 = vrot.slane %v7984_v51, 4  ;;  %v7989_v60 = vrot.slane %v7987_v13, 5  ;;  %v7942_v16 = vor.u32 %v7941_v38, %v7938_v9 }
 0x782   : > { %v7910_v10 = vsel %vm15628_vm13, %v7905_v62, %v7909_v25  ;;  %v7924_v11 = vsel %vm15628_vm13, %v7919_v0, %v7923_v20  ;;  %v7928_v44 = vor.u32 %v7927_v5, %v7923_v20  ;;  %v7945_v18 = vshll.u32 %v19747_v49, 16  ;;  %v7786_v0 = vld [vmem:[#allocation3 + $0x78] sm:$0xf] }
 0x783   : > { %v13206_v15 = vcombine.low %v7900_v32, %v7910_v10  ;;  %14338 = vmatmul.mubr.msk.bf16.gmra.mxu0 %vm6425_vm8, %v13242_v17  ;;  %v7951_v39 = vrot.slane %v7949_v46, 4  ;;  %v7955_v23 = vshll.u32 %v19792_v4, 16  ;;  %v7943_v26 = vrot.slane %v7942_v16, 4 }
 0x784   : > { %v7929_v37 = vrot.slane %v7928_v44, 4  ;;  %v8008_v19 = vshrl.u32 %v7782_v21, 16  ;;  %v8011_v34 = vshll.u32 %v7782_v21, 16  ;;  %v7947_v9 = vrot.slane %v7945_v18, 5 }
 0x785   : > { %14296 = vmatmul.mubr.msk.bf16.gmra.mxu1 %vm6425_vm8, %v13206_v15  ;;  %v7957_v38 = vrot.slane %v7955_v23, 5  ;;  %v8021_v57 = vshrl.u32 %v19794_v30, 16  ;;  %v13243_v36 = vcombine.low %v7782_v21, %v19794_v30  ;;  %v7966_v52 = vor.u32 %v7965_v59, %v7962_v6  ;;  %v19831_v21 = vld [vmem:[#allocation3 + $0x7c] sm:$0xf]  ;;  %v19835_v15 = vld [vmem:[#allocation3 + $0x68] sm:$0x1] }
 0x786   : > { %v7934_v46 = vsel %vm15628_vm13, %v7929_v37, %v7933_v12  ;;  %v8010_v28 = vrot.slane %v8008_v19, 4  ;;  %v8013_v61 = vrot.slane %v8011_v34, 5  ;;  %v7948_v2 = vsel %vm15628_vm13, %v7943_v26, %v7947_v9  ;;  %v7788_v34 = vld [vmem:[#allocation3 + $0x84] sm:$0xf] }
 0x787   : > { %v13207_v22 = vcombine.low %v7924_v11, %v7934_v46  ;;  %v7952_v31 = vor.u32 %v7951_v39, %v7947_v9  ;;  %14341 = vmatprep.mubr.msk.bf16.mxu0 %vm6425_vm8, %v13243_v36  ;;  %v7969_v29 = vshll.u32 %v19762_v42, 16  ;;  %v7967_v53 = vrot.slane %v7966_v52, 4  ;;  %v19843_v36 = vld [vmem:[#allocation3 + $0x88] sm:$0xf] }
 0x788   : > { %v7975_v25 = vrot.slane %v7973_v47, 4  ;;  %v7979_v32 = vshll.u32 %v19806_v14, 16  ;;  %v8032_v35 = vshrl.u32 %v7784_v40, 16  ;;  %v8035_v55 = vshll.u32 %v7784_v40, 16 }
 0x789   : > { %14299 = vmatprep.mubr.msk.bf16.mxu1 %vm6425_vm8, %v13207_v22  ;;  %v7953_v6 = vrot.slane %v7952_v31, 4  ;;  %v7971_v59 = vrot.slane %v7969_v29, 5  ;;  %v8045_v5 = vshrl.u32 %v19813_v54, 16  ;;  %v13244_v13 = vcombine.low %v7784_v40, %v19813_v54 }
 0x78a   : > { %v7981_v1 = vrot.slane %v7979_v32, 5  ;;  %v8034_v51 = vrot.slane %v8032_v35, 4  ;;  %v7990_v62 = vor.u32 %v7989_v60, %v7986_v27  ;;  %v8037_v17 = vrot.slane %v8035_v55, 5 }
 0x78b   : > { %v7958_v47 = vsel %vm15628_vm13, %v7953_v6, %v7957_v38  ;;  %v7972_v20 = vsel %vm15628_vm13, %v7967_v53, %v7971_v59  ;;  %v7976_v12 = vor.u32 %v7975_v25, %v7971_v59  ;;  %14342 = vmatmul.mubr.msk.bf16.gmra.mxu0 %vm6425_vm8, %v13244_v13  ;;  %v7993_v44 = vshll.u32 %v19781_v63, 16  ;;  %v19850_v53 = vld [vmem:[#allocation3 + $0x74] sm:$0x1]  ;;  %v7790_v25 = vld [vmem:[#allocation3 + $0x90] sm:$0xf] }
 0x78c   : > { %v13208_v10 = vcombine.low %v7948_v2, %v7958_v47  ;;  %v7991_v11 = vrot.slane %v7990_v62, 4  ;;  %v7999_v16 = vrot.slane %v7997_v48, 4  ;;  %v8003_v60 = vshll.u32 %v19822_v58, 16 }
 0x78d   : > { %v7977_v27 = vrot.slane %v7976_v12, 4  ;;  %v8056_v18 = vshrl.u32 %v7786_v0, 16  ;;  %v8059_v39 = vshll.u32 %v7786_v0, 16  ;;  %v7995_v23 = vrot.slane %v7993_v44, 5  ;;  %v19859_v12 = vld [vmem:[#allocation3 + $0x94] sm:$0xf] }
 0x78e   : > { %14300 = vmatmul.mubr.msk.bf16.gmra.mxu1 %vm6425_vm8, %v13208_v10  ;;  %v8069_v37 = vshrl.u32 %v19831_v21, 16  ;;  %v13245_v26 = vcombine.low %v7786_v0, %v19831_v21  ;;  %v8014_v19 = vor.u32 %v8013_v61, %v8010_v28  ;;  %v8005_v48 = vrot.slane %v8003_v60, 5 }
 0x78f   : > { %v7982_v40 = vsel %vm15628_vm13, %v7977_v27, %v7981_v1  ;;  %v8058_v9 = vrot.slane %v8056_v18, 4  ;;  %v8061_v38 = vrot.slane %v8059_v39, 5  ;;  %v7996_v52 = vsel %vm15628_vm13, %v7991_v11, %v7995_v23 }
 0x790   : > { %v13209_v46 = vcombine.low %v7972_v20, %v7982_v40  ;;  %v8000_v22 = vor.u32 %v7999_v16, %v7995_v23  ;;  %14345 = vmatprep.mubr.msk.bf16.mxu0 %vm6425_vm8, %v13245_v26  ;;  %v8015_v2 = vrot.slane %v8014_v19, 4  ;;  %v8017_v31 = vshll.u32 %v19794_v30, 16  ;;  %v19867_v23 = vld [vmem:[#allocation3 + $0x80] sm:$0x1] }
 0x791   : > { %v8023_v28 = vrot.slane %v8021_v57, 4  ;;  %v8027_v61 = vshll.u32 %v19835_v15, 16  ;;  %v8080_v29 = vshrl.u32 %v7788_v34, 16  ;;  %v8083_v35 = vshll.u32 %v7788_v34, 16 }
 0x792   : > { %14303 = vmatprep.mubr.msk.bf16.mxu1 %vm6425_vm8, %v13209_v46  ;;  %v8001_v32 = vrot.slane %v8000_v22, 4  ;;  %v8093_v6 = vshrl.u32 %v19843_v36, 16  ;;  %v13246_v59 = vcombine.low %v7788_v34, %v19843_v36  ;;  %v8019_v55 = vrot.slane %v8017_v31, 5  ;;  %v7792_v46 = vld [vmem:[#allocation3 + $0x9c] sm:$0xf] }
 0x793   : > { %v8029_v1 = vrot.slane %v8027_v61, 5  ;;  %v8082_v13 = vrot.slane %v8080_v29, 4  ;;  %v8038_v62 = vor.u32 %v8037_v17, %v8034_v51  ;;  %v8085_v0 = vrot.slane %v8083_v35, 5 }
 0x794   : > { %v8006_v57 = vsel %vm15628_vm13, %v8001_v32, %v8005_v48  ;;  %14346 = vmatmul.mubr.msk.bf16.gmra.mxu0 %vm6425_vm8, %v13246_v59  ;;  %v8041_v47 = vshll.u32 %v19813_v54, 16  ;;  %v8047_v20 = vrot.slane %v8045_v5, 4  ;;  %v8020_v11 = vsel %vm15628_vm13, %v8015_v2, %v8019_v55 }
 0x795   : > { %v13210_v10 = vcombine.low %v7996_v52, %v8006_v57  ;;  %v8024_v44 = vor.u32 %v8023_v28, %v8019_v55  ;;  %v8039_v16 = vrot.slane %v8038_v62, 4  ;;  %v8051_v51 = vshll.u32 %v19850_v53, 16  ;;  %v19871_v52 = vld [vmem:[#allocation3 + $0xa0] sm:$0xf]  ;;  %v19883_v57 = vld [vmem:[#allocation3 + $0x8c] sm:$0x1] }
 0x796   : > { %v8043_v27 = vrot.slane %v8041_v47, 5  ;;  %v8104_v17 = vshrl.u32 %v7790_v25, 16  ;;  %v8107_v60 = vshll.u32 %v7790_v25, 16  ;;  %v8117_v39 = vshrl.u32 %v19859_v12, 16 }
 0x797   : > { %14304 = vmatmul.mubr.msk.bf16.gmra.mxu1 %vm6425_vm8, %v13210_v10  ;;  %v8025_v18 = vrot.slane %v8024_v44, 4  ;;  %v13247_v5 = vcombine.low %v7790_v25, %v19859_v12  ;;  %v8062_v26 = vor.u32 %v8061_v38, %v8058_v9  ;;  %v8053_v40 = vrot.slane %v8051_v51, 5 }
 0x798   : > { %v8044_v19 = vsel %vm15628_vm13, %v8039_v16, %v8043_v27  ;;  %v8048_v34 = vor.u32 %v8047_v20, %v8043_v27  ;;  %v8106_v48 = vrot.slane %v8104_v17, 4  ;;  %v8109_v2 = vrot.slane %v8107_v60, 5  ;;  %v7794_v20 = vld [vmem:[#allocation3 + $0xa8] sm:$0xf]  ;;  %v19887_v16 = vld [vmem:[#allocation3 + $0xac] sm:$0xf] }
 0x799   : > { %v8030_v22 = vsel %vm15628_vm13, %v8025_v18, %v8029_v1  ;;  %14349 = vmatprep.mubr.msk.bf16.mxu0 %vm6425_vm8, %v13247_v5  ;;  %v8063_v31 = vrot.slane %v8062_v26, 4  ;;  %v8065_v28 = vshll.u32 %v19831_v21, 16  ;;  %v8071_v38 = vrot.slane %v8069_v37, 4 }
 0x79a   : > { %v13211_v61 = vcombine.low %v8020_v11, %v8030_v22  ;;  %v8049_v9 = vrot.slane %v8048_v34, 4  ;;  %v8075_v29 = vshll.u32 %v19867_v23, 16  ;;  %v8128_v32 = vshrl.u32 %v7792_v46, 16  ;;  %v7796_v22 = vld [vmem:[#allocation3 + $0xb4] sm:$0xf] }
 0x79b   : > { %v8067_v25 = vrot.slane %v8065_v28, 5  ;;  %v8131_v35 = vshll.u32 %v7792_v46, 16  ;;  %v8141_v59 = vshrl.u32 %v19871_v52, 16  ;;  %v13248_v62 = vcombine.low %v7792_v46, %v19871_v52 }
 0x79c   : > { %14307 = vmatprep.mubr.msk.bf16.mxu1 %vm6425_vm8, %v13211_v61  ;;  %v8054_v55 = vsel %vm15628_vm13, %v8049_v9, %v8053_v40  ;;  %v8077_v1 = vrot.slane %v8075_v29, 5  ;;  %v8086_v47 = vor.u32 %v8085_v0, %v8082_v13  ;;  %v8130_v44 = vrot.slane %v8128_v32, 4  ;;  %v19895_v40 = vld [vmem:[#allocation3 + $0x98] sm:$0x1] }
 0x79d   : > { %v13212_v37 = vcombine.low %v8044_v19, %v8054_v55  ;;  %v8068_v10 = vsel %vm15628_vm13, %v8063_v31, %v8067_v25  ;;  %v8072_v11 = vor.u32 %v8071_v38, %v8067_v25  ;;  %v8133_v27 = vrot.slane %v8131_v35, 5  ;;  %14350 = vmatmul.mubr.msk.bf16.gmra.mxu0 %vm6425_vm8, %v13248_v62  ;;  %v19899_v9 = vld [vmem:[#allocation3 + $0xb8] sm:$0xf] }
 0x79e   : > { %v8087_v51 = vrot.slane %v8086_v47, 4  ;;  %v8089_v17 = vshll.u32 %v19843_v36, 16  ;;  %v8095_v60 = vrot.slane %v8093_v6, 4  ;;  %v8099_v13 = vshll.u32 %v19883_v57, 16 }
 0x79f   : > { %14308 = vmatmul.mubr.msk.bf16.gmra.mxu1 %vm6425_vm8, %v13212_v37  ;;  %v8073_v18 = vrot.slane %v8072_v11, 4  ;;  %v8152_v0 = vshrl.u32 %v7794_v20, 16  ;;  %v8155_v5 = vshll.u32 %v7794_v20, 16  ;;  %v8165_v19 = vshrl.u32 %v19887_v16, 16 }
 0x7a0   : > { %v8091_v26 = vrot.slane %v8089_v17, 5  ;;  %v13249_v34 = vcombine.low %v7794_v20, %v19887_v16  ;;  %v8110_v46 = vor.u32 %v8109_v2, %v8106_v48  ;;  %v8101_v6 = vrot.slane %v8099_v13, 5 }
 0x7a1   : > { %v8078_v31 = vsel %vm15628_vm13, %v8073_v18, %v8077_v1  ;;  %v8154_v28 = vrot.slane %v8152_v0, 4  ;;  %v8157_v61 = vrot.slane %v8155_v5, 5  ;;  %v8113_v35 = vshll.u32 %v19859_v12, 16  ;;  %v19915_v5 = vld [vmem:[#allocation3 + $0xb0] sm:$0x1] }
 0x7a2   : > { %v13213_v38 = vcombine.low %v8068_v10, %v8078_v31  ;;  %v8092_v29 = vsel %vm15628_vm13, %v8087_v51, %v8091_v26  ;;  %v8096_v25 = vor.u32 %v8095_v60, %v8091_v26  ;;  %14353 = vmatprep.mubr.msk.bf16.mxu0 %vm6425_vm8, %v13249_v34  ;;  %v8111_v32 = vrot.slane %v8110_v46, 4  ;;  %v19909_v51 = vld [vmem:[#allocation3 + $0xa4] sm:$0x1]  ;;  %v14711_v60 = vld [vmem:[#allocation3 + $0xc] sm:$0xff]  }
 0x7a3   : > { %v8119_v48 = vrot.slane %v8117_v39, 4  ;;  %v8123_v2 = vshll.u32 %v19895_v40, 16  ;;  %v8176_v55 = vshrl.u32 %v7796_v22, 16  ;;  %v8179_v62 = vshll.u32 %v7796_v22, 16 }
 0x7a4   : > { %14311 = vmatprep.mubr.msk.bf16.mxu1 %vm6425_vm8, %v13213_v38  ;;  %v8097_v1 = vrot.slane %v8096_v25, 4  ;;  %v8189_v47 = vshrl.u32 %v19899_v9, 16  ;;  %v13250_v20 = vcombine.low %v7796_v22, %v19899_v9  ;;  %v8115_v37 = vrot.slane %v8113_v35, 5 }
 0x7a5   : > { %v8125_v10 = vrot.slane %v8123_v2, 5  ;;  %v8178_v11 = vrot.slane %v8176_v55, 4  ;;  %v8134_v17 = vor.u32 %v8133_v27, %v8130_v44  ;;  %v8181_v18 = vrot.slane %v8179_v62, 5  ;;  %v19926_v55 = vld [vmem:[#allocation3 + $0xbc] sm:$0x1] }
 0x7a6   : > { %v8102_v39 = vsel %vm15628_vm13, %v8097_v1, %v8101_v6  ;;  %14354 = vmatmul.mubr.msk.bf16.gmra.mxu0 %vm6425_vm8, %v13250_v20  ;;  %v8137_v13 = vshll.u32 %v19871_v52, 16  ;;  %v8143_v0 = vrot.slane %v8141_v59, 4  ;;  %v8116_v34 = vsel %vm15628_vm13, %v8111_v32, %v8115_v37  ;;  %v8753_v1 = vld [vmem:[#allocation3] sm:$0xe] }
 0x7a7   : > { %v13214_v26 = vcombine.low %v8092_v29, %v8102_v39  ;;  %v8120_v46 = vor.u32 %v8119_v48, %v8115_v37  ;;  %v8135_v22 = vrot.slane %v8134_v17, 4  ;;  %14393 = vmatprep.mubr.msk.bf16.mxu0 %vm6425_vm8, %v14711_v60  ;;  %v8147_v27 = vshll.u32 %v19909_v51, 16  ;;  %v14712_v17 = vld [vmem:[#allocation3 + $0x18] sm:$0xff]   ;;  %v8754_v39 = vld [vmem:[#allocation3 + $0xc] sm:$0xe] }
 0x7a8   : > { %v8139_v44 = vrot.slane %v8137_v13, 5  ;;  %v8158_v31 = vor.u32 %v8157_v61, %v8154_v28  ;;  %v8161_v6 = vshll.u32 %v19887_v16, 16  ;;  %v8167_v59 = vrot.slane %v8165_v19, 4 }
 0x7a9   : > { %14312 = vmatmul.mubr.msk.bf16.gmra.mxu1 %vm6425_vm8, %v13214_v26  ;;  %v8121_v38 = vrot.slane %v8120_v46, 4  ;;  %v8171_v25 = vshll.u32 %v19915_v5, 16  ;;  %v8182_v29 = vor.u32 %v8181_v18, %v8178_v11  ;;  %v8149_v48 = vrot.slane %v8147_v27, 5  ;;  %v14713_v26 = vld [vmem:[#allocation3 + $0x24] sm:$0xff]  }
 0x7aa   : > { %v8140_v32 = vsel %vm15628_vm13, %v8135_v22, %v8139_v44  ;;  %v8144_v35 = vor.u32 %v8143_v0, %v8139_v44  ;;  %v8159_v2 = vrot.slane %v8158_v31, 4  ;;  %v8163_v61 = vrot.slane %v8161_v6, 5  ;;  %v15021_v22 = vld [vmem:[#allocation3 + $0x4] sm:$0xf]  ;;  %v8755_v31 = vld [vmem:[#allocation3 + $0x18] sm:$0xe] }
 0x7ab   : > { %v8126_v28 = vsel %vm15628_vm13, %v8121_v38, %v8125_v10  ;;  %v8173_v62 = vrot.slane %v8171_v25, 5  ;;  %v8183_v20 = vrot.slane %v8182_v29, 4  ;;  %v8185_v11 = vshll.u32 %v19899_v9, 16 }
 0x7ac   : > { %v13215_v37 = vcombine.low %v8116_v34, %v8126_v28  ;;  %v8145_v19 = vrot.slane %v8144_v35, 4  ;;  %v8191_v60 = vrot.slane %v8189_v47, 4  ;;  %v8164_v18 = vsel %vm15628_vm13, %v8159_v2, %v8163_v61  ;;  %v15022_v47 = vld [vmem:[#allocation3 + $0x8] sm:$0x1]  ;;  %v15053_v2 = vld [vmem:[%s15178_s15 + $0xd8] sm:$0xff] }
 0x7ad   : > { %v8168_v13 = vor.u32 %v8167_v59, %v8163_v61  ;;  %v8195_v0 = vshll.u32 %v19926_v55, 16  ;;  %v13267_v46 = vrot.slane %v8753_v1, 9  ;;  %v8187_v34 = vrot.slane %v8185_v11, 5  ;;  %v15023_v61 = vld [vmem:[#allocation3 + $0x10] sm:$0xf] }
 0x7ae   : > { %14315 = vmatprep.mubr.msk.bf16.mxu1 %vm6425_vm8, %v13215_v37  ;;  %v8150_v10 = vsel %vm15628_vm13, %v8145_v19, %v8149_v48  ;;  %14394 = vmatmul.mubr.msk.bf16.vlgmr.msra.gmra.mxu0 %vm6425_vm8, %v14712_v17  ;;  %v8803_v44 = vrot.slane %v15021_v22, 5  ;;  %v8806_v27 = vrot.slane %v15022_v47, 5  ;;  %v13268_v25 = vrot.slane %v8754_v39, 9 }
 0x7af   : > { %v13216_v6 = vcombine.low %v8140_v32, %v8150_v10  ;;  %v8169_v38 = vrot.slane %v8168_v13, 4  ;;  %v8197_v59 = vrot.slane %v8195_v0, 5  ;;  %14397 = vmatprep.mubr.msk.bf16.mxu0 %vm6425_vm8, %v14713_v26  ;;  %v8188_v29 = vsel %vm15628_vm13, %v8183_v20, %v8187_v34  ;;  %v8756_v13 = vld [vmem:[#allocation3 + $0x24] sm:$0xe]  ;;  %v8757_v10 = vld [vmem:[#allocation3 + $0x30] sm:$0xe] }
 0x7b0   : > { %v8192_v35 = vor.u32 %v8191_v60, %v8187_v34  ;;  %v8804_v48 = vsel %vm16429_vm14, %v13267_v46, %v8803_v44  ;;  %v8805_v1 = vrot.slane %v8803_v44, 4  ;;  %v8810_v32 = vrot.slane %v15023_v61, 5  ;;  %v15024_v60 = vld [vmem:[#allocation3 + $0x1c] sm:$0xf]  ;;  %v14714_v34 = vld [vmem:[#allocation3 + $0x30] sm:$0xff]  }
 0x7b1   : > { %14316 = vmatmul.mubr.msk.bf16.gmra.mxu1 %vm6425_vm8, %v13216_v6  ;;  %v8174_v28 = vsel %vm15628_vm13, %v8169_v38, %v8173_v62  ;;  %v19948_v37 = vsel %vm550_vm0, %v19769_v3, 0  ;;  %v13269_v19 = vrot.slane %v8755_v31, 9  ;;  %v8817_v39 = vrot.slane %v15024_v60, 5  ;;  %v19960_v3 = vld [vmem:[%s22045_s9 + $0x1c] sm:$0xf]  ;;  %v14715_v6 = vld [vmem:[#allocation3 + $0x3c] sm:$0xff]  }
 0x7b2   : > { %v13217_v17 = vcombine.low %v8164_v18, %v8174_v28  ;;  %v8193_v11 = vrot.slane %v8192_v35, 4  ;;  %v8807_v20 = vsel %vm16429_vm14, %v8805_v1, %v8806_v27  ;;  %v19954_v26 = vsel %vm16429_vm14, %v13268_v25, %v8810_v32  ;;  %v8758_v25 = vld [vmem:[#allocation3 + $0x3c] sm:$0xe] }
 0x7b3   : > { %v13284_v0 = vcombine.low %v8804_v48, %v8807_v20  ;;  %v8812_v62 = vrot.slane %v8810_v32, 4  ;;  %v8820_v46 = vrot.slane %v19740_v41, 5  ;;  %v19967_v22 = vsel %vm16429_vm14, %v13269_v19, %v8817_v39  ;;  %v15025_v41 = vld [vmem:[%s22045_s9 + $0x14] sm:$0xf] }
 0x7b4   : > { %14319 = vmatprep.mubr.msk.bf16.mxu1 %vm6425_vm8, %v13217_v17  ;;  %v8198_v18 = vsel %vm15628_vm13, %v8193_v11, %v8197_v59  ;;  %v8819_v44 = vrot.slane %v8817_v39, 4  ;;  %v10566_v47 = vsel %vm550_vm0, %v15025_v41, 0  ;;  %v13270_v38 = vrot.slane %v8756_v13, 9  ;;  %v8760_v11 = vld [vmem:[#allocation3 + $0x54] sm:$0xe] }
 0x7b5   : > { %v13218_v27 = vcombine.low %v8188_v29, %v8198_v18  ;;  %v19977_v31 = vsel %vm16429_vm14, %v8812_v62, %v8813_v56  ;;  %14460 = vmatpush3.bf16.msra.mxu0 %v10566_v47  ;;  %v8824_v59 = vrot.slane %v19688_v8, 5  ;;  %v8827_v45 = vrot.slane %v19760_v24, 5  ;;  %v8759_v56 = vld [vmem:[#allocation3 + $0x48] sm:$0xe]  ;;  %v8762_v41 = vld [vmem:[#allocation3 + $0x6c] sm:$0xe] }
 0x7b6   : > { %14398 = vmatmul.mubr.msk.bf16.gmra.mxu0 %vm6425_vm8, %v14714_v34  ;;  %v13285_v35 = vcombine.low %v19954_v26, %v19977_v31  ;;  %v19985_v29 = vsel %vm16429_vm14, %v8819_v44, %v8820_v46  ;;  %v13271_v48 = vrot.slane %v8757_v10, 9  ;;  %14648 = vmatprep.subr.msk.bf16.mxu0 %vm550_vm0, %v19960_v3  ;;  %v8831_v61 = vrot.slane %v19732_v7, 5  ;;  %v14716_v18 = vld [vmem:[#allocation3 + $0x48] sm:$0xff]   ;;  %v14717_v47 = vld [vmem:[#allocation3 + $0x54] sm:$0xff]  }
 0x7b7   : > { %14401 = vmatprep.mubr.msk.bf16.mxu0 %vm6425_vm8, %v14715_v6  ;;  %v13286_v8 = vcombine.low %v19967_v22, %v19985_v29  ;;  %v19995_v1 = vsel %vm16429_vm14, %v13270_v38, %v8824_v59  ;;  %v8826_v28 = vrot.slane %v8824_v59, 4  ;;  %v8834_v32 = vrot.slane %v19779_v33, 5  ;;  %v8763_v29 = vld [vmem:[#allocation3 + $0x78] sm:$0xe] }
 0x7b8   : > { %v13272_v24 = vrot.slane %v8758_v25, 9  ;;  %v8838_v19 = vrot.slane %v19747_v49, 5  ;;  %v8841_v17 = vrot.slane %v19792_v4, 5  ;;  %v20008_v60 = vsel %vm16429_vm14, %v13271_v48, %v8831_v61 }
 0x7b9   : > { %14320 = vmatmul.mubr.msk.bf16.gmra.mxu1 %vm6425_vm8, %v13218_v27  ;;  %v20004_v20 = vsel %vm16429_vm14, %v8826_v28, %v8827_v45  ;;  %v8833_v39 = vrot.slane %v8831_v61, 4  ;;  %v13273_v7 = vrot.slane %v8759_v56, 9  ;;  %v8845_v13 = vrot.slane %v19762_v42, 5  ;;  %v8764_v28 = vld [vmem:[#allocation3 + $0x84] sm:$0xe] }
 0x7ba   : > { %14359 = vmatprep.mubr.msk.bf16.mxu1 %vm6425_vm8, %v13284_v0  ;;  %v13287_v49 = vcombine.low %v19995_v1, %v20004_v20  ;;  %v20015_v33 = vsel %vm16429_vm14, %v13272_v24, %v8838_v19  ;;  %v8840_v4 = vrot.slane %v8838_v19, 4  ;;  %v8848_v62 = vrot.slane %v19806_v14, 5  ;;  %v8761_v0 = vld [vmem:[#allocation3 + $0x60] sm:$0xe] }
 0x7bb   : > { %v20020_v26 = vsel %vm16429_vm14, %v8833_v39, %v8834_v32  ;;  %v13274_v46 = vrot.slane %v8760_v11, 9  ;;  %v8852_v10 = vrot.slane %v19781_v63, 5  ;;  %v20032_v42 = vsel %vm16429_vm14, %v13273_v7, %v8845_v13  ;;  %v20066_v24 = vld [vmem:[%s22045_s9 + $0x18] sm:$0xf] }
 0x7bc   : > { %v13288_v34 = vcombine.low %v20008_v60, %v20020_v26  ;;  %v20028_v22 = vsel %vm16429_vm14, %v8840_v4, %v8841_v17  ;;  %v8847_v44 = vrot.slane %v8845_v13, 4  ;;  %v8855_v31 = vrot.slane %v19822_v58, 5  ;;  %v8765_v4 = vld [vmem:[#allocation3 + $0x90] sm:$0xe] }
 0x7bd   : > { %v13289_v14 = vcombine.low %v20015_v33, %v20028_v22  ;;  %v20038_v63 = vsel %vm16429_vm14, %v13274_v46, %v8852_v10  ;;  %v8854_v27 = vrot.slane %v8852_v10, 4  ;;  %v13275_v38 = vrot.slane %v8761_v0, 9 }
 0x7be   : > { %14402 = vmatmul.mubr.msk.bf16.gmra.mxu0 %vm6425_vm8, %v14716_v18  ;;  %v20044_v6 = vsel %vm16429_vm14, %v8847_v44, %v8848_v62  ;;  %v8859_v59 = vrot.slane %v19794_v30, 5  ;;  %v8862_v25 = vrot.slane %v19835_v15, 5  ;;  %v13276_v48 = vrot.slane %v8762_v41, 9  ;;  %v8766_v62 = vld [vmem:[#allocation3 + $0x9c] sm:$0xe]  ;;  %v14719_v44 = vld [vmem:[#allocation3 + $0x6c] sm:$0xff]  }
 0x7bf   : > { %14405 = vmatprep.mubr.msk.bf16.mxu0 %vm6425_vm8, %v14717_v47  ;;  %v13290_v45 = vcombine.low %v20032_v42, %v20044_v6  ;;  %v20053_v58 = vsel %vm16429_vm14, %v8854_v27, %v8855_v31  ;;  %v8866_v56 = vrot.slane %v19813_v54, 5  ;;  %v8869_v32 = vrot.slane %v19850_v53, 5  ;;  %v20101_v18 = vld [vmem:[#allocation3 + $0x10] sm:$0xf]  ;;  %v14723_v6 = vld [vmem:[#allocation3 + $0x9c] sm:$0xff]  }
 0x7c0   : > { %v13291_v61 = vcombine.low %v20038_v63, %v20053_v58  ;;  %v20060_v30 = vsel %vm16429_vm14, %v13275_v38, %v8859_v59  ;;  %v8861_v15 = vrot.slane %v8859_v59, 4  ;;  %v13277_v17 = vrot.slane %v8763_v29, 9  ;;  %v10291_v38 = vld [vmem:[#allocation3 + $0xc] sm:$0xe]  ;;  %v14722_v42 = vld [vmem:[#allocation3 + $0x90] sm:$0xff]  }
 0x7c1   : > { %14360 = vmatmul.mubr.msk.bf16.vlgmr.msra.gmra.mxu1 %vm6425_vm8, %v13285_v35  ;;  %v20071_v54 = vsel %vm16429_vm14, %v13276_v48, %v8866_v56  ;;  %v8868_v19 = vrot.slane %v8866_v56, 4  ;;  %v8873_v11 = vrot.slane %v19831_v21, 5  ;;  %v8876_v39 = vrot.slane %v19867_v23, 5  ;;  %v14718_v23 = vld [vmem:[#allocation3 + $0x60] sm:$0xff]   ;;  %v20117_v48 = vld [vmem:[#allocation3 + $0x14] sm:$0x1] }
 0x7c2   : > { %14426 = vmatpush3.bf16.msra.mxu1 %v19948_v37  ;;  %14363 = vmatprep.mubr.msk.bf16.mxu1 %vm6425_vm8, %v13286_v8  ;;  %v20078_v53 = vsel %vm16429_vm14, %v8861_v15, %v8862_v25  ;;  %v13278_v7 = vrot.slane %v8764_v28, 9  ;;  %v8880_v35 = vrot.slane %v19843_v36, 5  ;;  %v8883_v0 = vrot.slane %v19883_v57, 5  ;;  %v8767_v56 = vld [vmem:[#allocation3 + $0xa8] sm:$0xe] }
 0x7c3   : > { %v13292_v13 = vcombine.low %v20060_v30, %v20078_v53  ;;  %v20086_v21 = vsel %vm16429_vm14, %v8868_v19, %v8869_v32  ;;  %v20090_v37 = vsel %vm16429_vm14, %v13277_v17, %v8873_v11  ;;  %v8875_v8 = vrot.slane %v8873_v11, 4  ;;  %14647 = vmatprep.subr.msk.bf16.mxu1 %vm550_vm0, %v20066_v24  ;;  %v20127_v32 = vld [vmem:[#allocation3 + $0x1c] sm:$0xf]  ;;  %v14725_v30 = vld [vmem:[#allocation3 + $0xb4] sm:$0xff]  }
 0x7c4   : > { %v13293_v36 = vcombine.low %v20071_v54, %v20086_v21  ;;  %v20098_v46 = vsel %vm16429_vm14, %v13278_v7, %v8880_v35  ;;  %v8882_v10 = vrot.slane %v8880_v35, 4  ;;  %v13279_v47 = vrot.slane %v8765_v4, 9  ;;  %v20316_v21 = vld [vmem:[#allocation3 + $0x58] sm:$0xf] }
 0x7c5   : > { %v20105_v41 = vsel %vm16429_vm14, %v8875_v8, %v8876_v39  ;;  %v8887_v27 = vrot.slane %v19859_v12, 5  ;;  %v8890_v31 = vrot.slane %v19895_v40, 5  ;;  %v13280_v25 = vrot.slane %v8766_v62, 9  ;;  %v20134_v39 = vld [vmem:[#allocation3 + $0x20] sm:$0x1]  ;;  %v14720_v62 = vld [vmem:[#allocation3 + $0x78] sm:$0xff]  }
 0x7c6   : > { %14406 = vmatmul.mubr.msk.bf16.gmra.mxu0 %vm6425_vm8, %v14718_v23  ;;  %v13294_v59 = vcombine.low %v20090_v37, %v20105_v41  ;;  %v20114_v57 = vsel %vm16429_vm14, %v8882_v10, %v8883_v0  ;;  %v8894_v29 = vrot.slane %v19871_v52, 5  ;;  %v8897_v15 = vrot.slane %v19909_v51, 5  ;;  %v10292_v8 = vld [vmem:[#allocation3 + $0x18] sm:$0xe]  ;;  %v20167_v0 = vld [vmem:[#allocation3 + $0x28] sm:$0xf] }
 0x7c7   : > { %14409 = vmatprep.mubr.msk.bf16.mxu0 %vm6425_vm8, %v14719_v44  ;;  %v13295_v12 = vcombine.low %v20098_v46, %v20114_v57  ;;  %v20124_v40 = vsel %vm16429_vm14, %v13279_v47, %v8887_v27  ;;  %v8889_v28 = vrot.slane %v8887_v27, 4  ;;  %v13382_v17 = vrot.slane %v10291_v38, 9  ;;  %v20169_v44 = vld [vmem:[#allocation3 + $0x2c] sm:$0x1]  ;;  %v14721_v47 = vld [vmem:[#allocation3 + $0x84] sm:$0xff]  }
 0x7c8   : > { %v20131_v52 = vsel %vm16429_vm14, %v13280_v25, %v8894_v29  ;;  %v8896_v19 = vrot.slane %v8894_v29, 4  ;;  %v10357_v11 = vrot.slane %v20101_v18, 5  ;;  %v10360_v7 = vrot.slane %v20117_v48, 5  ;;  %v10293_v29 = vld [vmem:[#allocation3 + $0x24] sm:$0xe] }
 0x7c9   : > { %14364 = vmatmul.mubr.msk.bf16.gmra.mxu1 %vm6425_vm8, %v13287_v49  ;;  %v20142_v51 = vsel %vm16429_vm14, %v8889_v28, %v8890_v31  ;;  %v13281_v35 = vrot.slane %v8767_v56, 9  ;;  %v8901_v4 = vrot.slane %v19887_v16, 5  ;;  %v8768_v16 = vld [vmem:[#allocation3 + $0xb4] sm:$0xe]  ;;  %v13383_v31 = vrot.slane %v10292_v8, 9 }
 0x7ca   : > { %14367 = vmatprep.mubr.msk.bf16.mxu1 %vm6425_vm8, %v13288_v34  ;;  %v13296_v1 = vcombine.low %v20124_v40, %v20142_v51  ;;  %v20154_v20 = vsel %vm16429_vm14, %v8896_v19, %v8897_v15  ;;  %v20158_v49 = vsel %vm16429_vm14, %v13382_v17, %v10357_v11  ;;  %v10359_v23 = vrot.slane %v10357_v11, 4  ;;  %v9565_v19 = vld [vmem:[#allocation3 + $0xc] sm:$0xf]  ;;  %v20374_v40 = vld [vmem:[%s22047_s11] sm:$0x3] }
 0x7cb   : > { %v20164_v60 = vsel %vm16429_vm14, %v13281_v35, %v8901_v4  ;;  %v8903_v26 = vrot.slane %v8901_v4, 4  ;;  %v8904_v34 = vrot.slane %v19915_v5, 5  ;;  %v10364_v38 = vrot.slane %v20127_v32, 5 }
 0x7cc   : > { %v20173_v27 = vsel %vm16429_vm14, %v10359_v23, %v10360_v7  ;;  %v10367_v25 = vrot.slane %v20134_v39, 5  ;;  %v13282_v28 = vrot.slane %v8768_v16, 9  ;;  %v8908_v15 = vrot.slane %v19899_v9, 5  ;;  %v10294_v23 = vld [vmem:[#allocation3 + $0x30] sm:$0xe] }
 0x7cd   : > { %v13399_v56 = vcombine.low %v20158_v49, %v20173_v27  ;;  %v20181_v5 = vsel %vm16429_vm14, %v8903_v26, %v8904_v34  ;;  %v20189_v11 = vsel %vm16429_vm14, %v13383_v31, %v10364_v38  ;;  %v10366_v7 = vrot.slane %v10364_v38, 4 }
 0x7ce   : > { %14410 = vmatmul.mubr.msk.bf16.gmra.mxu0 %vm6425_vm8, %v14720_v62  ;;  %v8911_v35 = vrot.slane %v19926_v55, 5  ;;  %v20195_v4 = vsel %vm16429_vm14, %v13282_v28, %v8908_v15  ;;  %v8910_v9 = vrot.slane %v8908_v15, 4  ;;  %v13384_v8 = vrot.slane %v10293_v29, 9  ;;  %v20217_v29 = vld [vmem:[#allocation3 + $0x34] sm:$0xf] }
 0x7cf   : > { %14413 = vmatprep.mubr.msk.bf16.mxu0 %vm6425_vm8, %v14721_v47  ;;  %v10371_v62 = vrot.slane %v20167_v0, 5  ;;  %v20200_v16 = vsel %vm16429_vm14, %v10366_v7, %v10367_v25  ;;  %v10374_v26 = vrot.slane %v20169_v44, 5  ;;  %v9614_v34 = vshrl.u32 %v9565_v19, 16  ;;  %v20219_v28 = vld [vmem:[#allocation3 + $0x38] sm:$0x1] }
 0x7d0   : > { %v9617_v31 = vshll.u32 %v9565_v19, 16  ;;  %v20211_v47 = vsel %vm16429_vm14, %v8910_v9, %v8911_v35  ;;  %v9623_v15 = vshll.u32 %v20101_v18, 16  ;;  %v9568_v19 = vld [vmem:[#allocation3 + $0x18] sm:$0xf]  ;;  %v9627_v35 = vshrl.u32 %v20101_v18, 16 }
 0x7d1   : > { %14368 = vmatmul.mubr.msk.bf16.gmra.mxu1 %vm6425_vm8, %v13289_v14  ;;  %v20215_v38 = vsel %vm16429_vm14, %v13384_v8, %v10371_v62  ;;  %v10373_v25 = vrot.slane %v10371_v62, 4  ;;  %v9616_v22 = vrot.slane %v9614_v34, 4  ;;  %v9633_v9 = vshll.u32 %v20117_v48, 16 }
 0x7d2   : > { %14371 = vmatprep.mubr.msk.bf16.mxu1 %vm6425_vm8, %v13290_v45  ;;  %v9619_v14 = vrot.slane %v9617_v31, 5  ;;  %v13385_v8 = vrot.slane %v10294_v23, 9  ;;  %v9625_v34 = vrot.slane %v9623_v15, 5  ;;  %v10378_v31 = vrot.slane %v20217_v29, 5 }
 0x7d3   : > { %v20230_v7 = vsel %vm16429_vm14, %v10373_v25, %v10374_v26  ;;  %v9629_v33 = vrot.slane %v9627_v35, 4  ;;  %v9635_v17 = vrot.slane %v9633_v9, 5  ;;  %v10381_v10 = vrot.slane %v20219_v28, 5  ;;  %v20238_v25 = vld [vmem:[#allocation3 + $0x40] sm:$0xf] }
 0x7d4   : > { %v9620_v62 = vor.u32 %v9619_v14, %v9616_v22  ;;  %v9638_v26 = vshrl.u32 %v9568_v19, 16  ;;  %v20243_v48 = vsel %vm16429_vm14, %v13385_v8, %v10378_v31  ;;  %v10380_v23 = vrot.slane %v10378_v31, 4  ;;  %v10295_v9 = vld [vmem:[#allocation3 + $0x3c] sm:$0xe] }
 0x7d5   : > { %v9641_v45 = vshll.u32 %v9568_v19, 16  ;;  %v9630_v22 = vor.u32 %v9629_v33, %v9625_v34  ;;  %v9647_v15 = vshll.u32 %v20127_v32, 16  ;;  %v9651_v35 = vshrl.u32 %v20127_v32, 16  ;;  %v20255_v19 = vld [vmem:[#allocation3 + $0x44] sm:$0x1] }
 0x7d6   : > { %14414 = vmatmul.mubr.msk.bf16.gmra.mxu0 %vm6425_vm8, %v14722_v42  ;;  %v9621_v18 = vrot.slane %v9620_v62, 4  ;;  %v9640_v14 = vrot.slane %v9638_v26, 4  ;;  %v20252_v42 = vsel %vm16429_vm14, %v10380_v23, %v10381_v10  ;;  %v9657_v62 = vshll.u32 %v20134_v39, 16  ;;  %v9571_v26 = vld [vmem:[#allocation3 + $0x24] sm:$0xf]  ;;  %v14724_v23 = vld [vmem:[#allocation3 + $0xa8] sm:$0xff]  }
 0x7d7   : > { %14417 = vmatprep.mubr.msk.bf16.mxu0 %vm6425_vm8, %v14723_v6  ;;  %v9643_v8 = vrot.slane %v9641_v45, 5  ;;  %v9631_v33 = vrot.slane %v9630_v22, 4  ;;  %v13402_v32 = vcombine.low %v20243_v48, %v20252_v42  ;;  %v9649_v6 = vrot.slane %v9647_v15, 5 }
 0x7d8   : > { %v9626_v55 = vsel %vm15628_vm13, %v9621_v18, %v9625_v34  ;;  %v9653_v34 = vrot.slane %v9651_v35, 4  ;;  %v9659_v39 = vrot.slane %v9657_v62, 5  ;;  %v13386_v45 = vrot.slane %v10295_v9, 9 }
 0x7d9   : > { %14372 = vmatmul.mubr.msk.bf16.gmra.mxu1 %vm6425_vm8, %v13291_v61  ;;  %v9644_v10 = vor.u32 %v9643_v8, %v9640_v14  ;;  %v10385_v31 = vrot.slane %v20238_v25, 5  ;;  %v9636_v63 = vsel %vm15628_vm13, %v9631_v33, %v9635_v17  ;;  %v10388_v61 = vrot.slane %v20255_v19, 5  ;;  %v20282_v8 = vld [vmem:[#allocation3 + $0x4c] sm:$0xf] }
 0x7da   : > { %14375 = vmatprep.mubr.msk.bf16.mxu1 %vm6425_vm8, %v13292_v13  ;;  %v9654_v58 = vor.u32 %v9653_v34, %v9649_v6  ;;  %v20273_v18 = vsel %vm550_vm0, %v20066_v24, 0  ;;  %v20275_v53 = vcombine.low %v9626_v55, %v9636_v63  ;;  %v9662_v35 = vshrl.u32 %v9571_v26, 16  ;;  %v10296_v34 = vld [vmem:[#allocation3 + $0x48] sm:$0xe]  ;;  %v9574_v63 = vld [vmem:[#allocation3 + $0x30] sm:$0xf] }
 0x7db   : > { %v9645_v13 = vrot.slane %v9644_v10, 4  ;;  %v20279_v22 = vsel %vm16429_vm14, %v13386_v45, %v10385_v31  ;;  %v10387_v14 = vrot.slane %v10385_v31, 4  ;;  %v9665_v17 = vshll.u32 %v9571_v26, 16 }
 0x7dc   : > { %v9655_v15 = vrot.slane %v9654_v58, 4  ;;  %v9671_v9 = vshll.u32 %v20167_v0, 16  ;;  %v9675_v62 = vshrl.u32 %v20167_v0, 16  ;;  %v9681_v33 = vshll.u32 %v20169_v44, 16 }
 0x7dd   : > { %v9650_v24 = vsel %vm15628_vm13, %v9645_v13, %v9649_v6  ;;  %v20289_v55 = vsel %vm16429_vm14, %v10387_v14, %v10388_v61  ;;  %v9664_v31 = vrot.slane %v9662_v35, 4  ;;  %v9667_v26 = vrot.slane %v9665_v17, 5  ;;  %v20298_v6 = vld [vmem:[#allocation3 + $0x50] sm:$0x1] }
 0x7de   : > { %14418 = vmatmul.mubr.msk.bf16.gmra.mxu0 %vm6425_vm8, %v14724_v23  ;;  %v9660_v10 = vsel %vm15628_vm13, %v9655_v15, %v9659_v39  ;;  %v13403_v45 = vcombine.low %v20279_v22, %v20289_v55  ;;  %v9673_v61 = vrot.slane %v9671_v9, 5  ;;  %v9677_v0 = vrot.slane %v9675_v62, 4  ;;  %v20323_v62 = vld [vmem:[#allocation3 + $0x5c] sm:$0x1] }
 0x7df   : > { %14421 = vmatprep.mubr.msk.bf16.mxu0 %vm6425_vm8, %v14725_v30  ;;  %v20300_v58 = vcombine.low %v9650_v24, %v9660_v10  ;;  %v9683_v23 = vrot.slane %v9681_v33, 5  ;;  %v9668_v44 = vor.u32 %v9667_v26, %v9664_v31  ;;  %v20308_v39 = vsel %vm550_vm0, %v19960_v3, 0 }
 0x7e0   : > { %v13387_v30 = vrot.slane %v10296_v34, 9  ;;  %v10392_v13 = vrot.slane %v20282_v8, 5  ;;  %v9678_v14 = vor.u32 %v9677_v0, %v9673_v61  ;;  %v10395_v15 = vrot.slane %v20298_v6, 5  ;;  %v10297_v34 = vld [vmem:[#allocation3 + $0x54] sm:$0xe] }
 0x7e1   : > { %14376 = vmatmul.mubr.msk.bf16.gmra.mxu1 %vm6425_vm8, %v13293_v36  ;;  %v9686_v35 = vshrl.u32 %v9574_v63, 16  ;;  %v9689_v54 = vshll.u32 %v9574_v63, 16  ;;  %v14726_v36 = vld [vmem:[#allocation3 + $0xc0] sm:$0xff]   ;;  %v9669_v17 = vrot.slane %v9668_v44, 4  ;;  %v9695_v24 = vshll.u32 %v20217_v29, 16 }
 0x7e2   : > { %14379 = vmatprep.mubr.msk.bf16.mxu1 %vm6425_vm8, %v13294_v59  ;;  %v20320_v3 = vsel %vm16429_vm14, %v13387_v30, %v10392_v13  ;;  %v10394_v9 = vrot.slane %v10392_v13, 4  ;;  %v9679_v37 = vrot.slane %v9678_v14, 4  ;;  %v9699_v33 = vshrl.u32 %v20217_v29, 16  ;;  %v9577_v0 = vld [vmem:[#allocation3 + $0x3c] sm:$0xf] }
 0x7e3   : > { %v9688_v41 = vrot.slane %v9686_v35, 4  ;;  %v9691_v59 = vrot.slane %v9689_v54, 5  ;;  %v9674_v10 = vsel %vm15628_vm13, %v9669_v17, %v9673_v61  ;;  %v9697_v26 = vrot.slane %v9695_v24, 5  ;;  %v20346_v17 = vld [vmem:[#allocation3 + $0x64] sm:$0xf] }
 0x7e4   : > { %v20330_v31 = vsel %vm16429_vm14, %v10394_v9, %v10395_v15  ;;  %v9705_v63 = vshll.u32 %v20219_v28, 16  ;;  %v9684_v44 = vsel %vm15628_vm13, %v9679_v37, %v9683_v23  ;;  %v9701_v13 = vrot.slane %v9699_v33, 4  ;;  %v20357_v24 = vld [vmem:[#allocation3 + $0x68] sm:$0x1]  ;;  %v10298_v37 = vld [vmem:[#allocation3 + $0x60] sm:$0xe] }
 0x7e5   : > { %v13404_v29 = vcombine.low %v20320_v3, %v20330_v31  ;;  %v9692_v30 = vor.u32 %v9691_v59, %v9688_v41  ;;  %v20342_v61 = vcombine.low %v9674_v10, %v9684_v44  ;;  %v13388_v28 = vrot.slane %v10297_v34, 9  ;;  %v9580_v59 = vld [vmem:[#allocation3 + $0x48] sm:$0xf] }
 0x7e6   : > { %14422 = vmatmul.mubr.msk.bf16.gmra.mxu0 %vm6425_vm8, %v14726_v36  ;;  %v9707_v14 = vrot.slane %v9705_v63, 5  ;;  %v10399_v15 = vrot.slane %v20316_v21, 5  ;;  %v9702_v54 = vor.u32 %v9701_v13, %v9697_v26  ;;  %v10402_v23 = vrot.slane %v20323_v62, 5 }
 0x7e7   : > { %14461 = vmatprep.mubr.msk.bf16.mxu0 %vm6425_vm8, %v13399_v56  ;;  %v9693_v35 = vrot.slane %v9692_v30, 4  ;;  %v9710_v36 = vshrl.u32 %v9577_v0, 16  ;;  %v9713_v56 = vshll.u32 %v9577_v0, 16  ;;  %v9719_v9 = vshll.u32 %v20238_v25, 16 }
 0x7e8   : > { %v20354_v49 = vsel %vm16429_vm14, %v13388_v28, %v10399_v15  ;;  %v10401_v27 = vrot.slane %v10399_v15, 4  ;;  %v9703_v57 = vrot.slane %v9702_v54, 4  ;;  %v9723_v41 = vshrl.u32 %v20238_v25, 16  ;;  %v20388_v54 = vld [vmem:[#allocation3 + $0x70] sm:$0xf] }
 0x7e9   : > { %14380 = vmatmul.mubr.msk.bf16.gmra.mxu1 %vm6425_vm8, %v13295_v12  ;;  %v9698_v46 = vsel %vm15628_vm13, %v9693_v35, %v9697_v26  ;;  %v9712_v12 = vrot.slane %v9710_v36, 4  ;;  %v9715_v34 = vrot.slane %v9713_v56, 5  ;;  %v9721_v10 = vrot.slane %v9719_v9, 5 }
 0x7ea   : > { %14383 = vmatprep.mubr.msk.bf16.mxu1 %vm6425_vm8, %v13296_v1  ;;  %v20368_v33 = vsel %vm16429_vm14, %v10401_v27, %v10402_v23  ;;  %v9729_v63 = vshll.u32 %v20255_v19, 16  ;;  %v9708_v51 = vsel %vm15628_vm13, %v9703_v57, %v9707_v14  ;;  %v9725_v25 = vrot.slane %v9723_v41, 4  ;;  %v10299_v57 = vld [vmem:[#allocation3 + $0x6c] sm:$0xe] }
 0x7eb   : > { %v13405_v1 = vcombine.low %v20354_v49, %v20368_v33  ;;  %v13389_v26 = vrot.slane %v10298_v37, 9  ;;  %v20380_v0 = vcombine.low %v9698_v46, %v9708_v51  ;;  %v9716_v44 = vor.u32 %v9715_v34, %v9712_v12 }
 0x7ec   : > { %v9731_v30 = vrot.slane %v9729_v63, 5  ;;  %v10406_v13 = vrot.slane %v20346_v17, 5  ;;  %v22410_v19 = vcombine.low %v20189_v11, %v20200_v16  ;;  %v9726_v28 = vor.u32 %v9725_v25, %v9721_v10 }
 0x7ed   : > { %v10409_v15 = vrot.slane %v20357_v24, 5  ;;  %v9734_v14 = vshrl.u32 %v9580_v59, 16  ;;  %v9737_v35 = vshll.u32 %v9580_v59, 16  ;;  %v22411_v23 = vcombine.low %v20215_v38, %v20230_v7  ;;  %v9583_v59 = vld [vmem:[#allocation3 + $0x54] sm:$0xf] }
 0x7ee   : > { %14462 = vmatmul.mubr.msk.bf16.vlgmr.msra.gmra.mxu0 %vm6425_vm8, %v22410_v19  ;;  %v9717_v36 = vrot.slane %v9716_v44, 4  ;;  %v20397_v11 = vsel %vm16429_vm14, %v13389_v26, %v10406_v13  ;;  %v10408_v16 = vrot.slane %v10406_v13, 4  ;;  %v9743_v27 = vshll.u32 %v20282_v8, 16  ;;  %v20428_v19 = vld [vmem:[#allocation3 + $0x7c] sm:$0xf] }
 0x7ef   : > { %14465 = vmatprep.mubr.msk.bf16.mxu0 %vm6425_vm8, %v22411_v23  ;;  %14528 = vmatpush3.bf16.msra.mxu0 %v20308_v39  ;;  %v9727_v56 = vrot.slane %v9726_v28, 4  ;;  %v9736_v9 = vrot.slane %v9734_v14, 4  ;;  %v9739_v37 = vrot.slane %v9737_v35, 5  ;;  %v9747_v46 = vshrl.u32 %v20282_v8, 16  ;;  %v20414_v8 = vld [vmem:[#allocation3 + $0x74] sm:$0x1] }
 0x7f0   : > { %14650 = vmatprep.subr.msk.bf16.mxu0 %vm2360_vm10, %v20374_v40  ;;  %v22412_v38 = vcombine.low %v20131_v52, %v20154_v20  ;;  %v9722_v7 = vsel %vm15628_vm13, %v9717_v36, %v9721_v10  ;;  %v20411_v39 = vsel %vm16429_vm14, %v10408_v16, %v10409_v15  ;;  %v9745_v12 = vrot.slane %v9743_v27, 5  ;;  %v10300_v35 = vld [vmem:[#allocation3 + $0x78] sm:$0xe] }
 0x7f1   : > { %v9753_v41 = vshll.u32 %v20298_v6, 16  ;;  %v22413_v34 = vcombine.low %v20164_v60, %v20181_v5  ;;  %v9732_v52 = vsel %vm15628_vm13, %v9727_v56, %v9731_v30  ;;  %v13406_v20 = vcombine.low %v20397_v11, %v20411_v39  ;;  %v20442_v56 = vld [vmem:[#allocation3 + $0x80] sm:$0x1] }
 0x7f2   : > { %14384 = vmatmul.mubr.msk.bf16.gmra.mxu1 %vm6425_vm8, %v22412_v38  ;;  %v9740_v10 = vor.u32 %v9739_v37, %v9736_v9  ;;  %v9749_v63 = vrot.slane %v9747_v46, 4  ;;  %v20424_v51 = vcombine.low %v9722_v7, %v9732_v52  ;;  %v13390_v6 = vrot.slane %v10299_v57, 9  ;;  %v9586_v37 = vld [vmem:[#allocation3 + $0x60] sm:$0xf] }
 0x7f3   : > { %14387 = vmatprep.mubr.msk.bf16.mxu1 %vm6425_vm8, %v22413_v34  ;;  %v9755_v25 = vrot.slane %v9753_v41, 5  ;;  %v10413_v26 = vrot.slane %v20388_v54, 5  ;;  %v10416_v60 = vrot.slane %v20414_v8, 5  ;;  %v9758_v5 = vshrl.u32 %v9583_v59, 16  ;;  %v20550_v39 = vld [vmem:[#allocation3 + $0xa0] sm:$0xf] }
 0x7f4   : > { %v9741_v44 = vrot.slane %v9740_v10, 4  ;;  %v9750_v13 = vor.u32 %v9749_v63, %v9745_v12  ;;  %v9761_v15 = vshll.u32 %v9583_v59, 16  ;;  %v9767_v14 = vshll.u32 %v20316_v21, 16  ;;  %v20472_v63 = vld [vmem:[#allocation3 + $0x88] sm:$0xf] }
 0x7f5   : > { %v20432_v30 = vsel %vm16429_vm14, %v13390_v6, %v10413_v26  ;;  %v10415_v28 = vrot.slane %v10413_v26, 4  ;;  %v9760_v16 = vrot.slane %v9758_v5, 4  ;;  %v9771_v27 = vshrl.u32 %v20316_v21, 16 }
 0x7f6   : > { %14466 = vmatmul.mubr.msk.bf16.gmra.mxu0 %vm6425_vm8, %v13402_v32  ;;  %v9746_v23 = vsel %vm15628_vm13, %v9741_v44, %v9745_v12  ;;  %v9751_v36 = vrot.slane %v9750_v13, 4  ;;  %v9763_v48 = vrot.slane %v9761_v15, 5  ;;  %v9769_v42 = vrot.slane %v9767_v14, 5  ;;  %v10301_v44 = vld [vmem:[#allocation3 + $0x84] sm:$0xe] }
 0x7f7   : > { %14469 = vmatprep.mubr.msk.bf16.mxu0 %vm6425_vm8, %v13403_v45  ;;  %v20450_v9 = vsel %vm16429_vm14, %v10415_v28, %v10416_v60  ;;  %v9777_v32 = vshll.u32 %v20323_v62, 16  ;;  %v9773_v57 = vrot.slane %v9771_v27, 4  ;;  %v13391_v38 = vrot.slane %v10300_v35, 9  ;;  %v20482_v15 = vld [vmem:[#allocation3 + $0x8c] sm:$0x1] }
 0x7f8   : > { %v9756_v46 = vsel %vm15628_vm13, %v9751_v36, %v9755_v25  ;;  %v13407_v21 = vcombine.low %v20432_v30, %v20450_v9  ;;  %v22414_v22 = vcombine.low %v20195_v4, %v20211_v47  ;;  %v9764_v45 = vor.u32 %v9763_v48, %v9760_v16  ;;  %v9589_v14 = vld [vmem:[#allocation3 + $0x6c] sm:$0xf] }
 0x7f9   : > { %v20461_v55 = vcombine.low %v9746_v23, %v9756_v46  ;;  %v9779_v7 = vrot.slane %v9777_v32, 5  ;;  %v10420_v62 = vrot.slane %v20428_v19, 5  ;;  %v9774_v12 = vor.u32 %v9773_v57, %v9769_v42  ;;  %v20500_v32 = vld [vmem:[#allocation3 + $0x94] sm:$0xf]  ;;  %v10302_v57 = vld [vmem:[#allocation3 + $0x90] sm:$0xe] }
 0x7fa   : > { %14388 = vmatmul.mubr.msk.bf16.gmra.mxu1 %vm6425_vm8, %v22414_v22  ;;  %v10423_v41 = vrot.slane %v20442_v56, 5  ;;  %v9782_v59 = vshrl.u32 %v9586_v37, 16  ;;  %v9785_v34 = vshll.u32 %v9586_v37, 16  ;;  %v9765_v52 = vrot.slane %v9764_v45, 4  ;;  %v20505_v37 = vld [vmem:[%s22045_s9 + $0x20] sm:$0xf] }
 0x7fb   : > { %14427 = vmatprep.mubr.msk.bf16.mxu1 %vm6425_vm8, %v20275_v53  ;;  %v20469_v4 = vsel %vm16429_vm14, %v13391_v38, %v10420_v62  ;;  %v10422_v47 = vrot.slane %v10420_v62, 4  ;;  %v9791_v10 = vshll.u32 %v20346_v17, 16  ;;  %v9775_v25 = vrot.slane %v9774_v12, 4 }
 0x7fc   : > { %v9784_v6 = vrot.slane %v9782_v59, 4  ;;  %v9787_v26 = vrot.slane %v9785_v34, 5  ;;  %v9795_v53 = vshrl.u32 %v20346_v17, 16  ;;  %v9770_v13 = vsel %vm15628_vm13, %v9765_v52, %v9769_v42  ;;  %v9592_v59 = vld [vmem:[#allocation3 + $0x78] sm:$0xf] }
 0x7fd   : > { %v20479_v60 = vsel %vm16429_vm14, %v10422_v47, %v10423_v41  ;;  %v9793_v5 = vrot.slane %v9791_v10, 5  ;;  %v9801_v28 = vshll.u32 %v20357_v24, 16  ;;  %v9780_v17 = vsel %vm15628_vm13, %v9775_v25, %v9779_v7  ;;  %v20520_v7 = vld [vmem:[#allocation3 + $0x98] sm:$0x1] }
 0x7fe   : > { %14470 = vmatmul.mubr.msk.bf16.gmra.mxu0 %vm6425_vm8, %v13404_v29  ;;  %v13408_v35 = vcombine.low %v20469_v4, %v20479_v60  ;;  %v9788_v23 = vor.u32 %v9787_v26, %v9784_v6  ;;  %v9797_v36 = vrot.slane %v9795_v53, 4  ;;  %v20496_v24 = vcombine.low %v9770_v13, %v9780_v17  ;;  %v9598_v60 = vld [vmem:[#allocation3 + $0x90] sm:$0xf] }
 0x7ff   : > { %14473 = vmatprep.mubr.msk.bf16.mxu0 %vm6425_vm8, %v13405_v1  ;;  %v9803_v16 = vrot.slane %v9801_v28, 5  ;;  %v13392_v27 = vrot.slane %v10301_v44, 9  ;;  %v10427_v3 = vrot.slane %v20472_v63, 5  ;;  %v10430_v48 = vrot.slane %v20482_v15, 5 }
 0x800   : > { %v9789_v31 = vrot.slane %v9788_v23, 4  ;;  %v9798_v29 = vor.u32 %v9797_v36, %v9793_v5  ;;  %v9806_v42 = vshrl.u32 %v9589_v14, 16  ;;  %v9809_v1 = vshll.u32 %v9589_v14, 16  ;;  %v10303_v36 = vld [vmem:[#allocation3 + $0x9c] sm:$0xe] }
 0x801   : > { %v20511_v49 = vsel %vm16429_vm14, %v13392_v27, %v10427_v3  ;;  %v10429_v33 = vrot.slane %v10427_v3, 4  ;;  %v9815_v46 = vshll.u32 %v20388_v54, 16  ;;  %v13393_v52 = vrot.slane %v10302_v57, 9  ;;  %v20562_v27 = vld [vmem:[#allocation3 + $0xa4] sm:$0x1] }
 0x802   : > { %14428 = vmatmul.mubr.msk.bf16.vlgmr.msra.gmra.mxu1 %vm6425_vm8, %v20300_v58  ;;  %v9794_v38 = vsel %vm15628_vm13, %v9789_v31, %v9793_v5  ;;  %v9799_v22 = vrot.slane %v9798_v29, 4  ;;  %v9808_v45 = vrot.slane %v9806_v42, 4  ;;  %v9819_v58 = vshrl.u32 %v20388_v54, 16  ;;  %v9595_v3 = vld [vmem:[#allocation3 + $0x84] sm:$0xf] }
 0x803   : > { %14494 = vmatpush3.bf16.msra.mxu1 %v20273_v18  ;;  %14431 = vmatprep.mubr.msk.bf16.mxu1 %vm6425_vm8, %v20342_v61  ;;  %v20524_v62 = vsel %vm16429_vm14, %v10429_v33, %v10430_v48  ;;  %v9811_v12 = vrot.slane %v9809_v1, 5  ;;  %v9817_v41 = vrot.slane %v9815_v46, 5  ;;  %v9825_v18 = vshll.u32 %v20414_v8, 16 }
 0x804   : > { %14649 = vmatprep.subr.msk.bf16.mxu1 %vm550_vm0, %v20505_v37  ;;  %v9804_v61 = vsel %vm15628_vm13, %v9799_v22, %v9803_v16  ;;  %v13409_v54 = vcombine.low %v20511_v49, %v20524_v62  ;;  %v9821_v34 = vrot.slane %v9819_v58, 4  ;;  %v10434_v6 = vrot.slane %v20500_v32, 5  ;;  %v10304_v62 = vld [vmem:[#allocation3 + $0xa8] sm:$0xe] }
 0x805   : > { %v20533_v47 = vcombine.low %v9794_v38, %v9804_v61  ;;  %v9812_v10 = vor.u32 %v9811_v12, %v9808_v45  ;;  %v9827_v25 = vrot.slane %v9825_v18, 5  ;;  %v10437_v26 = vrot.slane %v20520_v7, 5  ;;  %v20586_v61 = vld [vmem:[#allocation3 + $0xb0] sm:$0x1] }
 0x806   : > { %14474 = vmatmul.mubr.msk.bf16.gmra.mxu0 %vm6425_vm8, %v13406_v20  ;;  %v9822_v8 = vor.u32 %v9821_v34, %v9817_v41  ;;  %v9830_v53 = vshrl.u32 %v9592_v59, 16  ;;  %v9833_v44 = vshll.u32 %v9592_v59, 16  ;;  %v20547_v5 = vsel %vm16429_vm14, %v13393_v52, %v10434_v6 }
 0x807   : > { %14477 = vmatprep.mubr.msk.bf16.mxu0 %vm6425_vm8, %v13407_v21  ;;  %v9813_v13 = vrot.slane %v9812_v10, 4  ;;  %v10436_v28 = vrot.slane %v10434_v6, 4  ;;  %v9839_v11 = vshll.u32 %v20428_v19, 16  ;;  %v9843_v23 = vshrl.u32 %v20428_v19, 16 }
 0x808   : > { %v9823_v20 = vrot.slane %v9822_v8, 4  ;;  %v9832_v14 = vrot.slane %v9830_v53, 4  ;;  %v9835_v17 = vrot.slane %v9833_v44, 5  ;;  %v9849_v16 = vshll.u32 %v20442_v56, 16 }
 0x809   : > { %v9818_v30 = vsel %vm15628_vm13, %v9813_v13, %v9817_v41  ;;  %v20559_v9 = vsel %vm16429_vm14, %v10436_v28, %v10437_v26  ;;  %v9841_v21 = vrot.slane %v9839_v11, 5  ;;  %v9845_v29 = vrot.slane %v9843_v23, 4 }
 0x80a   : > { %14432 = vmatmul.mubr.msk.bf16.gmra.mxu1 %vm6425_vm8, %v20380_v0  ;;  %v9828_v19 = vsel %vm15628_vm13, %v9823_v20, %v9827_v25  ;;  %v13410_v0 = vcombine.low %v20547_v5, %v20559_v9  ;;  %v9836_v31 = vor.u32 %v9835_v17, %v9832_v14  ;;  %v9851_v42 = vrot.slane %v9849_v16, 5  ;;  %v20605_v14 = vld [vmem:[#allocation3 + $0xb8] sm:$0xf] }
 0x80b   : > { %14435 = vmatprep.mubr.msk.bf16.mxu1 %vm6425_vm8, %v20424_v51  ;;  %v20570_v48 = vcombine.low %v9818_v30, %v9828_v19  ;;  %v13394_v49 = vrot.slane %v10303_v36, 9  ;;  %v10441_v56 = vrot.slane %v20550_v39, 5  ;;  %v9846_v1 = vor.u32 %v9845_v29, %v9841_v21  ;;  %v20574_v51 = vld [vmem:[#allocation3 + $0xac] sm:$0xf]  ;;  %v20613_v19 = vld [vmem:[#allocation3 + $0xbc] sm:$0x1] }
 0x80c   : > { %v9837_v33 = vrot.slane %v9836_v31, 4  ;;  %v10444_v46 = vrot.slane %v20562_v27, 5  ;;  %v9854_v57 = vshrl.u32 %v9595_v3, 16  ;;  %v9857_v45 = vshll.u32 %v9595_v3, 16  ;;  %v9601_v31 = vld [vmem:[#allocation3 + $0x9c] sm:$0xf] }
 0x80d   : > { %v10442_v38 = vsel %vm16429_vm14, %v13394_v49, %v10441_v56  ;;  %v10443_v22 = vrot.slane %v10441_v56, 4  ;;  %v9863_v58 = vshll.u32 %v20472_v63, 16  ;;  %v9847_v41 = vrot.slane %v9846_v1, 4 }
 0x80e   : > { %14478 = vmatmul.mubr.msk.bf16.gmra.mxu0 %vm6425_vm8, %v13408_v35  ;;  %v9842_v12 = vsel %vm15628_vm13, %v9837_v33, %v9841_v21  ;;  %v9856_v18 = vrot.slane %v9854_v57, 4  ;;  %v9867_v59 = vshrl.u32 %v20472_v63, 16  ;;  %v9859_v52 = vrot.slane %v9857_v45, 5  ;;  %v20621_v45 = vld [vmem:[#allocation3 + $0xc4] sm:$0xf] }
 0x80f   : > { %14481 = vmatprep.mubr.msk.bf16.mxu0 %vm6425_vm8, %v13409_v54  ;;  %v10445_v34 = vsel %vm16429_vm14, %v10443_v22, %v10444_v46  ;;  %v9865_v10 = vrot.slane %v9863_v58, 5  ;;  %v9873_v4 = vshll.u32 %v20482_v15, 16  ;;  %v9852_v35 = vsel %vm15628_vm13, %v9847_v41, %v9851_v42  ;;  %v10306_v41 = vld [vmem:[#allocation3 + $0xc0] sm:$0xe] }
 0x810   : > { %v13411_v25 = vcombine.low %v10442_v38, %v10445_v34  ;;  %v9869_v6 = vrot.slane %v9867_v59, 4  ;;  %v13395_v8 = vrot.slane %v10304_v62, 9  ;;  %v20596_v63 = vcombine.low %v9842_v12, %v9852_v35 }
 0x811   : > { %v9860_v54 = vor.u32 %v9859_v52, %v9856_v18  ;;  %v9875_v26 = vrot.slane %v9873_v4, 5  ;;  %v10448_v53 = vrot.slane %v20574_v51, 5  ;;  %v10451_v44 = vrot.slane %v20586_v61, 5 }
 0x812   : > { %14436 = vmatmul.mubr.msk.bf16.gmra.mxu1 %vm6425_vm8, %v20461_v55  ;;  %v9870_v15 = vor.u32 %v9869_v6, %v9865_v10  ;;  %v9878_v13 = vshrl.u32 %v9598_v60, 16  ;;  %v9881_v5 = vshll.u32 %v9598_v60, 16  ;;  %v9887_v55 = vshll.u32 %v20500_v32, 16 }
 0x813   : > { %14439 = vmatprep.mubr.msk.bf16.mxu1 %vm6425_vm8, %v20496_v24  ;;  %v9861_v28 = vrot.slane %v9860_v54, 4  ;;  %v10449_v11 = vsel %vm16429_vm14, %v13395_v8, %v10448_v53  ;;  %v10450_v20 = vrot.slane %v10448_v53, 4  ;;  %v9891_v30 = vshrl.u32 %v20500_v32, 16  ;;  %v10305_v24 = vld [vmem:[#allocation3 + $0xb4] sm:$0xe] }
 0x814   : > { %v9871_v17 = vrot.slane %v9870_v15, 4  ;;  %v9880_v23 = vrot.slane %v9878_v13, 4  ;;  %v9883_v36 = vrot.slane %v9881_v5, 5  ;;  %v9889_v16 = vrot.slane %v9887_v55, 5 }
 0x815   : > { %v9866_v9 = vsel %vm15628_vm13, %v9861_v28, %v9865_v10  ;;  %v10452_v21 = vsel %vm16429_vm14, %v10450_v20, %v10451_v44  ;;  %v9897_v3 = vshll.u32 %v20520_v7, 16  ;;  %v9893_v49 = vrot.slane %v9891_v30, 4  ;;  %v20633_v10 = vld [vmem:[#allocation3 + $0xc8] sm:$0x1] }
 0x816   : > { %14482 = vmatmul.mubr.msk.bf16.gmra.mxu0 %vm6425_vm8, %v13410_v0  ;;  %v9876_v29 = vsel %vm15628_vm13, %v9871_v17, %v9875_v26  ;;  %v13412_v42 = vcombine.low %v10449_v11, %v10452_v21  ;;  %v9884_v32 = vor.u32 %v9883_v36, %v9880_v23  ;;  %v13396_v1 = vrot.slane %v10305_v24, 9  ;;  %v11120_v24 = vld [vmem:[#allocation3 + $0x18] sm:$0xf] }
 0x817   : > { %14485 = vmatprep.mubr.msk.bf16.mxu0 %vm6425_vm8, %v13411_v25  ;;  %v13360_v56 = vcombine.low %v9866_v9, %v9876_v29  ;;  %v9899_v33 = vrot.slane %v9897_v3, 5  ;;  %v10455_v46 = vrot.slane %v20605_v14, 5  ;;  %v9894_v7 = vor.u32 %v9893_v49, %v9889_v16  ;;  %v9604_v25 = vld [vmem:[#allocation3 + $0xa8] sm:$0xf]  ;;  %v20657_v29 = vpop.f32.mrf.mxu0  ;;  %v20662_v49 = vld [vmem:[#allocation3 + $0x20] sm:$0x1] }
 0x818   : > { %v9885_v57 = vrot.slane %v9884_v32, 4  ;;  %v10458_v38 = vrot.slane %v20613_v19, 5  ;;  %v9902_v22 = vshrl.u32 %v9601_v31, 16  ;;  %v9905_v62 = vshll.u32 %v9601_v31, 16  ;;  %v20655_v31 = vld [vmem:[#allocation3 + $0x1c] sm:$0xf] }
 0x819   : > { %v10456_v0 = vsel %vm16429_vm14, %v13396_v1, %v10455_v46  ;;  %v10457_v58 = vrot.slane %v10455_v46, 4  ;;  %v9911_v12 = vshll.u32 %v20550_v39, 16  ;;  %v9895_v59 = vrot.slane %v9894_v7, 4 }
 0x81a   : > { %14440 = vmatmul.mubr.msk.bf16.gmra.mxu1 %vm6425_vm8, %v20533_v47  ;;  %v9890_v18 = vsel %vm15628_vm13, %v9885_v57, %v9889_v16  ;;  %v9904_v34 = vrot.slane %v9902_v22, 4  ;;  %v9915_v52 = vshrl.u32 %v20550_v39, 16  ;;  %v9907_v4 = vrot.slane %v9905_v62, 5 }
 0x81b   : > { %14443 = vmatprep.mubr.msk.bf16.mxu1 %vm6425_vm8, %v20570_v48  ;;  %v10459_v47 = vsel %vm16429_vm14, %v10457_v58, %v10458_v38  ;;  %v9913_v60 = vrot.slane %v9911_v12, 5  ;;  %v9921_v35 = vshll.u32 %v20562_v27, 16  ;;  %v9900_v48 = vsel %vm15628_vm13, %v9895_v59, %v9899_v33  ;;  %v9607_v33 = vld [vmem:[#allocation3 + $0xb4] sm:$0xf] }
 0x81c   : > { %v13413_v6 = vcombine.low %v10456_v0, %v10459_v47  ;;  %v9917_v8 = vrot.slane %v9915_v52, 4  ;;  %v13397_v54 = vrot.slane %v10306_v41, 9  ;;  %v13361_v26 = vcombine.low %v9890_v18, %v9900_v48  ;;  %v20667_v41 = vpop.f32.mrf.mxu0 }
 0x81d   : > { %v9908_v53 = vor.u32 %v9907_v4, %v9904_v34  ;;  %v9923_v15 = vrot.slane %v9921_v35, 5  ;;  %v10462_v39 = vrot.slane %v20621_v45, 5  ;;  %v10465_v13 = vrot.slane %v20633_v10, 5 }
 0x81e   : > { %14486 = vmatmul.mubr.msk.bf16.gmra.mxu0 %vm6425_vm8, %v13412_v42  ;;  %v9918_v44 = vor.u32 %v9917_v8, %v9913_v60  ;;  %v9926_v5 = vshrl.u32 %v9604_v25, 16  ;;  %v9929_v28 = vshll.u32 %v9604_v25, 16  ;;  %v9935_v55 = vshll.u32 %v20574_v51, 16  ;;  %v11123_v25 = vld [vmem:[#allocation3 + $0x24] sm:$0xf] }
 0x81f   : > { %14489 = vmatprep.mubr.msk.bf16.mxu0 %vm6425_vm8, %v13413_v6  ;;  %v9909_v27 = vrot.slane %v9908_v53, 4  ;;  %v10463_v11 = vsel %vm16429_vm14, %v13397_v54, %v10462_v39  ;;  %v10464_v20 = vrot.slane %v10462_v39, 4  ;;  %v9939_v30 = vshrl.u32 %v20574_v51, 16 }
 0x820   : > { %v9919_v17 = vrot.slane %v9918_v44, 4  ;;  %v9928_v23 = vrot.slane %v9926_v5, 4  ;;  %v9931_v36 = vrot.slane %v9929_v28, 5  ;;  %v9937_v16 = vrot.slane %v9935_v55, 5  ;;  %v20680_v5 = vpop.f32.mrf.mxu0 }
 0x821   : > { %v9914_v9 = vsel %vm15628_vm13, %v9909_v27, %v9913_v60  ;;  %v10466_v21 = vsel %vm16429_vm14, %v10464_v20, %v10465_v13  ;;  %v9945_v3 = vshll.u32 %v20586_v61, 16  ;;  %v9941_v32 = vrot.slane %v9939_v30, 4  ;;  %v20678_v13 = vld [vmem:[#allocation3 + $0x28] sm:$0xf] }
 0x822   : > { %14444 = vmatmul.mubr.msk.bf16.gmra.mxu1 %vm6425_vm8, %v20596_v63  ;;  %v9924_v51 = vsel %vm15628_vm13, %v9919_v17, %v9923_v15  ;;  %v13414_v42 = vcombine.low %v10463_v11, %v10466_v21  ;;  %v9932_v63 = vor.u32 %v9931_v36, %v9928_v23  ;;  %v11169_v57 = vshrl.u32 %v11120_v24, 16  ;;  %v20685_v17 = vld [vmem:[#allocation3 + $0x2c] sm:$0x1]  ;;  %v9610_v36 = vld [vmem:[#allocation3 + $0xc0] sm:$0xf] }
 0x823   : > { %14447 = vmatprep.mubr.msk.bf16.mxu1 %vm6425_vm8, %v13360_v56  ;;  %v13362_v1 = vcombine.low %v9914_v9, %v9924_v51  ;;  %v9947_v46 = vrot.slane %v9945_v3, 5  ;;  %v11172_v7 = vshll.u32 %v11120_v24, 16  ;;  %v9942_v38 = vor.u32 %v9941_v32, %v9937_v16 }
 0x824   : > { %v9933_v61 = vrot.slane %v9932_v63, 4  ;;  %v11178_v22 = vshll.u32 %v20655_v31, 16  ;;  %v11182_v0 = vshrl.u32 %v20655_v31, 16  ;;  %v11171_v56 = vrot.slane %v11169_v57, 4 }
 0x825   : > { %v11174_v58 = vrot.slane %v11172_v7, 5  ;;  %v11188_v62 = vshll.u32 %v20662_v49, 16  ;;  %v9950_v12 = vshrl.u32 %v9607_v33, 16  ;;  %v9943_v59 = vrot.slane %v9942_v38, 4  ;;  %v11126_v38 = vld [vmem:[#allocation3 + $0x30] sm:$0xf] }
 0x826   : > { %14490 = vmatmul.mubr.msk.bf16.gmra.mxu0 %vm6425_vm8, %v13414_v42  ;;  %v9938_v18 = vsel %vm15628_vm13, %v9933_v61, %v9937_v16  ;;  %v11180_v34 = vrot.slane %v11178_v22, 5  ;;  %v11184_v52 = vrot.slane %v11182_v0, 4  ;;  %v9953_v35 = vshll.u32 %v9607_v33, 16  ;;  %v20691_v42 = vpop.f32.mrf.mxu0 }
 0x827   : > { %v11175_v47 = vor.u32 %v11174_v58, %v11171_v56  ;;  %v11190_v4 = vrot.slane %v11188_v62, 5  ;;  %v9952_v60 = vrot.slane %v9950_v12, 4  ;;  %v9948_v48 = vsel %vm15628_vm13, %v9943_v59, %v9947_v46 }
 0x828   : > { %v11185_v6 = vor.u32 %v11184_v52, %v11180_v34  ;;  %v9959_v8 = vshll.u32 %v20605_v14, 16  ;;  %v9963_v54 = vshrl.u32 %v20605_v14, 16  ;;  %v13363_v53 = vcombine.low %v9938_v18, %v9948_v48 }
 0x829   : > { %v11176_v15 = vrot.slane %v11175_v47, 4  ;;  %v9955_v39 = vrot.slane %v9953_v35, 5  ;;  %v9969_v44 = vshll.u32 %v20613_v19, 16  ;;  %v11193_v20 = vshrl.u32 %v11123_v25, 16 }
 0x82a   : > { %14448 = vmatmul.mubr.msk.bf16.gmra.mxu1 %vm6425_vm8, %v13361_v26  ;;  %v11186_v28 = vrot.slane %v11185_v6, 4  ;;  %v9961_v27 = vrot.slane %v9959_v8, 5  ;;  %v9965_v11 = vrot.slane %v9963_v54, 4  ;;  %v11196_v23 = vshll.u32 %v11123_v25, 16  ;;  %v20710_v8 = vld [vmem:[#allocation3 + $0x38] sm:$0x1] }
 0x82b   : > { %14451 = vmatprep.mubr.msk.bf16.mxu1 %vm6425_vm8, %v13362_v1  ;;  %v11181_v14 = vsel %vm15628_vm13, %v11176_v15, %v11180_v34  ;;  %v9956_v55 = vor.u32 %v9955_v39, %v9952_v60  ;;  %v9971_v26 = vrot.slane %v9969_v44, 5  ;;  %v11195_v24 = vrot.slane %v11193_v20, 4  ;;  %v20701_v34 = vld [vmem:[#allocation3 + $0x34] sm:$0xf] }
 0x82c   : > { %v11191_v19 = vsel %vm15628_vm13, %v11186_v28, %v11190_v4  ;;  %v9966_v30 = vor.u32 %v9965_v11, %v9961_v27  ;;  %v11202_v9 = vshll.u32 %v20678_v13, 16  ;;  %v11198_v3 = vrot.slane %v11196_v23, 5  ;;  %v11129_v28 = vld [vmem:[#allocation3 + $0x3c] sm:$0xf] }
 0x82d   : > { %v13465_v21 = vcombine.low %v11181_v14, %v11191_v19  ;;  %v9957_v16 = vrot.slane %v9956_v55, 4  ;;  %v11206_v51 = vshrl.u32 %v20678_v13, 16  ;;  %v11212_v33 = vshll.u32 %v20685_v17, 16  ;;  %v20718_v14 = vld [vmem:[#allocation3 + $0x40] sm:$0xf] }
 0x82e   : > { %v9967_v63 = vrot.slane %v9966_v30, 4  ;;  %v11204_v32 = vrot.slane %v11202_v9, 5  ;;  %v9974_v1 = vshrl.u32 %v9610_v36, 16  ;;  %v11199_v57 = vor.u32 %v11198_v3, %v11195_v24  ;;  %v20703_v52 = vpop.f32.mrf.mxu0 }
 0x82f   : > { %14529 = vmatprep.mubr.msk.bf16.mxu0 %vm6425_vm8, %v13465_v21  ;;  %v9962_v46 = vsel %vm15628_vm13, %v9957_v16, %v9961_v27  ;;  %v11208_v7 = vrot.slane %v11206_v51, 4  ;;  %v9977_v61 = vshll.u32 %v9610_v36, 16  ;;  %v11214_v0 = vrot.slane %v11212_v33, 5  ;;  %v20725_v21 = vld [vmem:[#allocation3 + $0x44] sm:$0x1] }
 0x830   : > { %v9972_v22 = vsel %vm15628_vm13, %v9967_v63, %v9971_v26  ;;  %v9976_v56 = vrot.slane %v9974_v1, 4  ;;  %v9983_v58 = vshll.u32 %v20621_v45, 16  ;;  %v11200_v12 = vrot.slane %v11199_v57, 4 }
 0x831   : > { %v13364_v62 = vcombine.low %v9962_v46, %v9972_v22  ;;  %v11209_v18 = vor.u32 %v11208_v7, %v11204_v32  ;;  %v9979_v59 = vrot.slane %v9977_v61, 5  ;;  %v9987_v4 = vshrl.u32 %v20621_v45, 16  ;;  %v11132_v61 = vld [vmem:[#allocation3 + $0x48] sm:$0xf] }
 0x832   : > { %14452 = vmatmul.mubr.msk.bf16.gmra.mxu1 %vm6425_vm8, %v13363_v53  ;;  %v9985_v47 = vrot.slane %v9983_v58, 5  ;;  %v9993_v60 = vshll.u32 %v20633_v10, 16  ;;  %v11217_v35 = vshrl.u32 %v11126_v38, 16  ;;  %v11205_v25 = vsel %vm15628_vm13, %v11200_v12, %v11204_v32  ;;  %v20712_v53 = vpop.f32.mrf.mxu0  ;;  %v20735_v58 = vld [vmem:[#allocation3 + $0x4c] sm:$0xf] }
 0x833   : > { %14455 = vmatprep.mubr.msk.bf16.mxu1 %vm6425_vm8, %v13364_v62  ;;  %v11210_v48 = vrot.slane %v11209_v18, 4  ;;  %v9980_v6 = vor.u32 %v9979_v59, %v9976_v56  ;;  %v11220_v54 = vshll.u32 %v11126_v38, 16  ;;  %v9989_v15 = vrot.slane %v9987_v4, 4 }
 0x834   : > { %v9995_v39 = vrot.slane %v9993_v60, 5  ;;  %v11219_v44 = vrot.slane %v11217_v35, 4  ;;  %v11226_v45 = vshll.u32 %v20701_v34, 16  ;;  %v11230_v20 = vshrl.u32 %v20701_v34, 16  ;;  %v20720_v55 = vpop.f32.mrf.mxu0  ;;  %v14727_v60 = vld [vmem:[#allocation3 + $0x18] sm:$0xff]  }
 0x835   : > { %v11215_v10 = vsel %vm15628_vm13, %v11210_v48, %v11214_v0  ;;  %v9981_v27 = vrot.slane %v9980_v6, 4  ;;  %v11222_v11 = vrot.slane %v11220_v54, 5  ;;  %v9990_v23 = vor.u32 %v9989_v15, %v9985_v47  ;;  %v20743_v48 = vld [vmem:[#allocation3 + $0x50] sm:$0x1] }
 0x836   : > { %v13466_v26 = vcombine.low %v11205_v25, %v11215_v10  ;;  %v11228_v36 = vrot.slane %v11226_v45, 5  ;;  %v11236_v19 = vshll.u32 %v20710_v8, 16  ;;  %v11232_v9 = vrot.slane %v11230_v20, 4  ;;  %v20727_v3 = vpop.f32.mrf.mxu0 }
 0x837   : > { %v9986_v30 = vsel %vm15628_vm13, %v9981_v27, %v9985_v47  ;;  %v11223_v24 = vor.u32 %v11222_v11, %v11219_v44  ;;  %v11241_v16 = vshrl.u32 %v11129_v28, 16  ;;  %v9991_v51 = vrot.slane %v9990_v23, 4 }
 0x838   : > { %14530 = vmatmul.mubr.msk.bf16.vlgmr.msra.gmra.mxu0 %vm6425_vm8, %v13466_v26  ;;  %v11238_v63 = vrot.slane %v11236_v19, 5  ;;  %v11244_v32 = vshll.u32 %v11129_v28, 16  ;;  %v11250_v33 = vshll.u32 %v20718_v14, 16  ;;  %v11233_v46 = vor.u32 %v11232_v9, %v11228_v36 }
 0x839   : > { %v11224_v1 = vrot.slane %v11223_v24, 4  ;;  %v11243_v57 = vrot.slane %v11241_v16, 4  ;;  %v11254_v7 = vshrl.u32 %v20718_v14, 16  ;;  %v9996_v38 = vsel %vm15628_vm13, %v9991_v51, %v9995_v39  ;;  %v11135_v51 = vld [vmem:[#allocation3 + $0x54] sm:$0xf] }
 0x83a   : > { %v11246_v22 = vrot.slane %v11244_v32, 5  ;;  %v11252_v0 = vrot.slane %v11250_v33, 5  ;;  %v11260_v56 = vshll.u32 %v20725_v21, 16  ;;  %v13365_v62 = vcombine.low %v9986_v30, %v9996_v38 }
 0x83b   : > { %v11229_v12 = vsel %vm15628_vm13, %v11224_v1, %v11228_v36  ;;  %v11234_v18 = vrot.slane %v11233_v46, 4  ;;  %v11256_v59 = vrot.slane %v11254_v7, 4  ;;  %v20739_v47 = vpop.f32.mrf.mxu1  ;;  %v20741_v4 = vpop.f32.mrf.mxu0  ;;  %v11265_v6 = vshrl.u32 %v11132_v61, 16  ;;  %v20771_v7 = vld [vmem:[#allocation3 + $0x5c] sm:$0x1] }
 0x83c   : > { %v11247_v35 = vor.u32 %v11246_v22, %v11243_v57  ;;  %v11262_v25 = vrot.slane %v11260_v56, 5  ;;  %14456 = vmatmul.mubr.msk.bf16.gmra.mxu1 %vm6425_vm8, %v13365_v62  ;;  %v11268_v39 = vshll.u32 %v11132_v61, 16  ;;  %v11274_v44 = vshll.u32 %v20735_v58, 16  ;;  %v11138_v61 = vld [vmem:[#allocation3 + $0x60] sm:$0xf] }
 0x83d   : > { %v11239_v54 = vsel %vm15628_vm13, %v11234_v18, %v11238_v63  ;;  %v11257_v15 = vor.u32 %v11256_v59, %v11252_v0  ;;  %v20749_v45 = vpop.f32.mrf.mxu1  ;;  %v20751_v28 = vpop.f32.mrf.mxu0  ;;  %14495 = vmatprep.mubr.msk.bf16.mxu1 %vm6425_vm8, %v14727_v60  ;;  %v11267_v11 = vrot.slane %v11265_v6, 4  ;;  %v11278_v20 = vshrl.u32 %v20735_v58, 16  ;;  %v20763_v63 = vld [vmem:[#allocation3 + $0x58] sm:$0xf]  ;;  %v14729_v59 = vld [vmem:[#allocation3 + $0x30] sm:$0xff]  }
 0x83e   : > { %v13467_v10 = vcombine.low %v11229_v12, %v11239_v54  ;;  %v11248_v27 = vrot.slane %v11247_v35, 4  ;;  %v11270_v23 = vrot.slane %v11268_v39, 5  ;;  %v11276_v36 = vrot.slane %v11274_v44, 5  ;;  %v14728_v12 = vld [vmem:[#allocation3 + $0x24] sm:$0xff]  }
 0x83f   : > { %v11258_v26 = vrot.slane %v11257_v15, 4  ;;  %v11284_v19 = vshll.u32 %v20743_v48, 16  ;;  %v20756_v30 = vpop.f32.mrf.mxu1  ;;  %v20758_v24 = vpop.f32.mrf.mxu0  ;;  %v11280_v16 = vrot.slane %v11278_v20, 4  ;;  %v12121_v1 = vsel %vm550_vm0, %v20505_v37, 0  ;;  %v20784_v15 = vld [vmem:[#allocation3 + $0x64] sm:$0xf] }
 0x840   : > { %14533 = vmatprep.mubr.msk.bf16.mxu0 %vm6425_vm8, %v13467_v10  ;;  %v11253_v9 = vsel %vm15628_vm13, %v11248_v27, %v11252_v0  ;;  %v11271_v33 = vor.u32 %v11270_v23, %v11267_v11  ;;  %v12428_v46 = vsel %vm2360_vm10, %v20374_v40, 0  ;;  %v11289_v37 = vshrl.u32 %v11135_v51, 16  ;;  %v20789_v20 = vld [vmem:[#allocation3 + $0x68] sm:$0x1] }
 0x841   : > { %v11263_v32 = vsel %vm15628_vm13, %v11258_v26, %v11262_v25  ;;  %v8337_v57 = vpop.f32.mrf.mxu1  ;;  %v20773_v38 = vpop.f32.mrf.mxu0  ;;  %v11281_v0 = vor.u32 %v11280_v16, %v11276_v36  ;;  %v11286_v56 = vrot.slane %v11284_v19, 5  ;;  %14596 = vmatpush3.bf16.msra.mxu0 %v12428_v46  ;;  %v11292_v60 = vshll.u32 %v11135_v51, 16 }
 0x842   : > { %v13468_v22 = vcombine.low %v11253_v9, %v11263_v32  ;;  %v20776_v62 = vadd.f32 %v20691_v42, %v8337_v57  ;;  %v11272_v18 = vrot.slane %v11271_v33, 4  ;;  %v11298_v40 = vshll.u32 %v20763_v63, 16 }
 0x843   : > { %v20779_v35 = vpop.f32.mrf.mxu0  ;;  %v11282_v25 = vrot.slane %v11281_v0, 4  ;;  %v11302_v6 = vshrl.u32 %v20763_v63, 16  ;;  %v11308_v54 = vshll.u32 %v20771_v7, 16  ;;  %v11313_v42 = vshrl.u32 %v11138_v61, 16 }
 0x844   : > { %14534 = vmatmul.mubr.msk.bf16.gmra.mxu0 %vm6425_vm8, %v13468_v22  ;;  %14496 = vmatmul.mubr.msk.bf16.vlgmr.msra.gmra.mxu1 %vm6425_vm8, %v14728_v12  ;;  %v11277_v39 = vsel %vm15628_vm13, %v11272_v18, %v11276_v36  ;;  %v11291_v44 = vrot.slane %v11289_v37, 4  ;;  %v11294_v10 = vrot.slane %v11292_v60, 5  ;;  %v11300_v27 = vrot.slane %v11298_v40, 5  ;;  %v11141_v36 = vld [vmem:[#allocation3 + $0x6c] sm:$0xf] }
 0x845   : > { %v14297_v11 = vpop.f32.mrf.mxu1  ;;  %v20791_v26 = vpop.f32.mrf.mxu0  ;;  %v11287_v23 = vsel %vm15628_vm13, %v11282_v25, %v11286_v56  ;;  %14562 = vmatpush3.bf16.msra.mxu1 %v12121_v1  ;;  %14499 = vmatprep.mubr.msk.bf16.mxu1 %vm6425_vm8, %v14729_v59  ;;  %v11304_v19 = vrot.slane %v11302_v6, 4  ;;  %v11310_v9 = vrot.slane %v11308_v54, 5  ;;  %v11315_v33 = vrot.slane %v11313_v42, 4  ;;  %v20810_v42 = vld [vmem:[#allocation3 + $0x70] sm:$0xf] }
 0x846   : > { %v20797_v16 = vadd.f32 %v20703_v52, %v14297_v11  ;;  %v13469_v51 = vcombine.low %v11277_v39, %v11287_v23  ;;  %v11295_v32 = vor.u32 %v11294_v10, %v11291_v44  ;;  %v11316_v46 = vshll.u32 %v11138_v61, 16  ;;  %v14730_v44 = vld [vmem:[#allocation3 + $0x3c] sm:$0xff]   ;;  %v20817_v23 = vld [vmem:[#allocation3 + $0x74] sm:$0x1] }
 0x847   : > { %v8350_v57 = vpop.f32.mrf.mxu1  ;;  %v20799_v22 = vpop.f32.mrf.mxu0  ;;  %v11305_v0 = vor.u32 %v11304_v19, %v11300_v27  ;;  %v11322_v12 = vshll.u32 %v20784_v15, 16  ;;  %v11326_v1 = vshrl.u32 %v20784_v15, 16  ;;  %v11332_v56 = vshll.u32 %v20789_v20, 16  ;;  %22417 = vst [vmem:[#allocation5_spill] sm:$0xff] %v20817_v23 }
 0x848   : > { %14537 = vmatprep.mubr.msk.bf16.mxu0 %vm6425_vm8, %v13469_v51  ;;  %v11296_v18 = vrot.slane %v11295_v32, 4  ;;  %v11318_v52 = vrot.slane %v11316_v46, 5  ;;  %v20806_v59 = vadd.f32 %v20712_v53, %v8350_v57  ;;  %v11337_v60 = vshrl.u32 %v11141_v36, 16  ;;  %v11144_v51 = vld [vmem:[#allocation3 + $0x78] sm:$0xf]  ;;  %v14731_v57 = vld [vmem:[#allocation3 + $0x48] sm:$0xff]  }
 0x849   : > { %v14298_v37 = vpop.f32.mrf.mxu1  ;;  %v20808_v61 = vpop.f32.mrf.mxu0  ;;  %v11306_v40 = vrot.slane %v11305_v0, 4  ;;  %v11324_v25 = vrot.slane %v11322_v12, 5  ;;  %v11328_v6 = vrot.slane %v11326_v1, 4  ;;  %v11334_v54 = vrot.slane %v11332_v56, 5 }
 0x84a   : > { %22415 = vst [vmem:[#allocation47_spill] sm:$0xff] %v20806_v59  ;;  %v11301_v39 = vsel %vm15628_vm13, %v11296_v18, %v11300_v27  ;;  %v11319_v10 = vor.u32 %v11318_v52, %v11315_v33  ;;  %v20815_v11 = vadd.f32 %v20720_v55, %v14298_v37  ;;  %v11339_v19 = vrot.slane %v11337_v60, 4 }
 0x84b   : > { %v8353_v53 = vpop.f32.mrf.mxu1  ;;  %v11311_v32 = vsel %vm15628_vm13, %v11306_v40, %v11310_v9  ;;  %v11329_v46 = vor.u32 %v11328_v6, %v11324_v25  ;;  %v11340_v12 = vshll.u32 %v11141_v36, 16  ;;  %v20824_v27 = vpop.f32.mrf.mxu0  ;;  %v11346_v1 = vshll.u32 %v20810_v42, 16 }
 0x84c   : > { %22416 = vst [vmem:[#allocation23_spill] sm:$0xff] %v20815_v11  ;;  %v20822_v0 = vadd.f32 %v20727_v3, %v8353_v53  ;;  %v13470_v33 = vcombine.low %v11301_v39, %v11311_v32  ;;  %14500 = vmatmul.mubr.msk.bf16.gmra.mxu1 %vm6425_vm8, %v14730_v44  ;;  %v11320_v55 = vrot.slane %v11319_v10, 4  ;;  %v11350_v56 = vshrl.u32 %v20810_v42, 16  ;;  %v20831_v3 = vld [vmem:[#allocation3 + $0x7c] sm:$0xf] }
 0x84d   : > { %v11330_v18 = vrot.slane %v11329_v46, 4  ;;  %14503 = vmatprep.mubr.msk.bf16.mxu1 %vm6425_vm8, %v14731_v57  ;;  %v11342_v9 = vrot.slane %v11340_v12, 5  ;;  %v11356_v52 = vshll.u32 %v20817_v23, 16  ;;  %22419 = vst [vmem:[#allocation17_spill] sm:$0xff] %v20831_v3  ;;  %v11361_v36 = vshrl.u32 %v11144_v51, 16  ;;  %v20833_v60 = vpop.f32.mrf.mxu0  ;;  %v14735_v23 = vld [vmem:[#allocation3 + $0x78] sm:$0xff]  }
 0x84e   : > { %22418 = vst [vmem:[#allocation14_spill] sm:$0xff] %v20822_v0  ;;  %v14301_v37 = vpop.f32.mrf.mxu1  ;;  %14538 = vmatmul.mubr.msk.bf16.gmra.mxu0 %vm6425_vm8, %v13470_v33  ;;  %v11325_v40 = vsel %vm15628_vm13, %v11320_v55, %v11324_v25  ;;  %v11348_v6 = vrot.slane %v11346_v1, 5  ;;  %v11352_v39 = vrot.slane %v11350_v56, 4  ;;  %v20841_v10 = vld [vmem:[#allocation3 + $0x80] sm:$0x1]  ;;  %v11364_v59 = vshll.u32 %v11144_v51, 16 }
 0x84f   : > { %v20839_v44 = vadd.f32 %v20741_v4, %v14301_v37  ;;  %22421 = vst [vmem:[#allocation46_spill] sm:$0xff] %v20841_v10  ;;  %v11335_v53 = vsel %vm15628_vm13, %v11330_v18, %v11334_v54  ;;  %v11343_v32 = vor.u32 %v11342_v9, %v11339_v19  ;;  %v11358_v46 = vrot.slane %v11356_v52, 5  ;;  %v20845_v0 = vpop.f32.mrf.mxu0  ;;  %v11147_v55 = vld [vmem:[#allocation3 + $0x84] sm:$0xf]  ;;  %v14732_v9 = vld [vmem:[#allocation3 + $0x54] sm:$0xff]  }
 0x850   : > { %v11363_v57 = vrot.slane %v11361_v36, 4  ;;  %v8366_v12 = vpop.f32.mrf.mxu1  ;;  %v13471_v33 = vcombine.low %v11325_v40, %v11335_v53  ;;  %v11353_v11 = vor.u32 %v11352_v39, %v11348_v6  ;;  %v11370_v25 = vshll.u32 %v20831_v3, 16  ;;  %v20859_v40 = vld [vmem:[#allocation3 + $0x88] sm:$0xf] }
 0x851   : > { %22420 = vst [vmem:[#allocation49_spill] sm:$0xff] %v20839_v44  ;;  %v11344_v1 = vrot.slane %v11343_v32, 4  ;;  %v11374_v4 = vshrl.u32 %v20831_v3, 16  ;;  %v11380_v56 = vshll.u32 %v20841_v10, 16  ;;  %v20851_v37 = vadd.f32 %v20751_v28, %v8366_v12  ;;  %v20853_v19 = vpop.f32.mrf.mxu0  ;;  %22424 = vst [vmem:[#allocation36_spill] sm:$0xff] %v20859_v40  ;;  %v14733_v32 = vld [vmem:[#allocation3 + $0x60] sm:$0xff]  }
 0x852   : > { %v14302_v54 = vpop.f32.mrf.mxu1  ;;  %14541 = vmatprep.mubr.msk.bf16.mxu0 %vm6425_vm8, %v13471_v33  ;;  %v11354_v18 = vrot.slane %v11353_v11, 4  ;;  %v11366_v52 = vrot.slane %v11364_v59, 5  ;;  %v11372_v51 = vrot.slane %v11370_v25, 5  ;;  %v11385_v44 = vshrl.u32 %v11147_v55, 16 }
 0x853   : > { %22422 = vst [vmem:[#allocation27_spill] sm:$0xff] %v20851_v37  ;;  %v20857_v36 = vadd.f32 %v20758_v24, %v14302_v54  ;;  %v11349_v39 = vsel %vm15628_vm13, %v11344_v1, %v11348_v6  ;;  %v11376_v53 = vrot.slane %v11374_v4, 4  ;;  %v11382_v28 = vrot.slane %v11380_v56, 5  ;;  %v20863_v37 = vld [vmem:[#allocation3 + $0x8c] sm:$0x1] }
 0x854   : > { %v8369_v12 = vpop.f32.mrf.mxu1  ;;  %22425 = vst [vmem:[#allocation48_spill] sm:$0xff] %v20863_v37  ;;  %v20865_v33 = vpop.f32.mrf.mxu0  ;;  %v11359_v59 = vsel %vm15628_vm13, %v11354_v18, %v11358_v46  ;;  %14504 = vmatmul.mubr.msk.bf16.gmra.mxu1 %vm6425_vm8, %v14732_v9  ;;  %v11367_v24 = vor.u32 %v11366_v52, %v11363_v57  ;;  %v11388_v25 = vshll.u32 %v11147_v55, 16  ;;  %v11150_v6 = vld [vmem:[#allocation3 + $0x90] sm:$0xf]  ;;  %v11387_v56 = vrot.slane %v11385_v44, 4 }
 0x855   : > { %22423 = vst [vmem:[#allocation33_spill] sm:$0xff] %v20857_v36  ;;  %v20871_v11 = vadd.f32 %v20773_v38, %v8369_v12  ;;  %v13472_v1 = vcombine.low %v11349_v39, %v11359_v59  ;;  %v11377_v4 = vor.u32 %v11376_v53, %v11372_v51  ;;  %14507 = vmatprep.mubr.msk.bf16.mxu1 %vm6425_vm8, %v14733_v32  ;;  %v11394_v54 = vshll.u32 %v20859_v40, 16  ;;  %v20879_v38 = vld [vmem:[#allocation3 + $0x94] sm:$0xf] }
 0x856   : > { %v20875_v36 = vpop.f32.mrf.mxu0  ;;  %v11368_v10 = vrot.slane %v11367_v24, 4  ;;  %v11390_v3 = vrot.slane %v11388_v25, 5  ;;  %v11398_v46 = vshrl.u32 %v20859_v40, 16  ;;  %v11404_v57 = vshll.u32 %v20863_v37, 16  ;;  %22427 = vst [vmem:[#allocation51_spill] sm:$0xff] %v20879_v38  ;;  %v14734_v40 = vld [vmem:[#allocation3 + $0x6c] sm:$0xff]  }
 0x857   : > { %22426 = vst [vmem:[#allocation21_spill] sm:$0xff] %v20871_v11  ;;  %v14305_v18 = vpop.f32.mrf.mxu1  ;;  %14542 = vmatmul.mubr.msk.bf16.gmra.mxu0 %vm6425_vm8, %v13472_v1  ;;  %v11378_v55 = vrot.slane %v11377_v4, 4  ;;  %v11396_v9 = vrot.slane %v11394_v54, 5  ;;  %v11409_v44 = vshrl.u32 %v11150_v6, 16  ;;  %v20889_v24 = vld [vmem:[#allocation3 + $0x98] sm:$0x1] }
 0x858   : > { %v20883_v52 = vadd.f32 %v20779_v35, %v14305_v18  ;;  %v20885_v39 = vpop.f32.mrf.mxu0  ;;  %v11373_v53 = vsel %vm15628_vm13, %v11368_v10, %v11372_v51  ;;  %v11391_v32 = vor.u32 %v11390_v3, %v11387_v56  ;;  %v11400_v12 = vrot.slane %v11398_v46, 4  ;;  %22429 = vst [vmem:[#allocation35_spill] sm:$0xff] %v20889_v24  ;;  %v11153_v51 = vld [vmem:[#allocation3 + $0x9c] sm:$0xf] }
 0x859   : > { %v11406_v59 = vrot.slane %v11404_v57, 5  ;;  %v8382_v25 = vpop.f32.mrf.mxu1  ;;  %v11383_v1 = vsel %vm15628_vm13, %v11378_v55, %v11382_v28  ;;  %v11411_v4 = vrot.slane %v11409_v44, 4  ;;  %v11412_v54 = vshll.u32 %v11150_v6, 16  ;;  %v20901_v6 = vld [vmem:[#allocation3 + $0xa0] sm:$0xf] }
 0x85a   : > { %22428 = vst [vmem:[#allocation16_spill] sm:$0xff] %v20883_v52  ;;  %v11418_v35 = vshll.u32 %v20879_v38, 16  ;;  %v20894_v18 = vpop.f32.mrf.mxu0  ;;  %v13473_v52 = vcombine.low %v11373_v53, %v11383_v1  ;;  %v11392_v11 = vrot.slane %v11391_v32, 4  ;;  %v11401_v37 = vor.u32 %v11400_v12, %v11396_v9  ;;  %22431 = vst [vmem:[#allocation9_spill] sm:$0xff] %v20901_v6 }
 0x85b   : > { %v11422_v3 = vshrl.u32 %v20879_v38, 16  ;;  %v14306_v10 = vpop.f32.mrf.mxu1  ;;  %v11414_v56 = vrot.slane %v11412_v54, 5  ;;  %v11428_v57 = vshll.u32 %v20889_v24, 16  ;;  %v20899_v28 = vadd.f32 %v20791_v26, %v8382_v25  ;;  %v20914_v25 = vld [vmem:[#allocation3 + $0xa4] sm:$0x1] }
 0x85c   : > { %v11420_v46 = vrot.slane %v11418_v35, 5  ;;  %14545 = vmatprep.mubr.msk.bf16.mxu0 %vm6425_vm8, %v13473_v52  ;;  %v11397_v55 = vsel %vm15628_vm13, %v11392_v11, %v11396_v9  ;;  %v11402_v44 = vrot.slane %v11401_v37, 4  ;;  %14508 = vmatmul.mubr.msk.bf16.gmra.mxu1 %vm6425_vm8, %v14734_v40  ;;  %v20908_v32 = vadd.f32 %v20799_v22, %v14306_v10  ;;  %22434 = vst [vmem:[#allocation29_spill] sm:$0xff] %v20914_v25 }
 0x85d   : > { %22430 = vst [vmem:[#allocation38_spill] sm:$0xff] %v20899_v28  ;;  %v11424_v53 = vrot.slane %v11422_v3, 4  ;;  %v8385_v12 = vpop.f32.mrf.mxu1  ;;  %v11415_v1 = vor.u32 %v11414_v56, %v11411_v4  ;;  %v11430_v54 = vrot.slane %v11428_v57, 5  ;;  %14511 = vmatprep.mubr.msk.bf16.mxu1 %vm6425_vm8, %v14735_v23  ;;  %v11433_v52 = vshrl.u32 %v11153_v51, 16  ;;  %v20916_v35 = vpop.f32.mrf.mxu0  ;;  %v11156_v4 = vld [vmem:[#allocation3 + $0xa8] sm:$0xf] }
 0x85e   : > { %22432 = vst [vmem:[#allocation53_spill] sm:$0xff] %v20908_v32  ;;  %v20912_v26 = vadd.f32 %v20808_v61, %v8385_v12  ;;  %v11407_v37 = vsel %vm15628_vm13, %v11402_v44, %v11406_v59  ;;  %v11436_v11 = vshll.u32 %v11153_v51, 16  ;;  %v11442_v22 = vshll.u32 %v20901_v6, 16  ;;  %v20925_v28 = vld [vmem:[#allocation3 + $0xac] sm:$0xf] }
 0x85f   : > { %v11425_v40 = vor.u32 %v11424_v53, %v11420_v46  ;;  %v14309_v9 = vpop.f32.mrf.mxu1  ;;  %v13474_v3 = vcombine.low %v11397_v55, %v11407_v37  ;;  %v11416_v10 = vrot.slane %v11415_v1, 4  ;;  %v11435_v23 = vrot.slane %v11433_v52, 4  ;;  %v20922_v56 = vpop.f32.mrf.mxu0  ;;  %22435 = vst [vmem:[#allocation11_spill] sm:$0xff] %v20925_v28  ;;  %v20933_v53 = vld [vmem:[#allocation3 + $0xb0] sm:$0x1] }
 0x860   : > { %22433 = vst [vmem:[#allocation50_spill] sm:$0xff] %v20912_v26  ;;  %v11446_v61 = vshrl.u32 %v20901_v6, 16  ;;  %v11438_v12 = vrot.slane %v11436_v11, 5  ;;  %v11444_v26 = vrot.slane %v11442_v22, 5  ;;  %v11452_v32 = vshll.u32 %v20914_v25, 16  ;;  %22437 = vst [vmem:[#allocation52_spill] sm:$0xff] %v20933_v53 }
 0x861   : > { %v11426_v57 = vrot.slane %v11425_v40, 4  ;;  %v8398_v59 = vpop.f32.mrf.mxu1  ;;  %14546 = vmatmul.mubr.msk.bf16.gmra.mxu0 %vm6425_vm8, %v13474_v3  ;;  %v11421_v51 = vsel %vm15628_vm13, %v11416_v10, %v11420_v46  ;;  %v20931_v44 = vadd.f32 %v20824_v27, %v14309_v9  ;;  %v11457_v1 = vshrl.u32 %v11156_v4, 16  ;;  %v20935_v52 = vpop.f32.mrf.mxu0  ;;  %v14736_v22 = vld [vmem:[#allocation3 + $0x84] sm:$0xff]   ;;  %v14737_v27 = vld [vmem:[#allocation3 + $0x90] sm:$0xff]  }
 0x862   : > { %v11448_v55 = vrot.slane %v11446_v61, 4  ;;  %v11439_v40 = vor.u32 %v11438_v12, %v11435_v23  ;;  %v11454_v11 = vrot.slane %v11452_v32, 5  ;;  %v11460_v25 = vshll.u32 %v11156_v4, 16  ;;  %v11159_v23 = vld [vmem:[#allocation3 + $0xb4] sm:$0xf] }
 0x863   : > { %22436 = vst [vmem:[#allocation39_spill] sm:$0xff] %v20931_v44  ;;  %v11431_v37 = vsel %vm15628_vm13, %v11426_v57, %v11430_v54  ;;  %v14310_v3 = vpop.f32.mrf.mxu1  ;;  %v11459_v46 = vrot.slane %v11457_v1, 4  ;;  %v11466_v10 = vshll.u32 %v20925_v28, 16  ;;  %v20940_v9 = vpop.f32.mrf.mxu0  ;;  %v11470_v38 = vshrl.u32 %v20925_v28, 16 }
 0x864   : > { %v13475_v6 = vcombine.low %v11421_v51, %v11431_v37  ;;  %v11449_v24 = vor.u32 %v11448_v55, %v11444_v26  ;;  %v11440_v61 = vrot.slane %v11439_v40, 4  ;;  %14512 = vmatmul.mubr.msk.bf16.gmra.mxu1 %vm6425_vm8, %v14736_v22  ;;  %v11462_v44 = vrot.slane %v11460_v25, 5  ;;  %v20953_v55 = vld [vmem:[#allocation3 + $0xb8] sm:$0xf] }
 0x865   : > { %v11476_v54 = vshll.u32 %v20933_v53, 16  ;;  %v8401_v32 = vpop.f32.mrf.mxu1  ;;  %v11468_v57 = vrot.slane %v11466_v10, 5  ;;  %14515 = vmatprep.mubr.msk.bf16.mxu1 %vm6425_vm8, %v14737_v27  ;;  %v20948_v12 = vadd.f32 %v20833_v60, %v8398_v59  ;;  %v20951_v51 = vadd.f32 %v20845_v0, %v14310_v3  ;;  %22440 = vst [vmem:[#allocation12_spill] sm:$0xff] %v20953_v55 }
 0x866   : > { %14549 = vmatprep.mubr.msk.bf16.mxu0 %vm6425_vm8, %v13475_v6  ;;  %v11450_v4 = vrot.slane %v11449_v24, 4  ;;  %v20955_v25 = vpop.f32.mrf.mxu0  ;;  %v11445_v1 = vsel %vm15628_vm13, %v11440_v61, %v11444_v26  ;;  %v11463_v37 = vor.u32 %v11462_v44, %v11459_v46  ;;  %v11472_v40 = vrot.slane %v11470_v38, 4  ;;  %v20959_v24 = vld [vmem:[#allocation3 + $0xbc] sm:$0x1]  ;;  %v11162_v38 = vld [vmem:[#allocation3 + $0xc0] sm:$0xf] }
 0x867   : > { %22438 = vst [vmem:[#allocation13_spill] sm:$0xff] %v20948_v12  ;;  %22439 = vst [vmem:[#allocation55_spill] sm:$0xff] %v20951_v51  ;;  %v11478_v6 = vrot.slane %v11476_v54, 5  ;;  %v20964_v60 = vadd.f32 %v20853_v19, %v8401_v32  ;;  %v11481_v0 = vshrl.u32 %v11159_v23, 16  ;;  %v11484_v59 = vshll.u32 %v11159_v23, 16 }
 0x868   : > { %22441 = vst [vmem:[#allocation15_spill] sm:$0xff] %v20959_v24  ;;  %v11455_v22 = vsel %vm15628_vm13, %v11450_v4, %v11454_v11  ;;  %v20966_v3 = vpop.f32.mrf.mxu0  ;;  %v11464_v27 = vrot.slane %v11463_v37, 4  ;;  %v11473_v51 = vor.u32 %v11472_v40, %v11468_v57  ;;  %v11490_v26 = vshll.u32 %v20953_v55, 16  ;;  %v20971_v4 = vld [vmem:[#allocation3 + $0xc4] sm:$0xf]  ;;  %v14738_v40 = vld [vmem:[#allocation3 + $0x9c] sm:$0xff]  }
 0x869   : > { %22442 = vst [vmem:[#allocation40_spill] sm:$0xff] %v20964_v60  ;;  %v13476_v10 = vcombine.low %v11445_v1, %v11455_v22  ;;  %v14313_v44 = vpop.f32.mrf.mxu1  ;;  %v11483_v46 = vrot.slane %v11481_v0, 4  ;;  %v11486_v61 = vrot.slane %v11484_v59, 5  ;;  %v11494_v54 = vshrl.u32 %v20953_v55, 16  ;;  %v20981_v12 = vld [vmem:[#allocation3 + $0xc8] sm:$0x1] }
 0x86a   : > { %v11500_v11 = vshll.u32 %v20959_v24, 16  ;;  %v20973_v19 = vpop.f32.mrf.mxu0  ;;  %v11469_v32 = vsel %vm15628_vm13, %v11464_v27, %v11468_v57  ;;  %v11474_v23 = vrot.slane %v11473_v51, 4  ;;  %v11492_v1 = vrot.slane %v11490_v26, 5  ;;  %v14739_v55 = vld [vmem:[#allocation3 + $0xa8] sm:$0xff]  }
 0x86b   : > { %14550 = vmatmul.mubr.msk.bf16.gmra.mxu0 %vm6425_vm8, %v13476_v10  ;;  %v20979_v37 = vadd.f32 %v20865_v33, %v14313_v44  ;;  %v8414_v22 = vpop.f32.mrf.mxu1  ;;  %v11487_v0 = vor.u32 %v11486_v61, %v11483_v46  ;;  %v11496_v59 = vrot.slane %v11494_v54, 4  ;;  %v11505_v24 = vshrl.u32 %v11162_v38, 16  ;;  %v7177_v54 = vld [vmem:[#allocation3 + $0xcc] sm:$0x1] }
 0x86c   : > { %v11502_v60 = vrot.slane %v11500_v11, 5  ;;  %v20983_v53 = vpop.f32.mrf.mxu0  ;;  %v11479_v10 = vsel %vm15628_vm13, %v11474_v23, %v11478_v6  ;;  %14516 = vmatmul.mubr.msk.bf16.gmra.mxu1 %vm6425_vm8, %v14738_v40  ;;  %v11508_v57 = vshll.u32 %v11162_v38, 16  ;;  %v11514_v33 = vshll.u32 %v20971_v4, 16  ;;  %v7232_v40 = vld [vmem:[#allocation3 + $0xd4] sm:$0x1] }
 0x86d   : > { %22443 = vst [vmem:[#allocation30_spill] sm:$0xff] %v20979_v37  ;;  %v11518_v51 = vshrl.u32 %v20971_v4, 16  ;;  %v14314_v27 = vpop.f32.mrf.mxu1  ;;  %v13477_v26 = vcombine.low %v11469_v32, %v11479_v10  ;;  %v11488_v44 = vrot.slane %v11487_v0, 4  ;;  %v11497_v46 = vor.u32 %v11496_v59, %v11492_v1  ;;  %14519 = vmatprep.mubr.msk.bf16.mxu1 %vm6425_vm8, %v14739_v55  ;;  %v21003_v59 = vld [vmem:[#allocation3 + $0xd0] sm:$0xf] }
 0x86e   : > { %v11507_v61 = vrot.slane %v11505_v24, 4  ;;  %v20991_v11 = vpop.f32.mrf.mxu0  ;;  %v11510_v37 = vrot.slane %v11508_v57, 5  ;;  %v11516_v28 = vrot.slane %v11514_v33, 5  ;;  %v11524_v23 = vshll.u32 %v20981_v12, 16  ;;  %22447 = vst [vmem:[#allocation19_spill] sm:$0xff] %v21003_v59 }
 0x86f   : > { %22444 = vst [vmem:[#allocation57_spill] sm:$0xff] %v20991_v11  ;;  %v11520_v6 = vrot.slane %v11518_v51, 4  ;;  %v8417_v38 = vpop.f32.mrf.mxu1  ;;  %14553 = vmatprep.mubr.msk.bf16.mxu0 %vm6425_vm8, %v13477_v26  ;;  %v11493_v32 = vsel %vm15628_vm13, %v11488_v44, %v11492_v1  ;;  %v11498_v0 = vrot.slane %v11497_v46, 4  ;;  %v20998_v24 = vadd.f32 %v20875_v36, %v8414_v22 }
 0x870   : > { %v21001_v55 = vadd.f32 %v20885_v39, %v14314_v27  ;;  %v21005_v10 = vpop.f32.mrf.mxu0  ;;  %v11511_v57 = vor.u32 %v11510_v37, %v11507_v61  ;;  %v11526_v51 = vrot.slane %v11524_v23, 5  ;;  %v21008_v11 = vadd.f32 %v20894_v18, %v8417_v38  ;;  %v14740_v18 = vld [vmem:[#allocation3 + $0xb4] sm:$0xff]  }
 0x871   : > { %22445 = vst [vmem:[#allocation54_spill] sm:$0xff] %v20998_v24  ;;  %v11521_v33 = vor.u32 %v11520_v6, %v11516_v28  ;;  %v14317_v26 = vpop.f32.mrf.mxu1  ;;  %v11503_v1 = vsel %vm15628_vm13, %v11498_v0, %v11502_v60  ;;  %v7178_v39 = vsel %vm18138_vm7, 0, %v7177_v54  ;;  %v7233_v27 = vsel %vm18158_vm3, 0, %v7232_v40  ;;  %v11846_v23 = vld [vmem:[#allocation3 + $0x18] sm:$0xe]  ;;  %v15039_v24 = vld [vmem:[%s15178_s15 + $0x68] sm:$0xff] }
 0x872   : > { %22446 = vst [vmem:[#allocation31_spill] sm:$0xff] %v21001_v55  ;;  %22448 = vst [vmem:[#allocation41_spill] sm:$0xff] %v21008_v11  ;;  %v21013_v36 = vadd.f32 %v20916_v35, %v14317_v26  ;;  %v21019_v44 = vpop.f32.mrf.mxu0  ;;  %v13478_v37 = vcombine.low %v11493_v32, %v11503_v1  ;;  %v11512_v46 = vrot.slane %v11511_v57, 4  ;;  %v11538_v60 = vshll.u32 %v21003_v59, 16  ;;  %v14741_v35 = vld [vmem:[#allocation3 + $0xc0] sm:$0xff]  }
 0x873   : > { %v11522_v61 = vrot.slane %v11521_v33, 4  ;;  %v8430_v6 = vpop.f32.mrf.mxu1  ;;  %7179 = vst [vmem:[#allocation3 + $0xcc] sm:$0x1] %v7178_v39  ;;  %7234 = vst [vmem:[#allocation3 + $0xd4] sm:$0x1] %v7233_v27  ;;  %v11542_v50 = vshrl.u32 %v21003_v59, 16 }
 0x874   : > { %22449 = vst [vmem:[#allocation56_spill] sm:$0xff] %v21013_v36  ;;  %v21023_v38 = vadd.f32 %v20922_v56, %v8430_v6  ;;  %v11912_v54 = vrot.slane %v20655_v31, 5  ;;  %v21027_v40 = vpop.f32.mrf.mxu0  ;;  %14554 = vmatmul.mubr.msk.bf16.gmra.mxu0 %vm6425_vm8, %v13478_v37  ;;  %v11517_v32 = vsel %vm15628_vm13, %v11512_v46, %v11516_v28  ;;  %14520 = vmatmul.mubr.msk.bf16.gmra.mxu1 %vm6425_vm8, %v14740_v18  ;;  %v21035_v33 = vrot.slane %v11538_v60, 5  ;;  %v21037_v56 = vld [vmem:[#allocation3 + $0x24] sm:$0xe]  ;;  %v22475_v36 = vld [vmem:[#allocation27_spill] sm:$0xff] }
 0x875   : > { %v11527_v0 = vsel %vm15628_vm13, %v11522_v61, %v11526_v51  ;;  %v14318_v57 = vpop.f32.mrf.mxu1  ;;  %14523 = vmatprep.mubr.msk.bf16.mxu1 %vm6425_vm8, %v14741_v35  ;;  %v11544_v1 = vrot.slane %v11542_v50, 4  ;;  %v13497_v39 = vrot.slane %v11846_v23, 9  ;;  %v11915_v51 = vrot.slane %v20662_v49, 5  ;;  %v11848_v37 = vld [vmem:[#allocation3 + $0x30] sm:$0xe] }
 0x876   : > { %22451 = vst [vmem:[#allocation37_spill] sm:$0xff] %v21023_v38  ;;  %v13479_v26 = vcombine.low %v11517_v32, %v11527_v0  ;;  %v21041_v31 = vadd.f32 %v20935_v52, %v14318_v57  ;;  %v21043_v22 = vpop.f32.mrf.mxu0  ;;  %v11914_v27 = vrot.slane %v11912_v54, 4  ;;  %v13498_v61 = vrot.slane %v21037_v56, 9  ;;  %v22473_v38 = vld [vmem:[#allocation9_spill] sm:$0xff]  ;;  %v11859_v59 = vld [vmem:[#allocation3 + $0xb4] sm:$0xe] }
 0x877   : > { %v8433_v28 = vpop.f32.mrf.mxu1  ;;  %v11919_v18 = vrot.slane %v20678_v13, 5  ;;  %v11545_v6 = vor.u32 %v11544_v1, %v21035_v33  ;;  %v11922_v49 = vrot.slane %v20685_v17, 5  ;;  %v11926_v35 = vrot.slane %v20701_v34, 5 }
 0x878   : > { %22452 = vst [vmem:[#allocation59_spill] sm:$0xff] %v21041_v31  ;;  %14557 = vmatprep.mubr.msk.bf16.mxu0 %vm6425_vm8, %v13479_v26  ;;  %v21048_v46 = vadd.f32 %v20940_v9, %v8433_v28  ;;  %v21052_v52 = vpop.f32.mrf.mxu0  ;;  %v11916_v23 = vsel %vm16429_vm14, %v11914_v27, %v11915_v51  ;;  %v8635_v9 = vadd.f32 %v20657_v29, %v20739_v47  ;;  %v13499_v56 = vrot.slane %v11848_v37, 9 }
 0x879   : > { %v14321_v60 = vpop.f32.mrf.mxu1  ;;  %v11913_v57 = vsel %vm16429_vm14, %v13497_v39, %v11912_v54  ;;  %v11921_v29 = vrot.slane %v11919_v18, 4  ;;  %v11929_v51 = vrot.slane %v20710_v8, 5  ;;  %v11546_v37 = vrot.slane %v11545_v6, 4  ;;  %v15026_v8 = vld [vmem:[%s15178_s15] sm:$0xff]  ;;  %v11849_v6 = vld [vmem:[#allocation3 + $0x3c] sm:$0xe] }
 0x87a   : > { %22453 = vst [vmem:[#allocation42_spill] sm:$0xff] %v21048_v46  ;;  %v11165_v50 = vld [vmem:[#allocation3 + $0xcc] sm:$0xf]  ;;  %v21061_v32 = vld [vmem:[#allocation3 + $0xd4] sm:$0x1]  ;;  %v21064_v13 = vadd.f32 %v20955_v25, %v14321_v60  ;;  %v21068_v26 = vpop.f32.mrf.mxu0  ;;  %v13514_v47 = vcombine.low %v11913_v57, %v11916_v23  ;;  %v11928_v25 = vrot.slane %v11926_v35, 4  ;;  %v8627_v23 = vadd.f32 %v20667_v41, %v20749_v45 }
 0x87b   : > { %22454 = vst [vmem:[#allocation58_spill] sm:$0xff] %v21061_v32  ;;  %v14742_v0 = vld [vmem:[#allocation3 + $0xcc] sm:$0xff]   ;;  %v11529_v1 = vshrl.u32 %v11165_v50, 16  ;;  %v11532_v17 = vshll.u32 %v11165_v50, 16  ;;  %v11548_v34 = vshll.u32 %v21061_v32, 16  ;;  %v8446_v28 = vpop.f32.mrf.mxu1  ;;  %v11923_v45 = vsel %vm16429_vm14, %v11921_v29, %v11922_v49 }
 0x87c   : > { %22455 = vst [vmem:[#allocation32_spill] sm:$0xff] %v21064_v13  ;;  %v21072_v27 = vadd.f32 %v20966_v3, %v8446_v28  ;;  %v21075_v60 = vpop.f32.mrf.mxu0  ;;  %14524 = vmatmul.mubr.msk.bf16.gmra.mxu1 %vm6425_vm8, %v14742_v0  ;;  %v8638_v3 = vadd.f32 %v20680_v5, %v20756_v30  ;;  %v15027_v57 = vld [vmem:[%s15178_s15 + $0x8] sm:$0xff]  ;;  %v21091_v0 = vld [vmem:[%s15178_s15 + $0x10] sm:$0xff]  ;;  %v11930_v30 = vsel %vm16429_vm14, %v11928_v25, %v11929_v51  ;;  %v13500_v25 = vrot.slane %v11849_v6, 9 }
 0x87d   : > { %v11531_v54 = vrot.slane %v11529_v1, 4  ;;  %v11534_v39 = vrot.slane %v11532_v17, 5  ;;  %v11550_v50 = vrot.slane %v11548_v34, 5  ;;  %v14322_v13 = vpop.f32.mrf.mxu1  ;;  %14563 = vmatprep.mubr.msk.bf16.mxu1 %vm6425_vm8, %v13514_v47  ;;  %v12355_v28 = vpack.c.bf16 %v15027_v57, %v15026_v8  ;;  %v11850_v8 = vld [vmem:[#allocation3 + $0x48] sm:$0xe] }
 0x87e   : > { %22456 = vst [vmem:[#allocation6_spill] sm:$0xff] %v21072_v27  ;;  %v21086_v1 = vadd.f32 %v20973_v19, %v14322_v13  ;;  %v21088_v17 = vpop.f32.mrf.mxu0  ;;  %v21094_v27 = vld [vmem:[%s15178_s15 + $0x18] sm:$0xff]  ;;  %v11920_v13 = vsel %vm16429_vm14, %v13498_v61, %v11919_v18  ;;  %v11927_v47 = vsel %vm16429_vm14, %v13499_v56, %v11926_v35  ;;  %v22118_v43 = vrot.slane %v20763_v63, 5 }
 0x87f   : > { %v11535_v34 = vor.u32 %v11534_v39, %v11531_v54  ;;  %v8449_v5 = vpop.f32.mrf.mxu1  ;;  %v11933_v54 = vrot.slane %v20718_v14, 5  ;;  %v11551_v49 = vsel %vm15628_vm13, %v11546_v37, %v11550_v50  ;;  %v13516_v61 = vcombine.low %v11927_v47, %v11930_v30  ;;  %v21128_v30 = vld [vmem:[#allocation3 + $0x54] sm:$0xe] }
 0x880   : > { %22457 = vst [vmem:[#allocation28_spill] sm:$0xff] %v21086_v1  ;;  %v21103_v19 = vadd.f32 %v20983_v53, %v8449_v5  ;;  %v21110_v39 = vpop.f32.mrf.mxu0  ;;  %v11940_v53 = vrot.slane %v20735_v58, 5  ;;  %v13515_v5 = vcombine.low %v11920_v13, %v11923_v45  ;;  %v11936_v37 = vrot.slane %v20725_v21, 5  ;;  %v21133_v21 = vld [vmem:[%s15178_s15 + $0x20] sm:$0xff]  ;;  %v21136_v13 = vld [vmem:[%s15178_s15 + $0x28] sm:$0xff] }
 0x881   : > { %v11536_v57 = vrot.slane %v11535_v34, 4  ;;  %v14361_v29 = vpop.f32.mrf.mxu1  ;;  %v11935_v18 = vrot.slane %v11933_v54, 4  ;;  %v13501_v50 = vrot.slane %v11850_v8, 9  ;;  %v11943_v34 = vrot.slane %v20743_v48, 5  ;;  %v21141_v8 = vld [vmem:[%s15178_s15 + $0x30] sm:$0xff]  ;;  %v21144_v48 = vld [vmem:[%s15178_s15 + $0x38] sm:$0xff] }
 0x882   : > { %22458 = vst [vmem:[#allocation25_spill] sm:$0xff] %v21103_v19  ;;  %v21115_v51 = vadd.f32 %v14361_v29, %v8635_v9  ;;  %v21117_v35 = vpop.f32.mrf.mxu0  ;;  %v11942_v58 = vrot.slane %v11940_v53, 4  ;;  %v21151_v29 = vld [vmem:[%s15178_s15 + $0x40] sm:$0xff]  ;;  %v11949_v41 = vrot.slane %v22118_v43, 4  ;;  %v11961_v43 = vrot.slane %v20810_v42, 5 }
 0x883   : > { %v11541_v14 = vsel %vm15628_vm13, %v11536_v57, %v21035_v33  ;;  %v9048_v56 = vpop.f32.mrf.mxu1  ;;  %v11852_v33 = vld [vmem:[#allocation3 + $0x60] sm:$0xe]  ;;  %v11937_v57 = vsel %vm16429_vm14, %v11935_v18, %v11936_v37  ;;  %v11950_v37 = vrot.slane %v20771_v7, 5  ;;  %v11855_v42 = vld [vmem:[#allocation3 + $0x84] sm:$0xe] }
 0x884   : > { %v13480_v9 = vcombine.low %v11541_v14, %v11551_v49  ;;  %v21123_v6 = vadd.f32 %v9048_v56, %v8627_v23  ;;  %v21126_v45 = vpop.f32.mrf.mxu0  ;;  %14564 = vmatmul.mubr.msk.bf16.vlgmr.msra.gmra.mxu1 %vm6425_vm8, %v13515_v5  ;;  %v11934_v49 = vsel %vm16429_vm14, %v13500_v25, %v11933_v54  ;;  %v21154_v5 = vld [vmem:[%s15178_s15 + $0x48] sm:$0xff]  ;;  %v11853_v56 = vld [vmem:[#allocation3 + $0x6c] sm:$0xe]  ;;  %v11944_v54 = vsel %vm16429_vm14, %v11942_v58, %v11943_v34 }
 0x885   : > { %v14362_v47 = vpop.f32.mrf.mxu1  ;;  %14567 = vmatprep.mubr.msk.bf16.mxu1 %vm6425_vm8, %v13516_v61  ;;  %v13503_v61 = vrot.slane %v11852_v33, 9  ;;  %v13504_v34 = vrot.slane %v11853_v56, 9  ;;  %v13517_v1 = vcombine.low %v11934_v49, %v11937_v57  ;;  %v22459_v33 = vld [vmem:[#allocation5_spill] sm:$0xff] }
 0x886   : > { %14558 = vmatmul.mubr.msk.bf16.gmra.mxu0 %vm6425_vm8, %v13480_v9  ;;  %v21160_v23 = vadd.f32 %v14362_v47, %v8638_v3  ;;  %v21166_v25 = vpop.f32.mrf.mxu0  ;;  %v11941_v9 = vsel %vm16429_vm14, %v13501_v50, %v11940_v53  ;;  %v13502_v3 = vrot.slane %v21128_v30, 9  ;;  %v11954_v47 = vrot.slane %v20784_v15, 5 }
 0x887   : > { %14597 = vmatprep.mubr.msk.bf16.mxu0 %vm477_vm4, %v12355_v28  ;;  %v9051_v14 = vpop.f32.mrf.mxu1  ;;  %v11854_v28 = vld [vmem:[#allocation3 + $0x78] sm:$0xe]  ;;  %v13518_v46 = vcombine.low %v11941_v9, %v11944_v54  ;;  %v11957_v50 = vrot.slane %v20789_v20, 5  ;;  %v11963_v15 = vrot.slane %v11961_v43, 4  ;;  %v22461_v54 = vld [vmem:[#allocation47_spill] sm:$0xff] }
 0x888   : > { %v21176_v18 = vadd.f32 %v9051_v14, %v20776_v62  ;;  %v21179_v58 = vpop.f32.mrf.mxu0  ;;  %v11956_v53 = vrot.slane %v11954_v47, 4  ;;  %v21188_v62 = vsel %vm16429_vm14, %v11949_v41, %v11950_v37  ;;  %v11964_v14 = vrot.slane %v22459_v33, 5  ;;  %v11856_v41 = vld [vmem:[#allocation3 + $0x90] sm:$0xe] }
 0x889   : > { %v14365_v19 = vpop.f32.mrf.mxu1  ;;  %v21195_v57 = vsel %vm16429_vm14, %v13503_v61, %v11954_v47  ;;  %v21211_v61 = vsel %vm16429_vm14, %v13504_v34, %v11961_v43  ;;  %v22464_v43 = vld [vmem:[#allocation23_spill] sm:$0xff] }
 0x88a   : > { %v21184_v30 = vadd.f32 %v14365_v19, %v20797_v16  ;;  %v21190_v7 = vpop.f32.mrf.mxu0  ;;  %v21199_v20 = vsel %vm16429_vm14, %v11956_v53, %v11957_v50  ;;  %v13505_v16 = vrot.slane %v11854_v28, 9  ;;  %v22460_v19 = vld [vmem:[#allocation17_spill] sm:$0xff]  ;;  %v21215_v47 = vsel %vm16429_vm14, %v11963_v15, %v11964_v14  ;;  %v11857_v53 = vld [vmem:[#allocation3 + $0x9c] sm:$0xe] }
 0x88b   : > { %v9064_v56 = vpop.f32.mrf.mxu1  ;;  %v11968_v49 = vrot.slane %v22460_v19, 5  ;;  %v13520_v37 = vcombine.low %v21195_v57, %v21199_v20  ;;  %v13506_v57 = vrot.slane %v11855_v42, 9  ;;  %v22463_v20 = vpack.c.bf16 %v21094_v27, %v21091_v0 }
 0x88c   : > { %v21203_v9 = vadd.f32 %v9064_v56, %v22461_v54  ;;  %v21207_v33 = vpop.f32.mrf.mxu0  ;;  %14568 = vmatmul.mubr.msk.bf16.gmra.mxu1 %vm6425_vm8, %v13517_v1  ;;  %v22462_v56 = vld [vmem:[#allocation46_spill] sm:$0xff]  ;;  %v22465_v1 = vrot.slane %v20763_v63, 5  ;;  %v22466_v54 = vld [vmem:[#allocation36_spill] sm:$0xff]  ;;  %v13507_v42 = vrot.slane %v11856_v41, 9  ;;  %v22467_v27 = vpack.c.bf16 %v21136_v13, %v21133_v21 }
 0x88d   : > { %v14366_v28 = vpop.f32.mrf.mxu1  ;;  %v11970_v50 = vrot.slane %v11968_v49, 4  ;;  %v11971_v19 = vrot.slane %v22462_v56, 5  ;;  %14571 = vmatprep.mubr.msk.bf16.mxu1 %vm6425_vm8, %v13518_v46  ;;  %v11975_v56 = vrot.slane %v22466_v54, 5  ;;  %v21243_v63 = vsel %vm16429_vm14, %v13505_v16, %v11968_v49  ;;  %v22469_v41 = vld [vmem:[#allocation14_spill] sm:$0xff] }
 0x88e   : > { %14598 = vmatmul.mubr.msk.bf16.vlgmr.msra.gmra.mxu0 %vm477_vm4, %v22463_v20  ;;  %v21227_v34 = vadd.f32 %v14366_v28, %v22464_v43  ;;  %v11948_v15 = vsel %vm16429_vm14, %v13502_v3, %v22465_v1  ;;  %v21233_v14 = vpop.f32.mrf.mxu0  ;;  %v22468_v28 = vld [vmem:[#allocation51_spill] sm:$0xff]  ;;  %v11858_v54 = vld [vmem:[#allocation3 + $0xa8] sm:$0xe] }
 0x88f   : > { %14601 = vmatprep.mubr.msk.bf16.mxu0 %vm477_vm4, %v22467_v27  ;;  %v9067_v46 = vpop.f32.mrf.mxu1  ;;  %v13519_v0 = vcombine.low %v11948_v15, %v21188_v62  ;;  %v21247_v3 = vsel %vm16429_vm14, %v11970_v50, %v11971_v19  ;;  %v11982_v20 = vrot.slane %v22468_v28, 5  ;;  %v11977_v13 = vrot.slane %v11975_v56, 4  ;;  %v22470_v62 = vld [vmem:[#allocation48_spill] sm:$0xff]  ;;  %v22471_v19 = vld [vmem:[#allocation35_spill] sm:$0xff] }
 0x890   : > { %v21251_v43 = vadd.f32 %v9067_v46, %v22469_v41  ;;  %v21253_v1 = vpop.f32.mrf.mxu0  ;;  %v11978_v15 = vrot.slane %v22470_v62, 5  ;;  %v21260_v49 = vsel %vm16429_vm14, %v13506_v57, %v11975_v56  ;;  %v11985_v27 = vrot.slane %v22471_v19, 5  ;;  %v22472_v46 = vld [vmem:[#allocation49_spill] sm:$0xff] }
 0x891   : > { %v14369_v16 = vpop.f32.mrf.mxu1  ;;  %v11984_v50 = vrot.slane %v11982_v20, 4  ;;  %v13508_v28 = vrot.slane %v11857_v53, 9  ;;  %v21274_v62 = vsel %vm16429_vm14, %v13507_v42, %v11982_v20  ;;  %v11989_v57 = vrot.slane %v22473_v38, 5  ;;  %v22476_v20 = vld [vmem:[#allocation29_spill] sm:$0xff] }
 0x892   : > { %v21264_v41 = vadd.f32 %v14369_v16, %v22472_v46  ;;  %v21266_v31 = vpop.f32.mrf.mxu0  ;;  %v21270_v21 = vsel %vm16429_vm14, %v11977_v13, %v11978_v15  ;;  %v13509_v16 = vrot.slane %v11858_v54, 9  ;;  %v22474_v46 = vld [vmem:[#allocation11_spill] sm:$0xff]  ;;  %v11992_v11 = vrot.slane %v22476_v20, 5  ;;  %v22480_v20 = vld [vmem:[#allocation33_spill] sm:$0xff] }
 0x893   : > { %v9080_v56 = vpop.f32.mrf.mxu1  ;;  %v21281_v53 = vsel %vm16429_vm14, %v11984_v50, %v11985_v27  ;;  %v11996_v32 = vrot.slane %v22474_v46, 5  ;;  %v11991_v38 = vrot.slane %v11989_v57, 4  ;;  %v21295_v54 = vsel %vm16429_vm14, %v13508_v28, %v11989_v57  ;;  %v22478_v27 = vld [vmem:[#allocation52_spill] sm:$0xff] }
 0x894   : > { %v21285_v13 = vadd.f32 %v9080_v56, %v22475_v36  ;;  %v21287_v15 = vpop.f32.mrf.mxu0  ;;  %14572 = vmatmul.mubr.msk.bf16.gmra.mxu1 %vm6425_vm8, %v13519_v0  ;;  %22477 = vst [vmem:[#allocation34_spill] sm:$0xff] %v21295_v54  ;;  %v11999_v36 = vrot.slane %v22478_v27, 5  ;;  %v11860_v56 = vld [vmem:[#allocation3 + $0xc0] sm:$0xe]  ;;  %v22479_v46 = vpack.c.bf16 %v21144_v48, %v21141_v8  ;;  %v22483_v8 = vpack.c.bf16 %v21154_v5, %v21151_v29 }
 0x895   : > { %v14370_v19 = vpop.f32.mrf.mxu1  ;;  %v11998_v50 = vrot.slane %v11996_v32, 4  ;;  %14575 = vmatprep.mubr.msk.bf16.mxu1 %vm6425_vm8, %v13520_v37  ;;  %v21308_v0 = vsel %vm16429_vm14, %v11991_v38, %v11992_v11  ;;  %v21312_v28 = vsel %vm16429_vm14, %v13509_v16, %v11996_v32  ;;  %v13510_v11 = vrot.slane %v11859_v59, 9  ;;  %v22485_v27 = vld [vmem:[#allocation21_spill] sm:$0xff]  ;;  %v22487_v37 = vld [vmem:[#allocation15_spill] sm:$0xff] }
 0x896   : > { %14602 = vmatmul.mubr.msk.bf16.gmra.mxu0 %vm477_vm4, %v22479_v46  ;;  %v9186_v42 = vadd.f32 %v14370_v19, %v22480_v20  ;;  %v21304_v55 = vpop.f32.mrf.mxu0  ;;  %22482 = vst [vmem:[#allocation8_spill] sm:$0xff] %v21308_v0  ;;  %v22484_v19 = vld [vmem:[#allocation12_spill] sm:$0xff]  ;;  %v13511_v5 = vrot.slane %v11860_v56, 9  ;;  %v12010_v46 = vrot.slane %v20971_v4, 5  ;;  %v15037_v59 = vld [vmem:[%s15178_s15 + $0x58] sm:$0xff] }
 0x897   : > { %22481 = vst [vmem:[#allocation24_spill] sm:$0xff] %v21304_v55  ;;  %14605 = vmatprep.mubr.msk.bf16.mxu0 %vm477_vm4, %v22483_v8  ;;  %v9083_v48 = vpop.f32.mrf.mxu1  ;;  %v21322_v57 = vsel %vm16429_vm14, %v11998_v50, %v11999_v36  ;;  %v12003_v38 = vrot.slane %v22484_v19, 5  ;;  %v12006_v50 = vrot.slane %v22487_v37, 5  ;;  %v15036_v36 = vld [vmem:[%s15178_s15 + $0x50] sm:$0xff] }
 0x898   : > { %v9184_v32 = vadd.f32 %v9083_v48, %v22485_v27  ;;  %v21326_v16 = vpop.f32.mrf.mxu0  ;;  %v12360_v0 = vpack.c.bf16 %v15037_v59, %v15036_v36  ;;  %v22488_v19 = vld [vmem:[#allocation16_spill] sm:$0xff]  ;;  %v12012_v48 = vrot.slane %v12010_v46, 4  ;;  %v12013_v27 = vrot.slane %v20981_v12, 5  ;;  %v22489_v36 = vld [vmem:[#allocation38_spill] sm:$0xff] }
 0x899   : > { %22486 = vst [vmem:[#allocation45_spill] sm:$0xff] %v21326_v16  ;;  %v14373_v20 = vpop.f32.mrf.mxu1  ;;  %v12005_v8 = vrot.slane %v12003_v38, 4  ;;  %v15038_v16 = vld [vmem:[%s15178_s15 + $0x60] sm:$0xff]  ;;  %v21342_v4 = vsel %vm16429_vm14, %v13510_v11, %v12003_v38  ;;  %v22490_v11 = vld [vmem:[#allocation57_spill] sm:$0xff] }
 0x89a   : > { %v9189_v54 = vadd.f32 %v14373_v20, %v22488_v19  ;;  %v21335_v55 = vpop.f32.mrf.mxu0  ;;  %v12361_v29 = vpack.c.bf16 %v15039_v24, %v15038_v16  ;;  %v21350_v20 = vsel %vm16429_vm14, %v13511_v5, %v12010_v46  ;;  %v21359_v24 = vsel %vm16429_vm14, %v12012_v48, %v12013_v27 }
 0x89b   : > { %v9096_v56 = vpop.f32.mrf.mxu1  ;;  %v21346_v37 = vsel %vm16429_vm14, %v12005_v8, %v12006_v50  ;;  %v21363_v38 = vadd.f32 %v22490_v11, %v21115_v51  ;;  %v22491_v16 = vcombine.low %v21211_v61, %v21215_v47  ;;  %v13528_v46 = vcombine.low %v21350_v20, %v21359_v24  ;;  %v22493_v61 = vld [vmem:[#allocation53_spill] sm:$0xff] }
 0x89c   : > { %v9187_v59 = vadd.f32 %v9096_v56, %v22489_v36  ;;  %v21353_v19 = vpop.f32.mrf.mxu0  ;;  %v13527_v12 = vcombine.low %v21342_v4, %v21346_v37  ;;  %v21373_v8 = vadd.f32 %v21005_v10, %v21123_v6  ;;  %v22492_v51 = vcombine.low %v21243_v63, %v21247_v3 }
 0x89d   : > { %14576 = vmatmul.mubr.msk.bf16.gmra.mxu1 %vm6425_vm8, %v22491_v16  ;;  %v14374_v5 = vpop.f32.mrf.mxu1  ;;  %v21385_v48 = vadd.f32 %v21019_v44, %v21160_v23  ;;  %v21389_v27 = vadd.f32 %v21027_v40, %v21176_v18  ;;  %v21394_v6 = vadd.f32 %v21043_v22, %v21184_v30  ;;  %v21398_v63 = vadd.f32 %v21052_v52, %v21203_v9  ;;  %v15040_v44 = vld [vmem:[%s15178_s15 + $0x70] sm:$0xff]  ;;  %v15041_v23 = vld [vmem:[%s15178_s15 + $0x78] sm:$0xff]  ;;  %v22494_v18 = vld [vmem:[#allocation50_spill] sm:$0xff] }
 0x89e   : > { %14606 = vmatmul.mubr.msk.bf16.gmra.mxu0 %vm477_vm4, %v12360_v0  ;;  %14579 = vmatprep.mubr.msk.bf16.mxu1 %vm6425_vm8, %v22492_v51  ;;  %v9190_v47 = vadd.f32 %v14374_v5, %v22493_v61  ;;  %v21381_v50 = vpop.f32.mrf.mxu0  ;;  %v21402_v3 = vadd.f32 %v21068_v26, %v21227_v34  ;;  %v12362_v40 = vpack.c.bf16 %v15041_v23, %v15040_v44  ;;  %v22501_v23 = vld [vmem:[#allocation30_spill] sm:$0xff] }
 0x89f   : > { %14609 = vmatprep.mubr.msk.bf16.mxu0 %vm477_vm4, %v12361_v29  ;;  %v9099_v10 = vpop.f32.mrf.mxu1  ;;  %v21411_v22 = vadd.f32 %v21075_v60, %v21251_v43  ;;  %v21415_v52 = vadd.f32 %v21088_v17, %v21264_v41  ;;  %v21419_v26 = vadd.f32 %v21110_v39, %v21285_v13  ;;  %v21422_v9 = vadd.f32 %v21117_v35, %v9186_v42  ;;  %v22495_v60 = vld [vmem:[#allocation39_spill] sm:$0xff]  ;;  %v15042_v35 = vld [vmem:[%s15178_s15 + $0x80] sm:$0xff] }
 0x8a0   : > { %v9188_v0 = vadd.f32 %v9099_v10, %v22494_v18  ;;  %v21407_v29 = vpop.f32.mrf.mxu0  ;;  %v21425_v34 = vadd.f32 %v21126_v45, %v9184_v32  ;;  %v21428_v56 = vadd.f32 %v21166_v25, %v9189_v54  ;;  %v21434_v17 = vadd.f32 %v21179_v58, %v9187_v59  ;;  %v15043_v13 = vld [vmem:[%s15178_s15 + $0x88] sm:$0xff]  ;;  %v22496_v32 = vld [vmem:[#allocation13_spill] sm:$0xff] }
 0x8a1   : > { %v14377_v30 = vpop.f32.mrf.mxu1  ;;  %v21437_v41 = vadd.f32 %v21190_v7, %v9190_v47  ;;  %v12363_v45 = vpack.c.bf16 %v15043_v13, %v15042_v35  ;;  %v22497_v58 = vcombine.low %v21260_v49, %v21270_v21  ;;  %v22499_v59 = vld [vmem:[#allocation55_spill] sm:$0xff]  ;;  %v22500_v49 = vld [vmem:[#allocation40_spill] sm:$0xff]  ;;  %v15045_v10 = vld [vmem:[%s15178_s15 + $0x98] sm:$0xff] }
 0x8a2   : > { %v9193_v43 = vadd.f32 %v14377_v30, %v22495_v60  ;;  %v21431_v36 = vpop.f32.mrf.mxu0  ;;  %v21440_v39 = vadd.f32 %v21207_v33, %v9188_v0  ;;  %v22498_v33 = vcombine.low %v21274_v62, %v21281_v53  ;;  %v15044_v47 = vld [vmem:[%s15178_s15 + $0x90] sm:$0xff]  ;;  %v15046_v0 = vld [vmem:[%s15178_s15 + $0xa0] sm:$0xff]  ;;  %v15047_v30 = vld [vmem:[%s15178_s15 + $0xa8] sm:$0xff] }
 0x8a3   : > { %v9112_v42 = vpop.f32.mrf.mxu1  ;;  %v12364_v44 = vpack.c.bf16 %v15045_v10, %v15044_v47  ;;  %v12365_v60 = vpack.c.bf16 %v15047_v30, %v15046_v0  ;;  %v22502_v35 = vld [vmem:[#allocation54_spill] sm:$0xff]  ;;  %v15049_v0 = vld [vmem:[%s15178_s15 + $0xb8] sm:$0xff] }
 0x8a4   : > { %v9191_v25 = vadd.f32 %v9112_v42, %v22496_v32  ;;  %v21445_v54 = vpop.f32.mrf.mxu0  ;;  %v21448_v11 = vadd.f32 %v21233_v14, %v9193_v43  ;;  %v22504_v32 = vld [vmem:[#allocation34_spill] sm:$0xff] }
 0x8a5   : > { %14580 = vmatmul.mubr.msk.bf16.gmra.mxu1 %vm6425_vm8, %v22497_v58  ;;  %v14378_v7 = vpop.f32.mrf.mxu1 }
 0x8a6   : > { %14610 = vmatmul.mubr.msk.bf16.gmra.mxu0 %vm477_vm4, %v12362_v40  ;;  %14583 = vmatprep.mubr.msk.bf16.mxu1 %vm6425_vm8, %v22498_v33  ;;  %v9194_v16 = vadd.f32 %v14378_v7, %v22499_v59  ;;  %v21460_v5 = vpop.f32.mrf.mxu0  ;;  %v21463_v14 = vadd.f32 %v21253_v1, %v9191_v25  ;;  %v22505_v25 = vld [vmem:[#allocation8_spill] sm:$0xff]  ;;  %v22507_v7 = vcombine.low %v21312_v28, %v21322_v57  ;;  %v22508_v33 = vld [vmem:[#allocation31_spill] sm:$0xff] }
 0x8a7   : > { %14613 = vmatprep.mubr.msk.bf16.mxu0 %vm477_vm4, %v12363_v45  ;;  %v9115_v21 = vpop.f32.mrf.mxu1  ;;  %v22506_v58 = vcombine.low %v22504_v32, %v22505_v25  ;;  %v22513_v25 = vld [vmem:[#allocation58_spill] sm:$0xff] }
 0x8a8   : > { %v9192_v51 = vadd.f32 %v9115_v21, %v22500_v49  ;;  %v21467_v61 = vpop.f32.mrf.mxu0  ;;  %v21470_v62 = vadd.f32 %v21266_v31, %v9194_v16  ;;  %v22503_v31 = vld [vmem:[#allocation24_spill] sm:$0xff]  ;;  %v11861_v21 = vld [vmem:[#allocation3 + $0xcc] sm:$0xe]  ;;  %v22509_v49 = vld [vmem:[#allocation19_spill] sm:$0xff] }
 0x8a9   : > { %v14381_v53 = vpop.f32.mrf.mxu1 }
 0x8aa   : > { %v9197_v40 = vadd.f32 %v14381_v53, %v22501_v23  ;;  %v21475_v18 = vpop.f32.mrf.mxu0  ;;  %v21478_v1 = vadd.f32 %v21287_v15, %v9192_v51  ;;  %v12017_v51 = vrot.slane %v22509_v49, 5  ;;  %v22510_v53 = vld [vmem:[#allocation45_spill] sm:$0xff] }
 0x8ab   : > { %v9128_v43 = vpop.f32.mrf.mxu1 }
 0x8ac   : > { %v9195_v13 = vadd.f32 %v9128_v43, %v22502_v35  ;;  %v21483_v45 = vpop.f32.mrf.mxu0  ;;  %v21486_v42 = vadd.f32 %v22503_v31, %v9197_v40  ;;  %v15048_v40 = vld [vmem:[%s15178_s15 + $0xb0] sm:$0xff]  ;;  %v13512_v35 = vrot.slane %v11861_v21, 9  ;;  %v12019_v32 = vrot.slane %v12017_v51, 4 }
 0x8ad   : > { %14584 = vmatmul.mubr.msk.bf16.gmra.mxu1 %vm6425_vm8, %v22506_v58  ;;  %v14382_v15 = vpop.f32.mrf.mxu1  ;;  %v12366_v30 = vpack.c.bf16 %v15049_v0, %v15048_v40  ;;  %v22512_v31 = vld [vmem:[#allocation56_spill] sm:$0xff]  ;;  %v12020_v58 = vrot.slane %v22513_v25, 5  ;;  %v22516_v40 = vld [vmem:[#allocation42_spill] sm:$0xff] }
 0x8ae   : > { %14614 = vmatmul.mubr.msk.bf16.gmra.mxu0 %vm477_vm4, %v12364_v44  ;;  %14587 = vmatprep.mubr.msk.bf16.mxu1 %vm6425_vm8, %v22507_v7  ;;  %v9198_v59 = vadd.f32 %v14382_v15, %v22508_v33  ;;  %v21498_v16 = vpop.f32.mrf.mxu0  ;;  %v21502_v47 = vadd.f32 %v22510_v53, %v9195_v13  ;;  %v22511_v44 = vld [vmem:[#allocation41_spill] sm:$0xff]  ;;  %v15050_v7 = vld [vmem:[%s15178_s15 + $0xc0] sm:$0xff]  ;;  %v15051_v33 = vld [vmem:[%s15178_s15 + $0xc8] sm:$0xff] }
 0x8af   : > { %14617 = vmatprep.mubr.msk.bf16.mxu0 %vm477_vm4, %v12365_v60  ;;  %v9131_v10 = vpop.f32.mrf.mxu1  ;;  %v12367_v49 = vpack.c.bf16 %v15051_v33, %v15050_v7  ;;  %v12021_v4 = vsel %vm16429_vm14, %v12019_v32, %v12020_v58  ;;  %v15054_v25 = vld [vmem:[%s15178_s15 + $0xe0] sm:$0xff]  ;;  %v15055_v58 = vld [vmem:[%s15178_s15 + $0xe8] sm:$0xff] }
 0x8b0   : > { %v9196_v23 = vadd.f32 %v9131_v10, %v22511_v44  ;;  %v21506_v28 = vpop.f32.mrf.mxu0  ;;  %v21509_v57 = vadd.f32 %v21335_v55, %v9198_v59  ;;  %v22514_v59 = vld [vmem:[#allocation37_spill] sm:$0xff]  ;;  %v12369_v7 = vpack.c.bf16 %v15055_v58, %v15054_v25 }
 0x8b2   : > { %v14385_v43 = vpop.f32.mrf.mxu1  ;;  %v21515_v60 = vpop.f32.mrf.mxu0  ;;  %v21518_v15 = vadd.f32 %v21353_v19, %v9196_v23  ;;  %v12018_v19 = vsel %vm16429_vm14, %v13512_v35, %v12017_v51 }
 0x8b3   : > { %v9201_v13 = vadd.f32 %v14385_v43, %v22512_v31  ;;  %v15052_v43 = vld [vmem:[%s15178_s15 + $0xd0] sm:$0xff] }
 0x8b4   : > { %v9144_v55 = vpop.f32.mrf.mxu1  ;;  %v21523_v10 = vpop.f32.mrf.mxu0  ;;  %v12368_v35 = vpack.c.bf16 %v15053_v2, %v15052_v43  ;;  %v22517_v31 = vld [vmem:[#allocation32_spill] sm:$0xff] }
 0x8b5   : > { %v9199_v53 = vadd.f32 %v9144_v55, %v22514_v59  ;;  %v21526_v21 = vadd.f32 %v21381_v50, %v9201_v13  ;;  %14588 = vmatmul.mubr.msk.bf16.gmra.mxu1 %vm6425_vm8, %v13527_v12  ;;  %v22515_v50 = vld [vmem:[#allocation59_spill] sm:$0xff] }
 0x8b6   : > { %v14386_v44 = vpop.f32.mrf.mxu1  ;;  %14618 = vmatmul.mubr.msk.bf16.gmra.mxu0 %vm477_vm4, %v12366_v30  ;;  %14591 = vmatprep.mubr.msk.bf16.mxu1 %vm6425_vm8, %v13528_v46  ;;  %v14467_v37 = vpop.f32.mrf.mxu0  ;;  %v13529_v46 = vcombine.low %v12018_v19, %v12021_v4  ;;  %v22520_v4 = vld [vmem:[#allocation25_spill] sm:$0xff] }
 0x8b7   : > { %v9202_v23 = vadd.f32 %v14386_v44, %v22515_v50  ;;  %v21543_v12 = vadd.f32 %v21407_v29, %v9199_v53  ;;  %14621 = vmatprep.mubr.msk.bf16.mxu0 %vm477_vm4, %v12367_v49  ;;  %v22518_v49 = vld [vmem:[#allocation6_spill] sm:$0xff]  ;;  %v22519_v44 = vld [vmem:[#allocation28_spill] sm:$0xff] }
 0x8b8   : > { %v9147_v51 = vpop.f32.mrf.mxu1  ;;  %v10618_v30 = vpop.f32.mrf.mxu0 }
 0x8b9   : > { %v9200_v0 = vadd.f32 %v9147_v51, %v22516_v40  ;;  %v21548_v20 = vadd.f32 %v21431_v36, %v9202_v23 }
 0x8ba   : > { %v14389_v24 = vpop.f32.mrf.mxu1  ;;  %v14468_v32 = vpop.f32.mrf.mxu0 }
 0x8bb   : > { %v9205_v13 = vadd.f32 %v14389_v24, %v22517_v31  ;;  %v21554_v29 = vadd.f32 %v21445_v54, %v9200_v0  ;;  %v15056_v24 = vld [vmem:[%s15178_s15 + $0xf0] sm:$0xff] }
 0x8bc   : > { %v9160_v33 = vpop.f32.mrf.mxu1  ;;  %v10621_v36 = vpop.f32.mrf.mxu0 }
 0x8bd   : > { %v9203_v55 = vadd.f32 %v9160_v33, %v22518_v49  ;;  %v21560_v59 = vadd.f32 %v21460_v5, %v9205_v13  ;;  %14592 = vmatmul.mubr.msk.bf16.gmra.mxu1 %vm6425_vm8, %v13529_v46  ;;  %v15057_v46 = vld [vmem:[%s15178_s15 + $0xf8] sm:$0xff] }
 0x8be   : > { %v14390_v53 = vpop.f32.mrf.mxu1  ;;  %14622 = vmatmul.mubr.msk.bf16.gmra.mxu0 %vm477_vm4, %v12368_v35  ;;  %v14471_v19 = vpop.f32.mrf.mxu0  ;;  %v12370_v43 = vpack.c.bf16 %v15057_v46, %v15056_v24 }
 0x8bf   : > { %v9206_v54 = vadd.f32 %v14390_v53, %v22519_v44  ;;  %v21566_v50 = vadd.f32 %v21467_v61, %v9203_v55  ;;  %14625 = vmatprep.mubr.msk.bf16.mxu0 %vm477_vm4, %v12369_v7 }
 0x8c0   : > { %v9163_v23 = vpop.f32.mrf.mxu1  ;;  %v10634_v40 = vpop.f32.mrf.mxu0 }
 0x8c1   : > { %v9204_v51 = vadd.f32 %v9163_v23, %v22520_v4  ;;  %v21571_v5 = vadd.f32 %v21475_v18, %v9206_v54 }
 0x8c2   : > { %v14429_v0 = vpop.f32.mrf.mxu1  ;;  %v14472_v35 = vpop.f32.mrf.mxu0 }
 0x8c3   : > { %v10261_v2 = vadd.f32 %v14429_v0, %v21363_v38  ;;  %v21577_v31 = vadd.f32 %v21483_v45, %v9204_v51 }
 0x8c4   : > { %v10132_v61 = vpop.f32.mrf.mxu1  ;;  %v10637_v25 = vpop.f32.mrf.mxu0 }
 0x8c5   : > { %v10259_v13 = vadd.f32 %v10132_v61, %v21373_v8  ;;  %v21581_v58 = vadd.f32 %v21498_v16, %v10261_v2 }
 0x8c6   : > { %v14430_v7 = vpop.f32.mrf.mxu1  ;;  %14626 = vmatmul.mubr.msk.bf16.gmra.mxu0 %vm477_vm4, %v12370_v43  ;;  %v14475_v33 = vpop.f32.mrf.mxu0 }
 0x8c7   : > { %v10262_v18 = vadd.f32 %v14430_v7, %v21385_v48  ;;  %v21586_v49 = vadd.f32 %v21506_v28, %v10259_v13 }
 0x8c8   : > { %v10135_v38 = vpop.f32.mrf.mxu1  ;;  %v10650_v55 = vpop.f32.mrf.mxu0 }
 0x8c9   : > { %v10260_v45 = vadd.f32 %v10135_v38, %v21389_v27  ;;  %v21590_v53 = vadd.f32 %v21515_v60, %v10262_v18 }
 0x8ca   : > { %v14433_v8 = vpop.f32.mrf.mxu1  ;;  %v14476_v44 = vpop.f32.mrf.mxu0 }
 0x8cb   : > { %v10265_v16 = vadd.f32 %v14433_v8, %v21394_v6  ;;  %v21594_v54 = vadd.f32 %v21523_v10, %v10260_v45 }
 0x8cc   : > { %v10148_v23 = vpop.f32.mrf.mxu1  ;;  %v10653_v4 = vpop.f32.mrf.mxu0 }
 0x8cd   : > { %v10263_v48 = vadd.f32 %v10148_v23, %v21398_v63  ;;  %v21597_v28 = vadd.f32 %v14467_v37, %v10265_v16 }
 0x8ce   : > { %v14434_v51 = vpop.f32.mrf.mxu1  ;;  %v14479_v0 = vpop.f32.mrf.mxu0 }
 0x8cf   : > { %v10266_v27 = vadd.f32 %v14434_v51, %v21402_v3  ;;  %v21600_v24 = vadd.f32 %v10618_v30, %v10263_v48 }
 0x8d0   : > { %v10151_v60 = vpop.f32.mrf.mxu1  ;;  %v10666_v6 = vpop.f32.mrf.mxu0 }
 0x8d1   : > { %v10264_v46 = vadd.f32 %v10151_v60, %v21411_v22  ;;  %v21603_v43 = vadd.f32 %v14468_v32, %v10266_v27 }
 0x8d2   : > { %v14437_v10 = vpop.f32.mrf.mxu1  ;;  %v14480_v61 = vpop.f32.mrf.mxu0 }
 0x8d3   : > { %v10269_v2 = vadd.f32 %v14437_v10, %v21415_v52  ;;  %v21606_v63 = vadd.f32 %v10621_v36, %v10264_v46 }
 0x8d4   : > { %v10164_v37 = vpop.f32.mrf.mxu1  ;;  %v10669_v7 = vpop.f32.mrf.mxu0 }
 0x8d5   : > { %v10267_v13 = vadd.f32 %v10164_v37, %v21419_v26  ;;  %v21609_v3 = vadd.f32 %v14471_v19, %v10269_v2 }
 0x8d6   : > { %v14438_v30 = vpop.f32.mrf.mxu1  ;;  %v14483_v38 = vpop.f32.mrf.mxu0 }
 0x8d7   : > { %v10270_v18 = vadd.f32 %v14438_v30, %v21422_v9  ;;  %v21612_v22 = vadd.f32 %v10634_v40, %v10267_v13 }
 0x8d8   : > { %v10167_v32 = vpop.f32.mrf.mxu1  ;;  %v10682_v8 = vpop.f32.mrf.mxu0 }
 0x8d9   : > { %v10268_v45 = vadd.f32 %v10167_v32, %v21425_v34  ;;  %v21615_v52 = vadd.f32 %v14472_v35, %v10270_v18 }
 0x8da   : > { %v14441_v36 = vpop.f32.mrf.mxu1  ;;  %v14484_v23 = vpop.f32.mrf.mxu0 }
 0x8db   : > { %v10273_v16 = vadd.f32 %v14441_v36, %v21428_v56  ;;  %v21618_v26 = vadd.f32 %v10637_v25, %v10268_v45 }
 0x8dc   : > { %v10180_v19 = vpop.f32.mrf.mxu1  ;;  %v10685_v51 = vpop.f32.mrf.mxu0 }
 0x8dd   : > { %v10271_v48 = vadd.f32 %v10180_v19, %v21434_v17  ;;  %v21621_v9 = vadd.f32 %v14475_v33, %v10273_v16 }
 0x8de   : > { %v14442_v40 = vpop.f32.mrf.mxu1  ;;  %v14487_v60 = vpop.f32.mrf.mxu0 }
 0x8df   : > { %v10274_v27 = vadd.f32 %v14442_v40, %v21437_v41  ;;  %v21624_v34 = vadd.f32 %v10650_v55, %v10271_v48 }
 0x8e0   : > { %v10183_v35 = vpop.f32.mrf.mxu1  ;;  %v10698_v10 = vpop.f32.mrf.mxu0 }
 0x8e1   : > { %v10272_v46 = vadd.f32 %v10183_v35, %v21440_v39  ;;  %v21627_v56 = vadd.f32 %v14476_v44, %v10274_v27 }
 0x8e2   : > { %v14445_v25 = vpop.f32.mrf.mxu1  ;;  %v14488_v37 = vpop.f32.mrf.mxu0 }
 0x8e3   : > { %v10277_v2 = vadd.f32 %v14445_v25, %v21448_v11  ;;  %v21630_v17 = vadd.f32 %v10653_v4, %v10272_v46 }
 0x8e4   : > { %v10196_v33 = vpop.f32.mrf.mxu1  ;;  %v10701_v30 = vpop.f32.mrf.mxu0 }
 0x8e5   : > { %v10275_v13 = vadd.f32 %v10196_v33, %v21463_v14  ;;  %v21633_v41 = vadd.f32 %v14479_v0, %v10277_v2 }
 0x8e6   : > { %v14446_v55 = vpop.f32.mrf.mxu1  ;;  %v14491_v45 = vpop.f32.mrf.mxu0 }
 0x8e7   : > { %v10278_v18 = vadd.f32 %v14446_v55, %v21470_v62  ;;  %v21636_v32 = vadd.f32 %v10666_v6, %v10275_v13 }
 0x8e8   : > { %v10199_v39 = vpop.f32.mrf.mxu1  ;;  %v10714_v19 = vpop.f32.mrf.mxu0 }
 0x8e9   : > { %v10276_v44 = vadd.f32 %v10199_v39, %v21478_v1  ;;  %v21639_v36 = vadd.f32 %v14480_v61, %v10278_v18 }
 0x8ea   : > { %v14449_v11 = vpop.f32.mrf.mxu1  ;;  %v14492_v27 = vpop.f32.mrf.mxu0 }
 0x8eb   : > { %22521 = vst [vmem:[#allocation43_spill] sm:$0xff] %v21639_v36  ;;  %v10281_v4 = vadd.f32 %v14449_v11, %v21486_v42  ;;  %v21642_v16 = vadd.f32 %v10669_v7, %v10276_v44 }
 0x8ec   : > { %v10212_v14 = vpop.f32.mrf.mxu1  ;;  %v10717_v25 = vpop.f32.mrf.mxu0 }
 0x8ed   : > { %22522 = vst [vmem:[#allocation4_spill] sm:$0xff] %v21642_v16  ;;  %v10279_v0 = vadd.f32 %v10212_v14, %v21502_v47  ;;  %v21645_v48 = vadd.f32 %v14483_v38, %v10281_v4 }
 0x8ee   : > { %v14450_v62 = vpop.f32.mrf.mxu1 }
 0x8ef   : > { %22523 = vst [vmem:[#allocation44_spill] sm:$0xff] %v21645_v48  ;;  %v10282_v6 = vadd.f32 %v14450_v62, %v21509_v57  ;;  %v21648_v40 = vadd.f32 %v10682_v8, %v10279_v0 }
 0x8f0   : > { %v10215_v1 = vpop.f32.mrf.mxu1 }
 0x8f1   : > { %22524 = vst [vmem:[#allocation20_spill] sm:$0xff] %v21648_v40  ;;  %v10280_v61 = vadd.f32 %v10215_v1, %v21518_v15  ;;  %v21651_v35 = vadd.f32 %v14484_v23, %v10282_v6 }
 0x8f2   : > { %v14453_v42 = vpop.f32.mrf.mxu1 }
 0x8f3   : > { %22525 = vst [vmem:[#allocation10_spill] sm:$0xff] %v21651_v35  ;;  %v10285_v7 = vadd.f32 %v14453_v42, %v21526_v21  ;;  %v21654_v46 = vadd.f32 %v10685_v51, %v10280_v61 }
 0x8f4   : > { %v10228_v47 = vpop.f32.mrf.mxu1 }
 0x8f5   : > { %22526 = vst [vmem:[#allocation7_spill] sm:$0xff] %v21654_v46  ;;  %v10283_v38 = vadd.f32 %v10228_v47, %v21543_v12  ;;  %v21657_v2 = vadd.f32 %v14487_v60, %v10285_v7 }
 0x8f6   : > { %v14454_v57 = vpop.f32.mrf.mxu1 }
 0x8f7   : > { %22527 = vst [vmem:[#allocation22_spill] sm:$0xff] %v21657_v2  ;;  %v10286_v8 = vadd.f32 %v14454_v57, %v21548_v20  ;;  %v21660_v33 = vadd.f32 %v10698_v10, %v10283_v38 }
 0x8f8   : > { %v10231_v15 = vpop.f32.mrf.mxu1  ;;  %v21663_v13 = vpop.f32.mrf.mxu0 }
 0x8f9   : > { %22528 = vst [vmem:[#allocation18_spill] sm:$0xff] %v21660_v33  ;;  %v10284_v23 = vadd.f32 %v10231_v15, %v21554_v29  ;;  %v21665_v55 = vadd.f32 %v14488_v37, %v10286_v8 }
 0x8fa   : > { %v21667_v21 = vpop.f32.mrf.mxu0 }
 0x8fb   : > { %22529 = vst [vmem:[#allocation26_spill] sm:$0xff] %v21665_v55  ;;  %v21669_v51 = vadd.f32 %v10701_v30, %v10284_v23 }
 0x8fc   : > { %v21671_v12 = vpop.f32.mrf.mxu0  ;;  %v14457_v60 = vpop.f32.mrf.mxu1 }
 0x8fd   : > { %22530 = vst [vmem:[#allocation5_spill] sm:$0xff] %v21669_v51  ;;  %v10289_v18 = vadd.f32 %v14457_v60, %v21560_v59 }
 0x8fe   : > { %v10244_v39 = vpop.f32.mrf.mxu1  ;;  %v21675_v10 = vpop.f32.mrf.mxu0 }
 0x8ff   : > { %v10287_v20 = vadd.f32 %v10244_v39, %v21566_v50  ;;  %v21677_v44 = vadd.f32 %v14491_v45, %v10289_v18 }
 0x900   : > { %v14458_v29 = vpop.f32.mrf.mxu1 }
 0x901   : > { %22531 = vst [vmem:[#allocation17_spill] sm:$0xff] %v21677_v44  ;;  %v10290_v37 = vadd.f32 %v14458_v29, %v21571_v5  ;;  %v21680_v11 = vadd.f32 %v10714_v19, %v10287_v20 }
 0x902   : > { %v10247_v4 = vpop.f32.mrf.mxu1 }
 0x903   : > { %22532 = vst [vmem:[#allocation47_spill] sm:$0xff] %v21680_v11  ;;  %v10288_v30 = vadd.f32 %v10247_v4, %v21577_v31  ;;  %v21685_v0 = vadd.f32 %v14492_v27, %v10290_v37 }
 0x904   : > { %v21683_v14 = vpop.f32.mrf.mxu0  ;;  %v14497_v59 = vpop.f32.mrf.mxu1 }
 0x905   : > { %22533 = vst [vmem:[#allocation46_spill] sm:$0xff] %v21685_v0  ;;  %v21689_v50 = vadd.f32 %v10717_v25, %v10288_v30 }
 0x906   : > { %v21687_v62 = vpop.f32.mrf.mxu0  ;;  %v10961_v6 = vpop.f32.mrf.mxu1 }
 0x907   : > { %22534 = vst [vmem:[#allocation23_spill] sm:$0xff] %v21689_v50 }
 0x908   : > { %v21691_v45 = vpop.f32.mrf.mxu0  ;;  %v14498_v1 = vpop.f32.mrf.mxu1 }
 0x90a   : > { %v21693_v61 = vpop.f32.mrf.mxu0  ;;  %v10964_v5 = vpop.f32.mrf.mxu1 }
 0x90c   : > { %v14501_v19 = vpop.f32.mrf.mxu1 }
 0x90e   : > { %v21695_v42 = vpop.f32.mrf.mxu0  ;;  %v21697_v31 = vpop.f32.mrf.mxu1 }
 0x910   : > { %v21699_v7 = vpop.f32.mrf.mxu0  ;;  %v21701_v27 = vpop.f32.mrf.mxu1 }
 0x912   : > { %v21703_v47 = vpop.f32.mrf.mxu0  ;;  %v21705_v38 = vpop.f32.mrf.mxu1 }
 0x914   : > { %v21707_v25 = vpop.f32.mrf.mxu0  ;;  %v21709_v57 = vpop.f32.mrf.mxu1 }
 0x916   : > { %v21711_v8 = vpop.f32.mrf.mxu1 }
 0x917   : > { %v21713_v15 = vpop.f32.mrf.mxu0 }
 0x918   : > { %v21715_v23 = vpop.f32.mrf.mxu1 }
 0x919   : > { %v21717_v60 = vpop.f32.mrf.mxu0 }
 0x91a   : > { %v21719_v18 = vpop.f32.mrf.mxu1 }
 0x91b   : > { %v21721_v39 = vpop.f32.mrf.mxu0 }
 0x91c   : > { %v21723_v20 = vpop.f32.mrf.mxu1 }
 0x91d   : > { %v21725_v29 = vpop.f32.mrf.mxu0 }
 0x91e   : > { %v21727_v37 = vpop.f32.mrf.mxu1 }
 0x920   : > { %v21729_v4 = vpop.f32.mrf.mxu1 }
 0x921   : > { %v21731_v30 = vpop.f32.mrf.mxu0 }
 0x922   : > { %22535 = vst [vmem:[#allocation36_spill] sm:$0xff] %v21731_v30  ;;  %v21733_v50 = vpop.f32.mrf.mxu1 }
 0x923   : > { %v21735_v0 = vpop.f32.mrf.mxu0 }
 0x924   : > { %22536 = vst [vmem:[#allocation51_spill] sm:$0xff] %v21735_v0  ;;  %v21737_v11 = vpop.f32.mrf.mxu1 }
 0x925   : > { %v21739_v44 = vpop.f32.mrf.mxu0 }
 0x926   : > { %22537 = vst [vmem:[#allocation14_spill] sm:$0xff] %v21739_v44  ;;  %v21741_v51 = vpop.f32.mrf.mxu1 }
 0x927   : > { %v21743_v55 = vpop.f32.mrf.mxu0 }
 0x928   : > { %22538 = vst [vmem:[#allocation48_spill] sm:$0xff] %v21743_v55  ;;  %v21745_v33 = vpop.f32.mrf.mxu1 }
 0x929   : > { %22539 = vst [vmem:[#allocation35_spill] sm:$0xff] %v21745_v33 }
 0x92a   : > { %v21749_v46 = vpop.f32.mrf.mxu1 }
 0x92b   : > { %v21747_v2 = vpop.f32.mrf.mxu0  ;;  %22541 = vst [vmem:[#allocation9_spill] sm:$0xff] %v21749_v46 }
 0x92c   : > { %22540 = vst [vmem:[#allocation49_spill] sm:$0xff] %v21747_v2  ;;  %v21753_v40 = vpop.f32.mrf.mxu1 }
 0x92d   : > { %v21751_v35 = vpop.f32.mrf.mxu0  ;;  %22543 = vst [vmem:[#allocation27_spill] sm:$0xff] %v21753_v40 }
 0x92e   : > { %22542 = vst [vmem:[#allocation11_spill] sm:$0xff] %v21751_v35  ;;  %v21755_v48 = vpop.f32.mrf.mxu1 }
 0x92f   : > { %22544 = vst [vmem:[#allocation29_spill] sm:$0xff] %v21755_v48  ;;  %v21757_v0 = vpop.f32.mrf.mxu0 }
 0x930   : > { %22545 = vst [vmem:[#allocation52_spill] sm:$0xff] %v21757_v0  ;;  %v21759_v16 = vpop.f32.mrf.mxu1 }
 0x931   : > { %22546 = vst [vmem:[#allocation33_spill] sm:$0xff] %v21759_v16  ;;  %v21763_v30 = vpop.f32.mrf.mxu0 }
 0x932   : > { %v21761_v44 = vpop.f32.mrf.mxu1  ;;  %22548 = vst [vmem:[#allocation21_spill] sm:$0xff] %v21763_v30  ;;  %v11090_v30 = vadd.f32 %v14497_v59, %v21581_v58 }
 0x933   : > { %22547 = vst [vmem:[#allocation12_spill] sm:$0xff] %v21761_v44 }
 0x934   : > { %v21765_v55 = vpop.f32.mrf.mxu1  ;;  %v21769_v2 = vpop.f32.mrf.mxu0 }
 0x935   : > { %22549 = vst [vmem:[#allocation15_spill] sm:$0xff] %v21765_v55  ;;  %22551 = vst [vmem:[#allocation38_spill] sm:$0xff] %v21769_v2  ;;  %v11088_v2 = vadd.f32 %v10961_v6, %v21586_v49  ;;  %v21804_v49 = vld [vmem:[%s22046_s10] ss:$0 sm:$0xff] }
 0x936   : > { %v21767_v33 = vpop.f32.mrf.mxu1  ;;  %v21775_v40 = vpop.f32.mrf.mxu0 }
 0x937   : > { %22550 = vst [vmem:[#allocation16_spill] sm:$0xff] %v21767_v33  ;;  %22554 = vst [vmem:[#allocation50_spill] sm:$0xff] %v21775_v40  ;;  %v11091_v40 = vadd.f32 %v14498_v1, %v21590_v53  ;;  %v11814_v58 = vadd.f32 %v21667_v21, %v11088_v2  ;;  %v11094_v53 = vadd.f32 %v14501_v19, %v21597_v28 }
 0x938   : > { %v21771_v46 = vpop.f32.mrf.mxu1  ;;  %v21781_v16 = vpop.f32.mrf.mxu0 }
 0x939   : > { %22552 = vst [vmem:[#allocation57_spill] sm:$0xff] %v21771_v46  ;;  %22557 = vst [vmem:[#allocation55_spill] sm:$0xff] %v21781_v16 }
 0x93a   : > { %v21773_v35 = vpop.f32.mrf.mxu1  ;;  %v21788_v33 = vpop.f32.mrf.mxu0 }
 0x93b   : > { %22553 = vst [vmem:[#allocation53_spill] sm:$0xff] %v21773_v35 }
 0x93c   : > { %v21777_v48 = vpop.f32.mrf.mxu1 }
 0x93d   : > { %22555 = vst [vmem:[#allocation39_spill] sm:$0xff] %v21777_v48  ;;  %v11816_v48 = vadd.f32 %v21663_v13, %v11090_v30  ;;  %v11817_v13 = vadd.f32 %v21671_v12, %v11091_v40  ;;  %v11095_v40 = vadd.f32 %v21701_v27, %v21603_v43 }
 0x93e   : > { %v21779_v0 = vpop.f32.mrf.mxu1 }
 0x93f   : > { %22556 = vst [vmem:[#allocation13_spill] sm:$0xff] %v21779_v0 }
 0x940   : > { %v21783_v44 = vpop.f32.mrf.mxu1 }
 0x941   : > { %22558 = vst [vmem:[#allocation40_spill] sm:$0xff] %v21783_v44  ;;  %v11089_v44 = vadd.f32 %v10964_v5, %v21594_v54  ;;  %v11092_v54 = vadd.f32 %v21697_v31, %v21600_v24  ;;  %v11820_v31 = vadd.f32 %v21683_v14, %v11094_v53  ;;  %v11821_v53 = vadd.f32 %v21691_v45, %v11095_v40 }
 0x942   : > { %v21786_v55 = vpop.f32.mrf.mxu1 }
 0x943   : > { %22559 = vst [vmem:[#allocation30_spill] sm:$0xff] %v21786_v55  ;;  %v11815_v28 = vadd.f32 %v21675_v10, %v11089_v44  ;;  %v11818_v43 = vadd.f32 %v21687_v62, %v11092_v54 }
 0x944   : > { %v14565_v46 = vpop.f32.mrf.mxu1 }
 0x945   : > { %v12286_v16 = vadd.f32 %v14565_v46, %v11816_v48  ;;  %v21815_v46 = vld [vmem:[%s22048_s12] ss:$0 sm:$0xff] }
 0x946   : > { %v21791_v35 = vpop.f32.mrf.mxu0  ;;  %v12157_v0 = vpop.f32.mrf.mxu1 }
 0x947   : > { %v12284_v6 = vadd.f32 %v12157_v0, %v11814_v58  ;;  %v12325_v2 = vadd.f32 %v21804_v49, %v12286_v16  ;;  %v11093_v58 = vadd.f32 %v21705_v38, %v21606_v63  ;;  %v11098_v63 = vadd.f32 %v21709_v57, %v21609_v3 }
 0x948   : > { %v21795_v36 = vpop.f32.mrf.mxu0  ;;  %v14566_v59 = vpop.f32.mrf.mxu1 }
 0x949   : > { %v12287_v21 = vadd.f32 %v14566_v59, %v11817_v13  ;;  %v12323_v5 = vadd.f32 %v21804_v49, %v12284_v6 }
 0x94a   : > { %v21799_v55 = vpop.f32.mrf.mxu0  ;;  %v12160_v1 = vpop.f32.mrf.mxu1 }
 0x94b   : > { %v12285_v19 = vadd.f32 %v12160_v1, %v11815_v28  ;;  %v12326_v14 = vadd.f32 %v21804_v49, %v12287_v21  ;;  %v11819_v28 = vadd.f32 %v21693_v61, %v11093_v58 }
 0x94c   : > { %v21810_v48 = vpop.f32.mrf.mxu0  ;;  %v14569_v0 = vpop.f32.mrf.mxu1 }
 0x94d   : > { %v12290_v27 = vadd.f32 %v14569_v0, %v11820_v31  ;;  %v12324_v62 = vadd.f32 %v21804_v49, %v12285_v19 }
 0x94e   : > { %v14599_v12 = vpop.f32.mrf.mxu0  ;;  %v12173_v30 = vpop.f32.mrf.mxu1 }
 0x94f   : > { %v12473_v24 = vadd.f32 %v14599_v12, %v21815_v46  ;;  %v12288_v1 = vadd.f32 %v12173_v30, %v11818_v43  ;;  %v12329_v57 = vadd.f32 %v21804_v49, %v12290_v27  ;;  %v11099_v12 = vadd.f32 %v21715_v23, %v21615_v52 }
 0x950   : > { %v12464_v16 = vpop.f32.mrf.mxu0  ;;  %v14570_v59 = vpop.f32.mrf.mxu1  ;;  %v11097_v30 = vadd.f32 %v21719_v18, %v21618_v26 }
 0x951   : > { %v12465_v10 = vadd.f32 %v21815_v46, %v12464_v16  ;;  %v12593_v44 = vadd.f32 %v12473_v24, %v12325_v2  ;;  %v11096_v2 = vadd.f32 %v21711_v8, %v21612_v22  ;;  %v12291_v0 = vadd.f32 %v14570_v59, %v11821_v53 }
 0x952   : > { %v14600_v38 = vpop.f32.mrf.mxu0  ;;  %v12176_v54 = vpop.f32.mrf.mxu1  ;;  %v12327_v8 = vadd.f32 %v21804_v49, %v12288_v1  ;;  %v11825_v27 = vadd.f32 %v21703_v47, %v11099_v12  ;;  %v11103_v1 = vadd.f32 %v21729_v4, %v21627_v56  ;;  %v11106_v12 = vadd.f32 %v21737_v11, %v21633_v41 }
 0x953   : > { %12625 = vst.msk [vmem:[%s21831_s21 + $0x10] sm:$0xff] %vm6425_vm8, %v12593_v44  ;;  %v12476_v6 = vadd.f32 %v14600_v38, %v21815_v46  ;;  %v12591_v13 = vadd.f32 %v12465_v10, %v12323_v5  ;;  %v11824_v5 = vadd.f32 %v21695_v42, %v11098_v63  ;;  %v12289_v19 = vadd.f32 %v12176_v54, %v11819_v28 }
 0x954   : > { %v12467_v21 = vpop.f32.mrf.mxu0  ;;  %v14573_v40 = vpop.f32.mrf.mxu1  ;;  %v11822_v16 = vadd.f32 %v21699_v7, %v11096_v2  ;;  %v12330_v23 = vadd.f32 %v21804_v49, %v12291_v0  ;;  %v11102_v44 = vadd.f32 %v21723_v20, %v21621_v9  ;;  %v11100_v38 = vadd.f32 %v21727_v37, %v21624_v34 }
 0x955   : > { %12623 = vst.msk [vmem:[%s21831_s21] sm:$0xff] %vm6425_vm8, %v12591_v13  ;;  %v12468_v3 = vadd.f32 %v21815_v46, %v12467_v21  ;;  %v12594_v45 = vadd.f32 %v12476_v6, %v12326_v14  ;;  %v12294_v43 = vadd.f32 %v14573_v40, %v11824_v5  ;;  %v12328_v18 = vadd.f32 %v21804_v49, %v12289_v19 }
 0x956   : > { %v14603_v24 = vpop.f32.mrf.mxu0  ;;  %v12189_v31 = vpop.f32.mrf.mxu1  ;;  %v11823_v6 = vadd.f32 %v21707_v25, %v11097_v30  ;;  %v11828_v2 = vadd.f32 %v21713_v15, %v11102_v44  ;;  %v11829_v5 = vadd.f32 %v21721_v39, %v11103_v1 }
 0x957   : > { %12626 = vst.msk [vmem:[%s21831_s21 + $0x18] sm:$0xff] %vm6425_vm8, %v12594_v45  ;;  %v12489_v22 = vadd.f32 %v14603_v24, %v21815_v46  ;;  %v12592_v61 = vadd.f32 %v12468_v3, %v12324_v62  ;;  %v12292_v59 = vadd.f32 %v12189_v31, %v11822_v16  ;;  %v12333_v20 = vadd.f32 %v21804_v49, %v12294_v43  ;;  %v22560_v16 = vld [vmem:[#allocation43_spill] sm:$0xff]  ;;  %v22562_v43 = vld [vmem:[#allocation36_spill] sm:$0xff] }
 0x958   : > { %v12480_v58 = vpop.f32.mrf.mxu0  ;;  %v14574_v10 = vpop.f32.mrf.mxu1  ;;  %v11101_v3 = vadd.f32 %v21733_v50, %v21630_v17 }
 0x959   : > { %12624 = vst.msk [vmem:[%s21831_s21 + $0x8] sm:$0xff] %vm6425_vm8, %v12592_v61  ;;  %v12481_v52 = vadd.f32 %v21815_v46, %v12480_v58  ;;  %v12597_v42 = vadd.f32 %v12489_v22, %v12329_v57  ;;  %v12295_v13 = vadd.f32 %v14574_v10, %v11825_v27  ;;  %v12331_v37 = vadd.f32 %v21804_v49, %v12292_v59  ;;  %v22563_v27 = vld [vmem:[#allocation4_spill] sm:$0xff]  ;;  %v22565_v59 = vld [vmem:[#allocation51_spill] sm:$0xff] }
 0x95a   : > { %v14604_v14 = vpop.f32.mrf.mxu0  ;;  %v12192_v63 = vpop.f32.mrf.mxu1  ;;  %v11826_v57 = vadd.f32 %v21717_v60, %v11100_v38  ;;  %v11827_v31 = vadd.f32 %v21725_v29, %v11101_v3  ;;  %v11832_v10 = vadd.f32 %v22562_v43, %v11106_v12  ;;  %v22569_v3 = vld [vmem:[#allocation20_spill] sm:$0xff] }
 0x95b   : > { %12629 = vst.msk [vmem:[%s21831_s21 + $0x30] sm:$0xff] %vm6425_vm8, %v12597_v42  ;;  %v12492_v26 = vadd.f32 %v14604_v14, %v21815_v46  ;;  %v12595_v7 = vadd.f32 %v12481_v52, %v12327_v8  ;;  %v12293_v21 = vadd.f32 %v12192_v63, %v11823_v6  ;;  %v12334_v4 = vadd.f32 %v21804_v49, %v12295_v13  ;;  %v22561_v52 = vld [vmem:[#allocation35_spill] sm:$0xff] }
 0x95c   : > { %v12483_v53 = vpop.f32.mrf.mxu0  ;;  %v11104_v8 = vadd.f32 %v21741_v51, %v21636_v32  ;;  %v11107_v42 = vadd.f32 %v22561_v52, %v22560_v16  ;;  %v22567_v13 = vld [vmem:[#allocation27_spill] sm:$0xff] }
 0x95d   : > { %12627 = vst.msk [vmem:[%s21831_s21 + $0x20] sm:$0xff] %vm6425_vm8, %v12595_v7  ;;  %v12484_v9 = vadd.f32 %v21815_v46, %v12483_v53  ;;  %v12598_v47 = vadd.f32 %v12492_v26, %v12330_v23  ;;  %v14577_v62 = vpop.f32.mrf.mxu1  ;;  %v12332_v60 = vadd.f32 %v21804_v49, %v12293_v21  ;;  %v22564_v26 = vld [vmem:[#allocation9_spill] sm:$0xff] }
 0x95e   : > { %v14607_v54 = vpop.f32.mrf.mxu0  ;;  %v12298_v0 = vadd.f32 %v14577_v62, %v11828_v2  ;;  %v11105_v7 = vadd.f32 %v22564_v26, %v22563_v27  ;;  %v11830_v63 = vadd.f32 %v22565_v59, %v11104_v8 }
 0x95f   : > { %12630 = vst.msk [vmem:[%s21831_s21 + $0x38] sm:$0xff] %vm6425_vm8, %v12598_v47  ;;  %v12505_v34 = vadd.f32 %v14607_v54, %v21815_v46  ;;  %v12596_v25 = vadd.f32 %v12484_v9, %v12328_v18  ;;  %v12205_v28 = vpop.f32.mrf.mxu1  ;;  %v22568_v54 = vld [vmem:[#allocation14_spill] sm:$0xff] }
 0x960   : > { %v12496_v45 = vpop.f32.mrf.mxu0  ;;  %v12296_v22 = vadd.f32 %v12205_v28, %v11826_v57  ;;  %v12337_v39 = vadd.f32 %v21804_v49, %v12298_v0  ;;  %v11833_v2 = vadd.f32 %v22568_v54, %v11107_v42  ;;  %v22577_v42 = vld [vmem:[#allocation11_spill] sm:$0xff] }
 0x961   : > { %12628 = vst.msk [vmem:[%s21831_s21 + $0x28] sm:$0xff] %vm6425_vm8, %v12596_v25  ;;  %v12497_v56 = vadd.f32 %v21815_v46, %v12496_v45  ;;  %v12601_v15 = vadd.f32 %v12505_v34, %v12333_v20  ;;  %v14578_v40 = vpop.f32.mrf.mxu1  ;;  %v22566_v20 = vld [vmem:[#allocation44_spill] sm:$0xff]  ;;  %v22570_v45 = vld [vmem:[#allocation29_spill] sm:$0xff] }
 0x962   : > { %v14608_v24 = vpop.f32.mrf.mxu0  ;;  %v12299_v30 = vadd.f32 %v14578_v40, %v11829_v5  ;;  %v12335_v29 = vadd.f32 %v21804_v49, %v12296_v22  ;;  %v11110_v62 = vadd.f32 %v22567_v13, %v22566_v20  ;;  %v11108_v57 = vadd.f32 %v22570_v45, %v22569_v3 }
 0x963   : > { %12633 = vst.msk [vmem:[%s21831_s21 + $0x50] sm:$0xff] %vm6425_vm8, %v12601_v15  ;;  %v12508_v17 = vadd.f32 %v14608_v24, %v21815_v46  ;;  %v12599_v50 = vadd.f32 %v12497_v56, %v12331_v37  ;;  %v12208_v61 = vpop.f32.mrf.mxu1  ;;  %v22571_v15 = vld [vmem:[#allocation48_spill] sm:$0xff] }
 0x964   : > { %v12499_v19 = vpop.f32.mrf.mxu0  ;;  %v12297_v44 = vadd.f32 %v12208_v61, %v11827_v31  ;;  %v12338_v6 = vadd.f32 %v21804_v49, %v12299_v30  ;;  %v22574_v61 = vld [vmem:[#allocation49_spill] sm:$0xff]  ;;  %v22575_v30 = vld [vmem:[#allocation7_spill] sm:$0xff] }
 0x965   : > { %12631 = vst.msk [vmem:[%s21831_s21 + $0x40] sm:$0xff] %vm6425_vm8, %v12599_v50  ;;  %v12500_v41 = vadd.f32 %v21815_v46, %v12499_v19  ;;  %v12602_v11 = vadd.f32 %v12508_v17, %v12334_v4  ;;  %v14581_v58 = vpop.f32.mrf.mxu1  ;;  %v11831_v4 = vadd.f32 %v22571_v15, %v11105_v7  ;;  %v22572_v17 = vld [vmem:[#allocation10_spill] sm:$0xff]  ;;  %v22573_v50 = vld [vmem:[#allocation33_spill] sm:$0xff]  ;;  %v11836_v8 = vadd.f32 %v22574_v61, %v11110_v62  ;;  %v22580_v7 = vld [vmem:[#allocation52_spill] sm:$0xff] }
 0x966   : > { %v14611_v23 = vpop.f32.mrf.mxu0  ;;  %v12302_v9 = vadd.f32 %v14581_v58, %v11832_v10  ;;  %v12336_v37 = vadd.f32 %v21804_v49, %v12297_v44  ;;  %v22576_v58 = vld [vmem:[#allocation12_spill] sm:$0xff]  ;;  %v22578_v44 = vld [vmem:[#allocation22_spill] sm:$0xff]  ;;  %v22583_v62 = vld [vmem:[#allocation21_spill] sm:$0xff] }
 0x967   : > { %12634 = vst.msk [vmem:[%s21831_s21 + $0x58] sm:$0xff] %vm6425_vm8, %v12602_v11  ;;  %v12521_v32 = vadd.f32 %v14611_v23, %v21815_v46  ;;  %v12600_v51 = vadd.f32 %v12500_v41, %v12332_v60  ;;  %v12221_v14 = vpop.f32.mrf.mxu1  ;;  %v11111_v60 = vadd.f32 %v22573_v50, %v22572_v17  ;;  %v11109_v16 = vadd.f32 %v22576_v58, %v22575_v30 }
 0x968   : > { %v12512_v18 = vpop.f32.mrf.mxu0  ;;  %v12300_v21 = vadd.f32 %v12221_v14, %v11830_v63  ;;  %v12341_v12 = vadd.f32 %v21804_v49, %v12302_v9  ;;  %v11834_v23 = vadd.f32 %v22577_v42, %v11108_v57  ;;  %v22579_v14 = vld [vmem:[#allocation15_spill] sm:$0xff]  ;;  %v22581_v9 = vld [vmem:[#allocation18_spill] sm:$0xff] }
 0x969   : > { %12632 = vst.msk [vmem:[%s21831_s21 + $0x48] sm:$0xff] %vm6425_vm8, %v12600_v51  ;;  %v12513_v38 = vadd.f32 %v21815_v46, %v12512_v18  ;;  %v12605_v53 = vadd.f32 %v12521_v32, %v12337_v39  ;;  %v14582_v47 = vpop.f32.mrf.mxu1  ;;  %v11114_v27 = vadd.f32 %v22579_v14, %v22578_v44  ;;  %v11837_v18 = vadd.f32 %v22580_v7, %v11111_v60  ;;  %v22586_v57 = vld [vmem:[#allocation38_spill] sm:$0xff] }
 0x96a   : > { %v14612_v1 = vpop.f32.mrf.mxu0  ;;  %v12303_v24 = vadd.f32 %v14582_v47, %v11833_v2  ;;  %v12339_v41 = vadd.f32 %v21804_v49, %v12300_v21  ;;  %v22582_v47 = vld [vmem:[#allocation16_spill] sm:$0xff]  ;;  %v22584_v21 = vld [vmem:[#allocation26_spill] sm:$0xff] }
 0x96b   : > { %12637 = vst.msk [vmem:[%s21831_s21 + $0x70] sm:$0xff] %vm6425_vm8, %v12605_v53  ;;  %v12524_v34 = vadd.f32 %v14612_v1, %v21815_v46  ;;  %v12603_v25 = vadd.f32 %v12513_v38, %v12335_v29  ;;  %v12224_v28 = vpop.f32.mrf.mxu1  ;;  %v11112_v20 = vadd.f32 %v22582_v47, %v22581_v9  ;;  %v11835_v1 = vadd.f32 %v22583_v62, %v11109_v16  ;;  %v22589_v60 = vld [vmem:[#allocation50_spill] sm:$0xff]  ;;  %v22592_v16 = vld [vmem:[#allocation55_spill] sm:$0xff] }
 0x96c   : > { %v12515_v56 = vpop.f32.mrf.mxu0  ;;  %v12301_v11 = vadd.f32 %v12224_v28, %v11831_v4  ;;  %v12342_v32 = vadd.f32 %v21804_v49, %v12303_v24  ;;  %v22585_v28 = vld [vmem:[#allocation57_spill] sm:$0xff] }
 0x96d   : > { %12635 = vst.msk [vmem:[%s21831_s21 + $0x60] sm:$0xff] %vm6425_vm8, %v12603_v25  ;;  %v12516_v0 = vadd.f32 %v21815_v46, %v12515_v56  ;;  %v12606_v40 = vadd.f32 %v12524_v34, %v12338_v6  ;;  %v14585_v5 = vpop.f32.mrf.mxu1  ;;  %v11115_v3 = vadd.f32 %v22585_v28, %v22584_v21  ;;  %v11840_v56 = vadd.f32 %v22586_v57, %v11114_v27  ;;  %v22587_v24 = vld [vmem:[#allocation5_spill] sm:$0xff] }
 0x96e   : > { %v14615_v22 = vpop.f32.mrf.mxu0  ;;  %v12306_v51 = vadd.f32 %v14585_v5, %v11836_v8  ;;  %v12340_v38 = vadd.f32 %v21804_v49, %v12301_v11  ;;  %v22588_v5 = vld [vmem:[#allocation53_spill] sm:$0xff] }
 0x96f   : > { %12638 = vst.msk [vmem:[%s21831_s21 + $0x78] sm:$0xff] %vm6425_vm8, %v12606_v40  ;;  %v12537_v19 = vadd.f32 %v14615_v22, %v21815_v46  ;;  %v12604_v31 = vadd.f32 %v12516_v0, %v12336_v37  ;;  %v12237_v39 = vpop.f32.mrf.mxu1  ;;  %v11113_v17 = vadd.f32 %v22588_v5, %v22587_v24  ;;  %v11838_v22 = vadd.f32 %v22589_v60, %v11112_v20  ;;  %v22590_v11 = vld [vmem:[#allocation17_spill] sm:$0xff] }
 0x970   : > { %v12528_v52 = vpop.f32.mrf.mxu0  ;;  %v12304_v53 = vadd.f32 %v12237_v39, %v11834_v23  ;;  %v12345_v34 = vadd.f32 %v21804_v49, %v12306_v51  ;;  %v22591_v39 = vld [vmem:[#allocation39_spill] sm:$0xff] }
 0x971   : > { %12636 = vst.msk [vmem:[%s21831_s21 + $0x68] sm:$0xff] %vm6425_vm8, %v12604_v31  ;;  %v12529_v43 = vadd.f32 %v21815_v46, %v12528_v52  ;;  %v12609_v10 = vadd.f32 %v12537_v19, %v12341_v12  ;;  %v14586_v29 = vpop.f32.mrf.mxu1  ;;  %v11118_v30 = vadd.f32 %v22591_v39, %v22590_v11  ;;  %v11841_v52 = vadd.f32 %v22592_v16, %v11115_v3  ;;  %v22593_v51 = vld [vmem:[#allocation47_spill] sm:$0xff] }
 0x972   : > { %v14616_v26 = vpop.f32.mrf.mxu0  ;;  %v12307_v25 = vadd.f32 %v14586_v29, %v11837_v18  ;;  %v12343_v0 = vadd.f32 %v21804_v49, %v12304_v53  ;;  %v22594_v29 = vld [vmem:[#allocation13_spill] sm:$0xff]  ;;  %v11839_v27 = vadd.f32 %v21788_v33, %v11113_v17  ;;  %v22596_v53 = vld [vmem:[#allocation40_spill] sm:$0xff] }
 0x973   : > { %12641 = vst.msk [vmem:[%s21831_s21 + $0x90] sm:$0xff] %vm6425_vm8, %v12609_v10  ;;  %v12540_v59 = vadd.f32 %v14616_v26, %v21815_v46  ;;  %v12607_v63 = vadd.f32 %v12529_v43, %v12339_v41  ;;  %v12240_v6 = vpop.f32.mrf.mxu1  ;;  %v11116_v44 = vadd.f32 %v22594_v29, %v22593_v51  ;;  %v11844_v47 = vadd.f32 %v21791_v35, %v11118_v30 }
 0x974   : > { %v12531_v13 = vpop.f32.mrf.mxu0  ;;  %v12305_v40 = vadd.f32 %v12240_v6, %v11835_v1  ;;  %v12346_v19 = vadd.f32 %v21804_v49, %v12307_v25 }
 0x975   : > { %12639 = vst.msk [vmem:[%s21831_s21 + $0x80] sm:$0xff] %vm6425_vm8, %v12607_v63  ;;  %v12532_v54 = vadd.f32 %v21815_v46, %v12531_v13  ;;  %v12610_v2 = vadd.f32 %v12540_v59, %v12342_v32  ;;  %v14589_v37 = vpop.f32.mrf.mxu1 }
 0x976   : > { %v14619_v45 = vpop.f32.mrf.mxu0  ;;  %v12310_v31 = vadd.f32 %v14589_v37, %v11840_v56  ;;  %v12344_v43 = vadd.f32 %v21804_v49, %v12305_v40  ;;  %v11842_v37 = vadd.f32 %v21795_v36, %v11116_v44 }
 0x977   : > { %12642 = vst.msk [vmem:[%s21831_s21 + $0x98] sm:$0xff] %vm6425_vm8, %v12610_v2  ;;  %v12553_v15 = vadd.f32 %v14619_v45, %v21815_v46  ;;  %v12608_v4 = vadd.f32 %v12532_v54, %v12340_v38  ;;  %v12253_v12 = vpop.f32.mrf.mxu1  ;;  %v22595_v38 = vld [vmem:[#allocation46_spill] sm:$0xff]  ;;  %v22597_v54 = vld [vmem:[#allocation23_spill] sm:$0xff] }
 0x978   : > { %v12544_v50 = vpop.f32.mrf.mxu0  ;;  %v12308_v10 = vadd.f32 %v12253_v12, %v11838_v22  ;;  %v12349_v18 = vadd.f32 %v21804_v49, %v12310_v31  ;;  %v11119_v6 = vadd.f32 %v22596_v53, %v22595_v38  ;;  %v22598_v2 = vld [vmem:[#allocation30_spill] sm:$0xff] }
 0x979   : > { %12640 = vst.msk [vmem:[%s21831_s21 + $0x88] sm:$0xff] %vm6425_vm8, %v12608_v4  ;;  %v12545_v61 = vadd.f32 %v21815_v46, %v12544_v50  ;;  %v12613_v8 = vadd.f32 %v12553_v15, %v12345_v34  ;;  %v14590_v41 = vpop.f32.mrf.mxu1  ;;  %v11117_v34 = vadd.f32 %v22598_v2, %v22597_v54 }
 0x97a   : > { %v14620_v58 = vpop.f32.mrf.mxu0  ;;  %v12311_v59 = vadd.f32 %v14590_v41, %v11841_v52  ;;  %v12347_v13 = vadd.f32 %v21804_v49, %v12308_v10  ;;  %v11845_v56 = vadd.f32 %v21799_v55, %v11119_v6 }
 0x97b   : > { %12645 = vst.msk [vmem:[%s21831_s21 + $0xb0] sm:$0xff] %vm6425_vm8, %v12613_v8  ;;  %v12556_v42 = vadd.f32 %v14620_v58, %v21815_v46  ;;  %v12611_v23 = vadd.f32 %v12545_v61, %v12343_v0  ;;  %v12256_v32 = vpop.f32.mrf.mxu1  ;;  %v11843_v12 = vadd.f32 %v21810_v48, %v11117_v34 }
 0x97c   : > { %v12547_v14 = vpop.f32.mrf.mxu0  ;;  %v12309_v62 = vadd.f32 %v12256_v32, %v11839_v27  ;;  %v12350_v28 = vadd.f32 %v21804_v49, %v12311_v59 }
 0x97d   : > { %12643 = vst.msk [vmem:[%s21831_s21 + $0xa0] sm:$0xff] %vm6425_vm8, %v12611_v23  ;;  %v12548_v26 = vadd.f32 %v21815_v46, %v12547_v14  ;;  %v12614_v7 = vadd.f32 %v12556_v42, %v12346_v19  ;;  %v14593_v63 = vpop.f32.mrf.mxu1 }
 0x97e   : > { %v14623_v9 = vpop.f32.mrf.mxu0  ;;  %v12314_v3 = vadd.f32 %v14593_v63, %v11844_v47  ;;  %v12348_v36 = vadd.f32 %v21804_v49, %v12309_v62 }
 0x97f   : > { %12646 = vst.msk [vmem:[%s21831_s21 + $0xb8] sm:$0xff] %vm6425_vm8, %v12614_v7  ;;  %v12569_v33 = vadd.f32 %v14623_v9, %v21815_v46  ;;  %v12612_v20 = vadd.f32 %v12548_v26, %v12344_v43  ;;  %v12269_v1 = vpop.f32.mrf.mxu1 }
 0x980   : > { %v12560_v25 = vpop.f32.mrf.mxu0  ;;  %v12312_v0 = vadd.f32 %v12269_v1, %v11842_v37  ;;  %v12353_v55 = vadd.f32 %v21804_v49, %v12314_v3 }
 0x981   : > { %12644 = vst.msk [vmem:[%s21831_s21 + $0xa8] sm:$0xff] %vm6425_vm8, %v12612_v20  ;;  %v12561_v35 = vadd.f32 %v21815_v46, %v12560_v25  ;;  %v12617_v21 = vadd.f32 %v12569_v33, %v12349_v18  ;;  %v14594_v45 = vpop.f32.mrf.mxu1 }
 0x982   : > { %v14624_v57 = vpop.f32.mrf.mxu0  ;;  %v12315_v50 = vadd.f32 %v14594_v45, %v11845_v56  ;;  %v12351_v8 = vadd.f32 %v21804_v49, %v12312_v0 }
 0x983   : > { %12649 = vst.msk [vmem:[%s21831_s21 + $0xd0] sm:$0xff] %vm6425_vm8, %v12617_v21  ;;  %v12572_v15 = vadd.f32 %v14624_v57, %v21815_v46  ;;  %v12615_v4 = vadd.f32 %v12561_v35, %v12347_v13  ;;  %v12272_v24 = vpop.f32.mrf.mxu1 }
 0x984   : > { %v12563_v40 = vpop.f32.mrf.mxu0  ;;  %v12313_v48 = vadd.f32 %v12272_v24, %v11843_v12  ;;  %v12354_v11 = vadd.f32 %v21804_v49, %v12315_v50 }
 0x985   : > { %12647 = vst.msk [vmem:[%s21831_s21 + $0xc0] sm:$0xff] %vm6425_vm8, %v12615_v4  ;;  %v12564_v5 = vadd.f32 %v21815_v46, %v12563_v40  ;;  %v12618_v17 = vadd.f32 %v12572_v15, %v12350_v28 }
 0x986   : > { %v14627_v60 = vpop.f32.mrf.mxu0  ;;  %v12352_v16 = vadd.f32 %v21804_v49, %v12313_v48 }
 0x987   : > { %12650 = vst.msk [vmem:[%s21831_s21 + $0xd8] sm:$0xff] %vm6425_vm8, %v12618_v17  ;;  %v12585_v22 = vadd.f32 %v14627_v60, %v21815_v46  ;;  %v12616_v61 = vadd.f32 %v12564_v5, %v12348_v36 }
 0x988   : > { %v12576_v19 = vpop.f32.mrf.mxu0 }
 0x989   : > { %12648 = vst.msk [vmem:[%s21831_s21 + $0xc8] sm:$0xff] %vm6425_vm8, %v12616_v61  ;;  %v12577_v31 = vadd.f32 %v21815_v46, %v12576_v19  ;;  %v12621_v41 = vadd.f32 %v12585_v22, %v12353_v55 }
 0x98a   : > { %v14628_v39 = vpop.f32.mrf.mxu0 }
 0x98b   : > { %12653 = vst.msk [vmem:[%s21831_s21 + $0xf0] sm:$0xff] %vm6425_vm8, %v12621_v41  ;;  %v12588_v30 = vadd.f32 %v14628_v39, %v21815_v46  ;;  %v12619_v58 = vadd.f32 %v12577_v31, %v12351_v8 }
 0x98c   : > { %v12579_v52 = vpop.f32.mrf.mxu0 }
 0x98d   : > { %12651 = vst.msk [vmem:[%s21831_s21 + $0xe0] sm:$0xff] %vm6425_vm8, %v12619_v58  ;;  %v12580_v42 = vadd.f32 %v21815_v46, %v12579_v52  ;;  %v12622_v23 = vadd.f32 %v12588_v30, %v12354_v11 }
 0x98f   : > { %12654 = vst.msk [vmem:[%s21831_s21 + $0xf8] sm:$0xff] %vm6425_vm8, %v12622_v23  ;;  %v12620_v43 = vadd.f32 %v12580_v42, %v12352_v16 }
 0x991   : > { %12652 = vst.msk [vmem:[%s21831_s21 + $0xe8] sm:$0xff] %vm6425_vm8, %v12620_v43 }
 0x992 PF: > { %s23_s25 = sadd.s32 1, %s15064_s25  }
 0x993   : > { %p20_p4 = scmp.ge.s32.totalorder %s23_s25, 4  }
 0x995   :  { %22 = sbr.rel (!%p20_p4) target bundleno = 1 (0x1), region = 124 }

</bundles_post_ra>
